<compile_context>
chip_gen: v7x
topology: tpu7x:2x2x1
jax: 0.10.0
libtpu: 0.0.40
codegen_flags: <defaults>
</compile_context>

<pallas_src>
import jax
import jax.numpy as jnp
from jax.experimental import pallas as pl
from jax.experimental.pallas import tpu as pltpu

NOISE_DIM = 64
ATTRI_DIM = 64
DIN = NOISE_DIM + ATTRI_DIM          # 128
INPUT_SHAPE = 59                     # true generator output width
OUT_PAD = 128                        # lane-padded layer-3 width (59 -> 128)
HIDDEN = 2048
TN = 1024                            # hidden-column slab width
NUM_SLABS = HIDDEN // TN             # 2


def _generator_kernel(x_ref, w1_ref, b1_ref, w2_ref, b2_ref, w3_ref, out_ref):
    # Layer 1 (full width). Cheap (~4 MFLOP); recomputed per independent slab.
    h1 = jnp.dot(x_ref[...], w1_ref[...],
                 preferred_element_type=jnp.float32) + b1_ref[...]
    h1 = jnp.where(h1 > 0, h1, 0.2 * h1)                  # LeakyReLU(0.2)

    # Layer 2: one TN-wide slab of the 2048-wide hidden activation.
    h2 = jnp.dot(h1.astype(jnp.bfloat16), w2_ref[0],
                 preferred_element_type=jnp.float32) + b2_ref[...]
    h2 = jnp.where(h2 > 0, h2, 0.2 * h2)                  # LeakyReLU(0.2)

    # Layer 3: partial contribution of this slab (lane-padded to 128 cols).
    partial = jnp.dot(h2.astype(jnp.bfloat16), w3_ref[...],
                      preferred_element_type=jnp.float32)
    out_ref[0] = partial.astype(out_ref.dtype)


@jax.jit
def generator_forward(noise, attri, kparams):
    """kparams must come from prepare_params (bf16 / slab-major layout)."""
    w1, b1, w2_slabs, b2, w3_pad, b3 = kparams
    x = jnp.concatenate([attri, noise], axis=-1).astype(jnp.bfloat16)  # (B, 128)
    B, din = x.shape
    assert din == DIN
    assert B % 8 == 0, "batch must be a multiple of 8 for (8,128) tiling"

    weight_bytes = 2 * (DIN * HIDDEN + HIDDEN * HIDDEN + HIDDEN * OUT_PAD)
    cost = pl.CostEstimate(
        flops=2 * B * (DIN * HIDDEN + HIDDEN * HIDDEN + HIDDEN * OUT_PAD),
        transcendentals=0,
        bytes_accessed=weight_bytes + 4 * NUM_SLABS * B * OUT_PAD,
    )

    partials = pl.pallas_call(
        _generator_kernel,
        out_shape=jax.ShapeDtypeStruct((NUM_SLABS, B, OUT_PAD), jnp.float32),
        grid_spec=pltpu.PrefetchScalarGridSpec(
            num_scalar_prefetch=0,
            grid=(NUM_SLABS,),
            in_specs=[
                pl.BlockSpec((B, DIN), lambda j: (0, 0)),            # x (bf16)
                pl.BlockSpec((DIN, HIDDEN), lambda j: (0, 0)),       # W1 (bf16)
                pl.BlockSpec((1, HIDDEN), lambda j: (0, 0)),         # b1 (f32)
                pl.BlockSpec((1, HIDDEN, TN), lambda j: (j, 0, 0)),  # W2 slab (contiguous bf16)
                pl.BlockSpec((1, TN), lambda j: (0, j)),             # b2 slab (f32)
                pl.BlockSpec((TN, OUT_PAD), lambda j: (j, 0)),       # W3 row slab (bf16, padded)
            ],
            out_specs=pl.BlockSpec((1, B, OUT_PAD), lambda j: (j, 0, 0)),
        ),
        compiler_params=pltpu.CompilerParams(
            dimension_semantics=("parallel",),   # slabs independent -> both TCs on v7x
            vmem_limit_bytes=40 * 1024 * 1024,
        ),
        cost_estimate=cost,
    )(x, w1, b1, w2_slabs, b2, w3_pad)

    # Combine the per-slab partials, drop the lane padding, add final bias.
    return partials.sum(axis=0)[:, :INPUT_SHAPE] + b3    # (B, 59)


def init_params(key):
    """Deterministic synthetic f32 weights (module shapes; not a checkpoint).
    Weights stored as (in_features, out_features), i.e. y = x @ W + b."""
    k1, k2, k3, k4, k5, k6 = jax.random.split(key, 6)
    w1 = jax.random.normal(k1, (DIN, HIDDEN), jnp.float32) * (1.0 / jnp.sqrt(DIN))
    b1 = jax.random.normal(k2, (1, HIDDEN), jnp.float32) * 0.01
    w2 = jax.random.normal(k3, (HIDDEN, HIDDEN), jnp.float32) * (1.0 / jnp.sqrt(HIDDEN))
    b2 = jax.random.normal(k4, (1, HIDDEN), jnp.float32) * 0.01
    w3 = jax.random.normal(k5, (HIDDEN, INPUT_SHAPE), jnp.float32) * (1.0 / jnp.sqrt(HIDDEN))
    b3 = jax.random.normal(k6, (1, INPUT_SHAPE), jnp.float32) * 0.01
    return (w1, b1, w2, b2, w3, b3)


def prepare_params(params_f32):
    """One-time conversion: module (f32) params -> kernel streaming layout."""
    w1, b1, w2, b2, w3, b3 = params_f32
    w1_bf = w1.astype(jnp.bfloat16)                                        # (128, 2048)
    # Column slab j of W2 laid out contiguously: w2_slabs[j, i, t] = w2[i, j*TN + t]
    w2_slabs = jnp.transpose(
        w2.reshape(HIDDEN, NUM_SLABS, TN), (1, 0, 2)).astype(jnp.bfloat16)  # (2, 2048, TN)
    # Zero-pad W3 columns 59 -> 128 so the layer-3 path is lane-dense.
    w3_pad = jnp.pad(
        w3, ((0, 0), (0, OUT_PAD - INPUT_SHAPE))).astype(jnp.bfloat16)      # (2048, 128)
    return (w1_bf, b1, w2_slabs, b2, w3_pad, b3)


def reference_forward_bf16(noise, attri, params_f32):
    """Pure-JAX reference mirroring the kernel's bf16 weight streaming."""
    w1, b1, w2, b2, w3, b3 = params_f32
    x = jnp.concatenate([attri, noise], axis=-1).astype(jnp.bfloat16)
    h1 = jnp.dot(x, w1.astype(jnp.bfloat16),
                 preferred_element_type=jnp.float32) + b1
    h1 = jnp.where(h1 > 0, h1, 0.2 * h1)
    h2 = jnp.dot(h1.astype(jnp.bfloat16), w2.astype(jnp.bfloat16),
                 preferred_element_type=jnp.float32) + b2
    h2 = jnp.where(h2 > 0, h2, 0.2 * h2)
    return jnp.dot(h2.astype(jnp.bfloat16), w3.astype(jnp.bfloat16),
                   preferred_element_type=jnp.float32) + b3


if __name__ == "__main__":
    key = jax.random.PRNGKey(0)
    kp, kn, ka = jax.random.split(key, 3)

    B = 8
    params_f32 = init_params(kp)
    kparams = prepare_params(params_f32)   # one-time bf16 / layout conversion
    noise = jax.random.normal(kn, (B, NOISE_DIM), jnp.float32)
    attri = jax.random.normal(ka, (B, ATTRI_DIM), jnp.float32)

    out = generator_forward(noise, attri, kparams)
    jax.block_until_ready(out)

    ref = reference_forward_bf16(noise, attri, params_f32)
    assert out.shape == (B, INPUT_SHAPE), out.shape
    assert jnp.allclose(out, ref, rtol=1e-2, atol=1e-2), \
        float(jnp.max(jnp.abs(out - ref)))

    print("KERNEL_OK")
</pallas_src>

<mosaic_0001>
module attributes {stable_mosaic.version = 11 : i64} {
  func.func @_generator_kernel(%arg0: i32, %arg1: memref<8x128xbf16, #tpu.memory_space<vmem>>, %arg2: memref<128x2048xbf16, #tpu.memory_space<vmem>>, %arg3: memref<1x2048xf32, #tpu.memory_space<vmem>>, %arg4: memref<1x2048x1024xbf16, #tpu.memory_space<vmem>>, %arg5: memref<1x1024xf32, #tpu.memory_space<vmem>>, %arg6: memref<1024x128xbf16, #tpu.memory_space<vmem>>, %arg7: memref<1x8x128xf32, #tpu.memory_space<vmem>>) attributes {dimension_semantics = [#tpu.dimension_semantics<parallel>], iteration_bounds = array<i64: 2>, scalar_prefetch = 0 : i64, scratch_operands = 0 : i64, tpu.core_type = #tpu.core_type<tc>, window_params = [{pipeline_mode = #tpu.pipeline_mode<synchronous>, transform_indices = @transform_0, window_bounds = array<i64: 8, 128>}, {pipeline_mode = #tpu.pipeline_mode<synchronous>, transform_indices = @transform_1, window_bounds = array<i64: 128, 2048>}, {pipeline_mode = #tpu.pipeline_mode<synchronous>, transform_indices = @transform_2, window_bounds = array<i64: 1, 2048>}, {transform_indices = @transform_3, window_bounds = array<i64: 1, 2048, 1024>}, {transform_indices = @transform_4, window_bounds = array<i64: 1, 1024>}, {transform_indices = @transform_5, window_bounds = array<i64: 1024, 128>}, {transform_indices = @transform_6, window_bounds = array<i64: 1, 8, 128>}]} {
    %c0 = arith.constant 0 : index
    %c0_0 = arith.constant 0 : index
    %0 = vector.load %arg1[%c0, %c0_0] : memref<8x128xbf16, #tpu.memory_space<vmem>>, vector<8x128xbf16>
    %c0_1 = arith.constant 0 : index
    %c0_2 = arith.constant 0 : index
    %1 = vector.load %arg2[%c0_1, %c0_2] : memref<128x2048xbf16, #tpu.memory_space<vmem>>, vector<128x2048xbf16>
    %cst = arith.constant dense<0.000000e+00> : vector<8x2048xf32>
    %2 = tpu.matmul %0, %1, %cst {dimension_numbers = #tpu.dot_dimension_numbers<[1], [0], [0], [1], [0, 0, 1, 1], [], []>} : vector<8x128xbf16>, vector<128x2048xbf16>, vector<8x2048xf32> -> vector<8x2048xf32>
    %c0_3 = arith.constant 0 : index
    %c0_4 = arith.constant 0 : index
    %3 = vector.load %arg3[%c0_3, %c0_4] : memref<1x2048xf32, #tpu.memory_space<vmem>>, vector<1x2048xf32>
    %4 = vector.broadcast %3 : vector<1x2048xf32> to vector<8x2048xf32>
    %5 = arith.addf %2, %4 : vector<8x2048xf32>
    %cst_5 = arith.constant 0.000000e+00 : f32
    %6 = vector.broadcast %cst_5 : f32 to vector<8x2048xf32>
    %7 = arith.cmpf ogt, %5, %6 : vector<8x2048xf32>
    %cst_6 = arith.constant 2.000000e-01 : f32
    %8 = vector.broadcast %cst_6 : f32 to vector<8x2048xf32>
    %9 = arith.mulf %8, %5 : vector<8x2048xf32>
    %10 = arith.select %7, %5, %9 : vector<8x2048xi1>, vector<8x2048xf32>
    %11 = arith.truncf %10 : vector<8x2048xf32> to vector<8x2048xbf16>
    %c0_7 = arith.constant 0 : index
    %c0_8 = arith.constant 0 : index
    %c0_9 = arith.constant 0 : index
    %12 = vector.load %arg4[%c0_7, %c0_8, %c0_9] : memref<1x2048x1024xbf16, #tpu.memory_space<vmem>>, vector<1x2048x1024xbf16>
    %13 = vector.shape_cast %12 : vector<1x2048x1024xbf16> to vector<2048x1024xbf16>
    %cst_10 = arith.constant dense<0.000000e+00> : vector<8x1024xf32>
    %14 = tpu.matmul %11, %13, %cst_10 {dimension_numbers = #tpu.dot_dimension_numbers<[1], [0], [0], [1], [0, 0, 1, 1], [], []>} : vector<8x2048xbf16>, vector<2048x1024xbf16>, vector<8x1024xf32> -> vector<8x1024xf32>
    %c0_11 = arith.constant 0 : index
    %c0_12 = arith.constant 0 : index
    %15 = vector.load %arg5[%c0_11, %c0_12] : memref<1x1024xf32, #tpu.memory_space<vmem>>, vector<1x1024xf32>
    %16 = vector.broadcast %15 : vector<1x1024xf32> to vector<8x1024xf32>
    %17 = arith.addf %14, %16 : vector<8x1024xf32>
    %cst_13 = arith.constant 0.000000e+00 : f32
    %18 = vector.broadcast %cst_13 : f32 to vector<8x1024xf32>
    %19 = arith.cmpf ogt, %17, %18 : vector<8x1024xf32>
    %cst_14 = arith.constant 2.000000e-01 : f32
    %20 = vector.broadcast %cst_14 : f32 to vector<8x1024xf32>
    %21 = arith.mulf %20, %17 : vector<8x1024xf32>
    %22 = arith.select %19, %17, %21 : vector<8x1024xi1>, vector<8x1024xf32>
    %23 = arith.truncf %22 : vector<8x1024xf32> to vector<8x1024xbf16>
    %c0_15 = arith.constant 0 : index
    %c0_16 = arith.constant 0 : index
    %24 = vector.load %arg6[%c0_15, %c0_16] : memref<1024x128xbf16, #tpu.memory_space<vmem>>, vector<1024x128xbf16>
    %cst_17 = arith.constant dense<0.000000e+00> : vector<8x128xf32>
    %25 = tpu.matmul %23, %24, %cst_17 {dimension_numbers = #tpu.dot_dimension_numbers<[1], [0], [0], [1], [0, 0, 1, 1], [], []>} : vector<8x1024xbf16>, vector<1024x128xbf16>, vector<8x128xf32> -> vector<8x128xf32>
    %c0_18 = arith.constant 0 : index
    %c0_19 = arith.constant 0 : index
    %c0_20 = arith.constant 0 : index
    %26 = vector.load %arg7[%c0_18, %c0_19, %c0_20] : memref<1x8x128xf32, #tpu.memory_space<vmem>>, vector<1x8x128xf32>
    %27 = vector.shape_cast %26 : vector<1x8x128xf32> to vector<8x128xf32>
    %28 = vector.shape_cast %25 : vector<8x128xf32> to vector<1x8x128xf32>
    tpu.vector_store %arg7[%c0_18, %c0_19, %c0_20], %28 {strides = array<i32>} : memref<1x8x128xf32, #tpu.memory_space<vmem>>, vector<1x8x128xf32>,
    return
  }
  func.func @transform_0(%arg0: i32) -> (i32, i32) {
    %c0_i32 = arith.constant 0 : i32
    %c0_i32_0 = arith.constant 0 : i32
    %c0_i32_1 = arith.constant 0 : i32
    return %c0_i32, %c0_i32_0 : i32, i32
  }
  func.func @transform_1(%arg0: i32) -> (i32, i32) {
    %c0_i32 = arith.constant 0 : i32
    %c0_i32_0 = arith.constant 0 : i32
    %c0_i32_1 = arith.constant 0 : i32
    return %c0_i32, %c0_i32_0 : i32, i32
  }
  func.func @transform_2(%arg0: i32) -> (i32, i32) {
    %c0_i32 = arith.constant 0 : i32
    %c0_i32_0 = arith.constant 0 : i32
    %c0_i32_1 = arith.constant 0 : i32
    return %c0_i32, %c0_i32_0 : i32, i32
  }
  func.func @transform_3(%arg0: i32) -> (i32, i32, i32) {
    %c0_i32 = arith.constant 0 : i32
    %c0_i32_0 = arith.constant 0 : i32
    %c0_i32_1 = arith.constant 0 : i32
    return %arg0, %c0_i32, %c0_i32_0 : i32, i32, i32
  }
  func.func @transform_4(%arg0: i32) -> (i32, i32) {
    %c0_i32 = arith.constant 0 : i32
    %c0_i32_0 = arith.constant 0 : i32
    return %c0_i32, %arg0 : i32, i32
  }
  func.func @transform_5(%arg0: i32) -> (i32, i32) {
    %c0_i32 = arith.constant 0 : i32
    %c0_i32_0 = arith.constant 0 : i32
    return %arg0, %c0_i32 : i32, i32
  }
  func.func @transform_6(%arg0: i32) -> (i32, i32, i32) {
    %c0_i32 = arith.constant 0 : i32
    %c0_i32_0 = arith.constant 0 : i32
    %c0_i32_1 = arith.constant 0 : i32
    return %arg0, %c0_i32, %c0_i32_0 : i32, i32, i32
  }
}

</mosaic_0001>

<bundles_post_ra>
// kernel: generator_forward.1
= control target key start
LH: loop header
LB: loop body
LE: loop exit
PB: predicated region body
PF: predicated region fallthrough
CT: control target
= control target key end

     0   :  { %s13387_s0 = inlined_call_operand.vmem [shape: bf16[8,128], index: 0, kind: input, shape index: {}]   ;;  %s13388_s1 = inlined_call_operand.hbm [shape: bf16[128,2048], index: 1, kind: input, shape index: {}]   ;;  %s13389_s2 = inlined_call_operand.hbm [shape: f32[1,2048], index: 2, kind: input, shape index: {}]   ;;  %s13390_s3 = inlined_call_operand.hbm [shape: bf16[2,2048,1024], index: 3, kind: input, shape index: {}]   ;;  %s13391_s4 = inlined_call_operand.hbm [shape: f32[1,2048], index: 4, kind: input, shape index: {}]   ;;  %s13392_s5 = inlined_call_operand.hbm [shape: bf16[2048,128], index: 5, kind: input, shape index: {}]   ;;  %s13393_s6 = inlined_call_operand.vmem [shape: f32[2,8,128], index: 6, kind: output, shape index: {}]  }
   0x1   :  { %13406 = sst [smem:[#allocation14_spill]] %s13388_s1 }
   0x2   :  { %11 = vsyncpa [#allocation3], 0 }
   0x3   :  { %12 = vsyncpa [#allocation5], 0  ;;  %s11770_s21 = smov 0   ;;  %s11772_s22 = smov 0  }
   0x4   :  { %s11774_s23 = smov 0   ;;  %s11776_s24 = smov 0  }
   0x5 LB: > { %13407 = sst [smem:[#allocation12_spill]] %s11718_s23  ;;  %s11789_s25 = sadd.s32 4294967295, %s11722_s24   ;;  %s11722_s24 = sphi %s11776_s24, %s13433_s24   ;;  %s11718_s23 = sphi %s11774_s23, %s13430_s23   ;;  %s11714_s22 = sphi %s11772_s22, %s13432_s22   ;;  %s11710_s21 = sphi %s11770_s21, %s13431_s21  }
   0x6   : > { %s11792_s26 = sadd.s32 1, %s11722_s24   ;;  %s88_s28 = sadd.s32 1, %s11718_s23 }
   0x7   : > { %s85_s27 = ssub.s32 %s11722_s24, %s11792_s26  ;;  %p95_p1 = scmp.ne.s32.totalorder %s11718_s23, %s11714_s22 }
   0x8   : > { %p86_p0 = scmp.eq.s32.totalorder %s85_s27, 0  ;;  %p96_p2 = scmp.eq.s32.totalorder %s11722_s24, 0 }
   0x9   : > { %p101_p3 = scmp.ne.s32.totalorder %s11714_s22, %s11710_s21  ;;  %p13394_p5 = scmp.eq.s32.totalorder %s11789_s25, 0 }
   0xa   : > { %s11802_s29 = scalar_select %p86_p0, %s11718_s23, %s88_s28  }
   0xb   : > { %p11804_p4 = por %p96_p2, %p95_p1  ;;  %p9943_p6 = scmp.ge.s32.totalorder %s11722_s24, 1 }
   0xc   : > { %13408 = sst [smem:[#allocation13_spill]] %s11802_s29  ;;  %p190_p7 = scmp.lt.s32.totalorder %s11722_s24, 3 }
   0xd   : > { %p11813_p8 = por %p13394_p5, %p101_p3  ;;  %s11724_s9 = smov [#allocation2]  }
   0xe   : > { %p11817_p9 = pnand %p9943_p6, %p190_p7  ;;  %s205_s10 = sshll.u32 %s11724_s9, 4  ;;  %s206_s10 = int_to_ptr.vmem [resolvable:$true] %s205_s10 }
   0xf   : > { %s13410_s7 = scalar_select %p11813_p8, 1, 0 }
  0x10   : > { %s13411_s8 = scalar_select %p11817_p9, 1, 0 }
  0x11   : > { %p11406_p10 = pneg %p11817_p9  ;;  %p11425_p12 = scmp.lt.s32.totalorder %s11722_s24, 2 }
  0x12   : > { %s230_s12 = sand.u32 1, %s11722_s24   ;;  %s11832_s13 = sand.u32 1, %s11718_s23  }
  0x13   : > { %p11825_p11 = pnand %p11406_p10, %p13394_p5  ;;  %p11836_p13 = pnand %p11425_p12, %p11804_p4 }
  0x14   : > { %s13414_s1 = sld [smem:[#allocation14_spill]] }
  0x15   : > { %s13412_s11 = scalar_select %p11825_p11, 1, 0 }
  0x16   : > { %s13413_s14 = scalar_select %p11836_p13, 1, 0 }
  0x17   : > { %p13399_p1 = pneg %p11825_p11 }
  0x1a   : > { %s11534_s17 = scalar_lea.hbm %s13414_s1, 16384 }
  0x1b   : > { %p11535_p0 = scmp.ne.s32.totalorder %s13414_s1, %s11534_s17  ;;  %p11541_p4 = scmp.lt.u32.totalorder %s11534_s17, %s13414_s1 }
  0x1d   : > { %p11537_p2 = pnand %p13399_p1, %p11535_p0 }
  0x1f   : > { %p11538_p3 = pneg %p11537_p2 }
  0x21   : > { %p11543_p6 = pnand %p11541_p4, %p11538_p3 }
  0x23   : > { %11546 = shalt.err (!%p11543_p6)
}
  0x24   : > { %s11547_s27 = scalar_lea.vmem %s206_s10, 16384  ;;  %p11555_p5 = scmp.lt.s32.totalorder %s206_s10, %s206_s10 }
  0x25   : > { %p11548_p7 = scmp.ne.s32.totalorder %s206_s10, %s11547_s27  ;;  %p11556_p8 = scmp.lt.s32.totalorder %s11547_s27, %s11547_s27 }
  0x27   : > { %p11550_p10 = pnand %p11548_p7, %p13399_p1  ;;  %p11557_p9 = por %p11556_p8, %p11555_p5 }
  0x29   : > { %p11551_p12 = pneg %p11550_p10 }
  0x2b   : > { %p11558_p13 = pnand %p11557_p9, %p11551_p12 }
  0x2d   : > { %11561 = shalt.err (!%p11558_p13)
}
  0x2e   : > { %s11725_s28 = smov 1024   ;;  %s13402_s30 = smov 64  }
  0x2f   : > { %11409 = dma.hbm_to_vmem [thread:$0]  (!%p11825_p11), %s13414_s1, 16384, %s206_s10, [#allocation3], %s11725_s28, %s11725_s28, %s13402_s30  }
  0x30   : > { %s9947_s16 = sshll.u32 %s11832_s13, 13  ;;  %s11181_s17 = sshll.u32 %s11722_s24, 17 }
  0x31   : > { %s11868_s20 = scalar_lea.hbm %s13390_s3, %s11181_s17  ;;  %s234_s21 = scalar_lea.vmem [#allocation6], %s9947_s16 }
  0x32   : > { %s241_s27 = sshll.u32 %s234_s21, 4  ;;  %s11872_s29 = scalar_lea.sflag [#allocation3], %s230_s12  ;;  %s11870_s27 = int_to_ptr.vmem [resolvable:$true] %s241_s27 }
  0x33   : > { %s11562_s23 = scalar_lea.hbm %s11868_s20, 131072  ;;  %p13415_p8 = scmp.ne.s32.totalorder %s13413_s14, 0 }
  0x34   : > { %p11563_p5 = scmp.ne.s32.totalorder %s11868_s20, %s11562_s23  ;;  %s11567_s15 = scalar_lea.hbm %s13390_s3, 262144 }
  0x35   : > { %p11878_p9 = pneg %p13415_p8  ;;  %p11568_p2 = scmp.lt.u32.totalorder %s11868_s20, %s13390_s3 }
  0x36   : > { %p11569_p3 = scmp.lt.u32.totalorder %s11567_s15, %s11562_s23  ;;  %p11571_p6 = scmp.lt.u32.totalorder %s11562_s23, %s11868_s20 }
  0x37   : > { %s13416_s10 = scalar_select %p11878_p9, 1, 0 }
  0x38   : > { %p11565_p13 = pnand %p11878_p9, %p11563_p5  ;;  %p11570_p4 = por %p11569_p3, %p11568_p2 }
  0x3a   : > { %p11566_p0 = pneg %p11565_p13  ;;  %p11572_p7 = por %p11571_p6, %p11570_p4 }
  0x3c   : > { %p11573_p10 = pnand %p11572_p7, %p11566_p0 }
  0x3e   : > { %11576 = shalt.err (!%p11573_p10)
}
  0x3f   : > { %s11577_s12 = scalar_lea.vmem %s11870_s27, 131072  ;;  %s11727_s18 = smov [#allocation6]  }
  0x40   : > { %p11578_p12 = scmp.ne.s32.totalorder %s11870_s27, %s11577_s12  ;;  %s11582_s19 = sshll.u32 %s11727_s18, 4  ;;  %s11583_s19 = int_to_ptr.vmem [resolvable:$false] %s11582_s19 }
  0x41   : > { %s11584_s21 = scalar_lea.vmem %s11583_s19, 262144  ;;  %p11585_p1 = scmp.lt.s32.totalorder %s11870_s27, %s11583_s19 }
  0x42   : > { %p11580_p5 = pnand %p11578_p12, %p11878_p9  ;;  %p11586_p11 = scmp.lt.s32.totalorder %s11584_s21, %s11577_s12 }
  0x44   : > { %p11581_p13 = pneg %p11580_p5  ;;  %p11587_p2 = por %p11586_p11, %p11585_p1 }
  0x46   : > { %p11588_p3 = pnand %p11587_p2, %p11581_p13 }
  0x48   : > { %11591 = shalt.err (!%p11588_p3)
}
  0x49   : > { %s11728_s23 = smov 512   ;;  %s11729_s28 = smov 32  }
  0x4a   : > { %11416 = dma.hbm_to_vmem [thread:$0]  (!%p13415_p8), %s11868_s20, 131072, %s11870_s27, %s11872_s29, %s11728_s23, %s11728_s23, %s11729_s28  }
  0x4b   : > { %s9950_s9 = sshll.u32 %s11832_s13, 3  ;;  %s11182_s15 = sshll.u32 %s11722_s24, 7 }
  0x4c   : > { %s11907_s12 = scalar_lea.hbm %s13391_s4, %s11182_s15  ;;  %s255_s18 = scalar_lea.vmem [#allocation7], %s9950_s9 }
  0x4d   : > { %s263_s19 = sshll.u32 %s255_s18, 4  ;;  %s11730_s21 = smov [#allocation4]   ;;  %s11909_s19 = int_to_ptr.vmem [resolvable:$true] %s263_s19 }
  0x4e   : > { %s219_s30 = sshll.u32 %s11730_s21, 4  ;;  %s11592_s1 = scalar_lea.hbm %s11907_s12, 128  ;;  %s220_s30 = int_to_ptr.vmem [resolvable:$true] %s219_s30 }
  0x4f   : > { %p11593_p11 = scmp.ne.s32.totalorder %s11907_s12, %s11592_s1  ;;  %s11597_s23 = scalar_lea.hbm %s13391_s4, 256 }
  0x50   : > { %p11598_p4 = scmp.lt.u32.totalorder %s11907_s12, %s13391_s4  ;;  %p11599_p6 = scmp.lt.u32.totalorder %s11597_s23, %s11592_s1 }
  0x51   : > { %p11595_p1 = pnand %p11593_p11, %p11878_p9  ;;  %p11601_p10 = scmp.lt.u32.totalorder %s11592_s1, %s11907_s12 }
  0x52   : > { %p11600_p7 = por %p11599_p6, %p11598_p4 }
  0x53   : > { %p11596_p0 = pneg %p11595_p1 }
  0x54   : > { %p11602_p12 = por %p11601_p10, %p11600_p7 }
  0x56   : > { %p11603_p5 = pnand %p11602_p12, %p11596_p0 }
  0x58   : > { %11606 = shalt.err (!%p11603_p5)
}
  0x59   : > { %s11607_s9 = scalar_lea.vmem %s11909_s19, 128  ;;  %s11731_s16 = smov [#allocation7]  }
  0x5a   : > { %p11608_p13 = scmp.ne.s32.totalorder %s11909_s19, %s11607_s9  ;;  %s11612_s17 = sshll.u32 %s11731_s16, 4  ;;  %s11613_s17 = int_to_ptr.vmem [resolvable:$false] %s11612_s17 }
  0x5b   : > { %s11614_s18 = scalar_lea.vmem %s11613_s17, 256  ;;  %p11615_p11 = scmp.lt.s32.totalorder %s11909_s19, %s11613_s17 }
  0x5c   : > { %p11610_p2 = pnand %p11608_p13, %p11878_p9  ;;  %p11616_p1 = scmp.lt.s32.totalorder %s11614_s18, %s11607_s9 }
  0x5e   : > { %p11611_p3 = pneg %p11610_p2  ;;  %p11617_p4 = por %p11616_p1, %p11615_p11 }
  0x60   : > { %p11618_p6 = pnand %p11617_p4, %p11611_p3 }
  0x62   : > { %11621 = shalt.err (!%p11618_p6)
}
  0x63   : > { %11419 = dma.hbm_to_vmem [thread:$0]  (!%p13415_p8), %s11907_s12, 128, %s11909_s19, %s11872_s29  }
  0x64   : > { %s9953_s1 = sshll.u32 %s11832_s13, 9  ;;  %s11622_s27 = scalar_lea.hbm %s13389_s2, 256 }
  0x65   : > { %p11623_p0 = scmp.ne.s32.totalorder %s13389_s2, %s11622_s27  ;;  %p13417_p7 = scmp.ne.s32.totalorder %s13412_s11, 0 }
  0x66   : > { %p11629_p13 = scmp.lt.u32.totalorder %s11622_s27, %s13389_s2 }
  0x67   : > { %p13418_p10 = pneg %p13417_p7 }
  0x69   : > { %p11625_p12 = pnand %p11623_p0, %p13418_p10 }
  0x6b   : > { %p11626_p5 = pneg %p11625_p12 }
  0x6d   : > { %p11631_p2 = pnand %p11629_p13, %p11626_p5 }
  0x6f   : > { %11634 = shalt.err (!%p11631_p2)
}
  0x70   : > { %s11635_s12 = scalar_lea.vmem %s220_s30, 256  ;;  %p13419_p11 = pmov %p13418_p10 }
  0x71   : > { %p11636_p3 = scmp.ne.s32.totalorder %s220_s30, %s11635_s12  ;;  %p11643_p6 = scmp.lt.s32.totalorder %s220_s30, %s220_s30 }
  0x72   : > { %p11644_p8 = scmp.lt.s32.totalorder %s11635_s12, %s11635_s12 }
  0x73   : > { %p11638_p1 = pnand %p11636_p3, %p13419_p11 }
  0x74   : > { %p11645_p9 = por %p11644_p8, %p11643_p6 }
  0x75   : > { %p11639_p4 = pneg %p11638_p1 }
  0x77   : > { %p11646_p0 = pnand %p11645_p9, %p11639_p4 }
  0x79   : > { %11649 = shalt.err (!%p11646_p0)
}
  0x7a   : > { %11412 = dma.hbm_to_vmem [thread:$0]  (!%p13417_p7), %s13389_s2, 256, %s220_s30, [#allocation5]  }
  0x7b   : > { %s11183_s16 = sshll.u32 %s11722_s24, 13  ;;  %s274_s20 = scalar_lea.vmem [#allocation8], %s9953_s1 }
  0x7c   : > { %s11958_s21 = scalar_lea.hbm %s13392_s5, %s11183_s16  ;;  %s281_s27 = sshll.u32 %s274_s20, 4  ;;  %s11960_s27 = int_to_ptr.vmem [resolvable:$true] %s281_s27 }
  0x7d   : > { %s11650_s11 = scalar_lea.hbm %s11958_s21, 8192  ;;  %p13420_p9 = scmp.ne.s32.totalorder %s13416_s10, 0 }
  0x7e   : > { %p11651_p8 = scmp.ne.s32.totalorder %s11958_s21, %s11650_s11  ;;  %s11655_s23 = scalar_lea.hbm %s13392_s5, 16384 }
  0x7f   : > { %p11656_p7 = scmp.lt.u32.totalorder %s11958_s21, %s13392_s5  ;;  %p11657_p5 = scmp.lt.u32.totalorder %s11655_s23, %s11650_s11 }
  0x80   : > { %p11653_p10 = pnand %p11651_p8, %p13420_p9  ;;  %p11659_p2 = scmp.lt.u32.totalorder %s11650_s11, %s11958_s21 }
  0x81   : > { %p11658_p13 = por %p11657_p5, %p11656_p7 }
  0x82   : > { %p11654_p12 = pneg %p11653_p10 }
  0x83   : > { %p11660_p3 = por %p11659_p2, %p11658_p13 }
  0x85   : > { %p11661_p11 = pnand %p11660_p3, %p11654_p12 }
  0x87   : > { %11664 = shalt.err (!%p11661_p11)
}
  0x88   : > { %s11665_s1 = scalar_lea.vmem %s11960_s27, 8192  ;;  %s11732_s9 = smov [#allocation8]  }
  0x89   : > { %p11666_p1 = scmp.ne.s32.totalorder %s11960_s27, %s11665_s1  ;;  %s11670_s12 = sshll.u32 %s11732_s9, 4  ;;  %s11671_s12 = int_to_ptr.vmem [resolvable:$false] %s11670_s12 }
  0x8a   : > { %s11672_s13 = scalar_lea.vmem %s11671_s12, 16384  ;;  %p11673_p0 = scmp.lt.s32.totalorder %s11960_s27, %s11671_s12 }
  0x8b   : > { %p11668_p4 = pnand %p11666_p1, %p13420_p9  ;;  %p11674_p8 = scmp.lt.s32.totalorder %s11672_s13, %s11665_s1 }
  0x8d   : > { %p11669_p6 = pneg %p11668_p4  ;;  %p11675_p10 = por %p11674_p8, %p11673_p0 }
  0x8f   : > { %p11676_p7 = pnand %p11675_p10, %p11669_p6 }
  0x91   : > { %11679 = shalt.err (!%p11676_p7)
}
  0x92   : > { %s11733_s19 = smov 4   ;;  %p13421_p12 = scmp.ne.s32.totalorder %s13413_s14, 0 }
  0x93   : > { %s13422_s16 = smov 64   ;;  %p13423_p9 = scmp.ne.s32.totalorder %s13411_s8, 0 }
  0x94   : > { %11422 = dma.hbm_to_vmem [thread:$0]  (!%p13421_p12), %s11958_s21, 8192, %s11960_s27, %s11872_s29, %s13422_s16, %s13422_s16, %s11733_s19  }
  0x95   : > { %293 = sbr.rel (%p13423_p9) target bundleno = 1823 (0x71f), region = 44  ;;  %p13424_p5 = scmp.eq.s32.totalorder (!%p13423_p9), %s11789_s25, 0 }
  0x9c   : > { %11697 = dma.done.wait (%p13424_p5), [#allocation3], 16384   ;;  %p13425_p13 = pmov %p13424_p5 }
  0x9d   : > { %p13426_p2 = pmov %p13424_p5 }
  0x9e   : > { %11699 = vsyncadd (%p13425_p13), [#allocation3], 4294950912 }
  0x9f   : > { %11701 = dma.done.wait (%p13426_p2), [#allocation5], 256   ;;  %p13427_p3 = pmov %p13426_p2 }
  0xa0   : > { %s303_s14 = sand.u32 1, %s11789_s25   ;;  %s11998_s29 = sand.u32 1, %s11714_s22  }
  0xa1   : > { %11703 = vsyncadd (%p13427_p3), [#allocation5], 4294967040  ;;  %s9959_s8 = sshll.u32 %s11998_s29, 13  ;;  %s304_s10 = scalar_lea.sflag [#allocation3], %s303_s14 }
  0xa2   : > { %s12001_s17 = scalar_lea.vmem [#allocation6], %s9959_s8  ;;  %p13428_p11 = scmp.ne.s32.totalorder %s13410_s7, 0 }
  0xa4   : > { %11705 = dma.done.wait (%p13428_p11), %s304_s10, 139392  }
  0xa5   : > { %11707 = vsyncadd (%p13428_p11), %s304_s10, 4294827904  ;;  %v11734_v0 = vmov 0   ;;  %v371_v1 = vld [vmem:[#allocation2] sm:$0xff]  ;;  %v372_v14 = vld [vmem:[#allocation2 + $0x8] sm:$0xff]  ;;  %s9961_s21 = sshll.u32 %s11998_s29, 9  ;;  %s9960_s27 = sshll.u32 %s11998_s29, 3 }
  0xa6   : > { %1255 = vmatprep.mubr.bf16.mxu0 %v11734_v0  ;;  %1296 = vmatprep.mubr.bf16.mxu1 %v11734_v0  ;;  %v379_v2 = vld [vmem:[#allocation2 + $0x40] sm:$0xff]  ;;  %v380_v15 = vld [vmem:[#allocation2 + $0x48] sm:$0xff]  ;;  %v373_v58 = vld [vmem:[#allocation2 + $0x10] sm:$0xff]  ;;  %s13155_s20 = scalar_lea.vmem [#allocation8], %s9961_s21  ;;  %s316_s11 = scalar_lea.vmem [#allocation7], %s9960_s27 }
  0xa7   : > { %v387_v3 = vld [vmem:[#allocation2 + $0x80] sm:$0xff]  ;;  %v9964_v4 = vcombine.high %v371_v1, %v379_v2  ;;  %v9963_v5 = vcombine.low %v371_v1, %v379_v2  ;;  %v388_v16 = vld [vmem:[#allocation2 + $0x88] sm:$0xff]  ;;  %v9966_v18 = vcombine.high %v372_v14, %v380_v15  ;;  %v9965_v19 = vcombine.low %v372_v14, %v380_v15  ;;  %v381_v59 = vld [vmem:[#allocation2 + $0x50] sm:$0xff]  ;;  %p365_p1 = scmp.lt.s32.totalorder %s11789_s25, 1 }
  0xa8   : > { %v395_v6 = vld [vmem:[#allocation2 + $0xc0] sm:$0xff]  ;;  %v396_v17 = vld [vmem:[#allocation2 + $0xc8] sm:$0xff]  ;;  %v9968_v1 = vcombine.high %v373_v58, %v381_v59 }
  0xa9   : > { %v9980_v7 = vcombine.high %v387_v3, %v395_v6  ;;  %v403_v8 = vld [vmem:[#allocation2 + $0x100] sm:$0xff]  ;;  %1223 = vmatprep.subr.bf16.mxu0 %v9964_v4  ;;  %v9979_v10 = vcombine.low %v387_v3, %v395_v6  ;;  %v9982_v20 = vcombine.high %v388_v16, %v396_v17  ;;  %v404_v22 = vld [vmem:[#allocation2 + $0x108] sm:$0xff]  ;;  %1264 = vmatprep.subr.bf16.mxu1 %v9966_v18  ;;  %v389_v3 = vld [vmem:[#allocation2 + $0x90] sm:$0xff]  ;;  %s13435_s25 = smov (!%p365_p1, %s11789_s25), 1 }
  0xaa   : > { %v411_v9 = vld [vmem:[#allocation2 + $0x140] sm:$0xff]  ;;  %1224 = vmatpush1.bf16.msra.mxu0 %v9963_v5  ;;  %v412_v23 = vld [vmem:[#allocation2 + $0x148] sm:$0xff]  ;;  %1265 = vmatpush1.bf16.msra.mxu1 %v9965_v19  ;;  %v9981_v27 = vcombine.low %v388_v16, %v396_v17  ;;  %v397_v4 = vld [vmem:[#allocation2 + $0xd0] sm:$0xff]  ;;  %s9962_s30 = sshll.u32 %s13435_s25, 3 }
  0xab   : > { %1225 = vmatprep.subr.bf16.mxu0 %v9980_v7  ;;  %v9996_v11 = vcombine.high %v403_v8, %v411_v9  ;;  %v419_v12 = vld [vmem:[#allocation2 + $0x180] sm:$0xff]  ;;  %v9995_v21 = vcombine.low %v403_v8, %v411_v9  ;;  %1266 = vmatprep.subr.bf16.mxu1 %v9982_v20  ;;  %v9998_v28 = vcombine.high %v404_v22, %v412_v23  ;;  %v420_v30 = vld [vmem:[#allocation2 + $0x188] sm:$0xff]  ;;  %v374_v8 = vld [vmem:[#allocation2 + $0x18] sm:$0xff]  ;;  %s368_s28 = scalar_lea.vmem %s13393_s6, %s9962_s30 }
  0xac   : > { %v427_v13 = vld [vmem:[#allocation2 + $0x1c0] sm:$0xff]  ;;  %v428_v31 = vld [vmem:[#allocation2 + $0x1c8] sm:$0xff]  ;;  %v9997_v35 = vcombine.low %v404_v22, %v412_v23  ;;  %v9967_v7 = vcombine.low %v373_v58, %v381_v59  ;;  %v382_v9 = vld [vmem:[#allocation2 + $0x58] sm:$0xff]  ;;  %v9983_v15 = vcombine.low %v389_v3, %v397_v4 }
  0xad   : > { %v10012_v24 = vcombine.high %v419_v12, %v427_v13  ;;  %v435_v25 = vld [vmem:[#allocation2 + $0x200] sm:$0xff]  ;;  %v10011_v29 = vcombine.low %v419_v12, %v427_v13  ;;  %v10014_v36 = vcombine.high %v420_v30, %v428_v31  ;;  %v436_v38 = vld [vmem:[#allocation2 + $0x208] sm:$0xff]  ;;  %v10013_v43 = vcombine.low %v420_v30, %v428_v31  ;;  %v405_v12 = vld [vmem:[#allocation2 + $0x110] sm:$0xff] }
  0xae   : > { %1226 = vmatpush1.bf16.msra.mxu0 %v9979_v10  ;;  %v443_v26 = vld [vmem:[#allocation2 + $0x240] sm:$0xff]  ;;  %1267 = vmatpush1.bf16.msra.mxu1 %v9981_v27  ;;  %v444_v39 = vld [vmem:[#allocation2 + $0x248] sm:$0xff]  ;;  %v9984_v10 = vcombine.high %v389_v3, %v397_v4  ;;  %v413_v13 = vld [vmem:[#allocation2 + $0x150] sm:$0xff]  ;;  %v9970_v14 = vcombine.high %v374_v8, %v382_v9  ;;  %v9969_v19 = vcombine.low %v374_v8, %v382_v9 }
  0xaf   : > { %1227 = vmatprep.subr.bf16.mxu0 %v9996_v11  ;;  %v10028_v32 = vcombine.high %v435_v25, %v443_v26  ;;  %v451_v33 = vld [vmem:[#allocation2 + $0x280] sm:$0xff]  ;;  %1268 = vmatprep.subr.bf16.mxu1 %v9998_v28  ;;  %v10027_v37 = vcombine.low %v435_v25, %v443_v26  ;;  %v10030_v44 = vcombine.high %v436_v38, %v444_v39  ;;  %v452_v46 = vld [vmem:[#allocation2 + $0x288] sm:$0xff]  ;;  %v390_v16 = vld [vmem:[#allocation2 + $0x98] sm:$0xff] }
  0xb0   : > { %v459_v34 = vld [vmem:[#allocation2 + $0x2c0] sm:$0xff]  ;;  %v460_v47 = vld [vmem:[#allocation2 + $0x2c8] sm:$0xff]  ;;  %v10029_v51 = vcombine.low %v436_v38, %v444_v39  ;;  %v398_v17 = vld [vmem:[#allocation2 + $0xd8] sm:$0xff]  ;;  %v10000_v18 = vcombine.high %v405_v12, %v413_v13  ;;  %v9999_v23 = vcombine.low %v405_v12, %v413_v13 }
  0xb1   : > { %v10044_v40 = vcombine.high %v451_v33, %v459_v34  ;;  %v467_v41 = vld [vmem:[#allocation2 + $0x300] sm:$0xff]  ;;  %v10043_v45 = vcombine.low %v451_v33, %v459_v34  ;;  %v10046_v52 = vcombine.high %v452_v46, %v460_v47  ;;  %v468_v54 = vld [vmem:[#allocation2 + $0x308] sm:$0xff]  ;;  %v10045_v57 = vcombine.low %v452_v46, %v460_v47  ;;  %v421_v20 = vld [vmem:[#allocation2 + $0x190] sm:$0xff] }
  0xb2   : > { %1228 = vmatpush1.bf16.msra.mxu0 %v9995_v21  ;;  %v475_v42 = vld [vmem:[#allocation2 + $0x340] sm:$0xff]  ;;  %1269 = vmatpush1.bf16.msra.mxu1 %v9997_v35  ;;  %v476_v55 = vld [vmem:[#allocation2 + $0x348] sm:$0xff]  ;;  %v429_v21 = vld [vmem:[#allocation2 + $0x1d0] sm:$0xff]  ;;  %v9986_v22 = vcombine.high %v390_v16, %v398_v17  ;;  %v9985_v27 = vcombine.low %v390_v16, %v398_v17 }
  0xb3   : > { %1229 = vmatprep.subr.bf16.mxu0 %v10012_v24  ;;  %1270 = vmatprep.subr.bf16.mxu1 %v10014_v36  ;;  %v10060_v48 = vcombine.high %v467_v41, %v475_v42  ;;  %v483_v49 = vld [vmem:[#allocation2 + $0x380] sm:$0xff]  ;;  %v10059_v53 = vcombine.low %v467_v41, %v475_v42  ;;  %v10062_v60 = vcombine.high %v468_v54, %v476_v55  ;;  %v484_v62 = vld [vmem:[#allocation2 + $0x388] sm:$0xff]  ;;  %v406_v24 = vld [vmem:[#allocation2 + $0x118] sm:$0xff] }
  0xb4   : > { %v491_v50 = vld [vmem:[#allocation2 + $0x3c0] sm:$0xff]  ;;  %v492_v63 = vld [vmem:[#allocation2 + $0x3c8] sm:$0xff]  ;;  %v10061_v2 = vcombine.low %v468_v54, %v476_v55  ;;  %v414_v25 = vld [vmem:[#allocation2 + $0x158] sm:$0xff]  ;;  %v10016_v26 = vcombine.high %v421_v20, %v429_v21  ;;  %v10015_v31 = vcombine.low %v421_v20, %v429_v21 }
  0xb5   : > { %v10076_v56 = vcombine.high %v483_v49, %v491_v50  ;;  %v10075_v61 = vcombine.low %v483_v49, %v491_v50  ;;  %v10078_v5 = vcombine.high %v484_v62, %v492_v63  ;;  %v12012_v6 = vld [vmem:[%s13387_s0] sm:$0xf]  ;;  %v10077_v11 = vcombine.low %v484_v62, %v492_v63  ;;  %v437_v28 = vld [vmem:[#allocation2 + $0x210] sm:$0xff]  ;;  %v430_v33 = vld [vmem:[#allocation2 + $0x1d8] sm:$0xff] }
  0xb6   : > { %1230 = vmatpush1.bf16.msra.mxu0 %v10011_v29  ;;  %1271 = vmatpush1.bf16.msra.mxu1 %v10013_v43  ;;  %v445_v29 = vld [vmem:[#allocation2 + $0x250] sm:$0xff]  ;;  %v10002_v30 = vcombine.high %v406_v24, %v414_v25  ;;  %v10001_v35 = vcombine.low %v406_v24, %v414_v25  ;;  %v446_v41 = vld [vmem:[#allocation2 + $0x258] sm:$0xff] }
  0xb7   : > { %1231 = vmatprep.subr.bf16.mxu0 %v10028_v32  ;;  %1272 = vmatprep.subr.bf16.mxu1 %v10030_v44  ;;  %v422_v32 = vld [vmem:[#allocation2 + $0x198] sm:$0xff]  ;;  %v10032_v34 = vcombine.high %v437_v28, %v445_v29  ;;  %v453_v36 = vld [vmem:[#allocation2 + $0x290] sm:$0xff]  ;;  %v10031_v39 = vcombine.low %v437_v28, %v445_v29 }
  0xb8   : > { %v10018_v38 = vcombine.high %v422_v32, %v430_v33  ;;  %v10017_v43 = vcombine.low %v422_v32, %v430_v33  ;;  %v469_v44 = vld [vmem:[#allocation2 + $0x310] sm:$0xff]  ;;  %v462_v49 = vld [vmem:[#allocation2 + $0x2d8] sm:$0xff] }
  0xba   : > { %1232 = vmatpush1.bf16.msra.mxu0 %v10027_v37  ;;  %1273 = vmatpush1.bf16.msra.mxu1 %v10029_v51  ;;  %v461_v37 = vld [vmem:[#allocation2 + $0x2d0] sm:$0xff] }
  0xbb   : > { %1233 = vmatprep.subr.bf16.mxu0 %v10044_v40  ;;  %1274 = vmatprep.subr.bf16.mxu1 %v10046_v52  ;;  %v438_v40 = vld [vmem:[#allocation2 + $0x218] sm:$0xff]  ;;  %v10048_v42 = vcombine.high %v453_v36, %v461_v37  ;;  %v10047_v47 = vcombine.low %v453_v36, %v461_v37  ;;  %v485_v52 = vld [vmem:[#allocation2 + $0x390] sm:$0xff] }
  0xbc   : > { %v10034_v46 = vcombine.high %v438_v40, %v446_v41  ;;  %v10033_v51 = vcombine.low %v438_v40, %v446_v41 }
  0xbe   : > { %1234 = vmatpush1.bf16.msra.mxu0 %v10043_v45  ;;  %1275 = vmatpush1.bf16.msra.mxu1 %v10045_v57  ;;  %v477_v45 = vld [vmem:[#allocation2 + $0x350] sm:$0xff]  ;;  %v478_v57 = vld [vmem:[#allocation2 + $0x358] sm:$0xff] }
  0xbf   : > { %1235 = vmatprep.subr.bf16.mxu0 %v10060_v48  ;;  %1276 = vmatprep.subr.bf16.mxu1 %v10062_v60  ;;  %v454_v48 = vld [vmem:[#allocation2 + $0x298] sm:$0xff]  ;;  %v10064_v50 = vcombine.high %v469_v44, %v477_v45  ;;  %v10063_v55 = vcombine.low %v469_v44, %v477_v45  ;;  %v375_v60 = vld [vmem:[#allocation2 + $0x20] sm:$0xff] }
  0xc0   : > { %v10050_v54 = vcombine.high %v454_v48, %v462_v49  ;;  %v10049_v59 = vcombine.low %v454_v48, %v462_v49 }
  0xc2   : > { %1236 = vmatpush1.bf16.msra.mxu0 %v10059_v53  ;;  %1277 = vmatpush1.bf16.msra.mxu1 %v10061_v2  ;;  %v493_v53 = vld [vmem:[#allocation2 + $0x3d0] sm:$0xff]  ;;  %v494_v2 = vld [vmem:[#allocation2 + $0x3d8] sm:$0xff] }
  0xc3   : > { %1237 = vmatprep.subr.bf16.mxu0 %v10076_v56  ;;  %1278 = vmatprep.subr.bf16.mxu1 %v10078_v5  ;;  %v470_v56 = vld [vmem:[#allocation2 + $0x318] sm:$0xff]  ;;  %v10080_v58 = vcombine.high %v485_v52, %v493_v53  ;;  %v10079_v63 = vcombine.low %v485_v52, %v493_v53  ;;  %v391_v5 = vld [vmem:[#allocation2 + $0xa0] sm:$0xff] }
  0xc4   : > { %v10066_v62 = vcombine.high %v470_v56, %v478_v57  ;;  %v10065_v4 = vcombine.low %v470_v56, %v478_v57 }
  0xc6   : > { %1238 = vmatpush1.bf16.msra.mxu0 %v10075_v61  ;;  %1279 = vmatpush1.bf16.msra.mxu1 %v10077_v11  ;;  %v383_v61 = vld [vmem:[#allocation2 + $0x60] sm:$0xff]  ;;  %v384_v11 = vld [vmem:[#allocation2 + $0x68] sm:$0xff] }
  0xc7   : > { %1305 = vmatprep.subr.bf16.mxu0 %v9968_v1  ;;  %1346 = vmatprep.subr.bf16.mxu1 %v9970_v14  ;;  %v486_v1 = vld [vmem:[#allocation2 + $0x398] sm:$0xff]  ;;  %v9972_v3 = vcombine.high %v375_v60, %v383_v61  ;;  %v9971_v9 = vcombine.low %v375_v60, %v383_v61  ;;  %v407_v14 = vld [vmem:[#allocation2 + $0x120] sm:$0xff] }
  0xc8   : > { %v10082_v8 = vcombine.high %v486_v1, %v494_v2  ;;  %v10081_v13 = vcombine.low %v486_v1, %v494_v2 }
  0xc9   : > { %1256 = vmatmul.mubr.bf16.vlgmr.msra.gmra.mrb[0].mxu0 %v12012_v6  ;;  %1297 = vmatmul.mubr.bf16.vlgmr.msra.gmra.mrb[0].mxu1 %v12012_v6 }
  0xca   : > { %1306 = vmatpush1.bf16.msra.mxu0 %v9967_v7  ;;  %1337 = vmatprep.mubr.bf16.mxu0 %v11734_v0  ;;  %v399_v7 = vld [vmem:[#allocation2 + $0xe0] sm:$0xff] }
  0xcb   : > { %1307 = vmatprep.subr.bf16.mxu0 %v9984_v10  ;;  %1347 = vmatpush1.bf16.msra.mxu1 %v9969_v19  ;;  %v376_v10 = vld [vmem:[#allocation2 + $0x28] sm:$0xff]  ;;  %v9988_v12 = vcombine.high %v391_v5, %v399_v7  ;;  %v9987_v17 = vcombine.low %v391_v5, %v399_v7 }
  0xcc   : > { %1378 = vmatprep.mubr.bf16.mxu1 %v11734_v0  ;;  %1348 = vmatprep.subr.bf16.mxu1 %v9986_v22  ;;  %v9974_v16 = vcombine.high %v376_v10, %v384_v11  ;;  %v400_v19 = vld [vmem:[#allocation2 + $0xe8] sm:$0xff]  ;;  %v9973_v21 = vcombine.low %v376_v10, %v384_v11  ;;  %v423_v22 = vld [vmem:[#allocation2 + $0x1a0] sm:$0xff] }
  0xce   : > { %1308 = vmatpush1.bf16.msra.mxu0 %v9983_v15  ;;  %v415_v15 = vld [vmem:[#allocation2 + $0x160] sm:$0xff] }
  0xcf   : > { %1309 = vmatprep.subr.bf16.mxu0 %v10000_v18  ;;  %1349 = vmatpush1.bf16.msra.mxu1 %v9985_v27  ;;  %v392_v18 = vld [vmem:[#allocation2 + $0xa8] sm:$0xff]  ;;  %v10004_v20 = vcombine.high %v407_v14, %v415_v15  ;;  %v10003_v25 = vcombine.low %v407_v14, %v415_v15 }
  0xd0   : > { %1350 = vmatprep.subr.bf16.mxu1 %v10002_v30  ;;  %v9990_v24 = vcombine.high %v392_v18, %v400_v19  ;;  %v416_v27 = vld [vmem:[#allocation2 + $0x168] sm:$0xff]  ;;  %v9989_v29 = vcombine.low %v392_v18, %v400_v19  ;;  %v439_v30 = vld [vmem:[#allocation2 + $0x220] sm:$0xff] }
  0xd2   : > { %1310 = vmatpush1.bf16.msra.mxu0 %v9999_v23  ;;  %v431_v23 = vld [vmem:[#allocation2 + $0x1e0] sm:$0xff] }
  0xd3   : > { %1311 = vmatprep.subr.bf16.mxu0 %v10016_v26  ;;  %1351 = vmatpush1.bf16.msra.mxu1 %v10001_v35  ;;  %v408_v26 = vld [vmem:[#allocation2 + $0x128] sm:$0xff]  ;;  %v10020_v28 = vcombine.high %v423_v22, %v431_v23  ;;  %v10019_v33 = vcombine.low %v423_v22, %v431_v23 }
  0xd4   : > { %1352 = vmatprep.subr.bf16.mxu1 %v10018_v38  ;;  %v10006_v32 = vcombine.high %v408_v26, %v416_v27  ;;  %v432_v35 = vld [vmem:[#allocation2 + $0x1e8] sm:$0xff]  ;;  %v10005_v37 = vcombine.low %v408_v26, %v416_v27  ;;  %v455_v38 = vld [vmem:[#allocation2 + $0x2a0] sm:$0xff] }
  0xd6   : > { %1312 = vmatpush1.bf16.msra.mxu0 %v10015_v31  ;;  %v447_v31 = vld [vmem:[#allocation2 + $0x260] sm:$0xff] }
  0xd7   : > { %1313 = vmatprep.subr.bf16.mxu0 %v10032_v34  ;;  %1353 = vmatpush1.bf16.msra.mxu1 %v10017_v43  ;;  %v424_v34 = vld [vmem:[#allocation2 + $0x1a8] sm:$0xff]  ;;  %v10036_v36 = vcombine.high %v439_v30, %v447_v31  ;;  %v10035_v41 = vcombine.low %v439_v30, %v447_v31 }
  0xd8   : > { %1354 = vmatprep.subr.bf16.mxu1 %v10034_v46  ;;  %v10022_v40 = vcombine.high %v424_v34, %v432_v35  ;;  %v448_v43 = vld [vmem:[#allocation2 + $0x268] sm:$0xff]  ;;  %v10021_v45 = vcombine.low %v424_v34, %v432_v35  ;;  %v471_v46 = vld [vmem:[#allocation2 + $0x320] sm:$0xff] }
  0xda   : > { %1314 = vmatpush1.bf16.msra.mxu0 %v10031_v39  ;;  %v463_v39 = vld [vmem:[#allocation2 + $0x2e0] sm:$0xff] }
  0xdb   : > { %1315 = vmatprep.subr.bf16.mxu0 %v10048_v42  ;;  %1355 = vmatpush1.bf16.msra.mxu1 %v10033_v51  ;;  %v440_v42 = vld [vmem:[#allocation2 + $0x228] sm:$0xff]  ;;  %v10052_v44 = vcombine.high %v455_v38, %v463_v39  ;;  %v10051_v49 = vcombine.low %v455_v38, %v463_v39 }
  0xdc   : > { %1356 = vmatprep.subr.bf16.mxu1 %v10050_v54  ;;  %v10038_v48 = vcombine.high %v440_v42, %v448_v43  ;;  %v464_v51 = vld [vmem:[#allocation2 + $0x2e8] sm:$0xff]  ;;  %v10037_v53 = vcombine.low %v440_v42, %v448_v43  ;;  %v487_v54 = vld [vmem:[#allocation2 + $0x3a0] sm:$0xff] }
  0xde   : > { %1316 = vmatpush1.bf16.msra.mxu0 %v10047_v47  ;;  %v479_v47 = vld [vmem:[#allocation2 + $0x360] sm:$0xff] }
  0xdf   : > { %1317 = vmatprep.subr.bf16.mxu0 %v10064_v50  ;;  %1357 = vmatpush1.bf16.msra.mxu1 %v10049_v59  ;;  %v456_v50 = vld [vmem:[#allocation2 + $0x2a8] sm:$0xff]  ;;  %v10068_v52 = vcombine.high %v471_v46, %v479_v47  ;;  %v10067_v57 = vcombine.low %v471_v46, %v479_v47  ;;  %v473_v47 = vld [vmem:[#allocation2 + $0x330] sm:$0xff] }
  0xe0   : > { %1358 = vmatprep.subr.bf16.mxu1 %v10066_v62  ;;  %v10054_v56 = vcombine.high %v456_v50, %v464_v51  ;;  %v480_v59 = vld [vmem:[#allocation2 + $0x368] sm:$0xff]  ;;  %v10053_v61 = vcombine.low %v456_v50, %v464_v51  ;;  %v377_v62 = vld [vmem:[#allocation2 + $0x30] sm:$0xff]  ;;  %v458_v51 = vld [vmem:[#allocation2 + $0x2b8] sm:$0xff] }
  0xe2   : > { %1318 = vmatpush1.bf16.msra.mxu0 %v10063_v55  ;;  %v495_v55 = vld [vmem:[#allocation2 + $0x3e0] sm:$0xff] }
  0xe3   : > { %1319 = vmatprep.subr.bf16.mxu0 %v10080_v58  ;;  %1359 = vmatpush1.bf16.msra.mxu1 %v10065_v4  ;;  %v472_v58 = vld [vmem:[#allocation2 + $0x328] sm:$0xff]  ;;  %v10084_v60 = vcombine.high %v487_v54, %v495_v55  ;;  %v10083_v2 = vcombine.low %v487_v54, %v495_v55  ;;  %v489_v55 = vld [vmem:[#allocation2 + $0x3b0] sm:$0xff] }
  0xe4   : > { %1360 = vmatprep.subr.bf16.mxu1 %v10082_v8  ;;  %v10070_v1 = vcombine.high %v472_v58, %v480_v59  ;;  %v496_v4 = vld [vmem:[#allocation2 + $0x3e8] sm:$0xff]  ;;  %v10069_v7 = vcombine.low %v472_v58, %v480_v59  ;;  %v393_v8 = vld [vmem:[#allocation2 + $0xb0] sm:$0xff]  ;;  %v474_v59 = vld [vmem:[#allocation2 + $0x338] sm:$0xff] }
  0xe6   : > { %1320 = vmatpush1.bf16.msra.mxu0 %v10079_v63  ;;  %v385_v63 = vld [vmem:[#allocation2 + $0x70] sm:$0xff] }
  0xe7   : > { %1387 = vmatprep.subr.bf16.mxu0 %v9972_v3  ;;  %1361 = vmatpush1.bf16.msra.mxu1 %v10081_v13  ;;  %v488_v3 = vld [vmem:[#allocation2 + $0x3a8] sm:$0xff]  ;;  %v9976_v5 = vcombine.high %v377_v62, %v385_v63  ;;  %v9975_v11 = vcombine.low %v377_v62, %v385_v63  ;;  %v386_v13 = vld [vmem:[#allocation2 + $0x78] sm:$0xff]  ;;  %v1615_v63 = vld [vmem:[%s12001_s17] sm:$0xff] }
  0xe8   : > { %1428 = vmatprep.subr.bf16.mxu1 %v9974_v16  ;;  %v10086_v10 = vcombine.high %v488_v3, %v496_v4  ;;  %v10085_v15 = vcombine.low %v488_v3, %v496_v4  ;;  %v409_v16 = vld [vmem:[#allocation2 + $0x130] sm:$0xff]  ;;  %v490_v3 = vld [vmem:[#allocation2 + $0x3b8] sm:$0xff] }
  0xe9   : > { %1338 = vmatmul.mubr.bf16.vlgmr.msra.gmra.mrb[4].mxu0 %v12012_v6 }
  0xea   : > { %1388 = vmatpush1.bf16.msra.mxu0 %v9971_v9  ;;  %1419 = vmatprep.mubr.bf16.mxu0 %v11734_v0  ;;  %v401_v9 = vld [vmem:[#allocation2 + $0xf0] sm:$0xff] }
  0xeb   : > { %1389 = vmatprep.subr.bf16.mxu0 %v9988_v12  ;;  %1379 = vmatmul.mubr.bf16.vlgmr.msra.gmra.mrb[4].mxu1 %v12012_v6  ;;  %v378_v12 = vld [vmem:[#allocation2 + $0x38] sm:$0xff]  ;;  %v9992_v14 = vcombine.high %v393_v8, %v401_v9  ;;  %v9991_v19 = vcombine.low %v393_v8, %v401_v9  ;;  %v12032_v8 = vld [vmem:[%s12001_s17 + $0x420] sm:$0xff] }
  0xec   : > { %1429 = vmatpush1.bf16.msra.mxu1 %v9973_v21  ;;  %1460 = vmatprep.mubr.bf16.mxu1 %v11734_v0  ;;  %v9978_v18 = vcombine.high %v378_v12, %v386_v13  ;;  %v402_v21 = vld [vmem:[#allocation2 + $0xf8] sm:$0xff]  ;;  %v9977_v23 = vcombine.low %v378_v12, %v386_v13  ;;  %v1627_v12 = vld [vmem:[%s12001_s17 + $0x60] sm:$0xff] }
  0xed   : > { %1430 = vmatprep.subr.bf16.mxu1 %v9990_v24  ;;  %v425_v24 = vld [vmem:[#allocation2 + $0x1b0] sm:$0xff] }
  0xee   : > { %1390 = vmatpush1.bf16.msra.mxu0 %v9987_v17  ;;  %v417_v17 = vld [vmem:[#allocation2 + $0x170] sm:$0xff] }
  0xef   : > { %1391 = vmatprep.subr.bf16.mxu0 %v10004_v20  ;;  %v394_v20 = vld [vmem:[#allocation2 + $0xb8] sm:$0xff]  ;;  %v10008_v22 = vcombine.high %v409_v16, %v417_v17  ;;  %v10007_v27 = vcombine.low %v409_v16, %v417_v17 }
  0xf0   : > { %1431 = vmatpush1.bf16.msra.mxu1 %v9989_v29  ;;  %v9994_v26 = vcombine.high %v394_v20, %v402_v21  ;;  %v418_v29 = vld [vmem:[#allocation2 + $0x178] sm:$0xff]  ;;  %v9993_v31 = vcombine.low %v394_v20, %v402_v21  ;;  %v1631_v20 = vld [vmem:[%s12001_s17 + $0x80] sm:$0xff] }
  0xf1   : > { %1432 = vmatprep.subr.bf16.mxu1 %v10006_v32  ;;  %v441_v32 = vld [vmem:[#allocation2 + $0x230] sm:$0xff]  ;;  %v1616_v16 = vld [vmem:[%s12001_s17 + $0x8] sm:$0xff] }
  0xf2   : > { %1392 = vmatpush1.bf16.msra.mxu0 %v10003_v25  ;;  %v433_v25 = vld [vmem:[#allocation2 + $0x1f0] sm:$0xff]  ;;  %v1620_v17 = vld [vmem:[%s12001_s17 + $0x28] sm:$0xff] }
  0xf3   : > { %1393 = vmatprep.subr.bf16.mxu0 %v10020_v28  ;;  %v410_v28 = vld [vmem:[#allocation2 + $0x138] sm:$0xff]  ;;  %v10024_v30 = vcombine.high %v425_v24, %v433_v25  ;;  %v10023_v35 = vcombine.low %v425_v24, %v433_v25  ;;  %v1635_v21 = vld [vmem:[%s12001_s17 + $0xa0] sm:$0xff] }
  0xf4   : > { %1433 = vmatpush1.bf16.msra.mxu1 %v10005_v37  ;;  %v10010_v34 = vcombine.high %v410_v28, %v418_v29  ;;  %v434_v37 = vld [vmem:[#allocation2 + $0x1f8] sm:$0xff]  ;;  %v10009_v39 = vcombine.low %v410_v28, %v418_v29  ;;  %v1639_v28 = vld [vmem:[%s12001_s17 + $0xc0] sm:$0xff] }
  0xf5   : > { %1434 = vmatprep.subr.bf16.mxu1 %v10022_v40  ;;  %v457_v40 = vld [vmem:[#allocation2 + $0x2b0] sm:$0xff]  ;;  %v1624_v24 = vld [vmem:[%s12001_s17 + $0x48] sm:$0xff] }
  0xf6   : > { %1394 = vmatpush1.bf16.msra.mxu0 %v10019_v33  ;;  %v449_v33 = vld [vmem:[#allocation2 + $0x270] sm:$0xff]  ;;  %v1628_v25 = vld [vmem:[%s12001_s17 + $0x68] sm:$0xff] }
  0xf7   : > { %1395 = vmatprep.subr.bf16.mxu0 %v10036_v36  ;;  %v426_v36 = vld [vmem:[#allocation2 + $0x1b8] sm:$0xff]  ;;  %v10040_v38 = vcombine.high %v441_v32, %v449_v33  ;;  %v10039_v43 = vcombine.low %v441_v32, %v449_v33  ;;  %v1643_v29 = vld [vmem:[%s12001_s17 + $0xe0] sm:$0xff] }
  0xf8   : > { %1435 = vmatpush1.bf16.msra.mxu1 %v10021_v45  ;;  %v10026_v42 = vcombine.high %v426_v36, %v434_v37  ;;  %v450_v45 = vld [vmem:[#allocation2 + $0x278] sm:$0xff]  ;;  %v10025_v46 = vcombine.low %v426_v36, %v434_v37  ;;  %v1647_v36 = vld [vmem:[%s12001_s17 + $0x100] sm:$0xff] }
  0xf9   : > { %1436 = vmatprep.subr.bf16.mxu1 %v10038_v48  ;;  %v481_v48 = vld [vmem:[#allocation2 + $0x370] sm:$0xff]  ;;  %v1632_v32 = vld [vmem:[%s12001_s17 + $0x88] sm:$0xff] }
  0xfa   : > { %1396 = vmatpush1.bf16.msra.mxu0 %v10035_v41  ;;  %v465_v41 = vld [vmem:[#allocation2 + $0x2f0] sm:$0xff]  ;;  %v10071_v58 = vcombine.low %v473_v47, %v481_v48  ;;  %v1636_v33 = vld [vmem:[%s12001_s17 + $0xa8] sm:$0xff] }
  0xfb   : > { %1397 = vmatprep.subr.bf16.mxu0 %v10052_v44  ;;  %v442_v44 = vld [vmem:[#allocation2 + $0x238] sm:$0xff]  ;;  %v10055_v50 = vcombine.low %v457_v40, %v465_v41  ;;  %v1651_v37 = vld [vmem:[%s12001_s17 + $0x120] sm:$0xff] }
  0xfc   : > { %1437 = vmatpush1.bf16.msra.mxu1 %v10037_v53  ;;  %v10072_v53 = vcombine.high %v473_v47, %v481_v48  ;;  %v10041_v54 = vcombine.low %v442_v44, %v450_v45  ;;  %v1652_v47 = vld [vmem:[%s12001_s17 + $0x128] sm:$0xff] }
  0xfd   : > { %1438 = vmatprep.subr.bf16.mxu1 %v10054_v56  ;;  %v497_v56 = vld [vmem:[#allocation2 + $0x3f0] sm:$0xff] }
  0xfe   : > { %1398 = vmatpush1.bf16.msra.mxu0 %v10051_v49  ;;  %v10042_v49 = vcombine.high %v442_v44, %v450_v45  ;;  %v10087_v4 = vcombine.low %v489_v55, %v497_v56  ;;  %v1659_v44 = vld [vmem:[%s12001_s17 + $0x160] sm:$0xff] }
  0xff   : > { %1399 = vmatprep.subr.bf16.mxu0 %v10068_v52  ;;  %v466_v52 = vld [vmem:[#allocation2 + $0x2f8] sm:$0xff] }
 0x100   : > { %1439 = vmatpush1.bf16.msra.mxu1 %v10053_v61  ;;  %v10088_v61 = vcombine.high %v489_v55, %v497_v56  ;;  %v10057_v62 = vcombine.low %v458_v51, %v466_v52  ;;  %v1660_v55 = vld [vmem:[%s12001_s17 + $0x168] sm:$0xff] }
 0x101   : > { %1440 = vmatprep.subr.bf16.mxu1 %v10070_v1  ;;  %v1619_v1 = vld [vmem:[%s12001_s17 + $0x20] sm:$0xff] }
 0x102   : > { %1400 = vmatpush1.bf16.msra.mxu0 %v10067_v57  ;;  %v10058_v57 = vcombine.high %v458_v51, %v466_v52  ;;  %v10092_v9 = vcombine.high %v1615_v63, %v1619_v1  ;;  %v1667_v51 = vld [vmem:[%s12001_s17 + $0x1a0] sm:$0xff] }
 0x103   : > { %1401 = vmatprep.subr.bf16.mxu0 %v10084_v60  ;;  %v482_v60 = vld [vmem:[#allocation2 + $0x378] sm:$0xff] }
 0x104   : > { %1441 = vmatpush1.bf16.msra.mxu1 %v10069_v7  ;;  %v12029_v7 = vld [vmem:[%s12001_s17 + $0x400] sm:$0xff] }
 0x105   : > { %1442 = vmatprep.subr.bf16.mxu1 %v10086_v10  ;;  %v10073_v10 = vcombine.low %v474_v59, %v482_v60  ;;  %v10219_v13 = vcombine.low %v12029_v7, %v12032_v8 }
 0x106   : > { %1402 = vmatpush1.bf16.msra.mxu0 %v10083_v2  ;;  %v10074_v2 = vcombine.high %v474_v59, %v482_v60  ;;  %v1675_v59 = vld [vmem:[%s12001_s17 + $0x1e0] sm:$0xff] }
 0x107   : > { %1469 = vmatprep.subr.bf16.mxu0 %v9976_v5  ;;  %v498_v5 = vld [vmem:[#allocation2 + $0x3f8] sm:$0xff] }
 0x108   : > { %1443 = vmatpush1.bf16.msra.mxu1 %v10085_v15  ;;  %v10091_v15 = vcombine.low %v1615_v63, %v1619_v1  ;;  %v1668_v63 = vld [vmem:[%s12001_s17 + $0x1a8] sm:$0xff] }
 0x109   : > { %1420 = vmatmul.mubr.bf16.vlgmr.msra.gmra.mrb[8].mxu0 %v12012_v6  ;;  %1510 = vmatprep.subr.bf16.mxu1 %v9978_v18 }
 0x10a   : > { %1470 = vmatpush1.bf16.msra.mxu0 %v9975_v11  ;;  %1501 = vmatprep.mubr.bf16.mxu0 %v11734_v0  ;;  %v1623_v11 = vld [vmem:[%s12001_s17 + $0x40] sm:$0xff] }
 0x10b   : > { %1471 = vmatprep.subr.bf16.mxu0 %v9992_v14  ;;  %1461 = vmatmul.mubr.bf16.vlgmr.msra.gmra.mrb[8].mxu1 %v12012_v6  ;;  %v10090_v14 = vcombine.high %v490_v3, %v498_v5  ;;  %v10100_v18 = vcombine.high %v1623_v11, %v1627_v12 }
 0x10c   : > { %1511 = vmatpush1.bf16.msra.mxu1 %v9977_v23  ;;  %1542 = vmatprep.mubr.bf16.mxu1 %v11734_v0  ;;  %v10056_v0 = vcombine.high %v457_v40, %v465_v41  ;;  %v10099_v23 = vcombine.low %v1623_v11, %v1627_v12  ;;  %v1640_v40 = vld [vmem:[%s12001_s17 + $0xc8] sm:$0xff] }
 0x10d   : > { %1512 = vmatprep.subr.bf16.mxu1 %v9994_v26  ;;  %v10108_v26 = vcombine.high %v1631_v20, %v1635_v21  ;;  %v1644_v41 = vld [vmem:[%s12001_s17 + $0xe8] sm:$0xff] }
 0x10e   : > { %1472 = vmatpush1.bf16.msra.mxu0 %v9991_v19  ;;  %v10089_v19 = vcombine.low %v490_v3, %v498_v5  ;;  %v10118_v45 = vcombine.high %v1640_v40, %v1644_v41  ;;  %v1679_v3 = vld [vmem:[%s12001_s17 + $0x200] sm:$0xff]  ;;  %v1676_v11 = vld [vmem:[%s12001_s17 + $0x1e8] sm:$0xff] }
 0x10f   : > { %1473 = vmatprep.subr.bf16.mxu0 %v10008_v22  ;;  %v10094_v22 = vcombine.high %v1616_v16, %v1620_v17 }
 0x110   : > { %1513 = vmatpush1.bf16.msra.mxu1 %v9993_v31  ;;  %v10107_v31 = vcombine.low %v1631_v20, %v1635_v21  ;;  %v1684_v20 = vld [vmem:[%s12001_s17 + $0x228] sm:$0xff] }
 0x111   : > { %1514 = vmatprep.subr.bf16.mxu1 %v10010_v34  ;;  %v10116_v34 = vcombine.high %v1639_v28, %v1643_v29 }
 0x112   : > { %1474 = vmatpush1.bf16.msra.mxu0 %v10007_v27  ;;  %v10093_v27 = vcombine.low %v1616_v16, %v1620_v17  ;;  %v1691_v16 = vld [vmem:[%s12001_s17 + $0x260] sm:$0xff] }
 0x113   : > { %1475 = vmatprep.subr.bf16.mxu0 %v10024_v30  ;;  %v10102_v30 = vcombine.high %v1624_v24, %v1628_v25 }
 0x114   : > { %1515 = vmatpush1.bf16.msra.mxu1 %v10009_v39  ;;  %v10115_v39 = vcombine.low %v1639_v28, %v1643_v29  ;;  %v1692_v28 = vld [vmem:[%s12001_s17 + $0x268] sm:$0xff] }
 0x115   : > { %1516 = vmatprep.subr.bf16.mxu1 %v10026_v42  ;;  %v10124_v42 = vcombine.high %v1647_v36, %v1651_v37 }
 0x116   : > { %1476 = vmatpush1.bf16.msra.mxu0 %v10023_v35  ;;  %v10101_v35 = vcombine.low %v1624_v24, %v1628_v25  ;;  %v1699_v24 = vld [vmem:[%s12001_s17 + $0x2a0] sm:$0xff] }
 0x117   : > { %1477 = vmatprep.subr.bf16.mxu0 %v10040_v38  ;;  %v10110_v38 = vcombine.high %v1632_v32, %v1636_v33 }
 0x118   : > { %1517 = vmatpush1.bf16.msra.mxu1 %v10025_v46  ;;  %v1648_v46 = vld [vmem:[%s12001_s17 + $0x108] sm:$0xff] }
 0x119   : > { %1518 = vmatprep.subr.bf16.mxu1 %v10042_v49  ;;  %v10117_v49 = vcombine.low %v1640_v40, %v1644_v41  ;;  %v10126_v52 = vcombine.high %v1648_v46, %v1652_v47  ;;  %v1715_v40 = vld [vmem:[%s12001_s17 + $0x320] sm:$0xff] }
 0x11a   : > { %1478 = vmatpush1.bf16.msra.mxu0 %v10039_v43  ;;  %v1655_v43 = vld [vmem:[%s12001_s17 + $0x140] sm:$0xff] }
 0x11b   : > { %1479 = vmatprep.subr.bf16.mxu0 %v10056_v0  ;;  %v10123_v0 = vcombine.low %v1647_v36, %v1651_v37  ;;  %v10132_v48 = vcombine.high %v1655_v43, %v1659_v44  ;;  %v1700_v36 = vld [vmem:[%s12001_s17 + $0x2a8] sm:$0xff] }
 0x11c   : > { %1519 = vmatpush1.bf16.msra.mxu1 %v10041_v54  ;;  %v1656_v54 = vld [vmem:[%s12001_s17 + $0x148] sm:$0xff] }
 0x11d   : > { %1520 = vmatprep.subr.bf16.mxu1 %v10058_v57  ;;  %v10125_v57 = vcombine.low %v1648_v46, %v1652_v47  ;;  %v10134_v60 = vcombine.high %v1656_v54, %v1660_v55  ;;  %v1723_v46 = vld [vmem:[%s12001_s17 + $0x360] sm:$0xff] }
 0x11e   : > { %1480 = vmatpush1.bf16.msra.mxu0 %v10055_v50  ;;  %v1663_v50 = vld [vmem:[%s12001_s17 + $0x180] sm:$0xff] }
 0x11f   : > { %1481 = vmatprep.subr.bf16.mxu0 %v10072_v53  ;;  %v10131_v53 = vcombine.low %v1655_v43, %v1659_v44  ;;  %v10140_v56 = vcombine.high %v1663_v50, %v1667_v51  ;;  %v1708_v43 = vld [vmem:[%s12001_s17 + $0x2e8] sm:$0xff] }
 0x120   : > { %1521 = vmatpush1.bf16.msra.mxu1 %v10057_v62  ;;  %v1664_v62 = vld [vmem:[%s12001_s17 + $0x188] sm:$0xff] }
 0x121   : > { %1522 = vmatprep.subr.bf16.mxu1 %v10074_v2  ;;  %v10133_v2 = vcombine.low %v1656_v54, %v1660_v55  ;;  %v10142_v5 = vcombine.high %v1664_v62, %v1668_v63  ;;  %v1731_v54 = vld [vmem:[%s12001_s17 + $0x3a0] sm:$0xff] }
 0x122   : > { %1482 = vmatpush1.bf16.msra.mxu0 %v10071_v58  ;;  %v1671_v58 = vld [vmem:[%s12001_s17 + $0x1c0] sm:$0xff] }
 0x123   : > { %1483 = vmatprep.subr.bf16.mxu0 %v10088_v61  ;;  %v10139_v61 = vcombine.low %v1663_v50, %v1667_v51  ;;  %v10148_v1 = vcombine.high %v1671_v58, %v1675_v59  ;;  %v1716_v50 = vld [vmem:[%s12001_s17 + $0x328] sm:$0xff] }
 0x124   : > { %1523 = vmatpush1.bf16.msra.mxu1 %v10073_v10  ;;  %v1672_v10 = vld [vmem:[%s12001_s17 + $0x1c8] sm:$0xff] }
 0x125   : > { %1524 = vmatprep.subr.bf16.mxu1 %v10090_v14  ;;  %v10141_v14 = vcombine.low %v1664_v62, %v1668_v63  ;;  %v10150_v17 = vcombine.high %v1672_v10, %v1676_v11  ;;  %v1739_v62 = vld [vmem:[%s12001_s17 + $0x3e0] sm:$0xff] }
 0x126   : > { %1484 = vmatpush1.bf16.msra.mxu0 %v10087_v4  ;;  %v1683_v4 = vld [vmem:[%s12001_s17 + $0x220] sm:$0xff] }
 0x127   : > { %7801 = vmatprep.subr.bf16.mxu0 %v10092_v9  ;;  %v10147_v9 = vcombine.low %v1671_v58, %v1675_v59  ;;  %v10156_v12 = vcombine.high %v1679_v3, %v1683_v4  ;;  %v1724_v58 = vld [vmem:[%s12001_s17 + $0x368] sm:$0xff] }
 0x128   : > { %1525 = vmatpush1.bf16.msra.mxu1 %v10089_v19  ;;  %v1680_v19 = vld [vmem:[%s12001_s17 + $0x208] sm:$0xff] }
 0x129   : > { %1502 = vmatmul.mubr.bf16.vlgmr.msra.gmra.mrb[12].mxu0 %v12012_v6  ;;  %8129 = vmatprep.subr.bf16.mxu1 %v10094_v22  ;;  %v10149_v22 = vcombine.low %v1672_v10, %v1676_v11  ;;  %v10158_v25 = vcombine.high %v1680_v19, %v1684_v20  ;;  %v1736_v11 = vld [vmem:[%s12001_s17 + $0x3c8] sm:$0xff] }
 0x12a   : > { %7802 = vmatpush1.bf16.msra.mxu0 %v10091_v15  ;;  %v1687_v15 = vld [vmem:[%s12001_s17 + $0x240] sm:$0xff] }
 0x12b   : > { %7803 = vmatprep.subr.bf16.mxu0 %v10100_v18  ;;  %1543 = vmatmul.mubr.bf16.vlgmr.msra.gmra.mrb[12].mxu1 %v12012_v6  ;;  %v10109_v6 = vcombine.low %v1632_v32, %v1636_v33  ;;  %v10155_v18 = vcombine.low %v1679_v3, %v1683_v4  ;;  %v10164_v21 = vcombine.high %v1687_v15, %v1691_v16  ;;  %v1707_v32 = vld [vmem:[%s12001_s17 + $0x2e0] sm:$0xff]  ;;  %v1732_v3 = vld [vmem:[%s12001_s17 + $0x3a8] sm:$0xff] }
 0x12c   : > { %8130 = vmatpush1.bf16.msra.mxu1 %v10093_v27  ;;  %v1688_v27 = vld [vmem:[%s12001_s17 + $0x248] sm:$0xff] }
 0x12d   : > { %8131 = vmatprep.subr.bf16.mxu1 %v10102_v30  ;;  %v10157_v30 = vcombine.low %v1680_v19, %v1684_v20  ;;  %v10166_v33 = vcombine.high %v1688_v27, %v1692_v28 }
 0x12e   : > { %7804 = vmatpush1.bf16.msra.mxu0 %v10099_v23  ;;  %v1695_v23 = vld [vmem:[%s12001_s17 + $0x280] sm:$0xff] }
 0x12f   : > { %7805 = vmatprep.subr.bf16.mxu0 %v10108_v26  ;;  %v10163_v26 = vcombine.low %v1687_v15, %v1691_v16  ;;  %v10172_v29 = vcombine.high %v1695_v23, %v1699_v24 }
 0x130   : > { %8132 = vmatpush1.bf16.msra.mxu1 %v10101_v35  ;;  %v1696_v35 = vld [vmem:[%s12001_s17 + $0x288] sm:$0xff] }
 0x131   : > { %8133 = vmatprep.subr.bf16.mxu1 %v10110_v38  ;;  %v10165_v38 = vcombine.low %v1688_v27, %v1692_v28  ;;  %v10174_v41 = vcombine.high %v1696_v35, %v1700_v36 }
 0x132   : > { %7806 = vmatpush1.bf16.msra.mxu0 %v10107_v31  ;;  %v1703_v31 = vld [vmem:[%s12001_s17 + $0x2c0] sm:$0xff] }
 0x133   : > { %7807 = vmatprep.subr.bf16.mxu0 %v10116_v34  ;;  %v10171_v34 = vcombine.low %v1695_v23, %v1699_v24  ;;  %v10180_v37 = vcombine.high %v1703_v31, %v1707_v32  ;;  %v12109_v24 = vld [vmem:[#allocation4] sm:$0xff] }
 0x134   : > { %8134 = vmatpush1.bf16.msra.mxu1 %v10109_v6  ;;  %v1704_v6 = vld [vmem:[%s12001_s17 + $0x2c8] sm:$0xff] }
 0x135   : > { %8135 = vmatprep.subr.bf16.mxu1 %v10118_v45  ;;  %v10173_v45 = vcombine.low %v1696_v35, %v1700_v36  ;;  %v10182_v47 = vcombine.high %v1704_v6, %v1708_v43 }
 0x136   : > { %7808 = vmatpush1.bf16.msra.mxu0 %v10115_v39  ;;  %v1711_v39 = vld [vmem:[%s12001_s17 + $0x300] sm:$0xff] }
 0x137   : > { %7809 = vmatprep.subr.bf16.mxu0 %v10124_v42  ;;  %v10179_v42 = vcombine.low %v1703_v31, %v1707_v32  ;;  %v10188_v44 = vcombine.high %v1711_v39, %v1715_v40 }
 0x138   : > { %8136 = vmatpush1.bf16.msra.mxu1 %v10117_v49  ;;  %v1712_v49 = vld [vmem:[%s12001_s17 + $0x308] sm:$0xff] }
 0x139   : > { %8137 = vmatprep.subr.bf16.mxu1 %v10126_v52  ;;  %v10181_v52 = vcombine.low %v1704_v6, %v1708_v43  ;;  %v10190_v55 = vcombine.high %v1712_v49, %v1716_v50 }
 0x13a   : > { %7810 = vmatpush1.bf16.msra.mxu0 %v10123_v0  ;;  %v1719_v0 = vld [vmem:[%s12001_s17 + $0x340] sm:$0xff] }
 0x13b   : > { %7811 = vmatprep.subr.bf16.mxu0 %v10132_v48  ;;  %v10187_v48 = vcombine.low %v1711_v39, %v1715_v40  ;;  %v10196_v51 = vcombine.high %v1719_v0, %v1723_v46  ;;  %v1755_v40 = vld [vmem:[%s12001_s17 + $0x460] sm:$0xff] }
 0x13c   : > { %8138 = vmatpush1.bf16.msra.mxu1 %v10125_v57  ;;  %v1720_v57 = vld [vmem:[%s12001_s17 + $0x348] sm:$0xff] }
 0x13d   : > { %8139 = vmatprep.subr.bf16.mxu1 %v10134_v60  ;;  %v10189_v60 = vcombine.low %v1712_v49, %v1716_v50  ;;  %v10198_v63 = vcombine.high %v1720_v57, %v1724_v58  ;;  %v1759_v49 = vld [vmem:[%s12001_s17 + $0x480] sm:$0xff] }
 0x13e   : > { %7812 = vmatpush1.bf16.msra.mxu0 %v10131_v53  ;;  %v1727_v53 = vld [vmem:[%s12001_s17 + $0x380] sm:$0xff] }
 0x13f   : > { %7813 = vmatprep.subr.bf16.mxu0 %v10140_v56  ;;  %v10195_v56 = vcombine.low %v1719_v0, %v1723_v46  ;;  %v10204_v59 = vcombine.high %v1727_v53, %v1731_v54 }
 0x140   : > { %8140 = vmatpush1.bf16.msra.mxu1 %v10133_v2  ;;  %v1728_v2 = vld [vmem:[%s12001_s17 + $0x388] sm:$0xff] }
 0x141   : > { %8141 = vmatprep.subr.bf16.mxu1 %v10142_v5  ;;  %v10197_v5 = vcombine.low %v1720_v57, %v1724_v58  ;;  %v10205_v15 = vcombine.low %v1728_v2, %v1732_v3 }
 0x142   : > { %7814 = vmatpush1.bf16.msra.mxu0 %v10139_v61  ;;  %v1735_v61 = vld [vmem:[%s12001_s17 + $0x3c0] sm:$0xff] }
 0x143   : > { %7815 = vmatprep.subr.bf16.mxu0 %v10148_v1  ;;  %v10203_v1 = vcombine.low %v1727_v53, %v1731_v54  ;;  %v10212_v4 = vcombine.high %v1735_v61, %v1739_v62  ;;  %v10211_v10 = vcombine.low %v1735_v61, %v1739_v62  ;;  %v1760_v53 = vld [vmem:[%s12001_s17 + $0x488] sm:$0xff]  ;;  %v1767_v61 = vld [vmem:[%s12001_s17 + $0x4c0] sm:$0xff] }
 0x144   : > { %8142 = vmatpush1.bf16.msra.mxu1 %v10141_v14  ;;  %v10220_v14 = vcombine.high %v12029_v7, %v12032_v8  ;;  %v1764_v54 = vld [vmem:[%s12001_s17 + $0x4a8] sm:$0xff] }
 0x145   : > { %8143 = vmatprep.subr.bf16.mxu1 %v10150_v17  ;;  %v1744_v17 = vld [vmem:[%s12001_s17 + $0x408] sm:$0xff]  ;;  %v10237_v8 = vcombine.low %v1760_v53, %v1764_v54 }
 0x146   : > { %7816 = vmatpush1.bf16.msra.mxu0 %v10147_v9  ;;  %v10206_v9 = vcombine.high %v1728_v2, %v1732_v3  ;;  %v1772_v2 = vld [vmem:[%s12001_s17 + $0x4e8] sm:$0xff] }
 0x147   : > { %7817 = vmatprep.subr.bf16.mxu0 %v10156_v12  ;;  %v1740_v12 = vld [vmem:[%s12001_s17 + $0x3e8] sm:$0xff] }
 0x148   : > { %8144 = vmatpush1.bf16.msra.mxu1 %v10149_v22  ;;  %v10214_v16 = vcombine.high %v1736_v11, %v1740_v12  ;;  %v10213_v19 = vcombine.low %v1736_v11, %v1740_v12  ;;  %v1780_v11 = vld [vmem:[%s12001_s17 + $0x528] sm:$0xff] }
 0x149   : > { %8145 = vmatprep.subr.bf16.mxu1 %v10158_v25 }
 0x14a   : > { %7818 = vmatpush1.bf16.msra.mxu0 %v10155_v18  ;;  %v1748_v18 = vld [vmem:[%s12001_s17 + $0x428] sm:$0xff] }
 0x14b   : > { %7819 = vmatprep.subr.bf16.mxu0 %v10164_v21  ;;  %v10222_v20 = vcombine.high %v1744_v17, %v1748_v18  ;;  %v503_v21 = vlaneseq }
 0x14c   : > { %8146 = vmatpush1.bf16.msra.mxu1 %v10157_v30 }
 0x14d   : > { %8147 = vmatprep.subr.bf16.mxu1 %v10166_v33  ;;  %v12104_v22 = vshrl.u32 %v503_v21, 7 }
 0x14e   : > { %7820 = vmatpush1.bf16.msra.mxu0 %v10163_v26 }
 0x14f   : > { %7821 = vmatprep.subr.bf16.mxu0 %v10172_v29  ;;  %v12107_v23 = vsub.s32 0, %v12104_v22  ;;  %v12112_v25 = vsub.s32 1, %v12104_v22  ;;  %v12119_v29 = vsub.s32 3, %v12104_v22 }
 0x150   : > { %8148 = vmatpush1.bf16.msra.mxu1 %v10165_v38 }
 0x151   : > { %8149 = vmatprep.subr.bf16.mxu1 %v10174_v41  ;;  %v506_v26 = vrot.slane %v12109_v24, %v12107_v23  ;;  %v510_v27 = vrot.slane %v12109_v24, %v12112_v25  ;;  %v518_v38 = vrot.slane %v12109_v24, %v12119_v29  ;;  %v1752_v41 = vld [vmem:[%s12001_s17 + $0x448] sm:$0xff] }
 0x152   : > { %7822 = vmatpush1.bf16.msra.mxu0 %v10171_v34 }
 0x153   : > { %7823 = vmatprep.subr.bf16.mxu0 %v10180_v37  ;;  %v1751_v37 = vld [vmem:[%s12001_s17 + $0x440] sm:$0xff] }
 0x154   : > { %8150 = vmatpush1.bf16.msra.mxu1 %v10173_v45  ;;  %v10221_v45 = vcombine.low %v1744_v17, %v1748_v18  ;;  %v10227_v57 = vcombine.low %v1751_v37, %v1755_v40  ;;  %v1783_v17 = vld [vmem:[%s12001_s17 + $0x540] sm:$0xff] }
 0x155   : > { %8151 = vmatprep.subr.bf16.mxu1 %v10182_v47  ;;  %v10228_v47 = vcombine.high %v1751_v37, %v1755_v40  ;;  %v1787_v18 = vld [vmem:[%s12001_s17 + $0x560] sm:$0xff]  ;;  %v1800_v40 = vld [vmem:[%s12001_s17 + $0x5c8] sm:$0xff] }
 0x156   : > { %7824 = vmatpush1.bf16.msra.mxu0 %v10179_v42  ;;  %v1756_v42 = vld [vmem:[%s12001_s17 + $0x468] sm:$0xff] }
 0x157   : > { %7825 = vmatprep.subr.bf16.mxu0 %v10188_v44  ;;  %v10229_v58 = vcombine.low %v1752_v41, %v1756_v42 }
 0x158   : > { %8152 = vmatpush1.bf16.msra.mxu1 %v10181_v52  ;;  %v1763_v52 = vld [vmem:[%s12001_s17 + $0x4a0] sm:$0xff] }
 0x159   : > { %8153 = vmatprep.subr.bf16.mxu1 %v10190_v55  ;;  %v10235_v7 = vcombine.low %v1759_v49, %v1763_v52 }
 0x15a   : > { %7826 = vmatpush1.bf16.msra.mxu0 %v10187_v48  ;;  %v10230_v48 = vcombine.high %v1752_v41, %v1756_v42  ;;  %v1804_v41 = vld [vmem:[%s12001_s17 + $0x5e8] sm:$0xff] }
 0x15b   : > { %7827 = vmatprep.subr.bf16.mxu0 %v10196_v51 }
 0x15c   : > { %8154 = vmatpush1.bf16.msra.mxu1 %v10189_v60  ;;  %v10238_v60 = vcombine.high %v1760_v53, %v1764_v54 }
 0x15d   : > { %8155 = vmatprep.subr.bf16.mxu1 %v10198_v63  ;;  %v1771_v63 = vld [vmem:[%s12001_s17 + $0x4e0] sm:$0xff] }
 0x15e   : > { %7828 = vmatpush1.bf16.msra.mxu0 %v10195_v56  ;;  %v10243_v12 = vcombine.low %v1767_v61, %v1771_v63 }
 0x15f   : > { %7829 = vmatprep.subr.bf16.mxu0 %v10204_v59  ;;  %v10236_v59 = vcombine.high %v1759_v49, %v1763_v52  ;;  %v1811_v49 = vld [vmem:[%s12001_s17 + $0x620] sm:$0xff] }
 0x160   : > { %8156 = vmatpush1.bf16.msra.mxu1 %v10197_v5  ;;  %v1775_v5 = vld [vmem:[%s12001_s17 + $0x500] sm:$0xff] }
 0x161   : > { %8157 = vmatprep.subr.bf16.mxu1 %v10206_v9  ;;  %v1779_v9 = vld [vmem:[%s12001_s17 + $0x520] sm:$0xff] }
 0x162   : > { %7830 = vmatpush1.bf16.msra.mxu0 %v10203_v1  ;;  %v1768_v1 = vld [vmem:[%s12001_s17 + $0x4c8] sm:$0xff]  ;;  %v10251_v21 = vcombine.low %v1775_v5, %v1779_v9 }
 0x163   : > { %7831 = vmatprep.subr.bf16.mxu0 %v10212_v4  ;;  %v10246_v4 = vcombine.high %v1768_v1, %v1772_v2 }
 0x164   : > { %8158 = vmatpush1.bf16.msra.mxu1 %v10205_v15  ;;  %v10252_v15 = vcombine.high %v1775_v5, %v1779_v9  ;;  %v1827_v9 = vld [vmem:[%s12001_s17 + $0x6a0] sm:$0xff] }
 0x165   : > { %8159 = vmatprep.subr.bf16.mxu1 %v10214_v16 }
 0x166   : > { %7832 = vmatpush1.bf16.msra.mxu0 %v10211_v10  ;;  %v1776_v10 = vld [vmem:[%s12001_s17 + $0x508] sm:$0xff] }
 0x167   : > { %7842 = vmatprep.subr.bf16.mxu0 %v10220_v14  ;;  %v10245_v14 = vcombine.low %v1768_v1, %v1772_v2  ;;  %v10254_v16 = vcombine.high %v1776_v10, %v1780_v11 }
 0x168   : > { %8160 = vmatpush1.bf16.msra.mxu1 %v10213_v19  ;;  %v1784_v19 = vld [vmem:[%s12001_s17 + $0x548] sm:$0xff] }
 0x169   : > { %8170 = vmatprep.subr.bf16.mxu1 %v10222_v20  ;;  %v1788_v20 = vld [vmem:[%s12001_s17 + $0x568] sm:$0xff] }
 0x19c   : > { %v1257_v28 = vpop.f32.mrb[0].mxu0  ;;  %v12127_v43 = vpop.f32.mrb[0].mxu1 }
 0x19d   : > { %v1258_v30 = vadd.f32 %v1257_v28, %v506_v26  ;;  %v1259_v31 = vpop.f32.mrb[1].mxu0  ;;  %v1300_v0 = vpop.f32.mrb[1].mxu1  ;;  %v10253_v26 = vcombine.low %v1776_v10, %v1780_v11  ;;  %v10262_v28 = vcombine.high %v1784_v19, %v1788_v20  ;;  %v1824_v10 = vld [vmem:[%s12001_s17 + $0x688] sm:$0xff] }
 0x19e   : > { %v1260_v32 = vadd.f32 %v1259_v31, %v510_v27  ;;  %v1261_v33 = vpop.f32.mrb[2].mxu0  ;;  %v1301_v50 = vadd.f32 %v1300_v0, %v518_v38  ;;  %v1302_v51 = vpop.f32.mrb[2].mxu1  ;;  %v10260_v27 = vcombine.high %v1783_v17, %v1787_v18  ;;  %v1795_v31 = vld [vmem:[%s12001_s17 + $0x5a0] sm:$0xff]  ;;  %v10278_v0 = vcombine.high %v1800_v40, %v1804_v41  ;;  %v1828_v11 = vld [vmem:[%s12001_s17 + $0x6a8] sm:$0xff] }
 0x19f   : > { %vm1551_vm0 = vcmp.gt.f32.partialorder %v1258_v30, 0.0  ;;  %v1567_v34 = vmul.f32 0.2, %v1258_v30  ;;  %v1262_v35 = vpop.f32.mrb[3].mxu0  ;;  %v1303_v55 = vpop.f32.mrb[3].mxu1  ;;  %v1796_v33 = vld [vmem:[%s12001_s17 + $0x5a8] sm:$0xff] }
 0x1a0   : > { %vm1552_vm1 = vcmp.gt.f32.partialorder %v1260_v32, 0.0  ;;  %v1568_v36 = vmul.f32 0.2, %v1260_v32  ;;  %vm1554_vm2 = vcmp.gt.f32.partialorder %v1301_v50, 0.0  ;;  %v1570_v56 = vmul.f32 0.2, %v1301_v50 }
 0x1a1   : > { %v1583_v39 = vsel %vm1551_vm0, %v1258_v30, %v1567_v34  ;;  %v1791_v30 = vld [vmem:[%s12001_s17 + $0x580] sm:$0xff]  ;;  %v10259_v34 = vcombine.low %v1783_v17, %v1787_v18  ;;  %v10261_v35 = vcombine.low %v1784_v19, %v1788_v20  ;;  %v1812_v51 = vld [vmem:[%s12001_s17 + $0x628] sm:$0xff]  ;;  %v10277_v55 = vcombine.low %v1800_v40, %v1804_v41 }
 0x1a2   : > { %v1584_v6 = vsel %vm1552_vm1, %v1260_v32, %v1568_v36  ;;  %v12131_v46 = vpack.c.bf16 %v1583_v39, %v1583_v39  ;;  %v1586_v62 = vsel %vm1554_vm2, %v1301_v50, %v1570_v56  ;;  %v1792_v32 = vld [vmem:[%s12001_s17 + $0x588] sm:$0xff]  ;;  %v10268_v36 = vcombine.high %v1791_v30, %v1795_v31  ;;  %v1799_v38 = vld [vmem:[%s12001_s17 + $0x5c0] sm:$0xff] }
 0x1a3   : > { %v12129_v44 = vpack.c.bf16 %v1584_v6, %v1584_v6  ;;  %v12148_v3 = vpack.c.bf16 %v1586_v62, %v1586_v62  ;;  %v10270_v37 = vcombine.high %v1792_v32, %v1796_v33  ;;  %v1803_v39 = vld [vmem:[%s12001_s17 + $0x5e0] sm:$0xff]  ;;  %v10267_v42 = vcombine.low %v1791_v30, %v1795_v31  ;;  %v1808_v50 = vld [vmem:[%s12001_s17 + $0x608] sm:$0xff] }
 0x1a4   : > { %v10269_v6 = vcombine.low %v1792_v32, %v1796_v33  ;;  %v10275_v54 = vcombine.low %v1799_v38, %v1803_v39  ;;  %v1820_v62 = vld [vmem:[%s12001_s17 + $0x668] sm:$0xff]  ;;  %v10285_v2 = vcombine.low %v1808_v50, %v1812_v51  ;;  %v10302_v17 = vcombine.high %v1824_v10, %v1828_v11  ;;  %v1831_v18 = vld [vmem:[%s12001_s17 + $0x6c0] sm:$0xff] }
 0x1a5   : > { %7833 = vmatprep.mubr.bf16.mxu0 %v12129_v44  ;;  %8161 = vmatprep.mubr.bf16.mxu1 %v12129_v44  ;;  %v1835_v19 = vld [vmem:[%s12001_s17 + $0x6e0] sm:$0xff]  ;;  %v1832_v20 = vld [vmem:[%s12001_s17 + $0x6c8] sm:$0xff]  ;;  %v12198_v40 = vsub.s32 2, %v12104_v22 }
 0x1a6   : > { %7834 = vmatmul.mubr.bf16.vlgmr.msra.gmra.mrb[16].mxu0 %v12131_v46  ;;  %8162 = vmatmul.mubr.bf16.vlgmr.msra.gmra.mrb[16].mxu1 %v12131_v46  ;;  %v1839_v31 = vld [vmem:[%s12001_s17 + $0x700] sm:$0xff]  ;;  %v1840_v33 = vld [vmem:[%s12001_s17 + $0x708] sm:$0xff] }
 0x1a7   : > { %7843 = vmatpush1.bf16.msra.mxu0 %v10219_v13  ;;  %8171 = vmatpush1.bf16.msra.mxu1 %v10221_v45  ;;  %v10244_v13 = vcombine.high %v1767_v61, %v1771_v63  ;;  %v10276_v45 = vcombine.high %v1799_v38, %v1803_v39  ;;  %v1816_v61 = vld [vmem:[%s12001_s17 + $0x648] sm:$0xff]  ;;  %v1843_v32 = vld [vmem:[%s12001_s17 + $0x720] sm:$0xff] }
 0x1a8   : > { %7844 = vmatprep.subr.bf16.mxu0 %v10228_v47  ;;  %8172 = vmatprep.subr.bf16.mxu1 %v10230_v48  ;;  %v1807_v47 = vld [vmem:[%s12001_s17 + $0x600] sm:$0xff] }
 0x1a9   : > { %7874 = vmatprep.mubr.bf16.mxu0 %v12148_v3  ;;  %8202 = vmatprep.mubr.bf16.mxu1 %v12148_v3  ;;  %v10283_v1 = vcombine.low %v1807_v47, %v1811_v49  ;;  %v1847_v39 = vld [vmem:[%s12001_s17 + $0x740] sm:$0xff] }
 0x1aa   : > { %v1851_v41 = vld [vmem:[%s12001_s17 + $0x760] sm:$0xff] }
 0x1ab   : > { %7845 = vmatpush1.bf16.msra.mxu0 %v10227_v57  ;;  %8173 = vmatpush1.bf16.msra.mxu1 %v10229_v58  ;;  %v10284_v57 = vcombine.high %v1807_v47, %v1811_v49  ;;  %v10286_v58 = vcombine.high %v1808_v50, %v1812_v51  ;;  %v10324_v49 = vcombine.high %v1847_v39, %v1851_v41  ;;  %v1855_v51 = vld [vmem:[%s12001_s17 + $0x780] sm:$0xff] }
 0x1ac   : > { %7846 = vmatprep.subr.bf16.mxu0 %v10236_v59  ;;  %8174 = vmatprep.subr.bf16.mxu1 %v10238_v60  ;;  %v1815_v59 = vld [vmem:[%s12001_s17 + $0x640] sm:$0xff] }
 0x1ad   : > { %v1819_v60 = vld [vmem:[%s12001_s17 + $0x660] sm:$0xff] }
 0x1af   : > { %7847 = vmatpush1.bf16.msra.mxu0 %v10235_v7  ;;  %8175 = vmatpush1.bf16.msra.mxu1 %v10237_v8  ;;  %v10292_v8 = vcombine.high %v1815_v59, %v1819_v60 }
 0x1b0   : > { %7848 = vmatprep.subr.bf16.mxu0 %v10244_v13  ;;  %8176 = vmatprep.subr.bf16.mxu1 %v10246_v4  ;;  %v10294_v13 = vcombine.high %v1816_v61, %v1820_v62  ;;  %v1823_v4 = vld [vmem:[%s12001_s17 + $0x680] sm:$0xff] }
 0x1b3   : > { %7849 = vmatpush1.bf16.msra.mxu0 %v10243_v12  ;;  %8177 = vmatpush1.bf16.msra.mxu1 %v10245_v14  ;;  %v10291_v14 = vcombine.low %v1815_v59, %v1819_v60 }
 0x1b4   : > { %7850 = vmatprep.subr.bf16.mxu0 %v10252_v15  ;;  %8178 = vmatprep.subr.bf16.mxu1 %v10254_v16  ;;  %v10293_v15 = vcombine.low %v1816_v61, %v1820_v62  ;;  %v10300_v16 = vcombine.high %v1823_v4, %v1827_v9  ;;  %v1863_v62 = vld [vmem:[%s12001_s17 + $0x7c0] sm:$0xff] }
 0x1b7   : > { %7851 = vmatpush1.bf16.msra.mxu0 %v10251_v21  ;;  %8179 = vmatpush1.bf16.msra.mxu1 %v10253_v26  ;;  %v1836_v21 = vld [vmem:[%s12001_s17 + $0x6e8] sm:$0xff]  ;;  %v10299_v26 = vcombine.low %v1823_v4, %v1827_v9 }
 0x1b8   : > { %7852 = vmatprep.subr.bf16.mxu0 %v10260_v27  ;;  %8180 = vmatprep.subr.bf16.mxu1 %v10262_v28  ;;  %v10301_v27 = vcombine.low %v1824_v10, %v1828_v11  ;;  %v10308_v28 = vcombine.high %v1831_v18, %v1835_v19  ;;  %v10310_v30 = vcombine.high %v1832_v20, %v1836_v21 }
 0x1bb   : > { %7853 = vmatpush1.bf16.msra.mxu0 %v10259_v34  ;;  %8181 = vmatpush1.bf16.msra.mxu1 %v10261_v35  ;;  %v1844_v34 = vld [vmem:[%s12001_s17 + $0x728] sm:$0xff]  ;;  %v10307_v35 = vcombine.low %v1831_v18, %v1835_v19  ;;  %v12228_v19 = vld [vmem:[#allocation4 + $0x8] sm:$0xff] }
 0x1bc   : > { %7854 = vmatprep.subr.bf16.mxu0 %v10268_v36  ;;  %8182 = vmatprep.subr.bf16.mxu1 %v10270_v37  ;;  %v12169_v48 = vpop.f32.mrb[4].mxu0  ;;  %v10309_v36 = vcombine.low %v1832_v20, %v1836_v21  ;;  %v10316_v37 = vcombine.high %v1839_v31, %v1843_v32  ;;  %v10318_v38 = vcombine.high %v1840_v33, %v1844_v34 }
 0x1bd   : > { %v12174_v52 = vpop.f32.mrb[5].mxu0  ;;  %v10317_v47 = vcombine.low %v1840_v33, %v1844_v34  ;;  %v1883_v33 = vld [vmem:[%s12001_s17 + $0x860] sm:$0xff]  ;;  %v550_v34 = vrot.slane %v12228_v19, %v12119_v29 }
 0x1be   : > { %v1343_v53 = vpop.f32.mrb[6].mxu0  ;;  %v12180_v63 = vpop.f32.mrb[4].mxu1 }
 0x1bf   : > { %7855 = vmatpush1.bf16.msra.mxu0 %v10267_v42  ;;  %8183 = vmatpush1.bf16.msra.mxu1 %v10269_v6  ;;  %v1344_v56 = vpop.f32.mrb[7].mxu0  ;;  %v12182_v7 = vpop.f32.mrb[5].mxu1  ;;  %v1848_v42 = vld [vmem:[%s12001_s17 + $0x748] sm:$0xff]  ;;  %v514_v53 = vrot.slane %v12109_v24, %v12198_v40 }
 0x1c0   : > { %7856 = vmatprep.subr.bf16.mxu0 %v10276_v45  ;;  %8184 = vmatprep.subr.bf16.mxu1 %v10278_v0  ;;  %v1384_v5 = vpop.f32.mrb[6].mxu1  ;;  %v1852_v6 = vld [vmem:[%s12001_s17 + $0x768] sm:$0xff]  ;;  %v12204_v45 = vsub.s32 5, %v12104_v22  ;;  %v10315_v0 = vcombine.low %v1839_v31, %v1843_v32  ;;  %v1879_v32 = vld [vmem:[%s12001_s17 + $0x840] sm:$0xff] }
 0x1c1   : > { %v1385_v12 = vpop.f32.mrb[7].mxu1  ;;  %v10326_v50 = vcombine.high %v1848_v42, %v1852_v6  ;;  %v1860_v56 = vld [vmem:[%s12001_s17 + $0x7a8] sm:$0xff]  ;;  %v10325_v59 = vcombine.low %v1848_v42, %v1852_v6  ;;  %v10356_v6 = vcombine.high %v1879_v32, %v1883_v33 }
 0x1c2   : > { %v1871_v12 = vld [vmem:[%s12001_s17 + $0x800] sm:$0xff] }
 0x1c3   : > { %7857 = vmatpush1.bf16.msra.mxu0 %v10275_v54  ;;  %8185 = vmatpush1.bf16.msra.mxu1 %v10277_v55  ;;  %v1859_v54 = vld [vmem:[%s12001_s17 + $0x7a0] sm:$0xff]  ;;  %v1856_v55 = vld [vmem:[%s12001_s17 + $0x788] sm:$0xff] }
 0x1c4   : > { %7858 = vmatprep.subr.bf16.mxu0 %v10284_v57  ;;  %8186 = vmatprep.subr.bf16.mxu1 %v10286_v58  ;;  %v526_v57 = vrot.slane %v12109_v24, %v12204_v45  ;;  %v10323_v58 = vcombine.low %v1847_v39, %v1851_v41  ;;  %v10332_v60 = vcombine.high %v1855_v51, %v1859_v54 }
 0x1c5   : > { %v10334_v61 = vcombine.high %v1856_v55, %v1860_v56  ;;  %v10331_v5 = vcombine.low %v1855_v51, %v1859_v54  ;;  %v10333_v9 = vcombine.low %v1856_v55, %v1860_v56  ;;  %v1887_v51 = vld [vmem:[%s12001_s17 + $0x880] sm:$0xff]  ;;  %v1888_v56 = vld [vmem:[%s12001_s17 + $0x888] sm:$0xff] }
 0x1c6   : > { %v1342_v4 = vadd.f32 %v12174_v52, %v526_v57  ;;  %v1891_v55 = vld [vmem:[%s12001_s17 + $0x8a0] sm:$0xff]  ;;  %v1892_v57 = vld [vmem:[%s12001_s17 + $0x8a8] sm:$0xff] }
 0x1c7   : > { %7859 = vmatpush1.bf16.msra.mxu0 %v10283_v1  ;;  %8187 = vmatpush1.bf16.msra.mxu1 %v10285_v2  ;;  %v1299_v1 = vadd.f32 %v12127_v43, %v514_v53  ;;  %v1867_v2 = vld [vmem:[%s12001_s17 + $0x7e0] sm:$0xff] }
 0x1c8   : > { %7860 = vmatprep.subr.bf16.mxu0 %v10292_v8  ;;  %8188 = vmatprep.subr.bf16.mxu1 %v10294_v13  ;;  %v1864_v8 = vld [vmem:[%s12001_s17 + $0x7c8] sm:$0xff]  ;;  %v10340_v10 = vcombine.high %v1863_v62, %v1867_v2  ;;  %v1572_v52 = vmul.f32 0.2, %v1342_v4  ;;  %v10339_v21 = vcombine.low %v1863_v62, %v1867_v2  ;;  %vm1556_vm4 = vcmp.gt.f32.partialorder %v1342_v4, 0.0  ;;  %v1895_v2 = vld [vmem:[%s12001_s17 + $0x8c0] sm:$0xff] }
 0x1c9   : > { %v1868_v13 = vld [vmem:[%s12001_s17 + $0x7e8] sm:$0xff]  ;;  %v1569_v43 = vmul.f32 0.2, %v1299_v1  ;;  %vm1553_vm3 = vcmp.gt.f32.partialorder %v1299_v1, 0.0  ;;  %v10364_v62 = vcombine.high %v1887_v51, %v1891_v55 }
 0x1ca   : > { %v10342_v11 = vcombine.high %v1864_v8, %v1868_v13  ;;  %v1588_v39 = vsel %vm1556_vm4, %v1342_v4, %v1572_v52  ;;  %v1900_v4 = vld [vmem:[%s12001_s17 + $0x8e8] sm:$0xff] }
 0x1cb   : > { %7861 = vmatpush1.bf16.msra.mxu0 %v10291_v14  ;;  %8189 = vmatpush1.bf16.msra.mxu1 %v10293_v15  ;;  %v1875_v15 = vld [vmem:[%s12001_s17 + $0x820] sm:$0xff] }
 0x1cc   : > { %7862 = vmatprep.subr.bf16.mxu0 %v10300_v16  ;;  %8190 = vmatprep.subr.bf16.mxu1 %v10302_v17  ;;  %v1872_v16 = vld [vmem:[%s12001_s17 + $0x808] sm:$0xff] }
 0x1cd   : > { %v1876_v17 = vld [vmem:[%s12001_s17 + $0x828] sm:$0xff] }
 0x1ce   : > { %v10350_v31 = vcombine.high %v1872_v16, %v1876_v17  ;;  %v10349_v42 = vcombine.low %v1872_v16, %v1876_v17  ;;  %v1908_v16 = vld [vmem:[%s12001_s17 + $0x928] sm:$0xff] }
 0x1cf   : > { %7863 = vmatpush1.bf16.msra.mxu0 %v10299_v26  ;;  %8191 = vmatpush1.bf16.msra.mxu1 %v10301_v27  ;;  %v10341_v26 = vcombine.low %v1864_v8, %v1868_v13  ;;  %v546_v27 = vrot.slane %v12228_v19, %v12198_v40  ;;  %v1899_v8 = vld [vmem:[%s12001_s17 + $0x8e0] sm:$0xff]  ;;  %v1896_v13 = vld [vmem:[%s12001_s17 + $0x8c8] sm:$0xff] }
 0x1d0   : > { %7864 = vmatprep.subr.bf16.mxu0 %v10308_v28  ;;  %8192 = vmatprep.subr.bf16.mxu1 %v10310_v30  ;;  %v10348_v30 = vcombine.high %v1871_v12, %v1875_v15  ;;  %v10371_v17 = vcombine.low %v1895_v2, %v1899_v8  ;;  %v10373_v52 = vcombine.low %v1896_v13, %v1900_v4 }
 0x1d3   : > { %7865 = vmatpush1.bf16.msra.mxu0 %v10307_v35  ;;  %8193 = vmatpush1.bf16.msra.mxu1 %v10309_v36  ;;  %v1585_v35 = vsel %vm1553_vm3, %v1299_v1, %v1569_v43  ;;  %v1880_v36 = vld [vmem:[%s12001_s17 + $0x848] sm:$0xff]  ;;  %v10366_v1 = vcombine.high %v1888_v56, %v1892_v57  ;;  %v1907_v43 = vld [vmem:[%s12001_s17 + $0x920] sm:$0xff] }
 0x1d4   : > { %7866 = vmatprep.subr.bf16.mxu0 %v10316_v37  ;;  %8194 = vmatprep.subr.bf16.mxu1 %v10318_v38  ;;  %v1884_v37 = vld [vmem:[%s12001_s17 + $0x868] sm:$0xff]  ;;  %v10347_v38 = vcombine.low %v1871_v12, %v1875_v15  ;;  %v1903_v12 = vld [vmem:[%s12001_s17 + $0x900] sm:$0xff] }
 0x1d5   : > { %v1904_v15 = vld [vmem:[%s12001_s17 + $0x908] sm:$0xff] }
 0x1d7   : > { %7867 = vmatpush1.bf16.msra.mxu0 %v10315_v0  ;;  %8195 = vmatpush1.bf16.msra.mxu1 %v10317_v47 }
 0x1d8   : > { %7868 = vmatprep.subr.bf16.mxu0 %v10324_v49  ;;  %8196 = vmatprep.subr.bf16.mxu1 %v10326_v50  ;;  %v12241_v49 = vpack.c.bf16 %v1585_v35, %v1585_v35  ;;  %v10358_v50 = vcombine.high %v1880_v36, %v1884_v37  ;;  %v1919_v35 = vld [vmem:[%s12001_s17 + $0x980] sm:$0xff] }
 0x1db   : > { %7869 = vmatpush1.bf16.msra.mxu0 %v10323_v58  ;;  %8197 = vmatpush1.bf16.msra.mxu1 %v10325_v59  ;;  %v12249_v58 = vpack.c.bf16 %v1588_v39, %v1588_v39  ;;  %v12272_v39 = vsub.s32 4, %v12104_v22 }
 0x1dc   : > { %7870 = vmatprep.subr.bf16.mxu0 %v10332_v60  ;;  %8198 = vmatprep.subr.bf16.mxu1 %v10334_v61  ;;  %v12221_v14 = vpop.f32.mrb[8].mxu0  ;;  %v10355_v60 = vcombine.low %v1879_v32, %v1883_v33  ;;  %v10357_v61 = vcombine.low %v1880_v36, %v1884_v37  ;;  %v10381_v32 = vcombine.low %v1904_v15, %v1908_v16  ;;  %v1923_v36 = vld [vmem:[%s12001_s17 + $0x9a0] sm:$0xff]  ;;  %v1920_v37 = vld [vmem:[%s12001_s17 + $0x988] sm:$0xff] }
 0x1dd   : > { %v12226_v18 = vpop.f32.mrb[9].mxu0 }
 0x1de   : > { %v1425_v20 = vpop.f32.mrb[10].mxu0  ;;  %v1462_v41 = vpop.f32.mrb[8].mxu1 }
 0x1df   : > { %7871 = vmatpush1.bf16.msra.mxu0 %v10331_v5  ;;  %8199 = vmatpush1.bf16.msra.mxu1 %v10333_v9  ;;  %v1426_v28 = vpop.f32.mrb[11].mxu0  ;;  %v12239_v0 = vadd.f32 %v1462_v41, %v546_v27  ;;  %v1464_v47 = vpop.f32.mrb[9].mxu1  ;;  %v10363_v5 = vcombine.low %v1887_v51, %v1891_v55  ;;  %v10365_v9 = vcombine.low %v1888_v56, %v1892_v57  ;;  %v1915_v27 = vld [vmem:[%s12001_s17 + $0x960] sm:$0xff]  ;;  %v1932_v55 = vld [vmem:[%s12001_s17 + $0x9e8] sm:$0xff] }
 0x1e0   : > { %7872 = vmatprep.subr.bf16.mxu0 %v10340_v10  ;;  %8200 = vmatprep.subr.bf16.mxu1 %v10342_v11  ;;  %v12244_v53 = vadd.f32 %v1464_v47, %v550_v34  ;;  %v1466_v54 = vpop.f32.mrb[10].mxu1  ;;  %v10372_v10 = vcombine.high %v1895_v2, %v1899_v8  ;;  %v10374_v11 = vcombine.high %v1896_v13, %v1900_v4  ;;  %v1912_v28 = vld [vmem:[%s12001_s17 + $0x948] sm:$0xff]  ;;  %v1931_v51 = vld [vmem:[%s12001_s17 + $0x9e0] sm:$0xff]  ;;  %v12284_v8 = vsub.s32 6, %v12104_v22 }
 0x1e1   : > { %v1467_v59 = vpop.f32.mrb[11].mxu1  ;;  %v10380_v20 = vcombine.high %v1903_v12, %v1907_v43  ;;  %v1928_v54 = vld [vmem:[%s12001_s17 + $0x9c8] sm:$0xff]  ;;  %v554_v56 = vrot.slane %v12228_v19, %v12272_v39  ;;  %v558_v57 = vrot.slane %v12228_v19, %v12204_v45  ;;  %v1939_v13 = vld [vmem:[%s12001_s17 + $0xa20] sm:$0xff]  ;;  %vm1561_vm11 = vcmp.gt.f32.partialorder %v12239_v0, 0.0 }
 0x1e2   : > { %v10395_v59 = vcombine.low %v1919_v35, %v1923_v36  ;;  %v1936_v4 = vld [vmem:[%s12001_s17 + $0xa08] sm:$0xff]  ;;  %vm1562_vm10 = vcmp.gt.f32.partialorder %v12244_v53, 0.0 }
 0x1e3   : > { %7873 = vmatpush1.bf16.msra.mxu0 %v10339_v21  ;;  %8201 = vmatpush1.bf16.msra.mxu1 %v10341_v26  ;;  %v10382_v21 = vcombine.high %v1904_v15, %v1908_v16  ;;  %v1911_v26 = vld [vmem:[%s12001_s17 + $0x940] sm:$0xff]  ;;  %v10405_v16 = vcombine.low %v1928_v54, %v1932_v55 }
 0x1e4   : > { %7883 = vmatprep.subr.bf16.mxu0 %v10348_v30  ;;  %8211 = vmatprep.subr.bf16.mxu1 %v10350_v31  ;;  %v1916_v30 = vld [vmem:[%s12001_s17 + $0x968] sm:$0xff]  ;;  %v10379_v31 = vcombine.low %v1903_v12, %v1907_v43  ;;  %v10388_v33 = vcombine.high %v1911_v26, %v1915_v27  ;;  %v10387_v41 = vcombine.low %v1911_v26, %v1915_v27  ;;  %v1943_v26 = vld [vmem:[%s12001_s17 + $0xa40] sm:$0xff] }
 0x1e5   : > { %v10390_v34 = vcombine.high %v1912_v28, %v1916_v30  ;;  %v1947_v27 = vld [vmem:[%s12001_s17 + $0xa60] sm:$0xff] }
 0x1e6   : > { %7875 = vmatmul.mubr.bf16.vlgmr.msra.gmra.mrb[16].mxu0 %v12241_v49  ;;  %8203 = vmatmul.mubr.bf16.vlgmr.msra.gmra.mrb[16].mxu1 %v12241_v49 }
 0x1e7   : > { %7884 = vmatpush1.bf16.msra.mxu0 %v10347_v38  ;;  %8212 = vmatpush1.bf16.msra.mxu1 %v10349_v42  ;;  %v1924_v38 = vld [vmem:[%s12001_s17 + $0x9a8] sm:$0xff]  ;;  %v10389_v42 = vcombine.low %v1912_v28, %v1916_v30 }
 0x1e8   : > { %7885 = vmatprep.subr.bf16.mxu0 %v10356_v6  ;;  %8213 = vmatprep.subr.bf16.mxu1 %v10358_v50  ;;  %v10396_v6 = vcombine.high %v1919_v35, %v1923_v36  ;;  %v10398_v47 = vcombine.high %v1920_v37, %v1924_v38  ;;  %v1927_v50 = vld [vmem:[%s12001_s17 + $0x9c0] sm:$0xff]  ;;  %v1944_v28 = vld [vmem:[%s12001_s17 + $0xa48] sm:$0xff]  ;;  %v10420_v36 = vcombine.high %v1943_v26, %v1947_v27 }
 0x1e9   : > { %7915 = vmatprep.mubr.bf16.mxu0 %v12249_v58  ;;  %8243 = vmatprep.mubr.bf16.mxu1 %v12249_v58  ;;  %v10403_v15 = vcombine.low %v1927_v50, %v1931_v51  ;;  %v1948_v30 = vld [vmem:[%s12001_s17 + $0xa68] sm:$0xff] }
 0x1eb   : > { %7886 = vmatpush1.bf16.msra.mxu0 %v10355_v60  ;;  %8214 = vmatpush1.bf16.msra.mxu1 %v10357_v61  ;;  %v10397_v60 = vcombine.low %v1920_v37, %v1924_v38  ;;  %v10404_v61 = vcombine.high %v1927_v50, %v1931_v51  ;;  %v10422_v37 = vcombine.high %v1944_v28, %v1948_v30  ;;  %v1951_v38 = vld [vmem:[%s12001_s17 + $0xa80] sm:$0xff]  ;;  %v1956_v50 = vld [vmem:[%s12001_s17 + $0xaa8] sm:$0xff] }
 0x1ec   : > { %7887 = vmatprep.subr.bf16.mxu0 %v10364_v62  ;;  %8215 = vmatprep.subr.bf16.mxu1 %v10366_v1  ;;  %v10406_v62 = vcombine.high %v1928_v54, %v1932_v55  ;;  %v1935_v1 = vld [vmem:[%s12001_s17 + $0xa00] sm:$0xff]  ;;  %v10419_v54 = vcombine.low %v1943_v26, %v1947_v27  ;;  %v10421_v55 = vcombine.low %v1944_v28, %v1948_v30  ;;  %v1980_v27 = vld [vmem:[%s12001_s17 + $0xb68] sm:$0xff] }
 0x1ed   : > { %v1979_v26 = vld [vmem:[%s12001_s17 + $0xb60] sm:$0xff] }
 0x1ef   : > { %7888 = vmatpush1.bf16.msra.mxu0 %v10363_v5  ;;  %8216 = vmatpush1.bf16.msra.mxu1 %v10365_v9  ;;  %v1940_v5 = vld [vmem:[%s12001_s17 + $0xa28] sm:$0xff] }
 0x1f0   : > { %7889 = vmatprep.subr.bf16.mxu0 %v10372_v10  ;;  %8217 = vmatprep.subr.bf16.mxu1 %v10374_v11  ;;  %v12292_v11 = vsub.s32 7, %v12104_v22 }
 0x1f2   : > { %v566_v22 = vrot.slane %v12228_v19, %v12292_v11 }
 0x1f3   : > { %7890 = vmatpush1.bf16.msra.mxu0 %v10371_v17  ;;  %8218 = vmatpush1.bf16.msra.mxu1 %v10373_v52  ;;  %v562_v17 = vrot.slane %v12228_v19, %v12284_v8 }
 0x1f4   : > { %7891 = vmatprep.subr.bf16.mxu0 %v10380_v20  ;;  %8219 = vmatprep.subr.bf16.mxu1 %v10382_v21  ;;  %v10412_v20 = vcombine.high %v1935_v1, %v1939_v13  ;;  %v10414_v21 = vcombine.high %v1936_v4, %v1940_v5 }
 0x1f7   : > { %7892 = vmatpush1.bf16.msra.mxu0 %v10379_v31  ;;  %8220 = vmatpush1.bf16.msra.mxu1 %v10381_v32  ;;  %v10411_v32 = vcombine.low %v1935_v1, %v1939_v13 }
 0x1f8   : > { %7893 = vmatprep.subr.bf16.mxu0 %v10388_v33  ;;  %8221 = vmatprep.subr.bf16.mxu1 %v10390_v34  ;;  %v10413_v33 = vcombine.low %v1936_v4, %v1940_v5  ;;  %v1967_v5 = vld [vmem:[%s12001_s17 + $0xb00] sm:$0xff] }
 0x1fb   : > { %7894 = vmatpush1.bf16.msra.mxu0 %v10387_v41  ;;  %8222 = vmatpush1.bf16.msra.mxu1 %v10389_v42 }
 0x1fc   : > { %7895 = vmatprep.subr.bf16.mxu0 %v10396_v6  ;;  %8223 = vmatprep.subr.bf16.mxu1 %v10398_v47  ;;  %v1503_v2 = vpop.f32.mrb[12].mxu0  ;;  %v1955_v6 = vld [vmem:[%s12001_s17 + $0xaa0] sm:$0xff]  ;;  %v1952_v47 = vld [vmem:[%s12001_s17 + $0xa88] sm:$0xff] }
 0x1fd   : > { %v12289_v9 = vadd.f32 %v1503_v2, %v554_v56  ;;  %v1505_v10 = vpop.f32.mrb[13].mxu0  ;;  %v10428_v56 = vcombine.high %v1951_v38, %v1955_v6  ;;  %v10427_v1 = vcombine.low %v1951_v38, %v1955_v6  ;;  %v10429_v2 = vcombine.low %v1952_v47, %v1956_v50  ;;  %v1988_v38 = vld [vmem:[%s12001_s17 + $0xba8] sm:$0xff] }
 0x1fe   : > { %v12294_v12 = vadd.f32 %v1505_v10, %v558_v57  ;;  %v1507_v43 = vpop.f32.mrb[14].mxu0  ;;  %v1544_v31 = vpop.f32.mrb[12].mxu1  ;;  %v10430_v57 = vcombine.high %v1952_v47, %v1956_v50  ;;  %v1971_v10 = vld [vmem:[%s12001_s17 + $0xb20] sm:$0xff] }
 0x1ff   : > { %7896 = vmatpush1.bf16.msra.mxu0 %v10395_v59  ;;  %8224 = vmatpush1.bf16.msra.mxu1 %v10397_v60  ;;  %v1508_v52 = vpop.f32.mrb[15].mxu0  ;;  %v12304_v34 = vadd.f32 %v1544_v31, %v562_v17  ;;  %v1546_v35 = vpop.f32.mrb[13].mxu1  ;;  %v1959_v59 = vld [vmem:[%s12001_s17 + $0xac0] sm:$0xff]  ;;  %v1968_v43 = vld [vmem:[%s12001_s17 + $0xb08] sm:$0xff]  ;;  %v10443_v28 = vcombine.low %v1967_v5, %v1971_v10  ;;  %vm1563_vm13 = vcmp.gt.f32.partialorder %v12289_v9, 0.0 }
 0x200   : > { %7897 = vmatprep.subr.bf16.mxu0 %v10404_v61  ;;  %8225 = vmatprep.subr.bf16.mxu1 %v10406_v62  ;;  %v12307_v41 = vadd.f32 %v1546_v35, %v566_v22  ;;  %v1548_v42 = vpop.f32.mrb[14].mxu1  ;;  %v1963_v60 = vld [vmem:[%s12001_s17 + $0xae0] sm:$0xff]  ;;  %v1960_v61 = vld [vmem:[%s12001_s17 + $0xac8] sm:$0xff]  ;;  %v10444_v52 = vcombine.high %v1967_v5, %v1971_v10  ;;  %v522_v35 = vrot.slane %v12109_v24, %v12272_v39  ;;  %vm1564_vm12 = vcmp.gt.f32.partialorder %v12294_v12, 0.0 }
 0x201   : > { %v1549_v51 = vpop.f32.mrb[15].mxu1  ;;  %v1964_v62 = vld [vmem:[%s12001_s17 + $0xae8] sm:$0xff]  ;;  %v10436_v13 = vcombine.high %v1959_v59, %v1963_v60  ;;  %v534_v42 = vrot.slane %v12109_v24, %v12292_v11  ;;  %vm1565_vm15 = vcmp.gt.f32.partialorder %v12304_v34, 0.0 }
 0x202   : > { %v10438_v4 = vcombine.high %v1960_v61, %v1964_v62  ;;  %v10437_v17 = vcombine.low %v1960_v61, %v1964_v62  ;;  %v1976_v22 = vld [vmem:[%s12001_s17 + $0xb48] sm:$0xff]  ;;  %vm1566_vm14 = vcmp.gt.f32.partialorder %v12307_v41, 0.0 }
 0x203   : > { %7898 = vmatpush1.bf16.msra.mxu0 %v10403_v15  ;;  %8226 = vmatpush1.bf16.msra.mxu1 %v10405_v16  ;;  %v1972_v15 = vld [vmem:[%s12001_s17 + $0xb28] sm:$0xff]  ;;  %v10435_v16 = vcombine.low %v1959_v59, %v1963_v60  ;;  %v10453_v47 = vcombine.low %v1976_v22, %v1980_v27  ;;  %v1383_v24 = vadd.f32 %v12182_v7, %v534_v42 }
 0x204   : > { %7899 = vmatprep.subr.bf16.mxu0 %v10412_v20  ;;  %8227 = vmatprep.subr.bf16.mxu1 %v10414_v21  ;;  %v10446_v20 = vcombine.high %v1968_v43, %v1972_v15  ;;  %v1975_v21 = vld [vmem:[%s12001_s17 + $0xb40] sm:$0xff]  ;;  %v10445_v30 = vcombine.low %v1968_v43, %v1972_v15  ;;  %v1996_v59 = vld [vmem:[%s12001_s17 + $0xbe8] sm:$0xff] }
 0x205   : > { %v10452_v31 = vcombine.high %v1975_v21, %v1979_v26  ;;  %v10451_v6 = vcombine.low %v1975_v21, %v1979_v26  ;;  %v2004_v5 = vld [vmem:[%s12001_s17 + $0xc28] sm:$0xff]  ;;  %v1574_v10 = vmul.f32 0.2, %v1383_v24  ;;  %vm1558_vm6 = vcmp.gt.f32.partialorder %v1383_v24, 0.0  ;;  %v2011_v21 = vld [vmem:[%s12001_s17 + $0xc60] sm:$0xff] }
 0x206   : > { %v2008_v26 = vld [vmem:[%s12001_s17 + $0xc48] sm:$0xff] }
 0x207   : > { %7900 = vmatpush1.bf16.msra.mxu0 %v10411_v32  ;;  %8228 = vmatpush1.bf16.msra.mxu1 %v10413_v33  ;;  %v10454_v32 = vcombine.high %v1976_v22, %v1980_v27  ;;  %v1983_v33 = vld [vmem:[%s12001_s17 + $0xb80] sm:$0xff]  ;;  %v2012_v22 = vld [vmem:[%s12001_s17 + $0xc68] sm:$0xff] }
 0x208   : > { %7901 = vmatprep.subr.bf16.mxu0 %v10420_v36  ;;  %8229 = vmatprep.subr.bf16.mxu1 %v10422_v37  ;;  %v1987_v36 = vld [vmem:[%s12001_s17 + $0xba0] sm:$0xff]  ;;  %v1984_v37 = vld [vmem:[%s12001_s17 + $0xb88] sm:$0xff] }
 0x209   : > { %v10460_v50 = vcombine.high %v1983_v33, %v1987_v36  ;;  %v10462_v51 = vcombine.high %v1984_v37, %v1988_v38  ;;  %v10459_v60 = vcombine.low %v1983_v33, %v1987_v36  ;;  %v10461_v61 = vcombine.low %v1984_v37, %v1988_v38  ;;  %v2019_v36 = vld [vmem:[%s12001_s17 + $0xca0] sm:$0xff]  ;;  %v2016_v37 = vld [vmem:[%s12001_s17 + $0xc88] sm:$0xff] }
 0x20a   : > { %v10486_v33 = vcombine.high %v2008_v26, %v2012_v22  ;;  %v2020_v38 = vld [vmem:[%s12001_s17 + $0xca8] sm:$0xff] }
 0x20b   : > { %7902 = vmatpush1.bf16.msra.mxu0 %v10419_v54  ;;  %8230 = vmatpush1.bf16.msra.mxu1 %v10421_v55  ;;  %v1991_v54 = vld [vmem:[%s12001_s17 + $0xbc0] sm:$0xff]  ;;  %v1340_v55 = vadd.f32 %v12169_v48, %v522_v35  ;;  %v2000_v48 = vld [vmem:[%s12001_s17 + $0xc08] sm:$0xff] }
 0x20c   : > { %7903 = vmatprep.subr.bf16.mxu0 %v10428_v56  ;;  %8231 = vmatprep.subr.bf16.mxu1 %v10430_v57  ;;  %v1995_v56 = vld [vmem:[%s12001_s17 + $0xbe0] sm:$0xff]  ;;  %v1992_v57 = vld [vmem:[%s12001_s17 + $0xbc8] sm:$0xff] }
 0x20d   : > { %v10468_v62 = vcombine.high %v1991_v54, %v1995_v56  ;;  %vm1555_vm5 = vcmp.gt.f32.partialorder %v1340_v55, 0.0  ;;  %v10467_v7 = vcombine.low %v1991_v54, %v1995_v56  ;;  %v10469_v43 = vcombine.low %v1992_v57, %v1996_v59  ;;  %v2015_v35 = vld [vmem:[%s12001_s17 + $0xc80] sm:$0xff]  ;;  %v2028_v56 = vld [vmem:[%s12001_s17 + $0xce8] sm:$0xff] }
 0x20e   : > { %v2027_v54 = vld [vmem:[%s12001_s17 + $0xce0] sm:$0xff] }
 0x20f   : > { %7904 = vmatpush1.bf16.msra.mxu0 %v10427_v1  ;;  %8232 = vmatpush1.bf16.msra.mxu1 %v10429_v2  ;;  %v10470_v1 = vcombine.high %v1992_v57, %v1996_v59  ;;  %v1999_v2 = vld [vmem:[%s12001_s17 + $0xc00] sm:$0xff]  ;;  %v10491_v57 = vcombine.low %v2015_v35, %v2019_v36  ;;  %v10493_v59 = vcombine.low %v2016_v37, %v2020_v38 }
 0x210   : > { %7905 = vmatprep.subr.bf16.mxu0 %v10436_v13  ;;  %8233 = vmatprep.subr.bf16.mxu1 %v10438_v4  ;;  %v1571_v13 = vmul.f32 0.2, %v1340_v55  ;;  %v2003_v4 = vld [vmem:[%s12001_s17 + $0xc20] sm:$0xff] }
 0x211   : > { %v10476_v15 = vcombine.high %v1999_v2, %v2003_v4  ;;  %v10475_v27 = vcombine.low %v1999_v2, %v2003_v4  ;;  %v2036_v2 = vld [vmem:[%s12001_s17 + $0xd28] sm:$0xff] }
 0x213   : > { %7906 = vmatpush1.bf16.msra.mxu0 %v10435_v16  ;;  %8234 = vmatpush1.bf16.msra.mxu1 %v10437_v17  ;;  %v10478_v16 = vcombine.high %v2000_v48, %v2004_v5  ;;  %v1587_v17 = vsel %vm1555_vm5, %v1340_v55, %v1571_v13  ;;  %v2024_v55 = vld [vmem:[%s12001_s17 + $0xcc8] sm:$0xff] }
 0x214   : > { %7907 = vmatprep.subr.bf16.mxu0 %v10444_v52  ;;  %8235 = vmatprep.subr.bf16.mxu1 %v10446_v20  ;;  %v2007_v52 = vld [vmem:[%s12001_s17 + $0xc40] sm:$0xff]  ;;  %v1590_v20 = vsel %vm1558_vm6, %v1383_v24, %v1574_v10  ;;  %v10501_v4 = vcombine.low %v2024_v55, %v2028_v56 }
 0x215   : > { %v10483_v42 = vcombine.low %v2007_v52, %v2011_v21  ;;  %v2039_v10 = vld [vmem:[%s12001_s17 + $0xd40] sm:$0xff] }
 0x217   : > { %7908 = vmatpush1.bf16.msra.mxu0 %v10443_v28  ;;  %8236 = vmatpush1.bf16.msra.mxu1 %v10445_v30  ;;  %v12346_v28 = vpack.c.bf16 %v1587_v17, %v1587_v17  ;;  %v10477_v30 = vcombine.low %v2000_v48, %v2004_v5 }
 0x218   : > { %7909 = vmatprep.subr.bf16.mxu0 %v10452_v31  ;;  %8237 = vmatprep.subr.bf16.mxu1 %v10454_v32  ;;  %v12348_v31 = vpack.c.bf16 %v1590_v20, %v1590_v20  ;;  %v10484_v32 = vcombine.high %v2007_v52, %v2011_v21  ;;  %v2047_v21 = vld [vmem:[%s12001_s17 + $0xd80] sm:$0xff] }
 0x21b   : > { %7910 = vmatpush1.bf16.msra.mxu0 %v10451_v6  ;;  %8238 = vmatpush1.bf16.msra.mxu1 %v10453_v47  ;;  %v10485_v6 = vcombine.low %v2008_v26, %v2012_v22  ;;  %v10492_v47 = vcombine.high %v2015_v35, %v2019_v36  ;;  %v2051_v26 = vld [vmem:[%s12001_s17 + $0xda0] sm:$0xff]  ;;  %v2048_v22 = vld [vmem:[%s12001_s17 + $0xd88] sm:$0xff] }
 0x21c   : > { %7911 = vmatprep.subr.bf16.mxu0 %v10460_v50  ;;  %8239 = vmatprep.subr.bf16.mxu1 %v10462_v51  ;;  %v10494_v50 = vcombine.high %v2016_v37, %v2020_v38  ;;  %v2023_v51 = vld [vmem:[%s12001_s17 + $0xcc0] sm:$0xff]  ;;  %v2056_v38 = vld [vmem:[%s12001_s17 + $0xdc8] sm:$0xff] }
 0x21d   : > { %v10500_v24 = vcombine.high %v2023_v51, %v2027_v54  ;;  %v10499_v13 = vcombine.low %v2023_v51, %v2027_v54  ;;  %v2055_v36 = vld [vmem:[%s12001_s17 + $0xdc0] sm:$0xff] }
 0x21e   : > { %v2059_v37 = vld [vmem:[%s12001_s17 + $0xde0] sm:$0xff] }
 0x21f   : > { %7912 = vmatpush1.bf16.msra.mxu0 %v10459_v60  ;;  %8240 = vmatpush1.bf16.msra.mxu1 %v10461_v61  ;;  %v10502_v60 = vcombine.high %v2024_v55, %v2028_v56  ;;  %v2031_v61 = vld [vmem:[%s12001_s17 + $0xd00] sm:$0xff]  ;;  %v2064_v56 = vld [vmem:[%s12001_s17 + $0xe08] sm:$0xff] }
 0x220   : > { %7913 = vmatprep.subr.bf16.mxu0 %v10468_v62  ;;  %8241 = vmatprep.subr.bf16.mxu1 %v10470_v1  ;;  %v2035_v62 = vld [vmem:[%s12001_s17 + $0xd20] sm:$0xff]  ;;  %v2032_v1 = vld [vmem:[%s12001_s17 + $0xd08] sm:$0xff] }
 0x221   : > { %v10508_v48 = vcombine.high %v2031_v61, %v2035_v62  ;;  %v10510_v5 = vcombine.high %v2032_v1, %v2036_v2  ;;  %v10509_v17 = vcombine.low %v2032_v1, %v2036_v2  ;;  %v2063_v54 = vld [vmem:[%s12001_s17 + $0xe00] sm:$0xff]  ;;  %v2072_v2 = vld [vmem:[%s12001_s17 + $0xe48] sm:$0xff] }
 0x222   : > { %v2067_v55 = vld [vmem:[%s12001_s17 + $0xe20] sm:$0xff] }
 0x223   : > { %7914 = vmatpush1.bf16.msra.mxu0 %v10467_v7  ;;  %8242 = vmatpush1.bf16.msra.mxu1 %v10469_v43  ;;  %v2043_v7 = vld [vmem:[%s12001_s17 + $0xd60] sm:$0xff]  ;;  %v2040_v43 = vld [vmem:[%s12001_s17 + $0xd48] sm:$0xff] }
 0x224   : > { %7924 = vmatprep.subr.bf16.mxu0 %v10476_v15  ;;  %8252 = vmatprep.subr.bf16.mxu1 %v10478_v16  ;;  %v2044_v15 = vld [vmem:[%s12001_s17 + $0xd68] sm:$0xff]  ;;  %v10507_v16 = vcombine.low %v2031_v61, %v2035_v62  ;;  %v10516_v52 = vcombine.high %v2039_v10, %v2043_v7  ;;  %v2071_v62 = vld [vmem:[%s12001_s17 + $0xe40] sm:$0xff] }
 0x225   : > { %v10518_v20 = vcombine.high %v2040_v43, %v2044_v15  ;;  %v2075_v1 = vld [vmem:[%s12001_s17 + $0xe60] sm:$0xff] }
 0x226   : > { %7916 = vmatmul.mubr.bf16.vlgmr.msra.gmra.mrb[16].mxu0 %v12346_v28  ;;  %8244 = vmatmul.mubr.bf16.vlgmr.msra.gmra.mrb[16].mxu1 %v12346_v28 }
 0x227   : > { %7925 = vmatpush1.bf16.msra.mxu0 %v10475_v27  ;;  %7956 = vmatprep.mubr.bf16.mxu0 %v12348_v31  ;;  %v2052_v27 = vld [vmem:[%s12001_s17 + $0xda8] sm:$0xff] }
 0x228   : > { %8253 = vmatpush1.bf16.msra.mxu1 %v10477_v30  ;;  %8284 = vmatprep.mubr.bf16.mxu1 %v12348_v31  ;;  %v10515_v30 = vcombine.low %v2039_v10, %v2043_v7  ;;  %v10526_v35 = vcombine.high %v2048_v22, %v2052_v27  ;;  %v2079_v7 = vld [vmem:[%s12001_s17 + $0xe80] sm:$0xff] }
 0x229   : > { %7926 = vmatprep.subr.bf16.mxu0 %v10484_v32  ;;  %8254 = vmatprep.subr.bf16.mxu1 %v10486_v33  ;;  %v10517_v32 = vcombine.low %v2040_v43, %v2044_v15  ;;  %v10524_v33 = vcombine.high %v2047_v21, %v2051_v26  ;;  %v2083_v43 = vld [vmem:[%s12001_s17 + $0xea0] sm:$0xff]  ;;  %v2080_v15 = vld [vmem:[%s12001_s17 + $0xe88] sm:$0xff] }
 0x22b   : > { %7927 = vmatpush1.bf16.msra.mxu0 %v10483_v42  ;;  %v2060_v42 = vld [vmem:[%s12001_s17 + $0xde8] sm:$0xff] }
 0x22c   : > { %8255 = vmatpush1.bf16.msra.mxu1 %v10485_v6  ;;  %7928 = vmatprep.subr.bf16.mxu0 %v10492_v47  ;;  %v10523_v6 = vcombine.low %v2047_v21, %v2051_v26  ;;  %v10525_v47 = vcombine.low %v2048_v22, %v2052_v27  ;;  %v10534_v51 = vcombine.high %v2056_v38, %v2060_v42  ;;  %v2087_v26 = vld [vmem:[%s12001_s17 + $0xec0] sm:$0xff]  ;;  %v2088_v27 = vld [vmem:[%s12001_s17 + $0xec8] sm:$0xff] }
 0x22d   : > { %8256 = vmatprep.subr.bf16.mxu1 %v10494_v50  ;;  %v10532_v50 = vcombine.high %v2055_v36, %v2059_v37  ;;  %v2091_v22 = vld [vmem:[%s12001_s17 + $0xee0] sm:$0xff] }
 0x22f   : > { %7929 = vmatpush1.bf16.msra.mxu0 %v10491_v57  ;;  %v2068_v57 = vld [vmem:[%s12001_s17 + $0xe28] sm:$0xff] }
 0x230   : > { %8257 = vmatpush1.bf16.msra.mxu1 %v10493_v59  ;;  %7930 = vmatprep.subr.bf16.mxu0 %v10500_v24  ;;  %v10531_v59 = vcombine.low %v2055_v36, %v2059_v37  ;;  %v10533_v24 = vcombine.low %v2056_v38, %v2060_v42  ;;  %v10542_v61 = vcombine.high %v2064_v56, %v2068_v57  ;;  %v2095_v37 = vld [vmem:[%s12001_s17 + $0xf00] sm:$0xff]  ;;  %v2096_v42 = vld [vmem:[%s12001_s17 + $0xf08] sm:$0xff] }
 0x231   : > { %8258 = vmatprep.subr.bf16.mxu1 %v10502_v60  ;;  %v10540_v60 = vcombine.high %v2063_v54, %v2067_v55  ;;  %v2099_v38 = vld [vmem:[%s12001_s17 + $0xf20] sm:$0xff] }
 0x233   : > { %7931 = vmatpush1.bf16.msra.mxu0 %v10499_v13  ;;  %v2076_v13 = vld [vmem:[%s12001_s17 + $0xe68] sm:$0xff] }
 0x234   : > { %8259 = vmatpush1.bf16.msra.mxu1 %v10501_v4  ;;  %7932 = vmatprep.subr.bf16.mxu0 %v10508_v48  ;;  %v10539_v4 = vcombine.low %v2063_v54, %v2067_v55  ;;  %v10541_v48 = vcombine.low %v2064_v56, %v2068_v57  ;;  %v10550_v10 = vcombine.high %v2072_v2, %v2076_v13  ;;  %v2103_v55 = vld [vmem:[%s12001_s17 + $0xf40] sm:$0xff]  ;;  %v2104_v57 = vld [vmem:[%s12001_s17 + $0xf48] sm:$0xff] }
 0x235   : > { %8260 = vmatprep.subr.bf16.mxu1 %v10510_v5  ;;  %v10548_v5 = vcombine.high %v2071_v62, %v2075_v1  ;;  %v2107_v56 = vld [vmem:[%s12001_s17 + $0xf60] sm:$0xff] }
 0x237   : > { %7933 = vmatpush1.bf16.msra.mxu0 %v10507_v16  ;;  %v2084_v16 = vld [vmem:[%s12001_s17 + $0xea8] sm:$0xff] }
 0x238   : > { %8261 = vmatpush1.bf16.msra.mxu1 %v10509_v17  ;;  %7934 = vmatprep.subr.bf16.mxu0 %v10516_v52  ;;  %v10547_v17 = vcombine.low %v2071_v62, %v2075_v1  ;;  %v10549_v52 = vcombine.low %v2072_v2, %v2076_v13  ;;  %v10558_v21 = vcombine.high %v2080_v15, %v2084_v16  ;;  %v11532_v62 = vld [vmem:[#allocation4] sm:$0xff]  ;;  %v2111_v13 = vld [vmem:[%s12001_s17 + $0xf80] sm:$0xff] }
 0x239   : > { %8262 = vmatprep.subr.bf16.mxu1 %v10518_v20  ;;  %v10556_v20 = vcombine.high %v2079_v7, %v2083_v43  ;;  %v530_v1 = vrot.slane %v11532_v62, %v12284_v8  ;;  %v2143_v62 = vld [vmem:[%s12001_s17 + $0x1080] sm:$0xff] }
 0x23b   : > { %7935 = vmatpush1.bf16.msra.mxu0 %v10515_v30  ;;  %v2092_v30 = vld [vmem:[%s12001_s17 + $0xee8] sm:$0xff] }
 0x23c   : > { %8263 = vmatpush1.bf16.msra.mxu1 %v10517_v32  ;;  %7936 = vmatprep.subr.bf16.mxu0 %v10524_v33  ;;  %v10555_v32 = vcombine.low %v2079_v7, %v2083_v43  ;;  %v10557_v33 = vcombine.low %v2080_v15, %v2084_v16  ;;  %v10566_v36 = vcombine.high %v2088_v27, %v2092_v30 }
 0x23d   : > { %8264 = vmatprep.subr.bf16.mxu1 %v10526_v35  ;;  %v10564_v35 = vcombine.high %v2087_v26, %v2091_v22  ;;  %v10579_v7 = vcombine.low %v2103_v55, %v2107_v56  ;;  %v1381_v16 = vadd.f32 %v12180_v63, %v530_v1  ;;  %v2147_v1 = vld [vmem:[%s12001_s17 + $0x10a0] sm:$0xff] }
 0x23f   : > { %7937 = vmatpush1.bf16.msra.mxu0 %v10523_v6  ;;  %v2100_v6 = vld [vmem:[%s12001_s17 + $0xf28] sm:$0xff]  ;;  %vm1557_vm7 = vcmp.gt.f32.partialorder %v1381_v16, 0.0 }
 0x240   : > { %8265 = vmatpush1.bf16.msra.mxu1 %v10525_v47  ;;  %7938 = vmatprep.subr.bf16.mxu0 %v10532_v50  ;;  %v10563_v47 = vcombine.low %v2087_v26, %v2091_v22  ;;  %v10565_v50 = vcombine.low %v2088_v27, %v2092_v30  ;;  %v10574_v54 = vcombine.high %v2096_v42, %v2100_v6  ;;  %v2124_v26 = vld [vmem:[%s12001_s17 + $0xfe8] sm:$0xff] }
 0x241   : > { %8266 = vmatprep.subr.bf16.mxu1 %v10534_v51  ;;  %v10572_v51 = vcombine.high %v2095_v37, %v2099_v38 }
 0x243   : > { %7939 = vmatpush1.bf16.msra.mxu0 %v10531_v59  ;;  %v2108_v59 = vld [vmem:[%s12001_s17 + $0xf68] sm:$0xff] }
 0x244   : > { %8267 = vmatpush1.bf16.msra.mxu1 %v10533_v24  ;;  %7940 = vmatprep.subr.bf16.mxu0 %v10540_v60  ;;  %v10571_v24 = vcombine.low %v2095_v37, %v2099_v38  ;;  %v10573_v60 = vcombine.low %v2096_v42, %v2100_v6  ;;  %v10582_v2 = vcombine.high %v2104_v57, %v2108_v59  ;;  %v2132_v37 = vld [vmem:[%s12001_s17 + $0x1028] sm:$0xff] }
 0x245   : > { %8268 = vmatprep.subr.bf16.mxu1 %v10542_v61  ;;  %v10580_v61 = vcombine.high %v2103_v55, %v2107_v56  ;;  %v10581_v43 = vcombine.low %v2104_v57, %v2108_v59  ;;  %v2136_v57 = vld [vmem:[%s12001_s17 + $0x1048] sm:$0xff] }
 0x246   : > { %v2140_v59 = vld [vmem:[%s12001_s17 + $0x1068] sm:$0xff] }
 0x247   : > { %7941 = vmatpush1.bf16.msra.mxu0 %v10539_v4  ;;  %v2115_v4 = vld [vmem:[%s12001_s17 + $0xfa0] sm:$0xff] }
 0x248   : > { %8269 = vmatpush1.bf16.msra.mxu1 %v10541_v48  ;;  %7942 = vmatprep.subr.bf16.mxu0 %v10548_v5  ;;  %v2112_v48 = vld [vmem:[%s12001_s17 + $0xf88] sm:$0xff]  ;;  %v10588_v15 = vcombine.high %v2111_v13, %v2115_v4  ;;  %v10587_v22 = vcombine.low %v2111_v13, %v2115_v4  ;;  %v10614_v13 = vcombine.high %v2136_v57, %v2140_v59 }
 0x249   : > { %8270 = vmatprep.subr.bf16.mxu1 %v10550_v10  ;;  %v2116_v5 = vld [vmem:[%s12001_s17 + $0xfa8] sm:$0xff]  ;;  %v542_v10 = vrot.slane %v12228_v19, %v12112_v25 }
 0x24a   : > { %v10589_v27 = vcombine.low %v2112_v48, %v2116_v5  ;;  %v2144_v4 = vld [vmem:[%s12001_s17 + $0x1088] sm:$0xff] }
 0x24b   : > { %7943 = vmatpush1.bf16.msra.mxu0 %v10547_v17  ;;  %v10590_v17 = vcombine.high %v2112_v48, %v2116_v5  ;;  %v1424_v19 = vadd.f32 %v12226_v18, %v542_v10  ;;  %v2148_v48 = vld [vmem:[%s12001_s17 + $0x10a8] sm:$0xff]  ;;  %v10613_v10 = vcombine.low %v2136_v57, %v2140_v59 }
 0x24c   : > { %8271 = vmatpush1.bf16.msra.mxu1 %v10549_v52  ;;  %7944 = vmatprep.subr.bf16.mxu0 %v10556_v20  ;;  %v2119_v52 = vld [vmem:[%s12001_s17 + $0xfc0] sm:$0xff]  ;;  %v2180_v57 = vld [vmem:[%s12001_s17 + $0x11a8] sm:$0xff] }
 0x24d   : > { %8272 = vmatprep.subr.bf16.mxu1 %v10558_v21  ;;  %v2123_v20 = vld [vmem:[%s12001_s17 + $0xfe0] sm:$0xff]  ;;  %v2120_v21 = vld [vmem:[%s12001_s17 + $0xfc8] sm:$0xff]  ;;  %v1576_v38 = vmul.f32 0.2, %v1424_v19  ;;  %vm1560_vm8 = vcmp.gt.f32.partialorder %v1424_v19, 0.0 }
 0x24e   : > { %v10596_v30 = vcombine.high %v2119_v52, %v2123_v20  ;;  %v10598_v63 = vcombine.high %v2120_v21, %v2124_v26  ;;  %v10595_v18 = vcombine.low %v2119_v52, %v2123_v20  ;;  %v10597_v42 = vcombine.low %v2120_v21, %v2124_v26  ;;  %v2156_v52 = vld [vmem:[%s12001_s17 + $0x10e8] sm:$0xff] }
 0x24f   : > { %7945 = vmatpush1.bf16.msra.mxu0 %v10555_v32  ;;  %v1573_v32 = vmul.f32 0.2, %v1381_v16  ;;  %v1592_v55 = vsel %vm1560_vm8, %v1424_v19, %v1576_v38  ;;  %v10619_v20 = vcombine.low %v2143_v62, %v2147_v1  ;;  %v10621_v21 = vcombine.low %v2144_v4, %v2148_v48  ;;  %v2171_v38 = vld [vmem:[%s12001_s17 + $0x1160] sm:$0xff] }
 0x250   : > { %8273 = vmatpush1.bf16.msra.mxu1 %v10557_v33  ;;  %7946 = vmatprep.subr.bf16.mxu0 %v10564_v35  ;;  %v2127_v33 = vld [vmem:[%s12001_s17 + $0x1000] sm:$0xff] }
 0x251   : > { %8274 = vmatprep.subr.bf16.mxu1 %v10566_v36  ;;  %v2131_v35 = vld [vmem:[%s12001_s17 + $0x1020] sm:$0xff]  ;;  %v2128_v36 = vld [vmem:[%s12001_s17 + $0x1008] sm:$0xff] }
 0x252   : > { %v10604_v6 = vcombine.high %v2127_v33, %v2131_v35  ;;  %v10603_v56 = vcombine.low %v2127_v33, %v2131_v35 }
 0x253   : > { %7947 = vmatpush1.bf16.msra.mxu0 %v10563_v47  ;;  %v1589_v47 = vsel %vm1557_vm7, %v1381_v16, %v1573_v32  ;;  %v2155_v16 = vld [vmem:[%s12001_s17 + $0x10e0] sm:$0xff]  ;;  %v2164_v32 = vld [vmem:[%s12001_s17 + $0x1128] sm:$0xff] }
 0x254   : > { %8275 = vmatpush1.bf16.msra.mxu1 %v10565_v50  ;;  %7948 = vmatprep.subr.bf16.mxu0 %v10572_v51  ;;  %v10606_v50 = vcombine.high %v2128_v36, %v2132_v37  ;;  %v2135_v51 = vld [vmem:[%s12001_s17 + $0x1040] sm:$0xff] }
 0x255   : > { %8276 = vmatprep.subr.bf16.mxu1 %v10574_v54  ;;  %v2139_v54 = vld [vmem:[%s12001_s17 + $0x1060] sm:$0xff] }
 0x256   : > { %v10611_v5 = vcombine.low %v2135_v51, %v2139_v54 }
 0x257   : > { %7949 = vmatpush1.bf16.msra.mxu0 %v10571_v24  ;;  %v12423_v24 = vpack.c.bf16 %v1589_v47, %v1589_v47 }
 0x258   : > { %8277 = vmatpush1.bf16.msra.mxu1 %v10573_v60  ;;  %7950 = vmatprep.subr.bf16.mxu0 %v10580_v61  ;;  %v10605_v60 = vcombine.low %v2128_v36, %v2132_v37  ;;  %v10612_v61 = vcombine.high %v2135_v51, %v2139_v54  ;;  %v2167_v37 = vld [vmem:[%s12001_s17 + $0x1140] sm:$0xff] }
 0x259   : > { %8278 = vmatprep.subr.bf16.mxu1 %v10582_v2  ;;  %v12427_v2 = vpack.c.bf16 %v1592_v55, %v1592_v55  ;;  %v2175_v54 = vld [vmem:[%s12001_s17 + $0x1180] sm:$0xff]  ;;  %v10643_v59 = vcombine.low %v2167_v37, %v2171_v38 }
 0x25a   : > { %v2179_v55 = vld [vmem:[%s12001_s17 + $0x11a0] sm:$0xff] }
 0x25b   : > { %7951 = vmatpush1.bf16.msra.mxu0 %v10579_v7  ;;  %v10620_v7 = vcombine.high %v2143_v62, %v2147_v1  ;;  %v2183_v1 = vld [vmem:[%s12001_s17 + $0x11c0] sm:$0xff] }
 0x25c   : > { %8279 = vmatpush1.bf16.msra.mxu1 %v10581_v43  ;;  %7952 = vmatprep.subr.bf16.mxu0 %v10588_v15  ;;  %v10622_v43 = vcombine.high %v2144_v4, %v2148_v48  ;;  %v2151_v15 = vld [vmem:[%s12001_s17 + $0x10c0] sm:$0xff]  ;;  %v2184_v4 = vld [vmem:[%s12001_s17 + $0x11c8] sm:$0xff] }
 0x25d   : > { %8280 = vmatprep.subr.bf16.mxu1 %v10590_v17  ;;  %v2152_v17 = vld [vmem:[%s12001_s17 + $0x10c8] sm:$0xff]  ;;  %v10628_v26 = vcombine.high %v2151_v15, %v2155_v16 }
 0x25e   : > { %v10630_v19 = vcombine.high %v2152_v17, %v2156_v52  ;;  %v10629_v33 = vcombine.low %v2152_v17, %v2156_v52  ;;  %v2188_v48 = vld [vmem:[%s12001_s17 + $0x11e8] sm:$0xff] }
 0x25f   : > { %7953 = vmatpush1.bf16.msra.mxu0 %v10587_v22  ;;  %v2159_v22 = vld [vmem:[%s12001_s17 + $0x1100] sm:$0xff]  ;;  %v2192_v17 = vld [vmem:[%s12001_s17 + $0x1208] sm:$0xff] }
 0x260   : > { %8281 = vmatpush1.bf16.msra.mxu1 %v10589_v27  ;;  %7954 = vmatprep.subr.bf16.mxu0 %v10596_v30  ;;  %v2163_v27 = vld [vmem:[%s12001_s17 + $0x1120] sm:$0xff]  ;;  %v2160_v30 = vld [vmem:[%s12001_s17 + $0x1108] sm:$0xff] }
 0x261   : > { %8282 = vmatprep.subr.bf16.mxu1 %v10598_v63  ;;  %v10627_v63 = vcombine.low %v2151_v15, %v2155_v16  ;;  %v10636_v35 = vcombine.high %v2159_v22, %v2163_v27  ;;  %v10638_v36 = vcombine.high %v2160_v30, %v2164_v32  ;;  %v10637_v47 = vcombine.low %v2160_v30, %v2164_v32  ;;  %v2191_v15 = vld [vmem:[%s12001_s17 + $0x1200] sm:$0xff]  ;;  %v2196_v52 = vld [vmem:[%s12001_s17 + $0x1228] sm:$0xff] }
 0x262   : > { %v2195_v16 = vld [vmem:[%s12001_s17 + $0x1220] sm:$0xff]  ;;  %v2200_v30 = vld [vmem:[%s12001_s17 + $0x1248] sm:$0xff] }
 0x263   : > { %7955 = vmatpush1.bf16.msra.mxu0 %v10595_v18  ;;  %v2168_v18 = vld [vmem:[%s12001_s17 + $0x1148] sm:$0xff] }
 0x264   : > { %8283 = vmatpush1.bf16.msra.mxu1 %v10597_v42  ;;  %7965 = vmatprep.subr.bf16.mxu0 %v10604_v6  ;;  %v2172_v42 = vld [vmem:[%s12001_s17 + $0x1168] sm:$0xff]  ;;  %v10635_v6 = vcombine.low %v2159_v22, %v2163_v27  ;;  %v2199_v22 = vld [vmem:[%s12001_s17 + $0x1240] sm:$0xff] }
 0x265   : > { %8293 = vmatprep.subr.bf16.mxu1 %v10606_v50  ;;  %v10644_v50 = vcombine.high %v2167_v37, %v2171_v38  ;;  %v10646_v51 = vcombine.high %v2168_v18, %v2172_v42  ;;  %v2203_v27 = vld [vmem:[%s12001_s17 + $0x1260] sm:$0xff]  ;;  %v2204_v32 = vld [vmem:[%s12001_s17 + $0x1268] sm:$0xff] }
 0x266   : > { %7957 = vmatmul.mubr.bf16.vlgmr.msra.gmra.mrb[16].mxu0 %v12423_v24  ;;  %v2207_v37 = vld [vmem:[%s12001_s17 + $0x1280] sm:$0xff] }
 0x267   : > { %8285 = vmatmul.mubr.bf16.vlgmr.msra.gmra.mrb[16].mxu1 %v12423_v24  ;;  %7966 = vmatpush1.bf16.msra.mxu0 %v10603_v56  ;;  %v2176_v56 = vld [vmem:[%s12001_s17 + $0x1188] sm:$0xff]  ;;  %v2211_v38 = vld [vmem:[%s12001_s17 + $0x12a0] sm:$0xff] }
 0x268   : > { %7997 = vmatprep.mubr.bf16.mxu0 %v12427_v2  ;;  %8294 = vmatpush1.bf16.msra.mxu1 %v10605_v60  ;;  %v10645_v60 = vcombine.low %v2168_v18, %v2172_v42  ;;  %v10654_v62 = vcombine.high %v2176_v56, %v2180_v57  ;;  %v2208_v18 = vld [vmem:[%s12001_s17 + $0x1288] sm:$0xff] }
 0x269   : > { %8325 = vmatprep.mubr.bf16.mxu1 %v12427_v2  ;;  %7967 = vmatprep.subr.bf16.mxu0 %v10612_v61  ;;  %v10652_v61 = vcombine.high %v2175_v54, %v2179_v55  ;;  %v2212_v42 = vld [vmem:[%s12001_s17 + $0x12a8] sm:$0xff] }
 0x26a   : > { %8295 = vmatprep.subr.bf16.mxu1 %v10614_v13  ;;  %v2187_v13 = vld [vmem:[%s12001_s17 + $0x11e0] sm:$0xff] }
 0x26b   : > { %7968 = vmatpush1.bf16.msra.mxu0 %v10611_v5  ;;  %v10651_v5 = vcombine.low %v2175_v54, %v2179_v55  ;;  %v2215_v54 = vld [vmem:[%s12001_s17 + $0x12c0] sm:$0xff] }
 0x26c   : > { %8296 = vmatpush1.bf16.msra.mxu1 %v10613_v10  ;;  %7969 = vmatprep.subr.bf16.mxu0 %v10620_v7  ;;  %v10653_v10 = vcombine.low %v2176_v56, %v2180_v57  ;;  %v10660_v7 = vcombine.high %v2183_v1, %v2187_v13  ;;  %v2219_v55 = vld [vmem:[%s12001_s17 + $0x12e0] sm:$0xff]  ;;  %v2216_v56 = vld [vmem:[%s12001_s17 + $0x12c8] sm:$0xff] }
 0x26d   : > { %8297 = vmatprep.subr.bf16.mxu1 %v10622_v43  ;;  %v10662_v43 = vcombine.high %v2184_v4, %v2188_v48  ;;  %v2220_v57 = vld [vmem:[%s12001_s17 + $0x12e8] sm:$0xff] }
 0x26f   : > { %7970 = vmatpush1.bf16.msra.mxu0 %v10619_v20  ;;  %v10659_v20 = vcombine.low %v2183_v1, %v2187_v13  ;;  %v2223_v1 = vld [vmem:[%s12001_s17 + $0x1300] sm:$0xff] }
 0x270   : > { %8298 = vmatpush1.bf16.msra.mxu1 %v10621_v21  ;;  %7971 = vmatprep.subr.bf16.mxu0 %v10628_v26  ;;  %v10661_v21 = vcombine.low %v2184_v4, %v2188_v48  ;;  %v10668_v26 = vcombine.high %v2191_v15, %v2195_v16  ;;  %v2227_v13 = vld [vmem:[%s12001_s17 + $0x1320] sm:$0xff]  ;;  %v2224_v4 = vld [vmem:[%s12001_s17 + $0x1308] sm:$0xff] }
 0x271   : > { %8299 = vmatprep.subr.bf16.mxu1 %v10630_v19  ;;  %v10670_v19 = vcombine.high %v2192_v17, %v2196_v52  ;;  %v2228_v48 = vld [vmem:[%s12001_s17 + $0x1328] sm:$0xff] }
 0x273   : > { %7972 = vmatpush1.bf16.msra.mxu0 %v10627_v63  ;;  %v10667_v63 = vcombine.low %v2191_v15, %v2195_v16  ;;  %v2231_v15 = vld [vmem:[%s12001_s17 + $0x1340] sm:$0xff] }
 0x274   : > { %8300 = vmatpush1.bf16.msra.mxu1 %v10629_v33  ;;  %7973 = vmatprep.subr.bf16.mxu0 %v10636_v35  ;;  %v10669_v33 = vcombine.low %v2192_v17, %v2196_v52  ;;  %v10676_v35 = vcombine.high %v2199_v22, %v2203_v27  ;;  %v2235_v16 = vld [vmem:[%s12001_s17 + $0x1360] sm:$0xff]  ;;  %v2232_v17 = vld [vmem:[%s12001_s17 + $0x1348] sm:$0xff] }
 0x275   : > { %8301 = vmatprep.subr.bf16.mxu1 %v10638_v36  ;;  %v10678_v36 = vcombine.high %v2200_v30, %v2204_v32  ;;  %v2236_v52 = vld [vmem:[%s12001_s17 + $0x1368] sm:$0xff] }
 0x277   : > { %7974 = vmatpush1.bf16.msra.mxu0 %v10635_v6  ;;  %v10675_v6 = vcombine.low %v2199_v22, %v2203_v27  ;;  %v10710_v27 = vcombine.high %v2232_v17, %v2236_v52 }
 0x278   : > { %8302 = vmatpush1.bf16.msra.mxu1 %v10637_v47  ;;  %7975 = vmatprep.subr.bf16.mxu0 %v10644_v50  ;;  %v10677_v47 = vcombine.low %v2200_v30, %v2204_v32  ;;  %v10684_v50 = vcombine.high %v2207_v37, %v2211_v38  ;;  %v2239_v30 = vld [vmem:[%s12001_s17 + $0x1380] sm:$0xff] }
 0x279   : > { %8303 = vmatprep.subr.bf16.mxu1 %v10646_v51  ;;  %v10686_v51 = vcombine.high %v2208_v18, %v2212_v42  ;;  %v2243_v32 = vld [vmem:[%s12001_s17 + $0x13a0] sm:$0xff] }
 0x27b   : > { %7976 = vmatpush1.bf16.msra.mxu0 %v10643_v59  ;;  %v10683_v59 = vcombine.low %v2207_v37, %v2211_v38  ;;  %v10716_v37 = vcombine.high %v2239_v30, %v2243_v32 }
 0x27c   : > { %8304 = vmatpush1.bf16.msra.mxu1 %v10645_v60  ;;  %7977 = vmatprep.subr.bf16.mxu0 %v10652_v61  ;;  %v10685_v60 = vcombine.low %v2208_v18, %v2212_v42  ;;  %v10692_v61 = vcombine.high %v2215_v54, %v2219_v55  ;;  %v2247_v42 = vld [vmem:[%s12001_s17 + $0x13c0] sm:$0xff] }
 0x27d   : > { %8305 = vmatprep.subr.bf16.mxu1 %v10654_v62  ;;  %v10694_v62 = vcombine.high %v2216_v56, %v2220_v57 }
 0x27f   : > { %7978 = vmatpush1.bf16.msra.mxu0 %v10651_v5  ;;  %v10691_v5 = vcombine.low %v2215_v54, %v2219_v55 }
 0x280   : > { %8306 = vmatpush1.bf16.msra.mxu1 %v10653_v10  ;;  %7979 = vmatprep.subr.bf16.mxu0 %v10660_v7  ;;  %v10693_v10 = vcombine.low %v2216_v56, %v2220_v57  ;;  %v10700_v7 = vcombine.high %v2223_v1, %v2227_v13 }
 0x281   : > { %8307 = vmatprep.subr.bf16.mxu1 %v10662_v43  ;;  %v10702_v43 = vcombine.high %v2224_v4, %v2228_v48 }
 0x283   : > { %7980 = vmatpush1.bf16.msra.mxu0 %v10659_v20  ;;  %v10699_v20 = vcombine.low %v2223_v1, %v2227_v13 }
 0x284   : > { %8308 = vmatpush1.bf16.msra.mxu1 %v10661_v21  ;;  %7981 = vmatprep.subr.bf16.mxu0 %v10668_v26  ;;  %v10701_v21 = vcombine.low %v2224_v4, %v2228_v48  ;;  %v10708_v26 = vcombine.high %v2231_v15, %v2235_v16 }
 0x285   : > { %8309 = vmatprep.subr.bf16.mxu1 %v10670_v19  ;;  %v11533_v19 = vld [vmem:[#allocation4 + $0x8] sm:$0xff] }
 0x286   : > { %v538_v22 = vrot.slane %v11533_v19, %v12107_v23  ;;  %v2275_v19 = vld [vmem:[%s12001_s17 + $0x14a0] sm:$0xff] }
 0x287   : > { %7982 = vmatpush1.bf16.msra.mxu0 %v10667_v63  ;;  %v2240_v63 = vld [vmem:[%s12001_s17 + $0x1388] sm:$0xff] }
 0x288   : > { %8310 = vmatpush1.bf16.msra.mxu1 %v10669_v33  ;;  %7983 = vmatprep.subr.bf16.mxu0 %v10676_v35  ;;  %v2244_v33 = vld [vmem:[%s12001_s17 + $0x13a8] sm:$0xff]  ;;  %v10707_v35 = vcombine.low %v2231_v15, %v2235_v16  ;;  %v1422_v38 = vadd.f32 %v12221_v14, %v538_v22  ;;  %v2255_v14 = vld [vmem:[%s12001_s17 + $0x1400] sm:$0xff] }
 0x289   : > { %8311 = vmatprep.subr.bf16.mxu1 %v10678_v36  ;;  %v10709_v36 = vcombine.low %v2232_v17, %v2236_v52  ;;  %v10718_v18 = vcombine.high %v2240_v63, %v2244_v33  ;;  %v10717_v54 = vcombine.low %v2240_v63, %v2244_v33  ;;  %v2264_v16 = vld [vmem:[%s12001_s17 + $0x1448] sm:$0xff] }
 0x28a   : > { %v1575_v56 = vmul.f32 0.2, %v1422_v38  ;;  %vm1559_vm9 = vcmp.gt.f32.partialorder %v1422_v38, 0.0  ;;  %v2268_v17 = vld [vmem:[%s12001_s17 + $0x1468] sm:$0xff] }
 0x28b   : > { %7984 = vmatpush1.bf16.msra.mxu0 %v10675_v6  ;;  %v2251_v6 = vld [vmem:[%s12001_s17 + $0x13e0] sm:$0xff]  ;;  %v10741_v63 = vcombine.low %v2264_v16, %v2268_v17 }
 0x28c   : > { %8312 = vmatpush1.bf16.msra.mxu1 %v10677_v47  ;;  %7985 = vmatprep.subr.bf16.mxu0 %v10684_v50  ;;  %v2248_v47 = vld [vmem:[%s12001_s17 + $0x13c8] sm:$0xff]  ;;  %v10724_v55 = vcombine.high %v2247_v42, %v2251_v6  ;;  %v10723_v1 = vcombine.low %v2247_v42, %v2251_v6  ;;  %v1591_v48 = vsel %vm1559_vm9, %v1422_v38, %v1575_v56 }
 0x28d   : > { %8313 = vmatprep.subr.bf16.mxu1 %v10686_v51  ;;  %v2252_v50 = vld [vmem:[%s12001_s17 + $0x13e8] sm:$0xff]  ;;  %v10715_v51 = vcombine.low %v2239_v30, %v2243_v32  ;;  %v12500_v52 = vpack.c.bf16 %v1591_v48, %v1591_v48 }
 0x28e   : > { %v10726_v57 = vcombine.high %v2248_v47, %v2252_v50  ;;  %v10725_v13 = vcombine.low %v2248_v47, %v2252_v50  ;;  %v2276_v30 = vld [vmem:[%s12001_s17 + $0x14a8] sm:$0xff] }
 0x28f   : > { %7986 = vmatpush1.bf16.msra.mxu0 %v10683_v59  ;;  %v2259_v59 = vld [vmem:[%s12001_s17 + $0x1420] sm:$0xff]  ;;  %v2280_v38 = vld [vmem:[%s12001_s17 + $0x14c8] sm:$0xff] }
 0x290   : > { %8314 = vmatpush1.bf16.msra.mxu1 %v10685_v60  ;;  %7987 = vmatprep.subr.bf16.mxu0 %v10692_v61  ;;  %v2256_v60 = vld [vmem:[%s12001_s17 + $0x1408] sm:$0xff]  ;;  %v10732_v4 = vcombine.high %v2255_v14, %v2259_v59  ;;  %v10731_v15 = vcombine.low %v2255_v14, %v2259_v59 }
 0x291   : > { %8315 = vmatprep.subr.bf16.mxu1 %v10694_v62  ;;  %v2260_v61 = vld [vmem:[%s12001_s17 + $0x1428] sm:$0xff]  ;;  %v1578_v62 = vmul.f32 0.2, %v12244_v53 }
 0x292   : > { %v2292_v56 = vld [vmem:[%s12001_s17 + $0x1528] sm:$0xff] }
 0x293   : > { %7988 = vmatpush1.bf16.msra.mxu0 %v10691_v5  ;;  %v10734_v5 = vcombine.high %v2256_v60, %v2260_v61 }
 0x294   : > { %8316 = vmatpush1.bf16.msra.mxu1 %v10693_v10  ;;  %7989 = vmatprep.subr.bf16.mxu0 %v10700_v7  ;;  %v2263_v10 = vld [vmem:[%s12001_s17 + $0x1440] sm:$0xff] }
 0x295   : > { %8317 = vmatprep.subr.bf16.mxu1 %v10702_v43  ;;  %v2267_v7 = vld [vmem:[%s12001_s17 + $0x1460] sm:$0xff]  ;;  %v1594_v43 = vsel %vm1562_vm10, %v12244_v53, %v1578_v62  ;;  %v10742_v53 = vcombine.high %v2264_v16, %v2268_v17  ;;  %v2308_v16 = vld [vmem:[%s12001_s17 + $0x15a8] sm:$0xff] }
 0x296   : > { %v12504_v22 = vpack.c.bf16 %v1594_v43, %v1594_v43  ;;  %v10739_v32 = vcombine.low %v2263_v10, %v2267_v7  ;;  %v2299_v62 = vld [vmem:[%s12001_s17 + $0x1560] sm:$0xff] }
 0x297   : > { %7990 = vmatpush1.bf16.msra.mxu0 %v10699_v20  ;;  %v10733_v20 = vcombine.low %v2256_v60, %v2260_v61  ;;  %v2295_v61 = vld [vmem:[%s12001_s17 + $0x1540] sm:$0xff] }
 0x298   : > { %8318 = vmatpush1.bf16.msra.mxu1 %v10701_v21  ;;  %7991 = vmatprep.subr.bf16.mxu0 %v10708_v26  ;;  %v10740_v21 = vcombine.high %v2263_v10, %v2267_v7  ;;  %v2271_v26 = vld [vmem:[%s12001_s17 + $0x1480] sm:$0xff]  ;;  %v10771_v17 = vcombine.low %v2295_v61, %v2299_v62 }
 0x299   : > { %8319 = vmatprep.subr.bf16.mxu1 %v10710_v27  ;;  %v2272_v27 = vld [vmem:[%s12001_s17 + $0x1488] sm:$0xff]  ;;  %v10748_v33 = vcombine.high %v2271_v26, %v2275_v19  ;;  %v10747_v42 = vcombine.low %v2271_v26, %v2275_v19  ;;  %v2303_v7 = vld [vmem:[%s12001_s17 + $0x1580] sm:$0xff] }
 0x29a   : > { %v10749_v6 = vcombine.low %v2272_v27, %v2276_v30  ;;  %v2307_v43 = vld [vmem:[%s12001_s17 + $0x15a0] sm:$0xff] }
 0x29b   : > { %7992 = vmatpush1.bf16.msra.mxu0 %v10707_v35  ;;  %v10750_v35 = vcombine.high %v2272_v27, %v2276_v30  ;;  %v2311_v19 = vld [vmem:[%s12001_s17 + $0x15c0] sm:$0xff]  ;;  %v2312_v27 = vld [vmem:[%s12001_s17 + $0x15c8] sm:$0xff] }
 0x29c   : > { %8320 = vmatpush1.bf16.msra.mxu1 %v10709_v36  ;;  %7993 = vmatprep.subr.bf16.mxu0 %v10716_v37  ;;  %v2279_v36 = vld [vmem:[%s12001_s17 + $0x14c0] sm:$0xff]  ;;  %v2316_v30 = vld [vmem:[%s12001_s17 + $0x15e8] sm:$0xff] }
 0x29d   : > { %8321 = vmatprep.subr.bf16.mxu1 %v10718_v18  ;;  %v2283_v37 = vld [vmem:[%s12001_s17 + $0x14e0] sm:$0xff]  ;;  %v2284_v18 = vld [vmem:[%s12001_s17 + $0x14e8] sm:$0xff] }
 0x29e   : > { %v10756_v47 = vcombine.high %v2279_v36, %v2283_v37  ;;  %v10758_v50 = vcombine.high %v2280_v38, %v2284_v18  ;;  %v10757_v14 = vcombine.low %v2280_v38, %v2284_v18  ;;  %v2320_v38 = vld [vmem:[%s12001_s17 + $0x1608] sm:$0xff] }
 0x29f   : > { %7994 = vmatpush1.bf16.msra.mxu0 %v10715_v51  ;;  %v2287_v51 = vld [vmem:[%s12001_s17 + $0x1500] sm:$0xff]  ;;  %v2324_v18 = vld [vmem:[%s12001_s17 + $0x1628] sm:$0xff] }
 0x2a0   : > { %8322 = vmatpush1.bf16.msra.mxu1 %v10717_v54  ;;  %7995 = vmatprep.subr.bf16.mxu0 %v10724_v55  ;;  %v2291_v54 = vld [vmem:[%s12001_s17 + $0x1520] sm:$0xff]  ;;  %v2288_v55 = vld [vmem:[%s12001_s17 + $0x1508] sm:$0xff] }
 0x2a1   : > { %8323 = vmatprep.subr.bf16.mxu1 %v10726_v57  ;;  %v10755_v57 = vcombine.low %v2279_v36, %v2283_v37  ;;  %v10764_v59 = vcombine.high %v2287_v51, %v2291_v54  ;;  %v10766_v60 = vcombine.high %v2288_v55, %v2292_v56  ;;  %v10765_v48 = vcombine.low %v2288_v55, %v2292_v56  ;;  %v2319_v36 = vld [vmem:[%s12001_s17 + $0x1600] sm:$0xff]  ;;  %v2328_v55 = vld [vmem:[%s12001_s17 + $0x1648] sm:$0xff] }
 0x2a2   : > { %v2323_v37 = vld [vmem:[%s12001_s17 + $0x1620] sm:$0xff]  ;;  %v2332_v56 = vld [vmem:[%s12001_s17 + $0x1668] sm:$0xff] }
 0x2a3   : > { %7996 = vmatpush1.bf16.msra.mxu0 %v10723_v1  ;;  %v2296_v1 = vld [vmem:[%s12001_s17 + $0x1548] sm:$0xff] }
 0x2a4   : > { %8324 = vmatpush1.bf16.msra.mxu1 %v10725_v13  ;;  %8006 = vmatprep.subr.bf16.mxu0 %v10732_v4  ;;  %v2300_v13 = vld [vmem:[%s12001_s17 + $0x1568] sm:$0xff]  ;;  %v10763_v4 = vcombine.low %v2287_v51, %v2291_v54  ;;  %v2327_v51 = vld [vmem:[%s12001_s17 + $0x1640] sm:$0xff] }
 0x2a5   : > { %8334 = vmatprep.subr.bf16.mxu1 %v10734_v5  ;;  %v10772_v5 = vcombine.high %v2295_v61, %v2299_v62  ;;  %v10774_v10 = vcombine.high %v2296_v1, %v2300_v13  ;;  %v2331_v54 = vld [vmem:[%s12001_s17 + $0x1660] sm:$0xff] }
 0x2a6   : > { %7998 = vmatmul.mubr.bf16.vlgmr.msra.gmra.mrb[16].mxu0 %v12500_v52  ;;  %v2335_v61 = vld [vmem:[%s12001_s17 + $0x1680] sm:$0xff] }
 0x2a7   : > { %8326 = vmatmul.mubr.bf16.vlgmr.msra.gmra.mrb[16].mxu1 %v12500_v52  ;;  %8007 = vmatpush1.bf16.msra.mxu0 %v10731_v15  ;;  %v2304_v15 = vld [vmem:[%s12001_s17 + $0x1588] sm:$0xff]  ;;  %v2339_v62 = vld [vmem:[%s12001_s17 + $0x16a0] sm:$0xff] }
 0x2a8   : > { %8038 = vmatprep.mubr.bf16.mxu0 %v12504_v22  ;;  %8335 = vmatpush1.bf16.msra.mxu1 %v10733_v20  ;;  %v10773_v20 = vcombine.low %v2296_v1, %v2300_v13  ;;  %v10782_v26 = vcombine.high %v2304_v15, %v2308_v16  ;;  %v2336_v1 = vld [vmem:[%s12001_s17 + $0x1688] sm:$0xff] }
 0x2a9   : > { %8366 = vmatprep.mubr.bf16.mxu1 %v12504_v22  ;;  %8008 = vmatprep.subr.bf16.mxu0 %v10740_v21  ;;  %v10780_v21 = vcombine.high %v2303_v7, %v2307_v43  ;;  %v2340_v13 = vld [vmem:[%s12001_s17 + $0x16a8] sm:$0xff] }
 0x2aa   : > { %8336 = vmatprep.subr.bf16.mxu1 %v10742_v53  ;;  %v2315_v53 = vld [vmem:[%s12001_s17 + $0x15e0] sm:$0xff] }
 0x2ab   : > { %8009 = vmatpush1.bf16.msra.mxu0 %v10739_v32  ;;  %v10779_v32 = vcombine.low %v2303_v7, %v2307_v43  ;;  %v2343_v7 = vld [vmem:[%s12001_s17 + $0x16c0] sm:$0xff] }
 0x2ac   : > { %8337 = vmatpush1.bf16.msra.mxu1 %v10741_v63  ;;  %8010 = vmatprep.subr.bf16.mxu0 %v10748_v33  ;;  %v10781_v63 = vcombine.low %v2304_v15, %v2308_v16  ;;  %v10788_v33 = vcombine.high %v2311_v19, %v2315_v53  ;;  %v2347_v43 = vld [vmem:[%s12001_s17 + $0x16e0] sm:$0xff]  ;;  %v2344_v15 = vld [vmem:[%s12001_s17 + $0x16c8] sm:$0xff] }
 0x2ad   : > { %8338 = vmatprep.subr.bf16.mxu1 %v10750_v35  ;;  %v10790_v35 = vcombine.high %v2312_v27, %v2316_v30  ;;  %v2348_v16 = vld [vmem:[%s12001_s17 + $0x16e8] sm:$0xff] }
 0x2af   : > { %8011 = vmatpush1.bf16.msra.mxu0 %v10747_v42  ;;  %v10787_v42 = vcombine.low %v2311_v19, %v2315_v53  ;;  %v2351_v19 = vld [vmem:[%s12001_s17 + $0x1700] sm:$0xff] }
 0x2b0   : > { %8339 = vmatpush1.bf16.msra.mxu1 %v10749_v6  ;;  %8012 = vmatprep.subr.bf16.mxu0 %v10756_v47  ;;  %v10789_v6 = vcombine.low %v2312_v27, %v2316_v30  ;;  %v10796_v47 = vcombine.high %v2319_v36, %v2323_v37  ;;  %v2355_v53 = vld [vmem:[%s12001_s17 + $0x1720] sm:$0xff]  ;;  %v2352_v27 = vld [vmem:[%s12001_s17 + $0x1708] sm:$0xff] }
 0x2b1   : > { %8340 = vmatprep.subr.bf16.mxu1 %v10758_v50  ;;  %v10798_v50 = vcombine.high %v2320_v38, %v2324_v18  ;;  %v2356_v30 = vld [vmem:[%s12001_s17 + $0x1728] sm:$0xff] }
 0x2b3   : > { %8013 = vmatpush1.bf16.msra.mxu0 %v10755_v57  ;;  %v10795_v57 = vcombine.low %v2319_v36, %v2323_v37  ;;  %v2359_v36 = vld [vmem:[%s12001_s17 + $0x1740] sm:$0xff] }
 0x2b4   : > { %8341 = vmatpush1.bf16.msra.mxu1 %v10757_v14  ;;  %8014 = vmatprep.subr.bf16.mxu0 %v10764_v59  ;;  %v10797_v14 = vcombine.low %v2320_v38, %v2324_v18  ;;  %v10804_v59 = vcombine.high %v2327_v51, %v2331_v54  ;;  %v2363_v37 = vld [vmem:[%s12001_s17 + $0x1760] sm:$0xff]  ;;  %v2360_v38 = vld [vmem:[%s12001_s17 + $0x1748] sm:$0xff] }
 0x2b5   : > { %8342 = vmatprep.subr.bf16.mxu1 %v10766_v60  ;;  %v10806_v60 = vcombine.high %v2328_v55, %v2332_v56  ;;  %v2364_v18 = vld [vmem:[%s12001_s17 + $0x1768] sm:$0xff] }
 0x2b7   : > { %8015 = vmatpush1.bf16.msra.mxu0 %v10763_v4  ;;  %v10803_v4 = vcombine.low %v2327_v51, %v2331_v54  ;;  %v2367_v51 = vld [vmem:[%s12001_s17 + $0x1780] sm:$0xff] }
 0x2b8   : > { %8343 = vmatpush1.bf16.msra.mxu1 %v10765_v48  ;;  %8016 = vmatprep.subr.bf16.mxu0 %v10772_v5  ;;  %v10805_v48 = vcombine.low %v2328_v55, %v2332_v56  ;;  %v10812_v5 = vcombine.high %v2335_v61, %v2339_v62  ;;  %v2371_v54 = vld [vmem:[%s12001_s17 + $0x17a0] sm:$0xff]  ;;  %v2368_v55 = vld [vmem:[%s12001_s17 + $0x1788] sm:$0xff] }
 0x2b9   : > { %8344 = vmatprep.subr.bf16.mxu1 %v10774_v10  ;;  %v10814_v10 = vcombine.high %v2336_v1, %v2340_v13  ;;  %v2372_v56 = vld [vmem:[%s12001_s17 + $0x17a8] sm:$0xff] }
 0x2bb   : > { %8017 = vmatpush1.bf16.msra.mxu0 %v10771_v17  ;;  %v10811_v17 = vcombine.low %v2335_v61, %v2339_v62  ;;  %v2375_v61 = vld [vmem:[%s12001_s17 + $0x17c0] sm:$0xff] }
 0x2bc   : > { %8345 = vmatpush1.bf16.msra.mxu1 %v10773_v20  ;;  %8018 = vmatprep.subr.bf16.mxu0 %v10780_v21  ;;  %v10813_v20 = vcombine.low %v2336_v1, %v2340_v13  ;;  %v10820_v21 = vcombine.high %v2343_v7, %v2347_v43  ;;  %v2379_v62 = vld [vmem:[%s12001_s17 + $0x17e0] sm:$0xff]  ;;  %v2376_v1 = vld [vmem:[%s12001_s17 + $0x17c8] sm:$0xff] }
 0x2bd   : > { %8346 = vmatprep.subr.bf16.mxu1 %v10782_v26  ;;  %v10822_v26 = vcombine.high %v2344_v15, %v2348_v16  ;;  %v2380_v13 = vld [vmem:[%s12001_s17 + $0x17e8] sm:$0xff] }
 0x2bf   : > { %8019 = vmatpush1.bf16.msra.mxu0 %v10779_v32  ;;  %v10819_v32 = vcombine.low %v2343_v7, %v2347_v43  ;;  %v10854_v7 = vcombine.high %v2376_v1, %v2380_v13  ;;  %v2383_v43 = vld [vmem:[%s12001_s17 + $0x1800] sm:$0xff] }
 0x2c0   : > { %8347 = vmatpush1.bf16.msra.mxu1 %v10781_v63  ;;  %8020 = vmatprep.subr.bf16.mxu0 %v10788_v33  ;;  %v10821_v63 = vcombine.low %v2344_v15, %v2348_v16  ;;  %v10828_v33 = vcombine.high %v2351_v19, %v2355_v53  ;;  %v2387_v15 = vld [vmem:[%s12001_s17 + $0x1820] sm:$0xff]  ;;  %v2384_v16 = vld [vmem:[%s12001_s17 + $0x1808] sm:$0xff] }
 0x2c1   : > { %8348 = vmatprep.subr.bf16.mxu1 %v10790_v35  ;;  %v10830_v35 = vcombine.high %v2352_v27, %v2356_v30 }
 0x2c3   : > { %8021 = vmatpush1.bf16.msra.mxu0 %v10787_v42  ;;  %v10827_v42 = vcombine.low %v2351_v19, %v2355_v53  ;;  %v10860_v19 = vcombine.high %v2383_v43, %v2387_v15 }
 0x2c4   : > { %8349 = vmatpush1.bf16.msra.mxu1 %v10789_v6  ;;  %8022 = vmatprep.subr.bf16.mxu0 %v10796_v47  ;;  %v10829_v6 = vcombine.low %v2352_v27, %v2356_v30  ;;  %v10836_v47 = vcombine.high %v2359_v36, %v2363_v37  ;;  %v2391_v30 = vld [vmem:[%s12001_s17 + $0x1840] sm:$0xff] }
 0x2c5   : > { %8350 = vmatprep.subr.bf16.mxu1 %v10798_v50  ;;  %v10838_v50 = vcombine.high %v2360_v38, %v2364_v18 }
 0x2c7   : > { %8023 = vmatpush1.bf16.msra.mxu0 %v10795_v57  ;;  %v10835_v57 = vcombine.low %v2359_v36, %v2363_v37  ;;  %v2396_v36 = vld [vmem:[%s12001_s17 + $0x1868] sm:$0xff] }
 0x2c8   : > { %8351 = vmatpush1.bf16.msra.mxu1 %v10797_v14  ;;  %8024 = vmatprep.subr.bf16.mxu0 %v10804_v59  ;;  %v10837_v14 = vcombine.low %v2360_v38, %v2364_v18  ;;  %v10844_v59 = vcombine.high %v2367_v51, %v2371_v54  ;;  %v2399_v18 = vld [vmem:[%s12001_s17 + $0x1880] sm:$0xff] }
 0x2c9   : > { %8352 = vmatprep.subr.bf16.mxu1 %v10806_v60  ;;  %v10846_v60 = vcombine.high %v2368_v55, %v2372_v56 }
 0x2cb   : > { %8025 = vmatpush1.bf16.msra.mxu0 %v10803_v4  ;;  %v10843_v4 = vcombine.low %v2367_v51, %v2371_v54 }
 0x2cc   : > { %8353 = vmatpush1.bf16.msra.mxu1 %v10805_v48  ;;  %8026 = vmatprep.subr.bf16.mxu0 %v10812_v5  ;;  %v10845_v48 = vcombine.low %v2368_v55, %v2372_v56  ;;  %v10852_v5 = vcombine.high %v2375_v61, %v2379_v62 }
 0x2cd   : > { %8354 = vmatprep.subr.bf16.mxu1 %v10814_v10  ;;  %v1577_v10 = vmul.f32 0.2, %v12239_v0 }
 0x2cf   : > { %8027 = vmatpush1.bf16.msra.mxu0 %v10811_v17  ;;  %v2388_v17 = vld [vmem:[%s12001_s17 + $0x1828] sm:$0xff]  ;;  %v1593_v53 = vsel %vm1561_vm11, %v12239_v0, %v1577_v10 }
 0x2d0   : > { %8355 = vmatpush1.bf16.msra.mxu1 %v10813_v20  ;;  %8028 = vmatprep.subr.bf16.mxu0 %v10820_v21  ;;  %v1580_v20 = vmul.f32 0.2, %v12294_v12  ;;  %v10851_v21 = vcombine.low %v2375_v61, %v2379_v62  ;;  %v10862_v27 = vcombine.high %v2384_v16, %v2388_v17  ;;  %v12578_v37 = vpack.c.bf16 %v1593_v53, %v1593_v53  ;;  %v2420_v10 = vld [vmem:[%s12001_s17 + $0x1928] sm:$0xff] }
 0x2d1   : > { %8356 = vmatprep.subr.bf16.mxu1 %v10822_v26  ;;  %v10853_v26 = vcombine.low %v2376_v1, %v2380_v13  ;;  %v10861_v38 = vcombine.low %v2384_v16, %v2388_v17  ;;  %v2423_v17 = vld [vmem:[%s12001_s17 + $0x1940] sm:$0xff] }
 0x2d3   : > { %8029 = vmatpush1.bf16.msra.mxu0 %v10819_v32  ;;  %v2395_v32 = vld [vmem:[%s12001_s17 + $0x1860] sm:$0xff] }
 0x2d4   : > { %8357 = vmatpush1.bf16.msra.mxu1 %v10821_v63  ;;  %8030 = vmatprep.subr.bf16.mxu0 %v10828_v33  ;;  %v1596_v63 = vsel %vm1564_vm12, %v12294_v12, %v1580_v20  ;;  %v10859_v33 = vcombine.low %v2383_v43, %v2387_v15  ;;  %v10868_v0 = vcombine.high %v2391_v30, %v2395_v32  ;;  %v2427_v20 = vld [vmem:[%s12001_s17 + $0x1960] sm:$0xff] }
 0x2d5   : > { %8358 = vmatprep.subr.bf16.mxu1 %v10830_v35  ;;  %v2392_v35 = vld [vmem:[%s12001_s17 + $0x1848] sm:$0xff]  ;;  %v10867_v51 = vcombine.low %v2391_v30, %v2395_v32  ;;  %v2431_v32 = vld [vmem:[%s12001_s17 + $0x1980] sm:$0xff] }
 0x2d6   : > { %v10870_v12 = vcombine.high %v2392_v35, %v2396_v36  ;;  %v10869_v54 = vcombine.low %v2392_v35, %v2396_v36  ;;  %v2436_v35 = vld [vmem:[%s12001_s17 + $0x19a8] sm:$0xff]  ;;  %v10899_v36 = vcombine.low %v2423_v17, %v2427_v20 }
 0x2d7   : > { %8031 = vmatpush1.bf16.msra.mxu0 %v10827_v42  ;;  %v2403_v42 = vld [vmem:[%s12001_s17 + $0x18a0] sm:$0xff] }
 0x2d8   : > { %8359 = vmatpush1.bf16.msra.mxu1 %v10829_v6  ;;  %8032 = vmatprep.subr.bf16.mxu0 %v10836_v47  ;;  %v12582_v6 = vpack.c.bf16 %v1596_v63, %v1596_v63  ;;  %v2400_v47 = vld [vmem:[%s12001_s17 + $0x1888] sm:$0xff]  ;;  %v10876_v55 = vcombine.high %v2399_v18, %v2403_v42  ;;  %v10875_v61 = vcombine.low %v2399_v18, %v2403_v42  ;;  %v2435_v63 = vld [vmem:[%s12001_s17 + $0x19a0] sm:$0xff] }
 0x2d9   : > { %8360 = vmatprep.subr.bf16.mxu1 %v10838_v50  ;;  %v2404_v50 = vld [vmem:[%s12001_s17 + $0x18a8] sm:$0xff]  ;;  %v2439_v42 = vld [vmem:[%s12001_s17 + $0x19c0] sm:$0xff] }
 0x2da   : > { %v10878_v56 = vcombine.high %v2400_v47, %v2404_v50  ;;  %v10877_v62 = vcombine.low %v2400_v47, %v2404_v50  ;;  %v2440_v47 = vld [vmem:[%s12001_s17 + $0x19c8] sm:$0xff] }
 0x2db   : > { %8033 = vmatpush1.bf16.msra.mxu0 %v10835_v57  ;;  %v2407_v57 = vld [vmem:[%s12001_s17 + $0x18c0] sm:$0xff]  ;;  %v2444_v50 = vld [vmem:[%s12001_s17 + $0x19e8] sm:$0xff] }
 0x2dc   : > { %8361 = vmatpush1.bf16.msra.mxu1 %v10837_v14  ;;  %8034 = vmatprep.subr.bf16.mxu0 %v10844_v59  ;;  %v2411_v14 = vld [vmem:[%s12001_s17 + $0x18e0] sm:$0xff]  ;;  %v2408_v59 = vld [vmem:[%s12001_s17 + $0x18c8] sm:$0xff] }
 0x2dd   : > { %8362 = vmatprep.subr.bf16.mxu1 %v10846_v60  ;;  %v2412_v60 = vld [vmem:[%s12001_s17 + $0x18e8] sm:$0xff]  ;;  %v10884_v1 = vcombine.high %v2407_v57, %v2411_v14 }
 0x2de   : > { %v10886_v13 = vcombine.high %v2408_v59, %v2412_v60  ;;  %v10885_v43 = vcombine.low %v2408_v59, %v2412_v60  ;;  %v2448_v59 = vld [vmem:[%s12001_s17 + $0x1a08] sm:$0xff] }
 0x2df   : > { %8035 = vmatpush1.bf16.msra.mxu0 %v10843_v4  ;;  %v2415_v4 = vld [vmem:[%s12001_s17 + $0x1900] sm:$0xff]  ;;  %v2452_v60 = vld [vmem:[%s12001_s17 + $0x1a28] sm:$0xff] }
 0x2e0   : > { %8363 = vmatpush1.bf16.msra.mxu1 %v10845_v48  ;;  %8036 = vmatprep.subr.bf16.mxu0 %v10852_v5  ;;  %v2419_v48 = vld [vmem:[%s12001_s17 + $0x1920] sm:$0xff]  ;;  %v2416_v5 = vld [vmem:[%s12001_s17 + $0x1908] sm:$0xff] }
 0x2e1   : > { %8364 = vmatprep.subr.bf16.mxu1 %v10854_v7  ;;  %v10883_v7 = vcombine.low %v2407_v57, %v2411_v14  ;;  %v10892_v15 = vcombine.high %v2415_v4, %v2419_v48  ;;  %v10894_v16 = vcombine.high %v2416_v5, %v2420_v10  ;;  %v10893_v53 = vcombine.low %v2416_v5, %v2420_v10  ;;  %v2447_v57 = vld [vmem:[%s12001_s17 + $0x1a00] sm:$0xff]  ;;  %v2456_v5 = vld [vmem:[%s12001_s17 + $0x1a48] sm:$0xff] }
 0x2e2   : > { %v2451_v14 = vld [vmem:[%s12001_s17 + $0x1a20] sm:$0xff]  ;;  %v2460_v10 = vld [vmem:[%s12001_s17 + $0x1a68] sm:$0xff] }
 0x2e3   : > { %8037 = vmatpush1.bf16.msra.mxu0 %v10851_v21  ;;  %v2424_v21 = vld [vmem:[%s12001_s17 + $0x1948] sm:$0xff] }
 0x2e4   : > { %8365 = vmatpush1.bf16.msra.mxu1 %v10853_v26  ;;  %8047 = vmatprep.subr.bf16.mxu0 %v10860_v19  ;;  %v2428_v26 = vld [vmem:[%s12001_s17 + $0x1968] sm:$0xff]  ;;  %v10891_v19 = vcombine.low %v2415_v4, %v2419_v48  ;;  %v2455_v4 = vld [vmem:[%s12001_s17 + $0x1a40] sm:$0xff] }
 0x2e5   : > { %8375 = vmatprep.subr.bf16.mxu1 %v10862_v27  ;;  %v10900_v27 = vcombine.high %v2423_v17, %v2427_v20  ;;  %v10902_v30 = vcombine.high %v2424_v21, %v2428_v26  ;;  %v2459_v48 = vld [vmem:[%s12001_s17 + $0x1a60] sm:$0xff] }
 0x2e6   : > { %8039 = vmatmul.mubr.bf16.vlgmr.msra.gmra.mrb[16].mxu0 %v12578_v37  ;;  %v2463_v17 = vld [vmem:[%s12001_s17 + $0x1a80] sm:$0xff] }
 0x2e7   : > { %8367 = vmatmul.mubr.bf16.vlgmr.msra.gmra.mrb[16].mxu1 %v12578_v37  ;;  %8048 = vmatpush1.bf16.msra.mxu0 %v10859_v33  ;;  %v2432_v33 = vld [vmem:[%s12001_s17 + $0x1988] sm:$0xff]  ;;  %v2467_v20 = vld [vmem:[%s12001_s17 + $0x1aa0] sm:$0xff] }
 0x2e8   : > { %8079 = vmatprep.mubr.bf16.mxu0 %v12582_v6  ;;  %8376 = vmatpush1.bf16.msra.mxu1 %v10861_v38  ;;  %v10901_v38 = vcombine.low %v2424_v21, %v2428_v26  ;;  %v10910_v18 = vcombine.high %v2432_v33, %v2436_v35  ;;  %v2464_v21 = vld [vmem:[%s12001_s17 + $0x1a88] sm:$0xff] }
 0x2e9   : > { %8407 = vmatprep.mubr.bf16.mxu1 %v12582_v6  ;;  %8049 = vmatprep.subr.bf16.mxu0 %v10868_v0  ;;  %v10908_v0 = vcombine.high %v2431_v32, %v2435_v63  ;;  %v2468_v26 = vld [vmem:[%s12001_s17 + $0x1aa8] sm:$0xff] }
 0x2ea   : > { %8377 = vmatprep.subr.bf16.mxu1 %v10870_v12  ;;  %v2443_v12 = vld [vmem:[%s12001_s17 + $0x19e0] sm:$0xff] }
 0x2eb   : > { %8050 = vmatpush1.bf16.msra.mxu0 %v10867_v51  ;;  %v10907_v51 = vcombine.low %v2431_v32, %v2435_v63  ;;  %v2471_v32 = vld [vmem:[%s12001_s17 + $0x1ac0] sm:$0xff] }
 0x2ec   : > { %8378 = vmatpush1.bf16.msra.mxu1 %v10869_v54  ;;  %8051 = vmatprep.subr.bf16.mxu0 %v10876_v55  ;;  %v10909_v54 = vcombine.low %v2432_v33, %v2436_v35  ;;  %v10916_v55 = vcombine.high %v2439_v42, %v2443_v12  ;;  %v2475_v63 = vld [vmem:[%s12001_s17 + $0x1ae0] sm:$0xff]  ;;  %v2472_v33 = vld [vmem:[%s12001_s17 + $0x1ac8] sm:$0xff] }
 0x2ed   : > { %8379 = vmatprep.subr.bf16.mxu1 %v10878_v56  ;;  %v10918_v56 = vcombine.high %v2440_v47, %v2444_v50  ;;  %v2476_v35 = vld [vmem:[%s12001_s17 + $0x1ae8] sm:$0xff] }
 0x2ef   : > { %8052 = vmatpush1.bf16.msra.mxu0 %v10875_v61  ;;  %v10915_v61 = vcombine.low %v2439_v42, %v2443_v12  ;;  %v2479_v42 = vld [vmem:[%s12001_s17 + $0x1b00] sm:$0xff] }
 0x2f0   : > { %8380 = vmatpush1.bf16.msra.mxu1 %v10877_v62  ;;  %8053 = vmatprep.subr.bf16.mxu0 %v10884_v1  ;;  %v10917_v62 = vcombine.low %v2440_v47, %v2444_v50  ;;  %v10924_v1 = vcombine.high %v2447_v57, %v2451_v14  ;;  %v2483_v12 = vld [vmem:[%s12001_s17 + $0x1b20] sm:$0xff]  ;;  %v2480_v47 = vld [vmem:[%s12001_s17 + $0x1b08] sm:$0xff] }
 0x2f1   : > { %8381 = vmatprep.subr.bf16.mxu1 %v10886_v13  ;;  %v10926_v13 = vcombine.high %v2448_v59, %v2452_v60  ;;  %v2484_v50 = vld [vmem:[%s12001_s17 + $0x1b28] sm:$0xff] }
 0x2f3   : > { %8054 = vmatpush1.bf16.msra.mxu0 %v10883_v7  ;;  %v10923_v7 = vcombine.low %v2447_v57, %v2451_v14  ;;  %v2487_v57 = vld [vmem:[%s12001_s17 + $0x1b40] sm:$0xff] }
 0x2f4   : > { %8382 = vmatpush1.bf16.msra.mxu1 %v10885_v43  ;;  %8055 = vmatprep.subr.bf16.mxu0 %v10892_v15  ;;  %v10925_v43 = vcombine.low %v2448_v59, %v2452_v60  ;;  %v10932_v15 = vcombine.high %v2455_v4, %v2459_v48  ;;  %v2491_v14 = vld [vmem:[%s12001_s17 + $0x1b60] sm:$0xff]  ;;  %v2488_v59 = vld [vmem:[%s12001_s17 + $0x1b48] sm:$0xff] }
 0x2f5   : > { %8383 = vmatprep.subr.bf16.mxu1 %v10894_v16  ;;  %v10934_v16 = vcombine.high %v2456_v5, %v2460_v10  ;;  %v2492_v60 = vld [vmem:[%s12001_s17 + $0x1b68] sm:$0xff] }
 0x2f7   : > { %8056 = vmatpush1.bf16.msra.mxu0 %v10891_v19  ;;  %v10931_v19 = vcombine.low %v2455_v4, %v2459_v48  ;;  %v2495_v4 = vld [vmem:[%s12001_s17 + $0x1b80] sm:$0xff] }
 0x2f8   : > { %8384 = vmatpush1.bf16.msra.mxu1 %v10893_v53  ;;  %8057 = vmatprep.subr.bf16.mxu0 %v10900_v27  ;;  %v10933_v53 = vcombine.low %v2456_v5, %v2460_v10  ;;  %v10940_v27 = vcombine.high %v2463_v17, %v2467_v20  ;;  %v2499_v48 = vld [vmem:[%s12001_s17 + $0x1ba0] sm:$0xff]  ;;  %v2496_v5 = vld [vmem:[%s12001_s17 + $0x1b88] sm:$0xff] }
 0x2f9   : > { %8385 = vmatprep.subr.bf16.mxu1 %v10902_v30  ;;  %v10942_v30 = vcombine.high %v2464_v21, %v2468_v26  ;;  %v2500_v10 = vld [vmem:[%s12001_s17 + $0x1ba8] sm:$0xff] }
 0x2fb   : > { %8058 = vmatpush1.bf16.msra.mxu0 %v10899_v36  ;;  %v10939_v36 = vcombine.low %v2463_v17, %v2467_v20  ;;  %v2503_v17 = vld [vmem:[%s12001_s17 + $0x1bc0] sm:$0xff] }
 0x2fc   : > { %8386 = vmatpush1.bf16.msra.mxu1 %v10901_v38  ;;  %8059 = vmatprep.subr.bf16.mxu0 %v10908_v0  ;;  %v10941_v38 = vcombine.low %v2464_v21, %v2468_v26  ;;  %v10948_v0 = vcombine.high %v2471_v32, %v2475_v63  ;;  %v2507_v20 = vld [vmem:[%s12001_s17 + $0x1be0] sm:$0xff]  ;;  %v2504_v21 = vld [vmem:[%s12001_s17 + $0x1bc8] sm:$0xff] }
 0x2fd   : > { %8387 = vmatprep.subr.bf16.mxu1 %v10910_v18  ;;  %v10950_v18 = vcombine.high %v2472_v33, %v2476_v35  ;;  %v2508_v26 = vld [vmem:[%s12001_s17 + $0x1be8] sm:$0xff] }
 0x2ff   : > { %8060 = vmatpush1.bf16.msra.mxu0 %v10907_v51  ;;  %v10947_v51 = vcombine.low %v2471_v32, %v2475_v63  ;;  %v10982_v32 = vcombine.high %v2504_v21, %v2508_v26  ;;  %v2511_v63 = vld [vmem:[%s12001_s17 + $0x1c00] sm:$0xff] }
 0x300   : > { %8388 = vmatpush1.bf16.msra.mxu1 %v10909_v54  ;;  %8061 = vmatprep.subr.bf16.mxu0 %v10916_v55  ;;  %v10949_v54 = vcombine.low %v2472_v33, %v2476_v35  ;;  %v10956_v55 = vcombine.high %v2479_v42, %v2483_v12  ;;  %v2515_v33 = vld [vmem:[%s12001_s17 + $0x1c20] sm:$0xff]  ;;  %v2512_v35 = vld [vmem:[%s12001_s17 + $0x1c08] sm:$0xff] }
 0x301   : > { %8389 = vmatprep.subr.bf16.mxu1 %v10918_v56  ;;  %v10958_v56 = vcombine.high %v2480_v47, %v2484_v50 }
 0x303   : > { %8062 = vmatpush1.bf16.msra.mxu0 %v10915_v61  ;;  %v10955_v61 = vcombine.low %v2479_v42, %v2483_v12  ;;  %v10988_v42 = vcombine.high %v2511_v63, %v2515_v33 }
 0x304   : > { %8390 = vmatpush1.bf16.msra.mxu1 %v10917_v62  ;;  %8063 = vmatprep.subr.bf16.mxu0 %v10924_v1  ;;  %v10957_v62 = vcombine.low %v2480_v47, %v2484_v50  ;;  %v10964_v1 = vcombine.high %v2487_v57, %v2491_v14  ;;  %v2519_v50 = vld [vmem:[%s12001_s17 + $0x1c40] sm:$0xff] }
 0x305   : > { %8391 = vmatprep.subr.bf16.mxu1 %v10926_v13  ;;  %v10966_v13 = vcombine.high %v2488_v59, %v2492_v60 }
 0x307   : > { %8064 = vmatpush1.bf16.msra.mxu0 %v10923_v7  ;;  %v10963_v7 = vcombine.low %v2487_v57, %v2491_v14  ;;  %v2524_v57 = vld [vmem:[%s12001_s17 + $0x1c68] sm:$0xff] }
 0x308   : > { %8392 = vmatpush1.bf16.msra.mxu1 %v10925_v43  ;;  %8065 = vmatprep.subr.bf16.mxu0 %v10932_v15  ;;  %v10965_v43 = vcombine.low %v2488_v59, %v2492_v60  ;;  %v10972_v15 = vcombine.high %v2495_v4, %v2499_v48  ;;  %v2527_v60 = vld [vmem:[%s12001_s17 + $0x1c80] sm:$0xff] }
 0x309   : > { %8393 = vmatprep.subr.bf16.mxu1 %v10934_v16  ;;  %v10974_v16 = vcombine.high %v2496_v5, %v2500_v10 }
 0x30b   : > { %8066 = vmatpush1.bf16.msra.mxu0 %v10931_v19  ;;  %v10971_v19 = vcombine.low %v2495_v4, %v2499_v48 }
 0x30c   : > { %8394 = vmatpush1.bf16.msra.mxu1 %v10933_v53  ;;  %8067 = vmatprep.subr.bf16.mxu0 %v10940_v27  ;;  %v10973_v53 = vcombine.low %v2496_v5, %v2500_v10  ;;  %v10980_v27 = vcombine.high %v2503_v17, %v2507_v20 }
 0x30d   : > { %8395 = vmatprep.subr.bf16.mxu1 %v10942_v30  ;;  %v1579_v30 = vmul.f32 0.2, %v12289_v9 }
 0x30f   : > { %8068 = vmatpush1.bf16.msra.mxu0 %v10939_v36  ;;  %v2516_v36 = vld [vmem:[%s12001_s17 + $0x1c28] sm:$0xff]  ;;  %v1595_v12 = vsel %vm1563_vm13, %v12289_v9, %v1579_v30 }
 0x310   : > { %8396 = vmatpush1.bf16.msra.mxu1 %v10941_v38  ;;  %8069 = vmatprep.subr.bf16.mxu0 %v10948_v0  ;;  %v1582_v38 = vmul.f32 0.2, %v12307_v41  ;;  %v10979_v0 = vcombine.low %v2503_v17, %v2507_v20  ;;  %v10990_v47 = vcombine.high %v2512_v35, %v2516_v36  ;;  %v12656_v14 = vpack.c.bf16 %v1595_v12, %v1595_v12  ;;  %v2548_v30 = vld [vmem:[%s12001_s17 + $0x1d28] sm:$0xff] }
 0x311   : > { %8397 = vmatprep.subr.bf16.mxu1 %v10950_v18  ;;  %v10981_v18 = vcombine.low %v2504_v21, %v2508_v26  ;;  %v10989_v59 = vcombine.low %v2512_v35, %v2516_v36  ;;  %v2551_v36 = vld [vmem:[%s12001_s17 + $0x1d40] sm:$0xff] }
 0x313   : > { %8070 = vmatpush1.bf16.msra.mxu0 %v10947_v51  ;;  %v2523_v51 = vld [vmem:[%s12001_s17 + $0x1c60] sm:$0xff] }
 0x314   : > { %8398 = vmatpush1.bf16.msra.mxu1 %v10949_v54  ;;  %8071 = vmatprep.subr.bf16.mxu0 %v10956_v55  ;;  %v1598_v54 = vsel %vm1566_vm14, %v12307_v41, %v1582_v38  ;;  %v10987_v55 = vcombine.low %v2511_v63, %v2515_v33  ;;  %v10996_v9 = vcombine.high %v2519_v50, %v2523_v51  ;;  %v2555_v38 = vld [vmem:[%s12001_s17 + $0x1d60] sm:$0xff] }
 0x315   : > { %8399 = vmatprep.subr.bf16.mxu1 %v10958_v56  ;;  %v2520_v56 = vld [vmem:[%s12001_s17 + $0x1c48] sm:$0xff]  ;;  %v10995_v4 = vcombine.low %v2519_v50, %v2523_v51  ;;  %v2559_v51 = vld [vmem:[%s12001_s17 + $0x1d80] sm:$0xff] }
 0x316   : > { %v10998_v41 = vcombine.high %v2520_v56, %v2524_v57  ;;  %v10997_v48 = vcombine.low %v2520_v56, %v2524_v57  ;;  %v2564_v56 = vld [vmem:[%s12001_s17 + $0x1da8] sm:$0xff]  ;;  %v11027_v57 = vcombine.low %v2551_v36, %v2555_v38 }
 0x317   : > { %8072 = vmatpush1.bf16.msra.mxu0 %v10955_v61  ;;  %v2531_v61 = vld [vmem:[%s12001_s17 + $0x1ca0] sm:$0xff] }
 0x318   : > { %8400 = vmatpush1.bf16.msra.mxu1 %v10957_v62  ;;  %8073 = vmatprep.subr.bf16.mxu0 %v10964_v1  ;;  %v12660_v62 = vpack.c.bf16 %v1598_v54, %v1598_v54  ;;  %v2528_v1 = vld [vmem:[%s12001_s17 + $0x1c88] sm:$0xff]  ;;  %v11004_v5 = vcombine.high %v2527_v60, %v2531_v61  ;;  %v11003_v17 = vcombine.low %v2527_v60, %v2531_v61  ;;  %v2563_v54 = vld [vmem:[%s12001_s17 + $0x1da0] sm:$0xff] }
 0x319   : > { %8401 = vmatprep.subr.bf16.mxu1 %v10966_v13  ;;  %v2532_v13 = vld [vmem:[%s12001_s17 + $0x1ca8] sm:$0xff]  ;;  %v2567_v61 = vld [vmem:[%s12001_s17 + $0x1dc0] sm:$0xff] }
 0x31a   : > { %v11006_v10 = vcombine.high %v2528_v1, %v2532_v13  ;;  %v11005_v20 = vcombine.low %v2528_v1, %v2532_v13  ;;  %v2568_v1 = vld [vmem:[%s12001_s17 + $0x1dc8] sm:$0xff] }
 0x31b   : > { %8074 = vmatpush1.bf16.msra.mxu0 %v10963_v7  ;;  %v2535_v7 = vld [vmem:[%s12001_s17 + $0x1cc0] sm:$0xff]  ;;  %v2572_v13 = vld [vmem:[%s12001_s17 + $0x1de8] sm:$0xff] }
 0x31c   : > { %8402 = vmatpush1.bf16.msra.mxu1 %v10965_v43  ;;  %8075 = vmatprep.subr.bf16.mxu0 %v10972_v15  ;;  %v2539_v43 = vld [vmem:[%s12001_s17 + $0x1ce0] sm:$0xff]  ;;  %v2536_v15 = vld [vmem:[%s12001_s17 + $0x1cc8] sm:$0xff] }
 0x31d   : > { %8403 = vmatprep.subr.bf16.mxu1 %v10974_v16  ;;  %v2540_v16 = vld [vmem:[%s12001_s17 + $0x1ce8] sm:$0xff]  ;;  %v11012_v21 = vcombine.high %v2535_v7, %v2539_v43 }
 0x31e   : > { %v11014_v26 = vcombine.high %v2536_v15, %v2540_v16  ;;  %v11013_v63 = vcombine.low %v2536_v15, %v2540_v16  ;;  %v2576_v15 = vld [vmem:[%s12001_s17 + $0x1e08] sm:$0xff] }
 0x31f   : > { %8076 = vmatpush1.bf16.msra.mxu0 %v10971_v19  ;;  %v2543_v19 = vld [vmem:[%s12001_s17 + $0x1d00] sm:$0xff]  ;;  %v2580_v16 = vld [vmem:[%s12001_s17 + $0x1e28] sm:$0xff] }
 0x320   : > { %8404 = vmatpush1.bf16.msra.mxu1 %v10973_v53  ;;  %8077 = vmatprep.subr.bf16.mxu0 %v10980_v27  ;;  %v2547_v53 = vld [vmem:[%s12001_s17 + $0x1d20] sm:$0xff]  ;;  %v2544_v27 = vld [vmem:[%s12001_s17 + $0x1d08] sm:$0xff] }
 0x321   : > { %8405 = vmatprep.subr.bf16.mxu1 %v10982_v32  ;;  %v11011_v32 = vcombine.low %v2535_v7, %v2539_v43  ;;  %v11020_v33 = vcombine.high %v2543_v19, %v2547_v53  ;;  %v11022_v35 = vcombine.high %v2544_v27, %v2548_v30  ;;  %v11021_v12 = vcombine.low %v2544_v27, %v2548_v30  ;;  %v2575_v7 = vld [vmem:[%s12001_s17 + $0x1e00] sm:$0xff]  ;;  %v2584_v27 = vld [vmem:[%s12001_s17 + $0x1e48] sm:$0xff] }
 0x322   : > { %v2579_v43 = vld [vmem:[%s12001_s17 + $0x1e20] sm:$0xff]  ;;  %v2588_v30 = vld [vmem:[%s12001_s17 + $0x1e68] sm:$0xff] }
 0x323   : > { %8078 = vmatpush1.bf16.msra.mxu0 %v10979_v0  ;;  %v2552_v0 = vld [vmem:[%s12001_s17 + $0x1d48] sm:$0xff] }
 0x324   : > { %8406 = vmatpush1.bf16.msra.mxu1 %v10981_v18  ;;  %8088 = vmatprep.subr.bf16.mxu0 %v10988_v42  ;;  %v2556_v18 = vld [vmem:[%s12001_s17 + $0x1d68] sm:$0xff]  ;;  %v11019_v42 = vcombine.low %v2543_v19, %v2547_v53  ;;  %v2583_v19 = vld [vmem:[%s12001_s17 + $0x1e40] sm:$0xff] }
 0x325   : > { %8416 = vmatprep.subr.bf16.mxu1 %v10990_v47  ;;  %v11028_v47 = vcombine.high %v2551_v36, %v2555_v38  ;;  %v11030_v50 = vcombine.high %v2552_v0, %v2556_v18  ;;  %v2587_v53 = vld [vmem:[%s12001_s17 + $0x1e60] sm:$0xff] }
 0x326   : > { %8080 = vmatmul.mubr.bf16.vlgmr.msra.gmra.mrb[16].mxu0 %v12656_v14  ;;  %v2591_v36 = vld [vmem:[%s12001_s17 + $0x1e80] sm:$0xff] }
 0x327   : > { %8408 = vmatmul.mubr.bf16.vlgmr.msra.gmra.mrb[16].mxu1 %v12656_v14  ;;  %8089 = vmatpush1.bf16.msra.mxu0 %v10987_v55  ;;  %v2560_v55 = vld [vmem:[%s12001_s17 + $0x1d88] sm:$0xff]  ;;  %v2595_v38 = vld [vmem:[%s12001_s17 + $0x1ea0] sm:$0xff] }
 0x328   : > { %8120 = vmatprep.mubr.bf16.mxu0 %v12660_v62  ;;  %8417 = vmatpush1.bf16.msra.mxu1 %v10989_v59  ;;  %v11029_v59 = vcombine.low %v2552_v0, %v2556_v18  ;;  %v11038_v60 = vcombine.high %v2560_v55, %v2564_v56  ;;  %v2592_v0 = vld [vmem:[%s12001_s17 + $0x1e88] sm:$0xff] }
 0x329   : > { %8448 = vmatprep.mubr.bf16.mxu1 %v12660_v62  ;;  %8090 = vmatprep.subr.bf16.mxu0 %v10996_v9  ;;  %v11036_v9 = vcombine.high %v2559_v51, %v2563_v54  ;;  %v2596_v18 = vld [vmem:[%s12001_s17 + $0x1ea8] sm:$0xff] }
 0x32a   : > { %8418 = vmatprep.subr.bf16.mxu1 %v10998_v41  ;;  %v2571_v41 = vld [vmem:[%s12001_s17 + $0x1de0] sm:$0xff] }
 0x32b   : > { %8091 = vmatpush1.bf16.msra.mxu0 %v10995_v4  ;;  %v11035_v4 = vcombine.low %v2559_v51, %v2563_v54  ;;  %v2599_v51 = vld [vmem:[%s12001_s17 + $0x1ec0] sm:$0xff] }
 0x32c   : > { %8419 = vmatpush1.bf16.msra.mxu1 %v10997_v48  ;;  %8092 = vmatprep.subr.bf16.mxu0 %v11004_v5  ;;  %v11037_v48 = vcombine.low %v2560_v55, %v2564_v56  ;;  %v11044_v5 = vcombine.high %v2567_v61, %v2571_v41  ;;  %v2603_v54 = vld [vmem:[%s12001_s17 + $0x1ee0] sm:$0xff]  ;;  %v2600_v55 = vld [vmem:[%s12001_s17 + $0x1ec8] sm:$0xff] }
 0x32d   : > { %8420 = vmatprep.subr.bf16.mxu1 %v11006_v10  ;;  %v11046_v10 = vcombine.high %v2568_v1, %v2572_v13  ;;  %v2604_v56 = vld [vmem:[%s12001_s17 + $0x1ee8] sm:$0xff] }
 0x32f   : > { %8093 = vmatpush1.bf16.msra.mxu0 %v11003_v17  ;;  %v11043_v17 = vcombine.low %v2567_v61, %v2571_v41  ;;  %v2607_v61 = vld [vmem:[%s12001_s17 + $0x1f00] sm:$0xff] }
 0x330   : > { %8421 = vmatpush1.bf16.msra.mxu1 %v11005_v20  ;;  %8094 = vmatprep.subr.bf16.mxu0 %v11012_v21  ;;  %v11045_v20 = vcombine.low %v2568_v1, %v2572_v13  ;;  %v11052_v21 = vcombine.high %v2575_v7, %v2579_v43  ;;  %v2611_v41 = vld [vmem:[%s12001_s17 + $0x1f20] sm:$0xff]  ;;  %v2608_v1 = vld [vmem:[%s12001_s17 + $0x1f08] sm:$0xff] }
 0x331   : > { %8422 = vmatprep.subr.bf16.mxu1 %v11014_v26  ;;  %v11054_v26 = vcombine.high %v2576_v15, %v2580_v16  ;;  %v2612_v13 = vld [vmem:[%s12001_s17 + $0x1f28] sm:$0xff] }
 0x333   : > { %8095 = vmatpush1.bf16.msra.mxu0 %v11011_v32  ;;  %v11051_v32 = vcombine.low %v2575_v7, %v2579_v43  ;;  %v2615_v7 = vld [vmem:[%s12001_s17 + $0x1f40] sm:$0xff] }
 0x334   : > { %8423 = vmatpush1.bf16.msra.mxu1 %v11013_v63  ;;  %8096 = vmatprep.subr.bf16.mxu0 %v11020_v33  ;;  %v11053_v63 = vcombine.low %v2576_v15, %v2580_v16  ;;  %v11060_v33 = vcombine.high %v2583_v19, %v2587_v53  ;;  %v2619_v43 = vld [vmem:[%s12001_s17 + $0x1f60] sm:$0xff]  ;;  %v2616_v15 = vld [vmem:[%s12001_s17 + $0x1f48] sm:$0xff] }
 0x335   : > { %8424 = vmatprep.subr.bf16.mxu1 %v11022_v35  ;;  %v11062_v35 = vcombine.high %v2584_v27, %v2588_v30  ;;  %v2620_v16 = vld [vmem:[%s12001_s17 + $0x1f68] sm:$0xff] }
 0x337   : > { %8097 = vmatpush1.bf16.msra.mxu0 %v11019_v42  ;;  %v11059_v42 = vcombine.low %v2583_v19, %v2587_v53  ;;  %v2623_v19 = vld [vmem:[%s12001_s17 + $0x1f80] sm:$0xff] }
 0x338   : > { %8425 = vmatpush1.bf16.msra.mxu1 %v11021_v12  ;;  %8098 = vmatprep.subr.bf16.mxu0 %v11028_v47  ;;  %v11061_v12 = vcombine.low %v2584_v27, %v2588_v30  ;;  %v11068_v47 = vcombine.high %v2591_v36, %v2595_v38  ;;  %v2627_v53 = vld [vmem:[%s12001_s17 + $0x1fa0] sm:$0xff]  ;;  %v2624_v27 = vld [vmem:[%s12001_s17 + $0x1f88] sm:$0xff] }
 0x339   : > { %8426 = vmatprep.subr.bf16.mxu1 %v11030_v50  ;;  %v11070_v50 = vcombine.high %v2592_v0, %v2596_v18  ;;  %v2628_v30 = vld [vmem:[%s12001_s17 + $0x1fa8] sm:$0xff] }
 0x33b   : > { %8099 = vmatpush1.bf16.msra.mxu0 %v11027_v57  ;;  %v11067_v57 = vcombine.low %v2591_v36, %v2595_v38  ;;  %v2631_v36 = vld [vmem:[%s12001_s17 + $0x1fc0] sm:$0xff] }
 0x33c   : > { %8427 = vmatpush1.bf16.msra.mxu1 %v11029_v59  ;;  %8100 = vmatprep.subr.bf16.mxu0 %v11036_v9  ;;  %v11069_v59 = vcombine.low %v2592_v0, %v2596_v18  ;;  %v11076_v9 = vcombine.high %v2599_v51, %v2603_v54  ;;  %v2635_v38 = vld [vmem:[%s12001_s17 + $0x1fe0] sm:$0xff]  ;;  %v2632_v0 = vld [vmem:[%s12001_s17 + $0x1fc8] sm:$0xff] }
 0x33d   : > { %8428 = vmatprep.subr.bf16.mxu1 %v11038_v60  ;;  %v11078_v60 = vcombine.high %v2600_v55, %v2604_v56  ;;  %v2636_v18 = vld [vmem:[%s12001_s17 + $0x1fe8] sm:$0xff] }
 0x33f   : > { %8101 = vmatpush1.bf16.msra.mxu0 %v11035_v4  ;;  %v11075_v4 = vcombine.low %v2599_v51, %v2603_v54  ;;  %v11110_v51 = vcombine.high %v2632_v0, %v2636_v18  ;;  %v1617_v54 = vld [vmem:[%s12001_s17 + $0x10] sm:$0xff] }
 0x340   : > { %8429 = vmatpush1.bf16.msra.mxu1 %v11037_v48  ;;  %8102 = vmatprep.subr.bf16.mxu0 %v11044_v5  ;;  %v11077_v48 = vcombine.low %v2600_v55, %v2604_v56  ;;  %v11084_v5 = vcombine.high %v2607_v61, %v2611_v41  ;;  %v1621_v55 = vld [vmem:[%s12001_s17 + $0x30] sm:$0xff]  ;;  %v1618_v56 = vld [vmem:[%s12001_s17 + $0x18] sm:$0xff] }
 0x341   : > { %8430 = vmatprep.subr.bf16.mxu1 %v11046_v10  ;;  %v11086_v10 = vcombine.high %v2608_v1, %v2612_v13 }
 0x343   : > { %8103 = vmatpush1.bf16.msra.mxu0 %v11043_v17  ;;  %v11083_v17 = vcombine.low %v2607_v61, %v2611_v41 }
 0x344   : > { %8431 = vmatpush1.bf16.msra.mxu1 %v11045_v20  ;;  %8104 = vmatprep.subr.bf16.mxu0 %v11052_v21  ;;  %v11085_v20 = vcombine.low %v2608_v1, %v2612_v13  ;;  %v11092_v21 = vcombine.high %v2615_v7, %v2619_v43  ;;  %v1625_v1 = vld [vmem:[%s12001_s17 + $0x50] sm:$0xff] }
 0x345   : > { %8432 = vmatprep.subr.bf16.mxu1 %v11054_v26  ;;  %v11094_v26 = vcombine.high %v2616_v15, %v2620_v16  ;;  %v1629_v13 = vld [vmem:[%s12001_s17 + $0x70] sm:$0xff] }
 0x347   : > { %8105 = vmatpush1.bf16.msra.mxu0 %v11051_v32  ;;  %v11091_v32 = vcombine.low %v2615_v7, %v2619_v43  ;;  %v10104_v43 = vcombine.high %v1625_v1, %v1629_v13 }
 0x348   : > { %8433 = vmatpush1.bf16.msra.mxu1 %v11053_v63  ;;  %8106 = vmatprep.subr.bf16.mxu0 %v11060_v33  ;;  %v11093_v63 = vcombine.low %v2616_v15, %v2620_v16  ;;  %v11100_v33 = vcombine.high %v2623_v19, %v2627_v53  ;;  %v1633_v15 = vld [vmem:[%s12001_s17 + $0x90] sm:$0xff] }
 0x349   : > { %8434 = vmatprep.subr.bf16.mxu1 %v11062_v35  ;;  %v11102_v35 = vcombine.high %v2624_v27, %v2628_v30 }
 0x34b   : > { %8107 = vmatpush1.bf16.msra.mxu0 %v11059_v42  ;;  %v11099_v42 = vcombine.low %v2623_v19, %v2627_v53 }
 0x34c   : > { %8435 = vmatpush1.bf16.msra.mxu1 %v11061_v12  ;;  %8108 = vmatprep.subr.bf16.mxu0 %v11068_v47  ;;  %v11101_v12 = vcombine.low %v2624_v27, %v2628_v30  ;;  %v11108_v47 = vcombine.high %v2631_v36, %v2635_v38  ;;  %v1641_v27 = vld [vmem:[%s12001_s17 + $0xd0] sm:$0xff] }
 0x34d   : > { %8436 = vmatprep.subr.bf16.mxu1 %v11070_v50  ;;  %v1581_v50 = vmul.f32 0.2, %v12304_v34  ;;  %v1645_v30 = vld [vmem:[%s12001_s17 + $0xf0] sm:$0xff] }
 0x34f   : > { %8109 = vmatpush1.bf16.msra.mxu0 %v11067_v57  ;;  %v1622_v57 = vld [vmem:[%s12001_s17 + $0x38] sm:$0xff]  ;;  %v1597_v61 = vsel %vm1565_vm15, %v12304_v34, %v1581_v50  ;;  %v1637_v34 = vld [vmem:[%s12001_s17 + $0xb0] sm:$0xff] }
 0x350   : > { %8437 = vmatpush1.bf16.msra.mxu1 %v11069_v59  ;;  %8110 = vmatprep.subr.bf16.mxu0 %v11076_v9  ;;  %v11107_v59 = vcombine.low %v2631_v36, %v2635_v38  ;;  %v11109_v9 = vcombine.low %v2632_v0, %v2636_v18  ;;  %v10098_v41 = vcombine.high %v1618_v56, %v1622_v57  ;;  %v1649_v38 = vld [vmem:[%s12001_s17 + $0x110] sm:$0xff]  ;;  %v1650_v18 = vld [vmem:[%s12001_s17 + $0x118] sm:$0xff] }
 0x351   : > { %8438 = vmatprep.subr.bf16.mxu1 %v11078_v60  ;;  %v10096_v60 = vcombine.high %v1617_v54, %v1621_v55  ;;  %v10097_v7 = vcombine.low %v1618_v56, %v1622_v57  ;;  %v10112_v19 = vcombine.high %v1633_v15, %v1637_v34  ;;  %v10120_v36 = vcombine.high %v1641_v27, %v1645_v30  ;;  %v1653_v0 = vld [vmem:[%s12001_s17 + $0x130] sm:$0xff]  ;;  %v1658_v56 = vld [vmem:[%s12001_s17 + $0x158] sm:$0xff] }
 0x352   : > { %v10128_v50 = vcombine.high %v1649_v38, %v1653_v0  ;;  %v1662_v57 = vld [vmem:[%s12001_s17 + $0x178] sm:$0xff] }
 0x353   : > { %8111 = vmatpush1.bf16.msra.mxu0 %v11075_v4  ;;  %v10095_v4 = vcombine.low %v1617_v54, %v1621_v55  ;;  %v1657_v54 = vld [vmem:[%s12001_s17 + $0x150] sm:$0xff] }
 0x354   : > { %8439 = vmatpush1.bf16.msra.mxu1 %v11077_v48  ;;  %8112 = vmatprep.subr.bf16.mxu0 %v11084_v5  ;;  %v1626_v48 = vld [vmem:[%s12001_s17 + $0x58] sm:$0xff]  ;;  %v1661_v55 = vld [vmem:[%s12001_s17 + $0x170] sm:$0xff] }
 0x355   : > { %8440 = vmatprep.subr.bf16.mxu1 %v11086_v10  ;;  %v1630_v5 = vld [vmem:[%s12001_s17 + $0x78] sm:$0xff]  ;;  %v12731_v10 = vpack.c.bf16 %v1597_v61, %v1597_v61  ;;  %v10138_v61 = vcombine.high %v1658_v56, %v1662_v57 }
 0x356   : > { %v10106_v16 = vcombine.high %v1626_v48, %v1630_v5 }
 0x357   : > { %8113 = vmatpush1.bf16.msra.mxu0 %v11083_v17  ;;  %v1634_v17 = vld [vmem:[%s12001_s17 + $0x98] sm:$0xff] }
 0x358   : > { %8441 = vmatpush1.bf16.msra.mxu1 %v11085_v20  ;;  %8114 = vmatprep.subr.bf16.mxu0 %v11092_v21  ;;  %v1638_v20 = vld [vmem:[%s12001_s17 + $0xb8] sm:$0xff]  ;;  %v10103_v21 = vcombine.low %v1625_v1, %v1629_v13  ;;  %v1669_v1 = vld [vmem:[%s12001_s17 + $0x1b0] sm:$0xff] }
 0x359   : > { %8442 = vmatprep.subr.bf16.mxu1 %v11094_v26  ;;  %v10105_v26 = vcombine.low %v1626_v48, %v1630_v5  ;;  %v10114_v53 = vcombine.high %v1634_v17, %v1638_v20  ;;  %v1666_v13 = vld [vmem:[%s12001_s17 + $0x198] sm:$0xff]  ;;  %v10135_v48 = vcombine.low %v1657_v54, %v1661_v55  ;;  %v10137_v5 = vcombine.low %v1658_v56, %v1662_v57 }
 0x35a   : > { %v1702_v56 = vld [vmem:[%s12001_s17 + $0x2b8] sm:$0xff] }
 0x35b   : > { %8115 = vmatpush1.bf16.msra.mxu0 %v11091_v32  ;;  %v1642_v32 = vld [vmem:[%s12001_s17 + $0xd8] sm:$0xff] }
 0x35c   : > { %8443 = vmatpush1.bf16.msra.mxu1 %v11093_v63  ;;  %8116 = vmatprep.subr.bf16.mxu0 %v11100_v33  ;;  %v1646_v63 = vld [vmem:[%s12001_s17 + $0xf8] sm:$0xff]  ;;  %v10111_v33 = vcombine.low %v1633_v15, %v1637_v34  ;;  %v1673_v15 = vld [vmem:[%s12001_s17 + $0x1d0] sm:$0xff] }
 0x35d   : > { %8444 = vmatprep.subr.bf16.mxu1 %v11102_v35  ;;  %v10113_v35 = vcombine.low %v1634_v17, %v1638_v20  ;;  %v1677_v34 = vld [vmem:[%s12001_s17 + $0x1f0] sm:$0xff]  ;;  %v1678_v17 = vld [vmem:[%s12001_s17 + $0x1f8] sm:$0xff] }
 0x35f   : > { %8117 = vmatpush1.bf16.msra.mxu0 %v11099_v42  ;;  %v1654_v42 = vld [vmem:[%s12001_s17 + $0x138] sm:$0xff] }
 0x360   : > { %8445 = vmatpush1.bf16.msra.mxu1 %v11101_v12  ;;  %8118 = vmatprep.subr.bf16.mxu0 %v11108_v47  ;;  %v10119_v12 = vcombine.low %v1641_v27, %v1645_v30  ;;  %v10121_v47 = vcombine.low %v1642_v32, %v1646_v63  ;;  %v1685_v27 = vld [vmem:[%s12001_s17 + $0x230] sm:$0xff]  ;;  %v1682_v30 = vld [vmem:[%s12001_s17 + $0x218] sm:$0xff] }
 0x361   : > { %8446 = vmatprep.subr.bf16.mxu1 %v11110_v51  ;;  %v10130_v51 = vcombine.high %v1650_v18, %v1654_v42 }
 0x363   : > { %8119 = vmatpush1.bf16.msra.mxu0 %v11107_v59  ;;  %v10127_v59 = vcombine.low %v1649_v38, %v1653_v0  ;;  %v1693_v38 = vld [vmem:[%s12001_s17 + $0x270] sm:$0xff]  ;;  %v1690_v0 = vld [vmem:[%s12001_s17 + $0x258] sm:$0xff] }
 0x364   : > { %8447 = vmatpush1.bf16.msra.mxu1 %v11109_v9  ;;  %8457 = vmatprep.subr.bf16.mxu0 %v10096_v60  ;;  %v10129_v9 = vcombine.low %v1650_v18, %v1654_v42  ;;  %v10136_v60 = vcombine.high %v1657_v54, %v1661_v55  ;;  %v1694_v18 = vld [vmem:[%s12001_s17 + $0x278] sm:$0xff]  ;;  %v1701_v54 = vld [vmem:[%s12001_s17 + $0x2b0] sm:$0xff] }
 0x365   : > { %8785 = vmatprep.subr.bf16.mxu1 %v10098_v41  ;;  %v1665_v41 = vld [vmem:[%s12001_s17 + $0x190] sm:$0xff]  ;;  %v1698_v55 = vld [vmem:[%s12001_s17 + $0x298] sm:$0xff] }
 0x366   : > { %8121 = vmatmul.mubr.bf16.vlgmr.msra.gmra.mrb[16].mxu0 %v12731_v10  ;;  %v10143_v20 = vcombine.low %v1665_v41, %v1669_v1 }
 0x367   : > { %8449 = vmatmul.mubr.bf16.vlgmr.msra.gmra.mrb[16].mxu1 %v12731_v10  ;;  %8458 = vmatpush1.bf16.msra.mxu0 %v10095_v4  ;;  %v1670_v4 = vld [vmem:[%s12001_s17 + $0x1b8] sm:$0xff] }
 0x368   : > { %8489 = vmatprep.mubr.bf16.mxu0 %v12129_v44  ;;  %8786 = vmatpush1.bf16.msra.mxu1 %v10097_v7  ;;  %v10144_v7 = vcombine.high %v1665_v41, %v1669_v1  ;;  %v1709_v41 = vld [vmem:[%s12001_s17 + $0x2f0] sm:$0xff]  ;;  %v1706_v1 = vld [vmem:[%s12001_s17 + $0x2d8] sm:$0xff] }
 0x369   : > { %8817 = vmatprep.mubr.bf16.mxu1 %v12129_v44  ;;  %8459 = vmatprep.subr.bf16.mxu0 %v10104_v43  ;;  %v10122_v44 = vcombine.high %v1642_v32, %v1646_v63  ;;  %v10146_v43 = vcombine.high %v1666_v13, %v1670_v4  ;;  %v1686_v32 = vld [vmem:[%s12001_s17 + $0x238] sm:$0xff]  ;;  %v10151_v63 = vcombine.low %v1673_v15, %v1677_v34 }
 0x36a   : > { %8787 = vmatprep.subr.bf16.mxu1 %v10106_v16  ;;  %v1674_v16 = vld [vmem:[%s12001_s17 + $0x1d8] sm:$0xff] }
 0x36b   : > { %8460 = vmatpush1.bf16.msra.mxu0 %v10103_v21  ;;  %v10145_v21 = vcombine.low %v1666_v13, %v1670_v4  ;;  %v1710_v13 = vld [vmem:[%s12001_s17 + $0x2f8] sm:$0xff] }
 0x36c   : > { %8788 = vmatpush1.bf16.msra.mxu1 %v10105_v26  ;;  %8461 = vmatprep.subr.bf16.mxu0 %v10112_v19  ;;  %v10152_v26 = vcombine.high %v1673_v15, %v1677_v34  ;;  %v10154_v19 = vcombine.high %v1674_v16, %v1678_v17  ;;  %v1717_v15 = vld [vmem:[%s12001_s17 + $0x330] sm:$0xff]  ;;  %v1714_v34 = vld [vmem:[%s12001_s17 + $0x318] sm:$0xff] }
 0x36d   : > { %8789 = vmatprep.subr.bf16.mxu1 %v10114_v53  ;;  %v1681_v53 = vld [vmem:[%s12001_s17 + $0x210] sm:$0xff] }
 0x36e   : > { %v10159_v42 = vcombine.low %v1681_v53, %v1685_v27 }
 0x36f   : > { %8462 = vmatpush1.bf16.msra.mxu0 %v10111_v33  ;;  %v10153_v33 = vcombine.low %v1674_v16, %v1678_v17  ;;  %v1718_v16 = vld [vmem:[%s12001_s17 + $0x338] sm:$0xff] }
 0x370   : > { %8790 = vmatpush1.bf16.msra.mxu1 %v10113_v35  ;;  %8463 = vmatprep.subr.bf16.mxu0 %v10120_v36  ;;  %v10160_v35 = vcombine.high %v1681_v53, %v1685_v27  ;;  %v10162_v36 = vcombine.high %v1682_v30, %v1686_v32  ;;  %v1725_v53 = vld [vmem:[%s12001_s17 + $0x370] sm:$0xff]  ;;  %v1722_v27 = vld [vmem:[%s12001_s17 + $0x358] sm:$0xff] }
 0x371   : > { %8791 = vmatprep.subr.bf16.mxu1 %v10122_v44  ;;  %v1689_v44 = vld [vmem:[%s12001_s17 + $0x250] sm:$0xff] }
 0x372   : > { %v10167_v57 = vcombine.low %v1689_v44, %v1693_v38 }
 0x373   : > { %8464 = vmatpush1.bf16.msra.mxu0 %v10119_v12  ;;  %v10161_v12 = vcombine.low %v1682_v30, %v1686_v32  ;;  %v1726_v30 = vld [vmem:[%s12001_s17 + $0x378] sm:$0xff] }
 0x374   : > { %8792 = vmatpush1.bf16.msra.mxu1 %v10121_v47  ;;  %8465 = vmatprep.subr.bf16.mxu0 %v10128_v50  ;;  %v10168_v47 = vcombine.high %v1689_v44, %v1693_v38  ;;  %v10170_v50 = vcombine.high %v1690_v0, %v1694_v18  ;;  %v1733_v44 = vld [vmem:[%s12001_s17 + $0x3b0] sm:$0xff]  ;;  %v1730_v38 = vld [vmem:[%s12001_s17 + $0x398] sm:$0xff] }
 0x375   : > { %8793 = vmatprep.subr.bf16.mxu1 %v10130_v51  ;;  %v1697_v51 = vld [vmem:[%s12001_s17 + $0x290] sm:$0xff] }
 0x376   : > { %v10175_v4 = vcombine.low %v1697_v51, %v1701_v54 }
 0x377   : > { %8466 = vmatpush1.bf16.msra.mxu0 %v10127_v59  ;;  %v10169_v59 = vcombine.low %v1690_v0, %v1694_v18  ;;  %v1734_v0 = vld [vmem:[%s12001_s17 + $0x3b8] sm:$0xff] }
 0x378   : > { %8794 = vmatpush1.bf16.msra.mxu1 %v10129_v9  ;;  %8467 = vmatprep.subr.bf16.mxu0 %v10136_v60  ;;  %v10176_v9 = vcombine.high %v1697_v51, %v1701_v54  ;;  %v10178_v60 = vcombine.high %v1698_v55, %v1702_v56  ;;  %v1741_v51 = vld [vmem:[%s12001_s17 + $0x3f0] sm:$0xff]  ;;  %v1738_v54 = vld [vmem:[%s12001_s17 + $0x3d8] sm:$0xff] }
 0x379   : > { %8795 = vmatprep.subr.bf16.mxu1 %v10138_v61  ;;  %v1705_v61 = vld [vmem:[%s12001_s17 + $0x2d0] sm:$0xff] }
 0x37a   : > { %v10183_v17 = vcombine.low %v1705_v61, %v1709_v41 }
 0x37b   : > { %8468 = vmatpush1.bf16.msra.mxu0 %v10135_v48  ;;  %v10177_v48 = vcombine.low %v1698_v55, %v1702_v56  ;;  %v1742_v55 = vld [vmem:[%s12001_s17 + $0x3f8] sm:$0xff] }
 0x37c   : > { %8796 = vmatpush1.bf16.msra.mxu1 %v10137_v5  ;;  %8469 = vmatprep.subr.bf16.mxu0 %v10144_v7  ;;  %v10184_v5 = vcombine.high %v1705_v61, %v1709_v41  ;;  %v10186_v7 = vcombine.high %v1706_v1, %v1710_v13  ;;  %v1749_v61 = vld [vmem:[%s12001_s17 + $0x430] sm:$0xff]  ;;  %v1746_v41 = vld [vmem:[%s12001_s17 + $0x418] sm:$0xff] }
 0x37d   : > { %8797 = vmatprep.subr.bf16.mxu1 %v10146_v43  ;;  %v1713_v43 = vld [vmem:[%s12001_s17 + $0x310] sm:$0xff] }
 0x37e   : > { %v10191_v32 = vcombine.low %v1713_v43, %v1717_v15 }
 0x37f   : > { %8470 = vmatpush1.bf16.msra.mxu0 %v10143_v20  ;;  %v10185_v20 = vcombine.low %v1706_v1, %v1710_v13  ;;  %v1750_v1 = vld [vmem:[%s12001_s17 + $0x438] sm:$0xff] }
 0x380   : > { %8798 = vmatpush1.bf16.msra.mxu1 %v10145_v21  ;;  %8471 = vmatprep.subr.bf16.mxu0 %v10152_v26  ;;  %v10192_v21 = vcombine.high %v1713_v43, %v1717_v15  ;;  %v10194_v26 = vcombine.high %v1714_v34, %v1718_v16  ;;  %v1757_v43 = vld [vmem:[%s12001_s17 + $0x470] sm:$0xff] }
 0x381   : > { %8799 = vmatprep.subr.bf16.mxu1 %v10154_v19  ;;  %v1721_v19 = vld [vmem:[%s12001_s17 + $0x350] sm:$0xff] }
 0x382   : > { %v10199_v18 = vcombine.low %v1721_v19, %v1725_v53 }
 0x383   : > { %8472 = vmatpush1.bf16.msra.mxu0 %v10151_v63  ;;  %v10193_v63 = vcombine.low %v1714_v34, %v1718_v16  ;;  %v1754_v34 = vld [vmem:[%s12001_s17 + $0x458] sm:$0xff] }
 0x384   : > { %8800 = vmatpush1.bf16.msra.mxu1 %v10153_v33  ;;  %8473 = vmatprep.subr.bf16.mxu0 %v10160_v35  ;;  %v10200_v33 = vcombine.high %v1721_v19, %v1725_v53  ;;  %v10202_v35 = vcombine.high %v1722_v27, %v1726_v30  ;;  %v1758_v16 = vld [vmem:[%s12001_s17 + $0x478] sm:$0xff] }
 0x385   : > { %8801 = vmatprep.subr.bf16.mxu1 %v10162_v36  ;;  %v1729_v36 = vld [vmem:[%s12001_s17 + $0x390] sm:$0xff]  ;;  %v10234_v19 = vcombine.high %v1754_v34, %v1758_v16  ;;  %v1762_v53 = vld [vmem:[%s12001_s17 + $0x498] sm:$0xff] }
 0x386   : > { %v10207_v56 = vcombine.low %v1729_v36, %v1733_v44 }
 0x387   : > { %8474 = vmatpush1.bf16.msra.mxu0 %v10159_v42  ;;  %v10201_v42 = vcombine.low %v1722_v27, %v1726_v30  ;;  %v1766_v27 = vld [vmem:[%s12001_s17 + $0x4b8] sm:$0xff] }
 0x388   : > { %8802 = vmatpush1.bf16.msra.mxu1 %v10161_v12  ;;  %8475 = vmatprep.subr.bf16.mxu0 %v10168_v47  ;;  %v10208_v12 = vcombine.high %v1729_v36, %v1733_v44  ;;  %v10210_v47 = vcombine.high %v1730_v38, %v1734_v0  ;;  %v1773_v36 = vld [vmem:[%s12001_s17 + $0x4f0] sm:$0xff]  ;;  %v1770_v44 = vld [vmem:[%s12001_s17 + $0x4d8] sm:$0xff] }
 0x389   : > { %8803 = vmatprep.subr.bf16.mxu1 %v10170_v50  ;;  %v1737_v50 = vld [vmem:[%s12001_s17 + $0x3d0] sm:$0xff] }
 0x38a   : > { %v10215_v13 = vcombine.low %v1737_v50, %v1741_v51 }
 0x38b   : > { %8476 = vmatpush1.bf16.msra.mxu0 %v10167_v57  ;;  %v10209_v57 = vcombine.low %v1730_v38, %v1734_v0  ;;  %v10241_v0 = vcombine.low %v1762_v53, %v1766_v27 }
 0x38c   : > { %8804 = vmatpush1.bf16.msra.mxu1 %v10169_v59  ;;  %8477 = vmatprep.subr.bf16.mxu0 %v10176_v9  ;;  %v10216_v59 = vcombine.high %v1737_v50, %v1741_v51  ;;  %v10218_v9 = vcombine.high %v1738_v54, %v1742_v55  ;;  %v1782_v50 = vld [vmem:[%s12001_s17 + $0x538] sm:$0xff] }
 0x38d   : > { %8805 = vmatprep.subr.bf16.mxu1 %v10178_v60  ;;  %v1745_v60 = vld [vmem:[%s12001_s17 + $0x410] sm:$0xff] }
 0x38e   : > { %v10223_v15 = vcombine.low %v1745_v60, %v1749_v61 }
 0x38f   : > { %8478 = vmatpush1.bf16.msra.mxu0 %v10175_v4  ;;  %v10217_v4 = vcombine.low %v1738_v54, %v1742_v55 }
 0x390   : > { %8806 = vmatpush1.bf16.msra.mxu1 %v10177_v48  ;;  %8479 = vmatprep.subr.bf16.mxu0 %v10184_v5  ;;  %v10224_v48 = vcombine.high %v1745_v60, %v1749_v61  ;;  %v10226_v5 = vcombine.high %v1746_v41, %v1750_v1  ;;  %v1790_v60 = vld [vmem:[%s12001_s17 + $0x578] sm:$0xff] }
 0x391   : > { %8807 = vmatprep.subr.bf16.mxu1 %v10186_v7  ;;  %v1753_v7 = vld [vmem:[%s12001_s17 + $0x450] sm:$0xff] }
 0x392   : > { %v10231_v30 = vcombine.low %v1753_v7, %v1757_v43 }
 0x393   : > { %8480 = vmatpush1.bf16.msra.mxu0 %v10183_v17  ;;  %v10225_v17 = vcombine.low %v1746_v41, %v1750_v1 }
 0x394   : > { %8808 = vmatpush1.bf16.msra.mxu1 %v10185_v20  ;;  %8481 = vmatprep.subr.bf16.mxu0 %v10192_v21  ;;  %v10232_v20 = vcombine.high %v1753_v7, %v1757_v43  ;;  %v1761_v21 = vld [vmem:[%s12001_s17 + $0x490] sm:$0xff]  ;;  %v1798_v7 = vld [vmem:[%s12001_s17 + $0x5b8] sm:$0xff] }
 0x395   : > { %8809 = vmatprep.subr.bf16.mxu1 %v10194_v26  ;;  %v1765_v26 = vld [vmem:[%s12001_s17 + $0x4b0] sm:$0xff] }
 0x396   : > { %v10239_v38 = vcombine.low %v1761_v21, %v1765_v26 }
 0x397   : > { %8482 = vmatpush1.bf16.msra.mxu0 %v10191_v32  ;;  %v10233_v32 = vcombine.low %v1754_v34, %v1758_v16 }
 0x398   : > { %8810 = vmatpush1.bf16.msra.mxu1 %v10193_v63  ;;  %8483 = vmatprep.subr.bf16.mxu0 %v10200_v33  ;;  %v10240_v63 = vcombine.high %v1761_v21, %v1765_v26  ;;  %v10242_v33 = vcombine.high %v1762_v53, %v1766_v27  ;;  %v1802_v21 = vld [vmem:[%s12001_s17 + $0x5d8] sm:$0xff] }
 0x399   : > { %8811 = vmatprep.subr.bf16.mxu1 %v10202_v35  ;;  %v1769_v35 = vld [vmem:[%s12001_s17 + $0x4d0] sm:$0xff]  ;;  %v1806_v26 = vld [vmem:[%s12001_s17 + $0x5f8] sm:$0xff] }
 0x39a   : > { %v10247_v51 = vcombine.low %v1769_v35, %v1773_v36 }
 0x39b   : > { %8484 = vmatpush1.bf16.msra.mxu0 %v10199_v18  ;;  %v10248_v18 = vcombine.high %v1769_v35, %v1773_v36  ;;  %v1814_v35 = vld [vmem:[%s12001_s17 + $0x638] sm:$0xff] }
 0x39c   : > { %8812 = vmatpush1.bf16.msra.mxu1 %v10201_v42  ;;  %8485 = vmatprep.subr.bf16.mxu0 %v10208_v12  ;;  %v1777_v42 = vld [vmem:[%s12001_s17 + $0x510] sm:$0xff] }
 0x39d   : > { %8813 = vmatprep.subr.bf16.mxu1 %v10210_v47  ;;  %v1781_v12 = vld [vmem:[%s12001_s17 + $0x530] sm:$0xff]  ;;  %v1778_v47 = vld [vmem:[%s12001_s17 + $0x518] sm:$0xff] }
 0x39e   : > { %v10256_v55 = vcombine.high %v1777_v42, %v1781_v12  ;;  %v10255_v61 = vcombine.low %v1777_v42, %v1781_v12  ;;  %v10257_v41 = vcombine.low %v1778_v47, %v1782_v50  ;;  %v1822_v42 = vld [vmem:[%s12001_s17 + $0x678] sm:$0xff] }
 0x39f   : > { %8486 = vmatpush1.bf16.msra.mxu0 %v10207_v56  ;;  %v10258_v56 = vcombine.high %v1778_v47, %v1782_v50 }
 0x3a0   : > { %8814 = vmatpush1.bf16.msra.mxu1 %v10209_v57  ;;  %8487 = vmatprep.subr.bf16.mxu0 %v10216_v59  ;;  %v1785_v57 = vld [vmem:[%s12001_s17 + $0x550] sm:$0xff] }
 0x3a1   : > { %8815 = vmatprep.subr.bf16.mxu1 %v10218_v9  ;;  %v1789_v59 = vld [vmem:[%s12001_s17 + $0x570] sm:$0xff]  ;;  %v1786_v9 = vld [vmem:[%s12001_s17 + $0x558] sm:$0xff] }
 0x3a2   : > { %v10264_v1 = vcombine.high %v1785_v57, %v1789_v59  ;;  %v10263_v43 = vcombine.low %v1785_v57, %v1789_v59  ;;  %v1830_v57 = vld [vmem:[%s12001_s17 + $0x6b8] sm:$0xff] }
 0x3a3   : > { %8488 = vmatpush1.bf16.msra.mxu0 %v10215_v13  ;;  %v10266_v13 = vcombine.high %v1786_v9, %v1790_v60 }
 0x3a4   : > { %8816 = vmatpush1.bf16.msra.mxu1 %v10217_v4  ;;  %8498 = vmatprep.subr.bf16.mxu0 %v10224_v48  ;;  %v1793_v4 = vld [vmem:[%s12001_s17 + $0x590] sm:$0xff] }
 0x3a5   : > { %8826 = vmatprep.subr.bf16.mxu1 %v10226_v5  ;;  %v1797_v48 = vld [vmem:[%s12001_s17 + $0x5b0] sm:$0xff]  ;;  %v1794_v5 = vld [vmem:[%s12001_s17 + $0x598] sm:$0xff] }
 0x3a6   : > { %8490 = vmatmul.mubr.bf16.vlgmr.msra.gmra.mrb[20].mxu0 %v12131_v46  ;;  %v10272_v34 = vcombine.high %v1793_v4, %v1797_v48  ;;  %v10274_v16 = vcombine.high %v1794_v5, %v1798_v7  ;;  %v10273_v53 = vcombine.low %v1794_v5, %v1798_v7 }
 0x3a7   : > { %8818 = vmatmul.mubr.bf16.vlgmr.msra.gmra.mrb[20].mxu1 %v12131_v46  ;;  %8499 = vmatpush1.bf16.msra.mxu0 %v10223_v15  ;;  %v1774_v46 = vld [vmem:[%s12001_s17 + $0x4f8] sm:$0xff]  ;;  %v10265_v15 = vcombine.low %v1786_v9, %v1790_v60 }
 0x3a8   : > { %8530 = vmatprep.mubr.bf16.mxu0 %v12148_v3  ;;  %8827 = vmatpush1.bf16.msra.mxu1 %v10225_v17  ;;  %v10249_v54 = vcombine.low %v1770_v44, %v1774_v46  ;;  %v1801_v17 = vld [vmem:[%s12001_s17 + $0x5d0] sm:$0xff] }
 0x3a9   : > { %8858 = vmatprep.mubr.bf16.mxu1 %v12148_v3  ;;  %8500 = vmatprep.subr.bf16.mxu0 %v10232_v20  ;;  %v10250_v3 = vcombine.high %v1770_v44, %v1774_v46  ;;  %v1805_v20 = vld [vmem:[%s12001_s17 + $0x5f0] sm:$0xff]  ;;  %v10281_v44 = vcombine.low %v1802_v21, %v1806_v26 }
 0x3aa   : > { %8828 = vmatprep.subr.bf16.mxu1 %v10234_v19  ;;  %v10271_v19 = vcombine.low %v1793_v4, %v1797_v48  ;;  %v10280_v27 = vcombine.high %v1801_v17, %v1805_v20  ;;  %v10279_v36 = vcombine.low %v1801_v17, %v1805_v20  ;;  %v1838_v4 = vld [vmem:[%s12001_s17 + $0x6f8] sm:$0xff] }
 0x3ab   : > { %8501 = vmatpush1.bf16.msra.mxu0 %v10231_v30  ;;  %v10282_v30 = vcombine.high %v1802_v21, %v1806_v26  ;;  %v1846_v17 = vld [vmem:[%s12001_s17 + $0x738] sm:$0xff] }
 0x3ac   : > { %8829 = vmatpush1.bf16.msra.mxu1 %v10233_v32  ;;  %8502 = vmatprep.subr.bf16.mxu0 %v10240_v63  ;;  %v1809_v32 = vld [vmem:[%s12001_s17 + $0x610] sm:$0xff] }
 0x3ad   : > { %8830 = vmatprep.subr.bf16.mxu1 %v10242_v33  ;;  %v1813_v63 = vld [vmem:[%s12001_s17 + $0x630] sm:$0xff]  ;;  %v1810_v33 = vld [vmem:[%s12001_s17 + $0x618] sm:$0xff] }
 0x3ae   : > { %v10288_v46 = vcombine.high %v1809_v32, %v1813_v63  ;;  %v10287_v12 = vcombine.low %v1809_v32, %v1813_v63  ;;  %v10289_v47 = vcombine.low %v1810_v33, %v1814_v35  ;;  %v1854_v32 = vld [vmem:[%s12001_s17 + $0x778] sm:$0xff] }
 0x3af   : > { %8503 = vmatpush1.bf16.msra.mxu0 %v10239_v38  ;;  %v10290_v38 = vcombine.high %v1810_v33, %v1814_v35 }
 0x3b0   : > { %8831 = vmatpush1.bf16.msra.mxu1 %v10241_v0  ;;  %8504 = vmatprep.subr.bf16.mxu0 %v10248_v18  ;;  %v1817_v0 = vld [vmem:[%s12001_s17 + $0x650] sm:$0xff] }
 0x3b1   : > { %8832 = vmatprep.subr.bf16.mxu1 %v10250_v3  ;;  %v1821_v18 = vld [vmem:[%s12001_s17 + $0x670] sm:$0xff]  ;;  %v1818_v3 = vld [vmem:[%s12001_s17 + $0x658] sm:$0xff] }
 0x3b2   : > { %v10296_v50 = vcombine.high %v1817_v0, %v1821_v18  ;;  %v10295_v59 = vcombine.low %v1817_v0, %v1821_v18  ;;  %v10297_v9 = vcombine.low %v1818_v3, %v1822_v42  ;;  %v1862_v0 = vld [vmem:[%s12001_s17 + $0x7b8] sm:$0xff] }
 0x3b3   : > { %8505 = vmatpush1.bf16.msra.mxu0 %v10247_v51  ;;  %v10298_v51 = vcombine.high %v1818_v3, %v1822_v42 }
 0x3b4   : > { %8833 = vmatpush1.bf16.msra.mxu1 %v10249_v54  ;;  %8506 = vmatprep.subr.bf16.mxu0 %v10256_v55  ;;  %v1825_v54 = vld [vmem:[%s12001_s17 + $0x690] sm:$0xff] }
 0x3b5   : > { %8834 = vmatprep.subr.bf16.mxu1 %v10258_v56  ;;  %v1829_v55 = vld [vmem:[%s12001_s17 + $0x6b0] sm:$0xff]  ;;  %v1826_v56 = vld [vmem:[%s12001_s17 + $0x698] sm:$0xff] }
 0x3b6   : > { %v10304_v60 = vcombine.high %v1825_v54, %v1829_v55  ;;  %v10303_v48 = vcombine.low %v1825_v54, %v1829_v55  ;;  %v10305_v5 = vcombine.low %v1826_v56, %v1830_v57  ;;  %v1870_v54 = vld [vmem:[%s12001_s17 + $0x7f8] sm:$0xff] }
 0x3b7   : > { %8507 = vmatpush1.bf16.msra.mxu0 %v10255_v61  ;;  %v10306_v61 = vcombine.high %v1826_v56, %v1830_v57 }
 0x3b8   : > { %8835 = vmatpush1.bf16.msra.mxu1 %v10257_v41  ;;  %8508 = vmatprep.subr.bf16.mxu0 %v10264_v1  ;;  %v1833_v41 = vld [vmem:[%s12001_s17 + $0x6d0] sm:$0xff] }
 0x3b9   : > { %8836 = vmatprep.subr.bf16.mxu1 %v10266_v13  ;;  %v1837_v1 = vld [vmem:[%s12001_s17 + $0x6f0] sm:$0xff]  ;;  %v1834_v13 = vld [vmem:[%s12001_s17 + $0x6d8] sm:$0xff] }
 0x3ba   : > { %v10312_v7 = vcombine.high %v1833_v41, %v1837_v1  ;;  %v10311_v20 = vcombine.low %v1833_v41, %v1837_v1  ;;  %v10313_v21 = vcombine.low %v1834_v13, %v1838_v4  ;;  %v1878_v41 = vld [vmem:[%s12001_s17 + $0x838] sm:$0xff] }
 0x3bb   : > { %8509 = vmatpush1.bf16.msra.mxu0 %v10263_v43  ;;  %v10314_v43 = vcombine.high %v1834_v13, %v1838_v4 }
 0x3bc   : > { %8837 = vmatpush1.bf16.msra.mxu1 %v10265_v15  ;;  %8510 = vmatprep.subr.bf16.mxu0 %v10272_v34  ;;  %v1841_v15 = vld [vmem:[%s12001_s17 + $0x710] sm:$0xff] }
 0x3bd   : > { %8838 = vmatprep.subr.bf16.mxu1 %v10274_v16  ;;  %v1845_v34 = vld [vmem:[%s12001_s17 + $0x730] sm:$0xff]  ;;  %v1842_v16 = vld [vmem:[%s12001_s17 + $0x718] sm:$0xff] }
 0x3be   : > { %v10320_v26 = vcombine.high %v1841_v15, %v1845_v34  ;;  %v10319_v63 = vcombine.low %v1841_v15, %v1845_v34  ;;  %v10321_v33 = vcombine.low %v1842_v16, %v1846_v17  ;;  %v1882_v15 = vld [vmem:[%s12001_s17 + $0x858] sm:$0xff] }
 0x3bf   : > { %8511 = vmatpush1.bf16.msra.mxu0 %v10271_v19  ;;  %v10322_v19 = vcombine.high %v1842_v16, %v1846_v17  ;;  %v1886_v34 = vld [vmem:[%s12001_s17 + $0x878] sm:$0xff] }
 0x3c0   : > { %8839 = vmatpush1.bf16.msra.mxu1 %v10273_v53  ;;  %8512 = vmatprep.subr.bf16.mxu0 %v10280_v27  ;;  %v1849_v53 = vld [vmem:[%s12001_s17 + $0x750] sm:$0xff] }
 0x3c1   : > { %8840 = vmatprep.subr.bf16.mxu1 %v10282_v30  ;;  %v1853_v27 = vld [vmem:[%s12001_s17 + $0x770] sm:$0xff]  ;;  %v1850_v30 = vld [vmem:[%s12001_s17 + $0x758] sm:$0xff] }
 0x3c2   : > { %v10328_v35 = vcombine.high %v1849_v53, %v1853_v27  ;;  %v10327_v18 = vcombine.low %v1849_v53, %v1853_v27  ;;  %v10329_v3 = vcombine.low %v1850_v30, %v1854_v32  ;;  %v1894_v53 = vld [vmem:[%s12001_s17 + $0x8b8] sm:$0xff] }
 0x3c3   : > { %8513 = vmatpush1.bf16.msra.mxu0 %v10279_v36  ;;  %v10330_v36 = vcombine.high %v1850_v30, %v1854_v32  ;;  %v10361_v30 = vcombine.low %v1882_v15, %v1886_v34 }
 0x3c4   : > { %8841 = vmatpush1.bf16.msra.mxu1 %v10281_v44  ;;  %8514 = vmatprep.subr.bf16.mxu0 %v10288_v46  ;;  %v1857_v44 = vld [vmem:[%s12001_s17 + $0x790] sm:$0xff] }
 0x3c5   : > { %8842 = vmatprep.subr.bf16.mxu1 %v10290_v38  ;;  %v1861_v46 = vld [vmem:[%s12001_s17 + $0x7b0] sm:$0xff]  ;;  %v1858_v38 = vld [vmem:[%s12001_s17 + $0x798] sm:$0xff] }
 0x3c6   : > { %v10336_v42 = vcombine.high %v1857_v44, %v1861_v46  ;;  %v10335_v55 = vcombine.low %v1857_v44, %v1861_v46  ;;  %v10337_v56 = vcombine.low %v1858_v38, %v1862_v0 }
 0x3c7   : > { %8515 = vmatpush1.bf16.msra.mxu0 %v10287_v12  ;;  %v10338_v12 = vcombine.high %v1858_v38, %v1862_v0  ;;  %v1905_v0 = vld [vmem:[%s12001_s17 + $0x910] sm:$0xff] }
 0x3c8   : > { %8843 = vmatpush1.bf16.msra.mxu1 %v10289_v47  ;;  %8516 = vmatprep.subr.bf16.mxu0 %v10296_v50  ;;  %v1865_v47 = vld [vmem:[%s12001_s17 + $0x7d0] sm:$0xff] }
 0x3c9   : > { %8844 = vmatprep.subr.bf16.mxu1 %v10298_v51  ;;  %v1869_v50 = vld [vmem:[%s12001_s17 + $0x7f0] sm:$0xff]  ;;  %v1866_v51 = vld [vmem:[%s12001_s17 + $0x7d8] sm:$0xff] }
 0x3ca   : > { %v10344_v57 = vcombine.high %v1865_v47, %v1869_v50  ;;  %v10343_v1 = vcombine.low %v1865_v47, %v1869_v50  ;;  %v10345_v13 = vcombine.low %v1866_v51, %v1870_v54 }
 0x3cb   : > { %8517 = vmatpush1.bf16.msra.mxu0 %v10295_v59  ;;  %v10346_v59 = vcombine.high %v1866_v51, %v1870_v54  ;;  %v1913_v54 = vld [vmem:[%s12001_s17 + $0x950] sm:$0xff] }
 0x3cc   : > { %8845 = vmatpush1.bf16.msra.mxu1 %v10297_v9  ;;  %8518 = vmatprep.subr.bf16.mxu0 %v10304_v60  ;;  %v1873_v9 = vld [vmem:[%s12001_s17 + $0x810] sm:$0xff] }
 0x3cd   : > { %8846 = vmatprep.subr.bf16.mxu1 %v10306_v61  ;;  %v1877_v60 = vld [vmem:[%s12001_s17 + $0x830] sm:$0xff]  ;;  %v1874_v61 = vld [vmem:[%s12001_s17 + $0x818] sm:$0xff] }
 0x3ce   : > { %v10352_v4 = vcombine.high %v1873_v9, %v1877_v60  ;;  %v10353_v16 = vcombine.low %v1874_v61, %v1878_v41 }
 0x3cf   : > { %8519 = vmatpush1.bf16.msra.mxu0 %v10303_v48  ;;  %v10354_v48 = vcombine.high %v1874_v61, %v1878_v41  ;;  %v1921_v41 = vld [vmem:[%s12001_s17 + $0x990] sm:$0xff] }
 0x3d0   : > { %8847 = vmatpush1.bf16.msra.mxu1 %v10305_v5  ;;  %8520 = vmatprep.subr.bf16.mxu0 %v10312_v7  ;;  %v1881_v5 = vld [vmem:[%s12001_s17 + $0x850] sm:$0xff] }
 0x3d1   : > { %8848 = vmatprep.subr.bf16.mxu1 %v10314_v43  ;;  %v1885_v7 = vld [vmem:[%s12001_s17 + $0x870] sm:$0xff]  ;;  %v10351_v43 = vcombine.low %v1873_v9, %v1877_v60 }
 0x3d2   : > { %v10360_v17 = vcombine.high %v1881_v5, %v1885_v7  ;;  %v10359_v27 = vcombine.low %v1881_v5, %v1885_v7 }
 0x3d3   : > { %8521 = vmatpush1.bf16.msra.mxu0 %v10311_v20  ;;  %v1889_v20 = vld [vmem:[%s12001_s17 + $0x890] sm:$0xff] }
 0x3d4   : > { %8849 = vmatpush1.bf16.msra.mxu1 %v10313_v21  ;;  %8522 = vmatprep.subr.bf16.mxu0 %v10320_v26  ;;  %v1893_v21 = vld [vmem:[%s12001_s17 + $0x8b0] sm:$0xff]  ;;  %v10362_v26 = vcombine.high %v1882_v15, %v1886_v34 }
 0x3d5   : > { %8850 = vmatprep.subr.bf16.mxu1 %v10322_v19  ;;  %v1890_v19 = vld [vmem:[%s12001_s17 + $0x898] sm:$0xff]  ;;  %v10368_v32 = vcombine.high %v1889_v20, %v1893_v21  ;;  %v10367_v44 = vcombine.low %v1889_v20, %v1893_v21  ;;  %v1929_v15 = vld [vmem:[%s12001_s17 + $0x9d0] sm:$0xff] }
 0x3d6   : > { %v10369_v46 = vcombine.low %v1890_v19, %v1894_v53  ;;  %v1933_v34 = vld [vmem:[%s12001_s17 + $0x9f0] sm:$0xff] }
 0x3d7   : > { %8523 = vmatpush1.bf16.msra.mxu0 %v10319_v63  ;;  %v10370_v63 = vcombine.high %v1890_v19, %v1894_v53  ;;  %v1937_v53 = vld [vmem:[%s12001_s17 + $0xa10] sm:$0xff] }
 0x3d8   : > { %8851 = vmatpush1.bf16.msra.mxu1 %v10321_v33  ;;  %8524 = vmatprep.subr.bf16.mxu0 %v10328_v35  ;;  %v1897_v33 = vld [vmem:[%s12001_s17 + $0x8d0] sm:$0xff] }
 0x3d9   : > { %8852 = vmatprep.subr.bf16.mxu1 %v10330_v36  ;;  %v1901_v35 = vld [vmem:[%s12001_s17 + $0x8f0] sm:$0xff]  ;;  %v1898_v36 = vld [vmem:[%s12001_s17 + $0x8d8] sm:$0xff] }
 0x3da   : > { %v10376_v38 = vcombine.high %v1897_v33, %v1901_v35 }
 0x3db   : > { %8525 = vmatpush1.bf16.msra.mxu0 %v10327_v18  ;;  %v1909_v18 = vld [vmem:[%s12001_s17 + $0x930] sm:$0xff] }
 0x3dc   : > { %8853 = vmatpush1.bf16.msra.mxu1 %v10329_v3  ;;  %8526 = vmatprep.subr.bf16.mxu0 %v10336_v42  ;;  %v1906_v3 = vld [vmem:[%s12001_s17 + $0x918] sm:$0xff]  ;;  %v10384_v50 = vcombine.high %v1905_v0, %v1909_v18 }
 0x3dd   : > { %8854 = vmatprep.subr.bf16.mxu1 %v10338_v12  ;;  %v1910_v42 = vld [vmem:[%s12001_s17 + $0x938] sm:$0xff]  ;;  %v10375_v12 = vcombine.low %v1897_v33, %v1901_v35 }
 0x3de   : > { %v10386_v51 = vcombine.high %v1906_v3, %v1910_v42  ;;  %v10385_v9 = vcombine.low %v1906_v3, %v1910_v42  ;;  %v1953_v42 = vld [vmem:[%s12001_s17 + $0xa90] sm:$0xff] }
 0x3df   : > { %8527 = vmatpush1.bf16.msra.mxu0 %v10335_v55  ;;  %v1917_v55 = vld [vmem:[%s12001_s17 + $0x970] sm:$0xff] }
 0x3e0   : > { %8855 = vmatpush1.bf16.msra.mxu1 %v10337_v56  ;;  %8528 = vmatprep.subr.bf16.mxu0 %v10344_v57  ;;  %v1914_v56 = vld [vmem:[%s12001_s17 + $0x958] sm:$0xff]  ;;  %v10392_v60 = vcombine.high %v1913_v54, %v1917_v55 }
 0x3e1   : > { %8856 = vmatprep.subr.bf16.mxu1 %v10346_v59  ;;  %v1918_v57 = vld [vmem:[%s12001_s17 + $0x978] sm:$0xff]  ;;  %v10383_v59 = vcombine.low %v1905_v0, %v1909_v18 }
 0x3e2   : > { %v10394_v61 = vcombine.high %v1914_v56, %v1918_v57  ;;  %v10393_v5 = vcombine.low %v1914_v56, %v1918_v57  ;;  %v1961_v57 = vld [vmem:[%s12001_s17 + $0xad0] sm:$0xff] }
 0x3e3   : > { %8529 = vmatpush1.bf16.msra.mxu0 %v10343_v1  ;;  %v1925_v1 = vld [vmem:[%s12001_s17 + $0x9b0] sm:$0xff] }
 0x3e4   : > { %8857 = vmatpush1.bf16.msra.mxu1 %v10345_v13  ;;  %8539 = vmatprep.subr.bf16.mxu0 %v10352_v4  ;;  %v1922_v13 = vld [vmem:[%s12001_s17 + $0x998] sm:$0xff]  ;;  %v10400_v7 = vcombine.high %v1921_v41, %v1925_v1  ;;  %v10399_v20 = vcombine.low %v1921_v41, %v1925_v1 }
 0x3e5   : > { %8867 = vmatprep.subr.bf16.mxu1 %v10354_v48  ;;  %v1926_v4 = vld [vmem:[%s12001_s17 + $0x9b8] sm:$0xff]  ;;  %v10391_v48 = vcombine.low %v1913_v54, %v1917_v55 }
 0x3e6   : > { %8531 = vmatmul.mubr.bf16.vlgmr.msra.gmra.mrb[20].mxu0 %v12241_v49  ;;  %v10401_v21 = vcombine.low %v1922_v13, %v1926_v4 }
 0x3e7   : > { %8859 = vmatmul.mubr.bf16.vlgmr.msra.gmra.mrb[20].mxu1 %v12241_v49  ;;  %8540 = vmatpush1.bf16.msra.mxu0 %v10351_v43  ;;  %v1902_v49 = vld [vmem:[%s12001_s17 + $0x8f8] sm:$0xff]  ;;  %v10402_v43 = vcombine.high %v1922_v13, %v1926_v4  ;;  %v1969_v4 = vld [vmem:[%s12001_s17 + $0xb10] sm:$0xff] }
 0x3e8   : > { %8571 = vmatprep.mubr.bf16.mxu0 %v12249_v58  ;;  %8868 = vmatpush1.bf16.msra.mxu1 %v10353_v16  ;;  %v10377_v47 = vcombine.low %v1898_v36, %v1902_v49  ;;  %v1930_v16 = vld [vmem:[%s12001_s17 + $0x9d8] sm:$0xff] }
 0x3e9   : > { %8899 = vmatprep.mubr.bf16.mxu1 %v12249_v58  ;;  %8541 = vmatprep.subr.bf16.mxu0 %v10360_v17  ;;  %v10378_v58 = vcombine.high %v1898_v36, %v1902_v49  ;;  %v1934_v17 = vld [vmem:[%s12001_s17 + $0x9f8] sm:$0xff]  ;;  %v1945_v49 = vld [vmem:[%s12001_s17 + $0xa50] sm:$0xff] }
 0x3ea   : > { %8869 = vmatprep.subr.bf16.mxu1 %v10362_v26  ;;  %v10408_v26 = vcombine.high %v1929_v15, %v1933_v34  ;;  %v10410_v19 = vcombine.high %v1930_v16, %v1934_v17  ;;  %v10409_v33 = vcombine.low %v1930_v16, %v1934_v17  ;;  %v1977_v17 = vld [vmem:[%s12001_s17 + $0xb50] sm:$0xff] }
 0x3eb   : > { %8542 = vmatpush1.bf16.msra.mxu0 %v10359_v27  ;;  %v1941_v27 = vld [vmem:[%s12001_s17 + $0xa30] sm:$0xff] }
 0x3ec   : > { %8870 = vmatpush1.bf16.msra.mxu1 %v10361_v30  ;;  %8543 = vmatprep.subr.bf16.mxu0 %v10368_v32  ;;  %v1938_v30 = vld [vmem:[%s12001_s17 + $0xa18] sm:$0xff]  ;;  %v10416_v35 = vcombine.high %v1937_v53, %v1941_v27 }
 0x3ed   : > { %8871 = vmatprep.subr.bf16.mxu1 %v10370_v63  ;;  %v1942_v32 = vld [vmem:[%s12001_s17 + $0xa38] sm:$0xff]  ;;  %v10407_v63 = vcombine.low %v1929_v15, %v1933_v34 }
 0x3ee   : > { %v10418_v36 = vcombine.high %v1938_v30, %v1942_v32  ;;  %v10417_v0 = vcombine.low %v1938_v30, %v1942_v32  ;;  %v1985_v32 = vld [vmem:[%s12001_s17 + $0xb90] sm:$0xff] }
 0x3ef   : > { %8544 = vmatpush1.bf16.msra.mxu0 %v10367_v44  ;;  %v1949_v44 = vld [vmem:[%s12001_s17 + $0xa70] sm:$0xff] }
 0x3f0   : > { %8872 = vmatpush1.bf16.msra.mxu1 %v10369_v46  ;;  %8545 = vmatprep.subr.bf16.mxu0 %v10376_v38  ;;  %v1946_v46 = vld [vmem:[%s12001_s17 + $0xa58] sm:$0xff]  ;;  %v10424_v18 = vcombine.high %v1945_v49, %v1949_v44 }
 0x3f1   : > { %8873 = vmatprep.subr.bf16.mxu1 %v10378_v58  ;;  %v1950_v38 = vld [vmem:[%s12001_s17 + $0xa78] sm:$0xff]  ;;  %v10415_v58 = vcombine.low %v1937_v53, %v1941_v27 }
 0x3f2   : > { %v10426_v3 = vcombine.high %v1946_v46, %v1950_v38  ;;  %v10425_v54 = vcombine.low %v1946_v46, %v1950_v38  ;;  %v1993_v38 = vld [vmem:[%s12001_s17 + $0xbd0] sm:$0xff] }
 0x3f3   : > { %8546 = vmatpush1.bf16.msra.mxu0 %v10375_v12  ;;  %v1957_v12 = vld [vmem:[%s12001_s17 + $0xab0] sm:$0xff] }
 0x3f4   : > { %8874 = vmatpush1.bf16.msra.mxu1 %v10377_v47  ;;  %8547 = vmatprep.subr.bf16.mxu0 %v10384_v50  ;;  %v1954_v47 = vld [vmem:[%s12001_s17 + $0xa98] sm:$0xff]  ;;  %v10432_v55 = vcombine.high %v1953_v42, %v1957_v12 }
 0x3f5   : > { %8875 = vmatprep.subr.bf16.mxu1 %v10386_v51  ;;  %v1958_v50 = vld [vmem:[%s12001_s17 + $0xab8] sm:$0xff]  ;;  %v10423_v51 = vcombine.low %v1945_v49, %v1949_v44 }
 0x3f6   : > { %v10434_v56 = vcombine.high %v1954_v47, %v1958_v50  ;;  %v10433_v41 = vcombine.low %v1954_v47, %v1958_v50  ;;  %v2001_v50 = vld [vmem:[%s12001_s17 + $0xc10] sm:$0xff] }
 0x3f7   : > { %8548 = vmatpush1.bf16.msra.mxu0 %v10383_v59  ;;  %v1965_v59 = vld [vmem:[%s12001_s17 + $0xaf0] sm:$0xff] }
 0x3f8   : > { %8876 = vmatpush1.bf16.msra.mxu1 %v10385_v9  ;;  %8549 = vmatprep.subr.bf16.mxu0 %v10392_v60  ;;  %v1962_v9 = vld [vmem:[%s12001_s17 + $0xad8] sm:$0xff]  ;;  %v10440_v1 = vcombine.high %v1961_v57, %v1965_v59 }
 0x3f9   : > { %8877 = vmatprep.subr.bf16.mxu1 %v10394_v61  ;;  %v1966_v60 = vld [vmem:[%s12001_s17 + $0xaf8] sm:$0xff]  ;;  %v10431_v61 = vcombine.low %v1953_v42, %v1957_v12 }
 0x3fa   : > { %v10442_v13 = vcombine.high %v1962_v9, %v1966_v60  ;;  %v10441_v15 = vcombine.low %v1962_v9, %v1966_v60  ;;  %v2009_v60 = vld [vmem:[%s12001_s17 + $0xc50] sm:$0xff] }
 0x3fb   : > { %8550 = vmatpush1.bf16.msra.mxu0 %v10391_v48  ;;  %v1973_v48 = vld [vmem:[%s12001_s17 + $0xb30] sm:$0xff] }
 0x3fc   : > { %8878 = vmatpush1.bf16.msra.mxu1 %v10393_v5  ;;  %8551 = vmatprep.subr.bf16.mxu0 %v10400_v7  ;;  %v1970_v5 = vld [vmem:[%s12001_s17 + $0xb18] sm:$0xff]  ;;  %v10448_v34 = vcombine.high %v1969_v4, %v1973_v48 }
 0x3fd   : > { %8879 = vmatprep.subr.bf16.mxu1 %v10402_v43  ;;  %v1974_v7 = vld [vmem:[%s12001_s17 + $0xb38] sm:$0xff]  ;;  %v10439_v43 = vcombine.low %v1961_v57, %v1965_v59 }
 0x3fe   : > { %v10450_v16 = vcombine.high %v1970_v5, %v1974_v7  ;;  %v10449_v53 = vcombine.low %v1970_v5, %v1974_v7  ;;  %v2017_v5 = vld [vmem:[%s12001_s17 + $0xc90] sm:$0xff] }
 0x3ff   : > { %8552 = vmatpush1.bf16.msra.mxu0 %v10399_v20  ;;  %v1981_v20 = vld [vmem:[%s12001_s17 + $0xb70] sm:$0xff] }
 0x400   : > { %8880 = vmatpush1.bf16.msra.mxu1 %v10401_v21  ;;  %8553 = vmatprep.subr.bf16.mxu0 %v10408_v26  ;;  %v1978_v21 = vld [vmem:[%s12001_s17 + $0xb58] sm:$0xff]  ;;  %v10456_v27 = vcombine.high %v1977_v17, %v1981_v20  ;;  %v2021_v7 = vld [vmem:[%s12001_s17 + $0xcb0] sm:$0xff] }
 0x401   : > { %8881 = vmatprep.subr.bf16.mxu1 %v10410_v19  ;;  %v1982_v26 = vld [vmem:[%s12001_s17 + $0xb78] sm:$0xff]  ;;  %v10447_v19 = vcombine.low %v1969_v4, %v1973_v48 }
 0x402   : > { %v10458_v30 = vcombine.high %v1978_v21, %v1982_v26  ;;  %v10457_v49 = vcombine.low %v1978_v21, %v1982_v26  ;;  %v2025_v26 = vld [vmem:[%s12001_s17 + $0xcd0] sm:$0xff] }
 0x403   : > { %8554 = vmatpush1.bf16.msra.mxu0 %v10407_v63  ;;  %v1989_v63 = vld [vmem:[%s12001_s17 + $0xbb0] sm:$0xff] }
 0x404   : > { %8882 = vmatpush1.bf16.msra.mxu1 %v10409_v33  ;;  %8555 = vmatprep.subr.bf16.mxu0 %v10416_v35  ;;  %v1986_v33 = vld [vmem:[%s12001_s17 + $0xb98] sm:$0xff]  ;;  %v10464_v44 = vcombine.high %v1985_v32, %v1989_v63 }
 0x405   : > { %8883 = vmatprep.subr.bf16.mxu1 %v10418_v36  ;;  %v1990_v35 = vld [vmem:[%s12001_s17 + $0xbb8] sm:$0xff]  ;;  %v10455_v36 = vcombine.low %v1977_v17, %v1981_v20  ;;  %v10496_v20 = vcombine.high %v2017_v5, %v2021_v7 }
 0x406   : > { %v10466_v46 = vcombine.high %v1986_v33, %v1990_v35  ;;  %v10465_v42 = vcombine.low %v1986_v33, %v1990_v35  ;;  %v2037_v33 = vld [vmem:[%s12001_s17 + $0xd30] sm:$0xff]  ;;  %v2034_v35 = vld [vmem:[%s12001_s17 + $0xd18] sm:$0xff] }
 0x407   : > { %8556 = vmatpush1.bf16.msra.mxu0 %v10415_v58  ;;  %v1997_v58 = vld [vmem:[%s12001_s17 + $0xbf0] sm:$0xff] }
 0x408   : > { %8884 = vmatpush1.bf16.msra.mxu1 %v10417_v0  ;;  %8557 = vmatprep.subr.bf16.mxu0 %v10424_v18  ;;  %v1994_v0 = vld [vmem:[%s12001_s17 + $0xbd8] sm:$0xff]  ;;  %v10472_v12 = vcombine.high %v1993_v38, %v1997_v58 }
 0x409   : > { %8885 = vmatprep.subr.bf16.mxu1 %v10426_v3  ;;  %v1998_v18 = vld [vmem:[%s12001_s17 + $0xbf8] sm:$0xff]  ;;  %v10463_v3 = vcombine.low %v1985_v32, %v1989_v63  ;;  %v2033_v63 = vld [vmem:[%s12001_s17 + $0xd10] sm:$0xff] }
 0x40a   : > { %v10474_v47 = vcombine.high %v1994_v0, %v1998_v18  ;;  %v10473_v57 = vcombine.low %v1994_v0, %v1998_v18  ;;  %v2045_v0 = vld [vmem:[%s12001_s17 + $0xd70] sm:$0xff]  ;;  %v2042_v18 = vld [vmem:[%s12001_s17 + $0xd58] sm:$0xff] }
 0x40b   : > { %8558 = vmatpush1.bf16.msra.mxu0 %v10423_v51  ;;  %v2005_v51 = vld [vmem:[%s12001_s17 + $0xc30] sm:$0xff] }
 0x40c   : > { %8886 = vmatpush1.bf16.msra.mxu1 %v10425_v54  ;;  %8559 = vmatprep.subr.bf16.mxu0 %v10432_v55  ;;  %v2002_v54 = vld [vmem:[%s12001_s17 + $0xc18] sm:$0xff]  ;;  %v10480_v59 = vcombine.high %v2001_v50, %v2005_v51 }
 0x40d   : > { %8887 = vmatprep.subr.bf16.mxu1 %v10434_v56  ;;  %v2006_v55 = vld [vmem:[%s12001_s17 + $0xc38] sm:$0xff]  ;;  %v10471_v56 = vcombine.low %v1993_v38, %v1997_v58  ;;  %v2041_v58 = vld [vmem:[%s12001_s17 + $0xd50] sm:$0xff] }
 0x40e   : > { %v10482_v9 = vcombine.high %v2002_v54, %v2006_v55  ;;  %v10481_v4 = vcombine.low %v2002_v54, %v2006_v55  ;;  %v2053_v54 = vld [vmem:[%s12001_s17 + $0xdb0] sm:$0xff]  ;;  %v2050_v55 = vld [vmem:[%s12001_s17 + $0xd98] sm:$0xff] }
 0x40f   : > { %8560 = vmatpush1.bf16.msra.mxu0 %v10431_v61  ;;  %v2013_v61 = vld [vmem:[%s12001_s17 + $0xc70] sm:$0xff] }
 0x410   : > { %8888 = vmatpush1.bf16.msra.mxu1 %v10433_v41  ;;  %8561 = vmatprep.subr.bf16.mxu0 %v10440_v1  ;;  %v10479_v41 = vcombine.low %v2001_v50, %v2005_v51  ;;  %v2010_v1 = vld [vmem:[%s12001_s17 + $0xc58] sm:$0xff]  ;;  %v10488_v48 = vcombine.high %v2009_v60, %v2013_v61  ;;  %v2049_v51 = vld [vmem:[%s12001_s17 + $0xd90] sm:$0xff] }
 0x411   : > { %8889 = vmatprep.subr.bf16.mxu1 %v10442_v13  ;;  %v2014_v13 = vld [vmem:[%s12001_s17 + $0xc78] sm:$0xff] }
 0x412   : > { %v10489_v17 = vcombine.low %v2010_v1, %v2014_v13 }
 0x413   : > { %8562 = vmatpush1.bf16.msra.mxu0 %v10439_v43  ;;  %v10490_v43 = vcombine.high %v2010_v1, %v2014_v13  ;;  %v2061_v1 = vld [vmem:[%s12001_s17 + $0xdf0] sm:$0xff] }
 0x414   : > { %8890 = vmatpush1.bf16.msra.mxu1 %v10441_v15  ;;  %8563 = vmatprep.subr.bf16.mxu0 %v10448_v34  ;;  %v2018_v15 = vld [vmem:[%s12001_s17 + $0xc98] sm:$0xff] }
 0x415   : > { %8891 = vmatprep.subr.bf16.mxu1 %v10450_v16  ;;  %v2022_v34 = vld [vmem:[%s12001_s17 + $0xcb8] sm:$0xff]  ;;  %v10487_v16 = vcombine.low %v2009_v60, %v2013_v61 }
 0x416   : > { %v10498_v21 = vcombine.high %v2018_v15, %v2022_v34 }
 0x417   : > { %8564 = vmatpush1.bf16.msra.mxu0 %v10447_v19  ;;  %v2029_v19 = vld [vmem:[%s12001_s17 + $0xcf0] sm:$0xff] }
 0x418   : > { %8892 = vmatpush1.bf16.msra.mxu1 %v10449_v53  ;;  %8565 = vmatprep.subr.bf16.mxu0 %v10456_v27  ;;  %v2026_v53 = vld [vmem:[%s12001_s17 + $0xcd8] sm:$0xff]  ;;  %v10495_v27 = vcombine.low %v2017_v5, %v2021_v7  ;;  %v10504_v32 = vcombine.high %v2025_v26, %v2029_v19 }
 0x419   : > { %8893 = vmatprep.subr.bf16.mxu1 %v10458_v30  ;;  %v10497_v30 = vcombine.low %v2018_v15, %v2022_v34  ;;  %v2062_v5 = vld [vmem:[%s12001_s17 + $0xdf8] sm:$0xff]  ;;  %v10527_v15 = vcombine.low %v2049_v51, %v2053_v54 }
 0x41b   : > { %8566 = vmatpush1.bf16.msra.mxu0 %v10455_v36  ;;  %v2038_v36 = vld [vmem:[%s12001_s17 + $0xd38] sm:$0xff] }
 0x41c   : > { %8894 = vmatpush1.bf16.msra.mxu1 %v10457_v49  ;;  %8567 = vmatprep.subr.bf16.mxu0 %v10464_v44  ;;  %v10503_v49 = vcombine.low %v2025_v26, %v2029_v19  ;;  %v10514_v38 = vcombine.high %v2034_v35, %v2038_v36  ;;  %v2065_v26 = vld [vmem:[%s12001_s17 + $0xe10] sm:$0xff] }
 0x41d   : > { %8895 = vmatprep.subr.bf16.mxu1 %v10466_v46  ;;  %v10512_v46 = vcombine.high %v2033_v63, %v2037_v33  ;;  %v2069_v19 = vld [vmem:[%s12001_s17 + $0xe30] sm:$0xff] }
 0x41f   : > { %8568 = vmatpush1.bf16.msra.mxu0 %v10463_v3  ;;  %v2046_v3 = vld [vmem:[%s12001_s17 + $0xd78] sm:$0xff] }
 0x420   : > { %8896 = vmatpush1.bf16.msra.mxu1 %v10465_v42  ;;  %8569 = vmatprep.subr.bf16.mxu0 %v10472_v12  ;;  %v10511_v42 = vcombine.low %v2033_v63, %v2037_v33  ;;  %v10513_v12 = vcombine.low %v2034_v35, %v2038_v36  ;;  %v10522_v50 = vcombine.high %v2042_v18, %v2046_v3  ;;  %v2073_v33 = vld [vmem:[%s12001_s17 + $0xe50] sm:$0xff]  ;;  %v2074_v36 = vld [vmem:[%s12001_s17 + $0xe58] sm:$0xff] }
 0x421   : > { %8897 = vmatprep.subr.bf16.mxu1 %v10474_v47  ;;  %v10520_v47 = vcombine.high %v2041_v58, %v2045_v0  ;;  %v2077_v35 = vld [vmem:[%s12001_s17 + $0xe70] sm:$0xff] }
 0x423   : > { %8570 = vmatpush1.bf16.msra.mxu0 %v10471_v56  ;;  %v2054_v56 = vld [vmem:[%s12001_s17 + $0xdb8] sm:$0xff] }
 0x424   : > { %8898 = vmatpush1.bf16.msra.mxu1 %v10473_v57  ;;  %8580 = vmatprep.subr.bf16.mxu0 %v10480_v59  ;;  %v10519_v57 = vcombine.low %v2041_v58, %v2045_v0  ;;  %v10521_v59 = vcombine.low %v2042_v18, %v2046_v3  ;;  %v10530_v61 = vcombine.high %v2050_v55, %v2054_v56  ;;  %v2081_v0 = vld [vmem:[%s12001_s17 + $0xe90] sm:$0xff]  ;;  %v2082_v3 = vld [vmem:[%s12001_s17 + $0xe98] sm:$0xff] }
 0x425   : > { %8908 = vmatprep.subr.bf16.mxu1 %v10482_v9  ;;  %v10528_v9 = vcombine.high %v2049_v51, %v2053_v54  ;;  %v2085_v18 = vld [vmem:[%s12001_s17 + $0xeb0] sm:$0xff] }
 0x426   : > { %8572 = vmatmul.mubr.bf16.vlgmr.msra.gmra.mrb[20].mxu0 %v12346_v28  ;;  %v2089_v54 = vld [vmem:[%s12001_s17 + $0xed0] sm:$0xff] }
 0x427   : > { %8900 = vmatmul.mubr.bf16.vlgmr.msra.gmra.mrb[20].mxu1 %v12346_v28  ;;  %8581 = vmatpush1.bf16.msra.mxu0 %v10479_v41  ;;  %v2030_v28 = vld [vmem:[%s12001_s17 + $0xcf8] sm:$0xff]  ;;  %v2057_v41 = vld [vmem:[%s12001_s17 + $0xdd0] sm:$0xff] }
 0x428   : > { %8612 = vmatprep.mubr.bf16.mxu0 %v12348_v31  ;;  %8909 = vmatpush1.bf16.msra.mxu1 %v10481_v4  ;;  %v10505_v44 = vcombine.low %v2026_v53, %v2030_v28 }
 0x429   : > { %8940 = vmatprep.mubr.bf16.mxu1 %v12348_v31  ;;  %8582 = vmatprep.subr.bf16.mxu0 %v10488_v48  ;;  %v10506_v31 = vcombine.high %v2026_v53, %v2030_v28  ;;  %v2058_v48 = vld [vmem:[%s12001_s17 + $0xdd8] sm:$0xff] }
 0x42a   : > { %8910 = vmatprep.subr.bf16.mxu1 %v10490_v43  ;;  %v2066_v28 = vld [vmem:[%s12001_s17 + $0xe18] sm:$0xff] }
 0x42b   : > { %8583 = vmatpush1.bf16.msra.mxu0 %v10487_v16 }
 0x42c   : > { %8911 = vmatpush1.bf16.msra.mxu1 %v10489_v17  ;;  %8584 = vmatprep.subr.bf16.mxu0 %v10496_v20  ;;  %v10529_v17 = vcombine.low %v2050_v55, %v2054_v56  ;;  %v10536_v20 = vcombine.high %v2057_v41, %v2061_v1  ;;  %v2093_v55 = vld [vmem:[%s12001_s17 + $0xef0] sm:$0xff]  ;;  %v2090_v56 = vld [vmem:[%s12001_s17 + $0xed8] sm:$0xff] }
 0x42d   : > { %8912 = vmatprep.subr.bf16.mxu1 %v10498_v21  ;;  %v10538_v21 = vcombine.high %v2058_v48, %v2062_v5 }
 0x42f   : > { %8585 = vmatpush1.bf16.msra.mxu0 %v10495_v27  ;;  %v2070_v27 = vld [vmem:[%s12001_s17 + $0xe38] sm:$0xff] }
 0x430   : > { %8913 = vmatpush1.bf16.msra.mxu1 %v10497_v30  ;;  %8586 = vmatprep.subr.bf16.mxu0 %v10504_v32  ;;  %v10535_v30 = vcombine.low %v2057_v41, %v2061_v1  ;;  %v10537_v32 = vcombine.low %v2058_v48, %v2062_v5  ;;  %v10546_v63 = vcombine.high %v2066_v28, %v2070_v27  ;;  %v2097_v1 = vld [vmem:[%s12001_s17 + $0xf10] sm:$0xff]  ;;  %v2098_v5 = vld [vmem:[%s12001_s17 + $0xf18] sm:$0xff] }
 0x431   : > { %8914 = vmatprep.subr.bf16.mxu1 %v10506_v31  ;;  %v10544_v31 = vcombine.high %v2065_v26, %v2069_v19  ;;  %v2101_v48 = vld [vmem:[%s12001_s17 + $0xf30] sm:$0xff] }
 0x433   : > { %8587 = vmatpush1.bf16.msra.mxu0 %v10503_v49  ;;  %v2078_v49 = vld [vmem:[%s12001_s17 + $0xe78] sm:$0xff] }
 0x434   : > { %8915 = vmatpush1.bf16.msra.mxu1 %v10505_v44  ;;  %8588 = vmatprep.subr.bf16.mxu0 %v10512_v46  ;;  %v10543_v44 = vcombine.low %v2065_v26, %v2069_v19  ;;  %v10545_v46 = vcombine.low %v2066_v28, %v2070_v27  ;;  %v10554_v58 = vcombine.high %v2074_v36, %v2078_v49  ;;  %v2106_v26 = vld [vmem:[%s12001_s17 + $0xf58] sm:$0xff] }
 0x435   : > { %8916 = vmatprep.subr.bf16.mxu1 %v10514_v38  ;;  %v10552_v38 = vcombine.high %v2073_v33, %v2077_v35  ;;  %v2110_v19 = vld [vmem:[%s12001_s17 + $0xf78] sm:$0xff] }
 0x437   : > { %8589 = vmatpush1.bf16.msra.mxu0 %v10511_v42  ;;  %v2086_v42 = vld [vmem:[%s12001_s17 + $0xeb8] sm:$0xff] }
 0x438   : > { %8917 = vmatpush1.bf16.msra.mxu1 %v10513_v12  ;;  %8590 = vmatprep.subr.bf16.mxu0 %v10520_v47  ;;  %v10551_v12 = vcombine.low %v2073_v33, %v2077_v35  ;;  %v10553_v47 = vcombine.low %v2074_v36, %v2078_v49  ;;  %v10562_v51 = vcombine.high %v2082_v3, %v2086_v42  ;;  %v2118_v33 = vld [vmem:[%s12001_s17 + $0xfb8] sm:$0xff] }
 0x439   : > { %v12961_v60 = vpop.f32.mrb[16].mxu0  ;;  %8918 = vmatprep.subr.bf16.mxu1 %v10522_v50  ;;  %v10560_v50 = vcombine.high %v2081_v0, %v2085_v18  ;;  %v10585_v36 = vcombine.low %v2106_v26, %v2110_v19 }
 0x43a   : > { %v12965_v13 = vpop.f32.mrb[16].mxu1  ;;  %v12967_v4 = vpop.f32.mrb[17].mxu0 }
 0x43b   : > { %v12971_v7 = vpop.f32.mrb[17].mxu1  ;;  %v8126_v43 = vpop.f32.mrb[18].mxu0  ;;  %8591 = vmatpush1.bf16.msra.mxu0 %v10519_v57  ;;  %v2094_v57 = vld [vmem:[%s12001_s17 + $0xef8] sm:$0xff] }
 0x43c   : > { %v8454_v34 = vpop.f32.mrb[18].mxu1  ;;  %8919 = vmatpush1.bf16.msra.mxu1 %v10521_v59  ;;  %v8127_v16 = vpop.f32.mrb[19].mxu0  ;;  %8592 = vmatprep.subr.bf16.mxu0 %v10528_v9  ;;  %v10559_v59 = vcombine.low %v2081_v0, %v2085_v18  ;;  %v10561_v9 = vcombine.low %v2082_v3, %v2086_v42  ;;  %v10570_v41 = vcombine.high %v2090_v56, %v2094_v57  ;;  %v2102_v43 = vld [vmem:[%s12001_s17 + $0xf38] sm:$0xff] }
 0x43d   : > { %8920 = vmatprep.subr.bf16.mxu1 %v10530_v61  ;;  %v8455_v53 = vpop.f32.mrb[19].mxu1  ;;  %v10568_v61 = vcombine.high %v2089_v54, %v2093_v55  ;;  %v10569_v34 = vcombine.low %v2090_v56, %v2094_v57  ;;  %v10576_v16 = vcombine.high %v2097_v1, %v2101_v48  ;;  %v10577_v28 = vcombine.low %v2098_v5, %v2102_v43  ;;  %v2126_v0 = vld [vmem:[%s12001_s17 + $0xff8] sm:$0xff] }
 0x43e   : > { %v10575_v53 = vcombine.low %v2097_v1, %v2101_v48  ;;  %v2138_v1 = vld [vmem:[%s12001_s17 + $0x1058] sm:$0xff] }
 0x43f   : > { %8593 = vmatpush1.bf16.msra.mxu0 %v10527_v15  ;;  %v10567_v15 = vcombine.low %v2089_v54, %v2093_v55  ;;  %v2134_v54 = vld [vmem:[%s12001_s17 + $0x1038] sm:$0xff] }
 0x440   : > { %8921 = vmatpush1.bf16.msra.mxu1 %v10529_v17  ;;  %8594 = vmatprep.subr.bf16.mxu0 %v10536_v20  ;;  %v10578_v17 = vcombine.high %v2098_v5, %v2102_v43  ;;  %v2105_v20 = vld [vmem:[%s12001_s17 + $0xf50] sm:$0xff]  ;;  %v2142_v48 = vld [vmem:[%s12001_s17 + $0x1078] sm:$0xff] }
 0x441   : > { %8922 = vmatprep.subr.bf16.mxu1 %v10538_v21  ;;  %v2109_v21 = vld [vmem:[%s12001_s17 + $0xf70] sm:$0xff] }
 0x442   : > { %v10584_v27 = vcombine.high %v2105_v20, %v2109_v21  ;;  %v10583_v35 = vcombine.low %v2105_v20, %v2109_v21  ;;  %v2150_v20 = vld [vmem:[%s12001_s17 + $0x10b8] sm:$0xff] }
 0x443   : > { %8595 = vmatpush1.bf16.msra.mxu0 %v10535_v30  ;;  %v10586_v30 = vcombine.high %v2106_v26, %v2110_v19  ;;  %v10617_v26 = vcombine.low %v2138_v1, %v2142_v48 }
 0x444   : > { %8923 = vmatpush1.bf16.msra.mxu1 %v10537_v32  ;;  %8596 = vmatprep.subr.bf16.mxu0 %v10544_v31  ;;  %v2113_v32 = vld [vmem:[%s12001_s17 + $0xf90] sm:$0xff] }
 0x445   : > { %8924 = vmatprep.subr.bf16.mxu1 %v10546_v63  ;;  %v2117_v31 = vld [vmem:[%s12001_s17 + $0xfb0] sm:$0xff]  ;;  %v2114_v63 = vld [vmem:[%s12001_s17 + $0xf98] sm:$0xff] }
 0x446   : > { %v10592_v49 = vcombine.high %v2113_v32, %v2117_v31  ;;  %v10591_v18 = vcombine.low %v2113_v32, %v2117_v31  ;;  %v10593_v3 = vcombine.low %v2114_v63, %v2118_v33 }
 0x447   : > { %8597 = vmatpush1.bf16.msra.mxu0 %v10543_v44  ;;  %v10594_v44 = vcombine.high %v2114_v63, %v2118_v33  ;;  %v2161_v33 = vld [vmem:[%s12001_s17 + $0x1110] sm:$0xff] }
 0x448   : > { %8925 = vmatpush1.bf16.msra.mxu1 %v10545_v46  ;;  %8598 = vmatprep.subr.bf16.mxu0 %v10552_v38  ;;  %v2121_v46 = vld [vmem:[%s12001_s17 + $0xfd0] sm:$0xff] }
 0x449   : > { %8926 = vmatprep.subr.bf16.mxu1 %v10554_v58  ;;  %v2125_v38 = vld [vmem:[%s12001_s17 + $0xff0] sm:$0xff]  ;;  %v2122_v58 = vld [vmem:[%s12001_s17 + $0xfd8] sm:$0xff] }
 0x44a   : > { %v10600_v42 = vcombine.high %v2121_v46, %v2125_v38  ;;  %v10599_v55 = vcombine.low %v2121_v46, %v2125_v38  ;;  %v10601_v56 = vcombine.low %v2122_v58, %v2126_v0 }
 0x44b   : > { %8599 = vmatpush1.bf16.msra.mxu0 %v10551_v12  ;;  %v10602_v12 = vcombine.high %v2122_v58, %v2126_v0  ;;  %v2169_v0 = vld [vmem:[%s12001_s17 + $0x1150] sm:$0xff] }
 0x44c   : > { %8927 = vmatpush1.bf16.msra.mxu1 %v10553_v47  ;;  %8600 = vmatprep.subr.bf16.mxu0 %v10560_v50  ;;  %v2129_v47 = vld [vmem:[%s12001_s17 + $0x1010] sm:$0xff] }
 0x44d   : > { %8928 = vmatprep.subr.bf16.mxu1 %v10562_v51  ;;  %v2133_v50 = vld [vmem:[%s12001_s17 + $0x1030] sm:$0xff]  ;;  %v2130_v51 = vld [vmem:[%s12001_s17 + $0x1018] sm:$0xff] }
 0x44e   : > { %v10608_v57 = vcombine.high %v2129_v47, %v2133_v50  ;;  %v10609_v5 = vcombine.low %v2130_v51, %v2134_v54 }
 0x44f   : > { %8601 = vmatpush1.bf16.msra.mxu0 %v10559_v59  ;;  %v10610_v59 = vcombine.high %v2130_v51, %v2134_v54  ;;  %v2177_v54 = vld [vmem:[%s12001_s17 + $0x1190] sm:$0xff] }
 0x450   : > { %8929 = vmatpush1.bf16.msra.mxu1 %v10561_v9  ;;  %8602 = vmatprep.subr.bf16.mxu0 %v10568_v61  ;;  %v2137_v9 = vld [vmem:[%s12001_s17 + $0x1050] sm:$0xff] }
 0x451   : > { %8930 = vmatprep.subr.bf16.mxu1 %v10570_v41  ;;  %v2141_v61 = vld [vmem:[%s12001_s17 + $0x1070] sm:$0xff]  ;;  %v10607_v41 = vcombine.low %v2129_v47, %v2133_v50 }
 0x452   : > { %v10616_v43 = vcombine.high %v2137_v9, %v2141_v61  ;;  %v10615_v21 = vcombine.low %v2137_v9, %v2141_v61 }
 0x453   : > { %8603 = vmatpush1.bf16.msra.mxu0 %v10567_v15  ;;  %v2145_v15 = vld [vmem:[%s12001_s17 + $0x1090] sm:$0xff] }
 0x454   : > { %8931 = vmatpush1.bf16.msra.mxu1 %v10569_v34  ;;  %8604 = vmatprep.subr.bf16.mxu0 %v10576_v16  ;;  %v2149_v34 = vld [vmem:[%s12001_s17 + $0x10b0] sm:$0xff]  ;;  %v10618_v16 = vcombine.high %v2138_v1, %v2142_v48 }
 0x455   : > { %8932 = vmatprep.subr.bf16.mxu1 %v10578_v17  ;;  %v2146_v17 = vld [vmem:[%s12001_s17 + $0x1098] sm:$0xff]  ;;  %v10624_v19 = vcombine.high %v2145_v15, %v2149_v34  ;;  %v10623_v32 = vcombine.low %v2145_v15, %v2149_v34  ;;  %v2185_v1 = vld [vmem:[%s12001_s17 + $0x11d0] sm:$0xff] }
 0x456   : > { %v10625_v31 = vcombine.low %v2146_v17, %v2150_v20  ;;  %v2189_v48 = vld [vmem:[%s12001_s17 + $0x11f0] sm:$0xff] }
 0x457   : > { %8605 = vmatpush1.bf16.msra.mxu0 %v10575_v53  ;;  %v10626_v53 = vcombine.high %v2146_v17, %v2150_v20  ;;  %v2193_v20 = vld [vmem:[%s12001_s17 + $0x1210] sm:$0xff] }
 0x458   : > { %8933 = vmatpush1.bf16.msra.mxu1 %v10577_v28  ;;  %8606 = vmatprep.subr.bf16.mxu0 %v10584_v27  ;;  %v2153_v28 = vld [vmem:[%s12001_s17 + $0x10d0] sm:$0xff] }
 0x459   : > { %8934 = vmatprep.subr.bf16.mxu1 %v10586_v30  ;;  %v2157_v27 = vld [vmem:[%s12001_s17 + $0x10f0] sm:$0xff]  ;;  %v2154_v30 = vld [vmem:[%s12001_s17 + $0x10d8] sm:$0xff] }
 0x45a   : > { %v10632_v63 = vcombine.high %v2153_v28, %v2157_v27 }
 0x45b   : > { %8607 = vmatpush1.bf16.msra.mxu0 %v10583_v35  ;;  %v2165_v35 = vld [vmem:[%s12001_s17 + $0x1130] sm:$0xff] }
 0x45c   : > { %8935 = vmatpush1.bf16.msra.mxu1 %v10585_v36  ;;  %8608 = vmatprep.subr.bf16.mxu0 %v10592_v49  ;;  %v2162_v36 = vld [vmem:[%s12001_s17 + $0x1118] sm:$0xff]  ;;  %v10640_v38 = vcombine.high %v2161_v33, %v2165_v35 }
 0x45d   : > { %8936 = vmatprep.subr.bf16.mxu1 %v10594_v44  ;;  %v2166_v49 = vld [vmem:[%s12001_s17 + $0x1138] sm:$0xff]  ;;  %v10631_v44 = vcombine.low %v2153_v28, %v2157_v27 }
 0x45e   : > { %v10642_v58 = vcombine.high %v2162_v36, %v2166_v49  ;;  %v10641_v47 = vcombine.low %v2162_v36, %v2166_v49  ;;  %v2209_v49 = vld [vmem:[%s12001_s17 + $0x1290] sm:$0xff] }
 0x45f   : > { %8609 = vmatpush1.bf16.msra.mxu0 %v10591_v18  ;;  %v2173_v18 = vld [vmem:[%s12001_s17 + $0x1170] sm:$0xff] }
 0x460   : > { %8937 = vmatpush1.bf16.msra.mxu1 %v10593_v3  ;;  %8610 = vmatprep.subr.bf16.mxu0 %v10600_v42  ;;  %v2170_v3 = vld [vmem:[%s12001_s17 + $0x1158] sm:$0xff]  ;;  %v10648_v50 = vcombine.high %v2169_v0, %v2173_v18 }
 0x461   : > { %8938 = vmatprep.subr.bf16.mxu1 %v10602_v12  ;;  %v2174_v42 = vld [vmem:[%s12001_s17 + $0x1178] sm:$0xff]  ;;  %v10639_v12 = vcombine.low %v2161_v33, %v2165_v35 }
 0x462   : > { %v10650_v51 = vcombine.high %v2170_v3, %v2174_v42  ;;  %v10649_v9 = vcombine.low %v2170_v3, %v2174_v42  ;;  %v2217_v42 = vld [vmem:[%s12001_s17 + $0x12d0] sm:$0xff] }
 0x463   : > { %8611 = vmatpush1.bf16.msra.mxu0 %v10599_v55  ;;  %v2181_v55 = vld [vmem:[%s12001_s17 + $0x11b0] sm:$0xff] }
 0x464   : > { %8939 = vmatpush1.bf16.msra.mxu1 %v10601_v56  ;;  %8621 = vmatprep.subr.bf16.mxu0 %v10608_v57  ;;  %v2178_v56 = vld [vmem:[%s12001_s17 + $0x1198] sm:$0xff]  ;;  %v10656_v61 = vcombine.high %v2177_v54, %v2181_v55  ;;  %v10655_v15 = vcombine.low %v2177_v54, %v2181_v55 }
 0x465   : > { %8949 = vmatprep.subr.bf16.mxu1 %v10610_v59  ;;  %v2182_v57 = vld [vmem:[%s12001_s17 + $0x11b8] sm:$0xff]  ;;  %v10647_v59 = vcombine.low %v2169_v0, %v2173_v18 }
 0x466   : > { %8613 = vmatmul.mubr.bf16.vlgmr.msra.gmra.mrb[20].mxu0 %v12423_v24  ;;  %v10657_v34 = vcombine.low %v2178_v56, %v2182_v57 }
 0x467   : > { %8941 = vmatmul.mubr.bf16.vlgmr.msra.gmra.mrb[20].mxu1 %v12423_v24  ;;  %8622 = vmatpush1.bf16.msra.mxu0 %v10607_v41  ;;  %v2158_v24 = vld [vmem:[%s12001_s17 + $0x10f8] sm:$0xff]  ;;  %v10658_v41 = vcombine.high %v2178_v56, %v2182_v57  ;;  %v2225_v57 = vld [vmem:[%s12001_s17 + $0x1310] sm:$0xff] }
 0x468   : > { %8653 = vmatprep.mubr.bf16.mxu0 %v12427_v2  ;;  %8950 = vmatpush1.bf16.msra.mxu1 %v10609_v5  ;;  %v10633_v46 = vcombine.low %v2154_v30, %v2158_v24  ;;  %v2186_v5 = vld [vmem:[%s12001_s17 + $0x11d8] sm:$0xff] }
 0x469   : > { %8981 = vmatprep.mubr.bf16.mxu1 %v12427_v2  ;;  %8623 = vmatprep.subr.bf16.mxu0 %v10616_v43  ;;  %v10634_v2 = vcombine.high %v2154_v30, %v2158_v24  ;;  %v2190_v43 = vld [vmem:[%s12001_s17 + $0x11f8] sm:$0xff]  ;;  %v2201_v24 = vld [vmem:[%s12001_s17 + $0x1250] sm:$0xff] }
 0x46a   : > { %8951 = vmatprep.subr.bf16.mxu1 %v10618_v16  ;;  %v10664_v16 = vcombine.high %v2185_v1, %v2189_v48  ;;  %v10666_v17 = vcombine.high %v2186_v5, %v2190_v43  ;;  %v10665_v28 = vcombine.low %v2186_v5, %v2190_v43  ;;  %v2233_v43 = vld [vmem:[%s12001_s17 + $0x1350] sm:$0xff] }
 0x46b   : > { %8624 = vmatpush1.bf16.msra.mxu0 %v10615_v21  ;;  %v2197_v21 = vld [vmem:[%s12001_s17 + $0x1230] sm:$0xff] }
 0x46c   : > { %8952 = vmatpush1.bf16.msra.mxu1 %v10617_v26  ;;  %8625 = vmatprep.subr.bf16.mxu0 %v10624_v19  ;;  %v2194_v26 = vld [vmem:[%s12001_s17 + $0x1218] sm:$0xff]  ;;  %v10672_v27 = vcombine.high %v2193_v20, %v2197_v21 }
 0x46d   : > { %8953 = vmatprep.subr.bf16.mxu1 %v10626_v53  ;;  %v2198_v19 = vld [vmem:[%s12001_s17 + $0x1238] sm:$0xff]  ;;  %v10663_v53 = vcombine.low %v2185_v1, %v2189_v48 }
 0x46e   : > { %v10674_v30 = vcombine.high %v2194_v26, %v2198_v19  ;;  %v10673_v33 = vcombine.low %v2194_v26, %v2198_v19  ;;  %v2241_v19 = vld [vmem:[%s12001_s17 + $0x1390] sm:$0xff] }
 0x46f   : > { %8626 = vmatpush1.bf16.msra.mxu0 %v10623_v32  ;;  %v2205_v32 = vld [vmem:[%s12001_s17 + $0x1270] sm:$0xff] }
 0x470   : > { %8954 = vmatpush1.bf16.msra.mxu1 %v10625_v31  ;;  %8627 = vmatprep.subr.bf16.mxu0 %v10632_v63  ;;  %v2202_v31 = vld [vmem:[%s12001_s17 + $0x1258] sm:$0xff]  ;;  %v10680_v35 = vcombine.high %v2201_v24, %v2205_v32 }
 0x471   : > { %8955 = vmatprep.subr.bf16.mxu1 %v10634_v2  ;;  %v2206_v63 = vld [vmem:[%s12001_s17 + $0x1278] sm:$0xff]  ;;  %v10671_v2 = vcombine.low %v2193_v20, %v2197_v21 }
 0x472   : > { %v10682_v36 = vcombine.high %v2202_v31, %v2206_v63  ;;  %v10681_v0 = vcombine.low %v2202_v31, %v2206_v63  ;;  %v2249_v63 = vld [vmem:[%s12001_s17 + $0x13d0] sm:$0xff] }
 0x473   : > { %8628 = vmatpush1.bf16.msra.mxu0 %v10631_v44  ;;  %v2213_v44 = vld [vmem:[%s12001_s17 + $0x12b0] sm:$0xff] }
 0x474   : > { %8956 = vmatpush1.bf16.msra.mxu1 %v10633_v46  ;;  %8629 = vmatprep.subr.bf16.mxu0 %v10640_v38  ;;  %v2210_v46 = vld [vmem:[%s12001_s17 + $0x1298] sm:$0xff]  ;;  %v10688_v18 = vcombine.high %v2209_v49, %v2213_v44 }
 0x475   : > { %8957 = vmatprep.subr.bf16.mxu1 %v10642_v58  ;;  %v2214_v38 = vld [vmem:[%s12001_s17 + $0x12b8] sm:$0xff]  ;;  %v10679_v58 = vcombine.low %v2201_v24, %v2205_v32 }
 0x476   : > { %v10690_v3 = vcombine.high %v2210_v46, %v2214_v38  ;;  %v10689_v54 = vcombine.low %v2210_v46, %v2214_v38  ;;  %v2257_v38 = vld [vmem:[%s12001_s17 + $0x1410] sm:$0xff] }
 0x477   : > { %8630 = vmatpush1.bf16.msra.mxu0 %v10639_v12  ;;  %v2221_v12 = vld [vmem:[%s12001_s17 + $0x12f0] sm:$0xff] }
 0x478   : > { %8958 = vmatpush1.bf16.msra.mxu1 %v10641_v47  ;;  %8631 = vmatprep.subr.bf16.mxu0 %v10648_v50  ;;  %v2218_v47 = vld [vmem:[%s12001_s17 + $0x12d8] sm:$0xff]  ;;  %v10696_v55 = vcombine.high %v2217_v42, %v2221_v12 }
 0x479   : > { %8959 = vmatprep.subr.bf16.mxu1 %v10650_v51  ;;  %v2222_v50 = vld [vmem:[%s12001_s17 + $0x12f8] sm:$0xff]  ;;  %v10687_v51 = vcombine.low %v2209_v49, %v2213_v44 }
 0x47a   : > { %v10698_v56 = vcombine.high %v2218_v47, %v2222_v50  ;;  %v10697_v1 = vcombine.low %v2218_v47, %v2222_v50  ;;  %v2265_v50 = vld [vmem:[%s12001_s17 + $0x1450] sm:$0xff] }
 0x47b   : > { %8632 = vmatpush1.bf16.msra.mxu0 %v10647_v59  ;;  %v2229_v59 = vld [vmem:[%s12001_s17 + $0x1330] sm:$0xff] }
 0x47c   : > { %8960 = vmatpush1.bf16.msra.mxu1 %v10649_v9  ;;  %8633 = vmatprep.subr.bf16.mxu0 %v10656_v61  ;;  %v2226_v9 = vld [vmem:[%s12001_s17 + $0x1318] sm:$0xff]  ;;  %v10704_v48 = vcombine.high %v2225_v57, %v2229_v59 }
 0x47d   : > { %8961 = vmatprep.subr.bf16.mxu1 %v10658_v41  ;;  %v2230_v61 = vld [vmem:[%s12001_s17 + $0x1338] sm:$0xff]  ;;  %v10695_v41 = vcombine.low %v2217_v42, %v2221_v12 }
 0x47e   : > { %v10706_v5 = vcombine.high %v2226_v9, %v2230_v61  ;;  %v10705_v20 = vcombine.low %v2226_v9, %v2230_v61  ;;  %v2273_v9 = vld [vmem:[%s12001_s17 + $0x1490] sm:$0xff] }
 0x47f   : > { %8634 = vmatpush1.bf16.msra.mxu0 %v10655_v15  ;;  %v2237_v15 = vld [vmem:[%s12001_s17 + $0x1370] sm:$0xff] }
 0x480   : > { %8962 = vmatpush1.bf16.msra.mxu1 %v10657_v34  ;;  %8635 = vmatprep.subr.bf16.mxu0 %v10664_v16  ;;  %v2234_v34 = vld [vmem:[%s12001_s17 + $0x1358] sm:$0xff]  ;;  %v10712_v21 = vcombine.high %v2233_v43, %v2237_v15  ;;  %v2277_v61 = vld [vmem:[%s12001_s17 + $0x14b0] sm:$0xff] }
 0x481   : > { %8963 = vmatprep.subr.bf16.mxu1 %v10666_v17  ;;  %v2238_v16 = vld [vmem:[%s12001_s17 + $0x1378] sm:$0xff]  ;;  %v10703_v17 = vcombine.low %v2225_v57, %v2229_v59 }
 0x482   : > { %v10714_v26 = vcombine.high %v2234_v34, %v2238_v16  ;;  %v10713_v24 = vcombine.low %v2234_v34, %v2238_v16  ;;  %v2281_v16 = vld [vmem:[%s12001_s17 + $0x14d0] sm:$0xff] }
 0x483   : > { %8636 = vmatpush1.bf16.msra.mxu0 %v10663_v53  ;;  %v2245_v53 = vld [vmem:[%s12001_s17 + $0x13b0] sm:$0xff] }
 0x484   : > { %8964 = vmatpush1.bf16.msra.mxu1 %v10665_v28  ;;  %8637 = vmatprep.subr.bf16.mxu0 %v10672_v27  ;;  %v2242_v28 = vld [vmem:[%s12001_s17 + $0x1398] sm:$0xff]  ;;  %v10720_v32 = vcombine.high %v2241_v19, %v2245_v53 }
 0x485   : > { %8965 = vmatprep.subr.bf16.mxu1 %v10674_v30  ;;  %v2246_v27 = vld [vmem:[%s12001_s17 + $0x13b8] sm:$0xff]  ;;  %v10711_v30 = vcombine.low %v2233_v43, %v2237_v15  ;;  %v10752_v15 = vcombine.high %v2273_v9, %v2277_v61 }
 0x486   : > { %v10722_v31 = vcombine.high %v2242_v28, %v2246_v27  ;;  %v10721_v49 = vcombine.low %v2242_v28, %v2246_v27  ;;  %v2293_v28 = vld [vmem:[%s12001_s17 + $0x1530] sm:$0xff]  ;;  %v2290_v27 = vld [vmem:[%s12001_s17 + $0x1518] sm:$0xff] }
 0x487   : > { %8638 = vmatpush1.bf16.msra.mxu0 %v10671_v2  ;;  %v2253_v2 = vld [vmem:[%s12001_s17 + $0x13f0] sm:$0xff] }
 0x488   : > { %8966 = vmatpush1.bf16.msra.mxu1 %v10673_v33  ;;  %8639 = vmatprep.subr.bf16.mxu0 %v10680_v35  ;;  %v2250_v33 = vld [vmem:[%s12001_s17 + $0x13d8] sm:$0xff]  ;;  %v10728_v44 = vcombine.high %v2249_v63, %v2253_v2 }
 0x489   : > { %8967 = vmatprep.subr.bf16.mxu1 %v10682_v36  ;;  %v2254_v35 = vld [vmem:[%s12001_s17 + $0x13f8] sm:$0xff]  ;;  %v10719_v36 = vcombine.low %v2241_v19, %v2245_v53  ;;  %v2289_v53 = vld [vmem:[%s12001_s17 + $0x1510] sm:$0xff] }
 0x48a   : > { %v10730_v46 = vcombine.high %v2250_v33, %v2254_v35  ;;  %v10729_v42 = vcombine.low %v2250_v33, %v2254_v35  ;;  %v2301_v33 = vld [vmem:[%s12001_s17 + $0x1570] sm:$0xff]  ;;  %v2298_v35 = vld [vmem:[%s12001_s17 + $0x1558] sm:$0xff] }
 0x48b   : > { %8640 = vmatpush1.bf16.msra.mxu0 %v10679_v58  ;;  %v2261_v58 = vld [vmem:[%s12001_s17 + $0x1430] sm:$0xff] }
 0x48c   : > { %8968 = vmatpush1.bf16.msra.mxu1 %v10681_v0  ;;  %8641 = vmatprep.subr.bf16.mxu0 %v10688_v18  ;;  %v2258_v0 = vld [vmem:[%s12001_s17 + $0x1418] sm:$0xff]  ;;  %v10736_v12 = vcombine.high %v2257_v38, %v2261_v58 }
 0x48d   : > { %8969 = vmatprep.subr.bf16.mxu1 %v10690_v3  ;;  %v2262_v18 = vld [vmem:[%s12001_s17 + $0x1438] sm:$0xff]  ;;  %v10727_v3 = vcombine.low %v2249_v63, %v2253_v2  ;;  %v2297_v2 = vld [vmem:[%s12001_s17 + $0x1550] sm:$0xff] }
 0x48e   : > { %v10738_v47 = vcombine.high %v2258_v0, %v2262_v18  ;;  %v10737_v57 = vcombine.low %v2258_v0, %v2262_v18  ;;  %v2309_v0 = vld [vmem:[%s12001_s17 + $0x15b0] sm:$0xff]  ;;  %v2306_v18 = vld [vmem:[%s12001_s17 + $0x1598] sm:$0xff] }
 0x48f   : > { %8642 = vmatpush1.bf16.msra.mxu0 %v10687_v51  ;;  %v2269_v51 = vld [vmem:[%s12001_s17 + $0x1470] sm:$0xff] }
 0x490   : > { %8970 = vmatpush1.bf16.msra.mxu1 %v10689_v54  ;;  %8643 = vmatprep.subr.bf16.mxu0 %v10696_v55  ;;  %v10735_v54 = vcombine.low %v2257_v38, %v2261_v58  ;;  %v2266_v55 = vld [vmem:[%s12001_s17 + $0x1458] sm:$0xff]  ;;  %v10744_v59 = vcombine.high %v2265_v50, %v2269_v51  ;;  %v2305_v58 = vld [vmem:[%s12001_s17 + $0x1590] sm:$0xff] }
 0x491   : > { %8971 = vmatprep.subr.bf16.mxu1 %v10698_v56  ;;  %v2270_v56 = vld [vmem:[%s12001_s17 + $0x1478] sm:$0xff] }
 0x492   : > { %v10745_v43 = vcombine.low %v2266_v55, %v2270_v56 }
 0x493   : > { %8644 = vmatpush1.bf16.msra.mxu0 %v10695_v41  ;;  %v10746_v41 = vcombine.high %v2266_v55, %v2270_v56  ;;  %v2314_v55 = vld [vmem:[%s12001_s17 + $0x15d8] sm:$0xff] }
 0x494   : > { %8972 = vmatpush1.bf16.msra.mxu1 %v10697_v1  ;;  %8645 = vmatprep.subr.bf16.mxu0 %v10704_v48  ;;  %v2274_v1 = vld [vmem:[%s12001_s17 + $0x1498] sm:$0xff] }
 0x495   : > { %8973 = vmatprep.subr.bf16.mxu1 %v10706_v5  ;;  %v2278_v48 = vld [vmem:[%s12001_s17 + $0x14b8] sm:$0xff]  ;;  %v10743_v5 = vcombine.low %v2265_v50, %v2269_v51  ;;  %v2313_v51 = vld [vmem:[%s12001_s17 + $0x15d0] sm:$0xff] }
 0x496   : > { %v10754_v34 = vcombine.high %v2274_v1, %v2278_v48  ;;  %v2318_v56 = vld [vmem:[%s12001_s17 + $0x15f8] sm:$0xff] }
 0x497   : > { %8646 = vmatpush1.bf16.msra.mxu0 %v10703_v17  ;;  %v2285_v17 = vld [vmem:[%s12001_s17 + $0x14f0] sm:$0xff] }
 0x498   : > { %8974 = vmatpush1.bf16.msra.mxu1 %v10705_v20  ;;  %8647 = vmatprep.subr.bf16.mxu0 %v10712_v21  ;;  %v2282_v20 = vld [vmem:[%s12001_s17 + $0x14d8] sm:$0xff]  ;;  %v10751_v21 = vcombine.low %v2273_v9, %v2277_v61  ;;  %v10760_v19 = vcombine.high %v2281_v16, %v2285_v17  ;;  %v10794_v61 = vcombine.high %v2314_v55, %v2318_v56 }
 0x499   : > { %8975 = vmatprep.subr.bf16.mxu1 %v10714_v26  ;;  %v10753_v26 = vcombine.low %v2274_v1, %v2278_v48  ;;  %v2325_v1 = vld [vmem:[%s12001_s17 + $0x1630] sm:$0xff]  ;;  %v2322_v48 = vld [vmem:[%s12001_s17 + $0x1618] sm:$0xff] }
 0x49b   : > { %8648 = vmatpush1.bf16.msra.mxu0 %v10711_v30  ;;  %v2294_v30 = vld [vmem:[%s12001_s17 + $0x1538] sm:$0xff] }
 0x49c   : > { %8976 = vmatpush1.bf16.msra.mxu1 %v10713_v24  ;;  %8649 = vmatprep.subr.bf16.mxu0 %v10720_v32  ;;  %v10759_v24 = vcombine.low %v2281_v16, %v2285_v17  ;;  %v10770_v63 = vcombine.high %v2290_v27, %v2294_v30  ;;  %v2329_v17 = vld [vmem:[%s12001_s17 + $0x1650] sm:$0xff] }
 0x49d   : > { %8977 = vmatprep.subr.bf16.mxu1 %v10722_v31  ;;  %v10768_v31 = vcombine.high %v2289_v53, %v2293_v28 }
 0x49f   : > { %8650 = vmatpush1.bf16.msra.mxu0 %v10719_v36  ;;  %v2302_v36 = vld [vmem:[%s12001_s17 + $0x1578] sm:$0xff] }
 0x4a0   : > { %8978 = vmatpush1.bf16.msra.mxu1 %v10721_v49  ;;  %8651 = vmatprep.subr.bf16.mxu0 %v10728_v44  ;;  %v10767_v49 = vcombine.low %v2289_v53, %v2293_v28  ;;  %v10769_v44 = vcombine.low %v2290_v27, %v2294_v30  ;;  %v10778_v38 = vcombine.high %v2298_v35, %v2302_v36  ;;  %v2337_v28 = vld [vmem:[%s12001_s17 + $0x1690] sm:$0xff]  ;;  %v2338_v30 = vld [vmem:[%s12001_s17 + $0x1698] sm:$0xff] }
 0x4a1   : > { %8979 = vmatprep.subr.bf16.mxu1 %v10730_v46  ;;  %v10776_v46 = vcombine.high %v2297_v2, %v2301_v33  ;;  %v2341_v27 = vld [vmem:[%s12001_s17 + $0x16b0] sm:$0xff] }
 0x4a3   : > { %8652 = vmatpush1.bf16.msra.mxu0 %v10727_v3  ;;  %v2310_v3 = vld [vmem:[%s12001_s17 + $0x15b8] sm:$0xff] }
 0x4a4   : > { %8980 = vmatpush1.bf16.msra.mxu1 %v10729_v42  ;;  %8662 = vmatprep.subr.bf16.mxu0 %v10736_v12  ;;  %v10775_v42 = vcombine.low %v2297_v2, %v2301_v33  ;;  %v10777_v12 = vcombine.low %v2298_v35, %v2302_v36  ;;  %v10786_v50 = vcombine.high %v2306_v18, %v2310_v3  ;;  %v2345_v33 = vld [vmem:[%s12001_s17 + $0x16d0] sm:$0xff]  ;;  %v2346_v36 = vld [vmem:[%s12001_s17 + $0x16d8] sm:$0xff] }
 0x4a5   : > { %8990 = vmatprep.subr.bf16.mxu1 %v10738_v47  ;;  %v10784_v47 = vcombine.high %v2305_v58, %v2309_v0  ;;  %v2349_v35 = vld [vmem:[%s12001_s17 + $0x16f0] sm:$0xff] }
 0x4a6   : > { %8654 = vmatmul.mubr.bf16.vlgmr.msra.gmra.mrb[20].mxu0 %v12500_v52 }
 0x4a7   : > { %8982 = vmatmul.mubr.bf16.vlgmr.msra.gmra.mrb[20].mxu1 %v12500_v52  ;;  %8663 = vmatpush1.bf16.msra.mxu0 %v10735_v54  ;;  %v2286_v52 = vld [vmem:[%s12001_s17 + $0x14f8] sm:$0xff]  ;;  %v2317_v54 = vld [vmem:[%s12001_s17 + $0x15f0] sm:$0xff] }
 0x4a8   : > { %8694 = vmatprep.mubr.bf16.mxu0 %v12504_v22  ;;  %8991 = vmatpush1.bf16.msra.mxu1 %v10737_v57  ;;  %v10761_v32 = vcombine.low %v2282_v20, %v2286_v52  ;;  %v10783_v57 = vcombine.low %v2305_v58, %v2309_v0  ;;  %v10792_v9 = vcombine.high %v2313_v51, %v2317_v54  ;;  %v2353_v0 = vld [vmem:[%s12001_s17 + $0x1710] sm:$0xff] }
 0x4a9   : > { %9022 = vmatprep.mubr.bf16.mxu1 %v12504_v22  ;;  %8664 = vmatprep.subr.bf16.mxu0 %v10744_v59  ;;  %v10762_v22 = vcombine.high %v2282_v20, %v2286_v52  ;;  %v10785_v59 = vcombine.low %v2306_v18, %v2310_v3  ;;  %v2333_v20 = vld [vmem:[%s12001_s17 + $0x1670] sm:$0xff]  ;;  %v2330_v52 = vld [vmem:[%s12001_s17 + $0x1658] sm:$0xff] }
 0x4aa   : > { %8992 = vmatprep.subr.bf16.mxu1 %v10746_v41  ;;  %v2321_v41 = vld [vmem:[%s12001_s17 + $0x1610] sm:$0xff]  ;;  %v2354_v3 = vld [vmem:[%s12001_s17 + $0x1718] sm:$0xff] }
 0x4ab   : > { %8665 = vmatpush1.bf16.msra.mxu0 %v10743_v5  ;;  %v2326_v5 = vld [vmem:[%s12001_s17 + $0x1638] sm:$0xff]  ;;  %v2357_v18 = vld [vmem:[%s12001_s17 + $0x1730] sm:$0xff] }
 0x4ac   : > { %8993 = vmatpush1.bf16.msra.mxu1 %v10745_v43  ;;  %8666 = vmatprep.subr.bf16.mxu0 %v10752_v15  ;;  %v10791_v43 = vcombine.low %v2313_v51, %v2317_v54  ;;  %v10793_v15 = vcombine.low %v2314_v55, %v2318_v56  ;;  %v10802_v16 = vcombine.high %v2322_v48, %v2326_v5  ;;  %v2361_v54 = vld [vmem:[%s12001_s17 + $0x1750] sm:$0xff]  ;;  %v2362_v56 = vld [vmem:[%s12001_s17 + $0x1758] sm:$0xff] }
 0x4ad   : > { %8994 = vmatprep.subr.bf16.mxu1 %v10754_v34  ;;  %v10800_v34 = vcombine.high %v2321_v41, %v2325_v1  ;;  %v2365_v55 = vld [vmem:[%s12001_s17 + $0x1770] sm:$0xff] }
 0x4af   : > { %8667 = vmatpush1.bf16.msra.mxu0 %v10751_v21  ;;  %v2334_v21 = vld [vmem:[%s12001_s17 + $0x1678] sm:$0xff] }
 0x4b0   : > { %8995 = vmatpush1.bf16.msra.mxu1 %v10753_v26  ;;  %8668 = vmatprep.subr.bf16.mxu0 %v10760_v19  ;;  %v10799_v26 = vcombine.low %v2321_v41, %v2325_v1  ;;  %v10801_v19 = vcombine.low %v2322_v48, %v2326_v5  ;;  %v10810_v53 = vcombine.high %v2330_v52, %v2334_v21  ;;  %v2369_v1 = vld [vmem:[%s12001_s17 + $0x1790] sm:$0xff]  ;;  %v2370_v5 = vld [vmem:[%s12001_s17 + $0x1798] sm:$0xff] }
 0x4b1   : > { %8996 = vmatprep.subr.bf16.mxu1 %v10762_v22  ;;  %v10808_v22 = vcombine.high %v2329_v17, %v2333_v20  ;;  %v2373_v48 = vld [vmem:[%s12001_s17 + $0x17b0] sm:$0xff] }
 0x4b3   : > { %8669 = vmatpush1.bf16.msra.mxu0 %v10759_v24  ;;  %v2342_v24 = vld [vmem:[%s12001_s17 + $0x16b8] sm:$0xff] }
 0x4b4   : > { %8997 = vmatpush1.bf16.msra.mxu1 %v10761_v32  ;;  %8670 = vmatprep.subr.bf16.mxu0 %v10768_v31  ;;  %v10807_v32 = vcombine.low %v2329_v17, %v2333_v20  ;;  %v10809_v31 = vcombine.low %v2330_v52, %v2334_v21  ;;  %v10818_v2 = vcombine.high %v2338_v30, %v2342_v24  ;;  %v2377_v20 = vld [vmem:[%s12001_s17 + $0x17d0] sm:$0xff]  ;;  %v2378_v21 = vld [vmem:[%s12001_s17 + $0x17d8] sm:$0xff] }
 0x4b5   : > { %8998 = vmatprep.subr.bf16.mxu1 %v10770_v63  ;;  %v10816_v63 = vcombine.high %v2337_v28, %v2341_v27  ;;  %v2381_v52 = vld [vmem:[%s12001_s17 + $0x17f0] sm:$0xff] }
 0x4b7   : > { %8671 = vmatpush1.bf16.msra.mxu0 %v10767_v49  ;;  %v2350_v49 = vld [vmem:[%s12001_s17 + $0x16f8] sm:$0xff] }
 0x4b8   : > { %8999 = vmatpush1.bf16.msra.mxu1 %v10769_v44  ;;  %8672 = vmatprep.subr.bf16.mxu0 %v10776_v46  ;;  %v10815_v44 = vcombine.low %v2337_v28, %v2341_v27  ;;  %v10817_v46 = vcombine.low %v2338_v30, %v2342_v24  ;;  %v10826_v58 = vcombine.high %v2346_v36, %v2350_v49  ;;  %v2385_v27 = vld [vmem:[%s12001_s17 + $0x1810] sm:$0xff]  ;;  %v2386_v24 = vld [vmem:[%s12001_s17 + $0x1818] sm:$0xff] }
 0x4b9   : > { %9000 = vmatprep.subr.bf16.mxu1 %v10778_v38  ;;  %v10824_v38 = vcombine.high %v2345_v33, %v2349_v35  ;;  %v2389_v30 = vld [vmem:[%s12001_s17 + $0x1830] sm:$0xff] }
 0x4bb   : > { %8673 = vmatpush1.bf16.msra.mxu0 %v10775_v42  ;;  %v2358_v42 = vld [vmem:[%s12001_s17 + $0x1738] sm:$0xff] }
 0x4bc   : > { %9001 = vmatpush1.bf16.msra.mxu1 %v10777_v12  ;;  %8674 = vmatprep.subr.bf16.mxu0 %v10784_v47  ;;  %v10823_v12 = vcombine.low %v2345_v33, %v2349_v35  ;;  %v10825_v47 = vcombine.low %v2346_v36, %v2350_v49  ;;  %v10834_v51 = vcombine.high %v2354_v3, %v2358_v42  ;;  %v2393_v35 = vld [vmem:[%s12001_s17 + $0x1850] sm:$0xff] }
 0x4bd   : > { %9002 = vmatprep.subr.bf16.mxu1 %v10786_v50  ;;  %v10832_v50 = vcombine.high %v2353_v0, %v2357_v18  ;;  %v2397_v36 = vld [vmem:[%s12001_s17 + $0x1870] sm:$0xff]  ;;  %v10863_v49 = vcombine.low %v2385_v27, %v2389_v30 }
 0x4bf   : > { %8675 = vmatpush1.bf16.msra.mxu0 %v10783_v57  ;;  %v2366_v57 = vld [vmem:[%s12001_s17 + $0x1778] sm:$0xff] }
 0x4c0   : > { %9003 = vmatpush1.bf16.msra.mxu1 %v10785_v59  ;;  %8676 = vmatprep.subr.bf16.mxu0 %v10792_v9  ;;  %v10831_v59 = vcombine.low %v2353_v0, %v2357_v18  ;;  %v10833_v9 = vcombine.low %v2354_v3, %v2358_v42  ;;  %v10842_v41 = vcombine.high %v2362_v56, %v2366_v57  ;;  %v2401_v0 = vld [vmem:[%s12001_s17 + $0x1890] sm:$0xff]  ;;  %v2402_v3 = vld [vmem:[%s12001_s17 + $0x1898] sm:$0xff] }
 0x4c1   : > { %9004 = vmatprep.subr.bf16.mxu1 %v10794_v61  ;;  %v10840_v61 = vcombine.high %v2361_v54, %v2365_v55  ;;  %v2405_v18 = vld [vmem:[%s12001_s17 + $0x18b0] sm:$0xff] }
 0x4c3   : > { %8677 = vmatpush1.bf16.msra.mxu0 %v10791_v43  ;;  %v2374_v43 = vld [vmem:[%s12001_s17 + $0x17b8] sm:$0xff] }
 0x4c4   : > { %9005 = vmatpush1.bf16.msra.mxu1 %v10793_v15  ;;  %8678 = vmatprep.subr.bf16.mxu0 %v10800_v34  ;;  %v10839_v15 = vcombine.low %v2361_v54, %v2365_v55  ;;  %v10841_v34 = vcombine.low %v2362_v56, %v2366_v57  ;;  %v10850_v17 = vcombine.high %v2370_v5, %v2374_v43  ;;  %v2413_v55 = vld [vmem:[%s12001_s17 + $0x18f0] sm:$0xff]  ;;  %v2410_v57 = vld [vmem:[%s12001_s17 + $0x18d8] sm:$0xff] }
 0x4c5   : > { %9006 = vmatprep.subr.bf16.mxu1 %v10802_v16  ;;  %v10848_v16 = vcombine.high %v2369_v1, %v2373_v48  ;;  %v10880_v54 = vcombine.high %v2401_v0, %v2405_v18 }
 0x4c7   : > { %8679 = vmatpush1.bf16.msra.mxu0 %v10799_v26  ;;  %v2382_v26 = vld [vmem:[%s12001_s17 + $0x17f8] sm:$0xff] }
 0x4c8   : > { %9007 = vmatpush1.bf16.msra.mxu1 %v10801_v19  ;;  %8680 = vmatprep.subr.bf16.mxu0 %v10808_v22  ;;  %v10847_v19 = vcombine.low %v2369_v1, %v2373_v48  ;;  %v10849_v22 = vcombine.low %v2370_v5, %v2374_v43  ;;  %v10858_v28 = vcombine.high %v2378_v21, %v2382_v26  ;;  %v2421_v1 = vld [vmem:[%s12001_s17 + $0x1930] sm:$0xff]  ;;  %v2418_v48 = vld [vmem:[%s12001_s17 + $0x1918] sm:$0xff] }
 0x4c9   : > { %9008 = vmatprep.subr.bf16.mxu1 %v10810_v53  ;;  %v10856_v53 = vcombine.high %v2377_v20, %v2381_v52  ;;  %v2422_v5 = vld [vmem:[%s12001_s17 + $0x1938] sm:$0xff] }
 0x4cb   : > { %8681 = vmatpush1.bf16.msra.mxu0 %v10807_v32  ;;  %v2390_v32 = vld [vmem:[%s12001_s17 + $0x1838] sm:$0xff] }
 0x4cc   : > { %9009 = vmatpush1.bf16.msra.mxu1 %v10809_v31  ;;  %8682 = vmatprep.subr.bf16.mxu0 %v10816_v63  ;;  %v10855_v31 = vcombine.low %v2377_v20, %v2381_v52  ;;  %v10857_v63 = vcombine.low %v2378_v21, %v2382_v26  ;;  %v10866_v33 = vcombine.high %v2386_v24, %v2390_v32  ;;  %v2426_v52 = vld [vmem:[%s12001_s17 + $0x1958] sm:$0xff] }
 0x4cd   : > { %9010 = vmatprep.subr.bf16.mxu1 %v10818_v2  ;;  %v10864_v2 = vcombine.high %v2385_v27, %v2389_v30  ;;  %v10898_v20 = vcombine.high %v2418_v48, %v2422_v5  ;;  %v2430_v21 = vld [vmem:[%s12001_s17 + $0x1978] sm:$0xff] }
 0x4ce   : > { %v10906_v27 = vcombine.high %v2426_v52, %v2430_v21  ;;  %v2434_v30 = vld [vmem:[%s12001_s17 + $0x1998] sm:$0xff] }
 0x4cf   : > { %8683 = vmatpush1.bf16.msra.mxu0 %v10815_v44  ;;  %v2394_v44 = vld [vmem:[%s12001_s17 + $0x1858] sm:$0xff] }
 0x4d0   : > { %9011 = vmatpush1.bf16.msra.mxu1 %v10817_v46  ;;  %8684 = vmatprep.subr.bf16.mxu0 %v10824_v38  ;;  %v2398_v46 = vld [vmem:[%s12001_s17 + $0x1878] sm:$0xff]  ;;  %v10865_v38 = vcombine.low %v2386_v24, %v2390_v32 }
 0x4d1   : > { %9012 = vmatprep.subr.bf16.mxu1 %v10826_v58  ;;  %v10872_v58 = vcombine.high %v2393_v35, %v2397_v36  ;;  %v10874_v42 = vcombine.high %v2394_v44, %v2398_v46  ;;  %v2438_v24 = vld [vmem:[%s12001_s17 + $0x19b8] sm:$0xff] }
 0x4d3   : > { %8685 = vmatpush1.bf16.msra.mxu0 %v10823_v12  ;;  %v2406_v12 = vld [vmem:[%s12001_s17 + $0x18b8] sm:$0xff] }
 0x4d4   : > { %9013 = vmatpush1.bf16.msra.mxu1 %v10825_v47  ;;  %8686 = vmatprep.subr.bf16.mxu0 %v10832_v50  ;;  %v10871_v47 = vcombine.low %v2393_v35, %v2397_v36  ;;  %v2409_v50 = vld [vmem:[%s12001_s17 + $0x18d0] sm:$0xff]  ;;  %v10882_v56 = vcombine.high %v2402_v3, %v2406_v12  ;;  %v10914_v35 = vcombine.high %v2434_v30, %v2438_v24  ;;  %v2442_v36 = vld [vmem:[%s12001_s17 + $0x19d8] sm:$0xff] }
 0x4d5   : > { %9014 = vmatprep.subr.bf16.mxu1 %v10834_v51  ;;  %v10873_v51 = vcombine.low %v2394_v44, %v2398_v46  ;;  %v10887_v43 = vcombine.low %v2409_v50, %v2413_v55  ;;  %v2449_v46 = vld [vmem:[%s12001_s17 + $0x1a10] sm:$0xff] }
 0x4d7   : > { %8687 = vmatpush1.bf16.msra.mxu0 %v10831_v59  ;;  %v10879_v59 = vcombine.low %v2401_v0, %v2405_v18  ;;  %v2453_v0 = vld [vmem:[%s12001_s17 + $0x1a30] sm:$0xff] }
 0x4d8   : > { %9015 = vmatpush1.bf16.msra.mxu1 %v10833_v9  ;;  %8688 = vmatprep.subr.bf16.mxu0 %v10840_v61  ;;  %v2417_v9 = vld [vmem:[%s12001_s17 + $0x1910] sm:$0xff]  ;;  %v10881_v61 = vcombine.low %v2402_v3, %v2406_v12  ;;  %v2450_v3 = vld [vmem:[%s12001_s17 + $0x1a18] sm:$0xff] }
 0x4d9   : > { %9016 = vmatprep.subr.bf16.mxu1 %v10842_v41  ;;  %v10888_v41 = vcombine.high %v2409_v50, %v2413_v55  ;;  %v10895_v26 = vcombine.low %v2417_v9, %v2421_v1 }
 0x4db   : > { %8689 = vmatpush1.bf16.msra.mxu0 %v10839_v15  ;;  %v2425_v15 = vld [vmem:[%s12001_s17 + $0x1950] sm:$0xff] }
 0x4dc   : > { %9017 = vmatpush1.bf16.msra.mxu1 %v10841_v34  ;;  %8690 = vmatprep.subr.bf16.mxu0 %v10848_v16  ;;  %v10896_v16 = vcombine.high %v2417_v9, %v2421_v1  ;;  %v2469_v9 = vld [vmem:[%s12001_s17 + $0x1ab0] sm:$0xff]  ;;  %v2466_v1 = vld [vmem:[%s12001_s17 + $0x1a98] sm:$0xff] }
 0x4dd   : > { %9018 = vmatprep.subr.bf16.mxu1 %v10850_v17  ;;  %v2429_v17 = vld [vmem:[%s12001_s17 + $0x1970] sm:$0xff] }
 0x4de   : > { %v10903_v32 = vcombine.low %v2425_v15, %v2429_v17 }
 0x4df   : > { %8691 = vmatpush1.bf16.msra.mxu0 %v10847_v19  ;;  %v2433_v19 = vld [vmem:[%s12001_s17 + $0x1990] sm:$0xff] }
 0x4e0   : > { %9019 = vmatpush1.bf16.msra.mxu1 %v10849_v22  ;;  %8692 = vmatprep.subr.bf16.mxu0 %v10856_v53  ;;  %v10897_v22 = vcombine.low %v2418_v48, %v2422_v5  ;;  %v10904_v53 = vcombine.high %v2425_v15, %v2429_v17  ;;  %v2470_v48 = vld [vmem:[%s12001_s17 + $0x1ab8] sm:$0xff] }
 0x4e1   : > { %9020 = vmatprep.subr.bf16.mxu1 %v10858_v28  ;;  %v2437_v28 = vld [vmem:[%s12001_s17 + $0x19b0] sm:$0xff]  ;;  %v10946_v17 = vcombine.high %v2466_v1, %v2470_v48 }
 0x4e2   : > { %v10911_v44 = vcombine.low %v2433_v19, %v2437_v28 }
 0x4e3   : > { %8693 = vmatpush1.bf16.msra.mxu0 %v10855_v31  ;;  %v2441_v31 = vld [vmem:[%s12001_s17 + $0x19d0] sm:$0xff] }
 0x4e4   : > { %9021 = vmatpush1.bf16.msra.mxu1 %v10857_v63  ;;  %8703 = vmatprep.subr.bf16.mxu0 %v10864_v2  ;;  %v10905_v63 = vcombine.low %v2426_v52, %v2430_v21  ;;  %v10912_v2 = vcombine.high %v2433_v19, %v2437_v28  ;;  %v2478_v52 = vld [vmem:[%s12001_s17 + $0x1af8] sm:$0xff]  ;;  %v10945_v19 = vcombine.low %v2466_v1, %v2470_v48 }
 0x4e5   : > { %9031 = vmatprep.subr.bf16.mxu1 %v10866_v33  ;;  %v2445_v33 = vld [vmem:[%s12001_s17 + $0x19f0] sm:$0xff] }
 0x4e6   : > { %8695 = vmatmul.mubr.bf16.vlgmr.msra.gmra.mrb[20].mxu0 %v12578_v37  ;;  %v10919_v12 = vcombine.low %v2441_v31, %v2445_v33 }
 0x4e7   : > { %9023 = vmatmul.mubr.bf16.vlgmr.msra.gmra.mrb[20].mxu1 %v12578_v37  ;;  %8704 = vmatpush1.bf16.msra.mxu0 %v10863_v49  ;;  %v2414_v37 = vld [vmem:[%s12001_s17 + $0x18f8] sm:$0xff] }
 0x4e8   : > { %8735 = vmatprep.mubr.bf16.mxu0 %v12582_v6  ;;  %9032 = vmatpush1.bf16.msra.mxu1 %v10865_v38  ;;  %v10889_v34 = vcombine.low %v2410_v57, %v2414_v37  ;;  %v2446_v49 = vld [vmem:[%s12001_s17 + $0x19f8] sm:$0xff]  ;;  %v10913_v38 = vcombine.low %v2434_v30, %v2438_v24 }
 0x4e9   : > { %9063 = vmatprep.mubr.bf16.mxu1 %v12582_v6  ;;  %8705 = vmatprep.subr.bf16.mxu0 %v10872_v58  ;;  %v10890_v6 = vcombine.high %v2410_v57, %v2414_v37  ;;  %v10920_v58 = vcombine.high %v2441_v31, %v2445_v33  ;;  %v10922_v18 = vcombine.high %v2442_v36, %v2446_v49  ;;  %v2462_v57 = vld [vmem:[%s12001_s17 + $0x1a78] sm:$0xff] }
 0x4ea   : > { %9033 = vmatprep.subr.bf16.mxu1 %v10874_v42  ;;  %v2454_v42 = vld [vmem:[%s12001_s17 + $0x1a38] sm:$0xff]  ;;  %v10921_v50 = vcombine.low %v2442_v36, %v2446_v49  ;;  %v10927_v37 = vcombine.low %v2449_v46, %v2453_v0 }
 0x4eb   : > { %8706 = vmatpush1.bf16.msra.mxu0 %v10871_v47  ;;  %v2457_v47 = vld [vmem:[%s12001_s17 + $0x1a50] sm:$0xff]  ;;  %v10930_v55 = vcombine.high %v2450_v3, %v2454_v42  ;;  %v2486_v30 = vld [vmem:[%s12001_s17 + $0x1b38] sm:$0xff] }
 0x4ec   : > { %9034 = vmatpush1.bf16.msra.mxu1 %v10873_v51  ;;  %8707 = vmatprep.subr.bf16.mxu0 %v10880_v54  ;;  %v10928_v51 = vcombine.high %v2449_v46, %v2453_v0  ;;  %v2461_v54 = vld [vmem:[%s12001_s17 + $0x1a70] sm:$0xff]  ;;  %v2494_v36 = vld [vmem:[%s12001_s17 + $0x1b78] sm:$0xff] }
 0x4ed   : > { %9035 = vmatprep.subr.bf16.mxu1 %v10882_v56  ;;  %v2458_v56 = vld [vmem:[%s12001_s17 + $0x1a58] sm:$0xff]  ;;  %v10935_v5 = vcombine.low %v2457_v47, %v2461_v54 }
 0x4ee   : > { %v10937_v15 = vcombine.low %v2458_v56, %v2462_v57 }
 0x4ef   : > { %8708 = vmatpush1.bf16.msra.mxu0 %v10879_v59  ;;  %v2465_v59 = vld [vmem:[%s12001_s17 + $0x1a90] sm:$0xff] }
 0x4f0   : > { %9036 = vmatpush1.bf16.msra.mxu1 %v10881_v61  ;;  %8709 = vmatprep.subr.bf16.mxu0 %v10888_v41  ;;  %v10929_v61 = vcombine.low %v2450_v3, %v2454_v42  ;;  %v10936_v41 = vcombine.high %v2457_v47, %v2461_v54  ;;  %v10943_v21 = vcombine.low %v2465_v59, %v2469_v9  ;;  %v2502_v3 = vld [vmem:[%s12001_s17 + $0x1bb8] sm:$0xff] }
 0x4f1   : > { %9037 = vmatprep.subr.bf16.mxu1 %v10890_v6  ;;  %v10938_v6 = vcombine.high %v2458_v56, %v2462_v57  ;;  %v2510_v56 = vld [vmem:[%s12001_s17 + $0x1bf8] sm:$0xff] }
 0x4f3   : > { %8710 = vmatpush1.bf16.msra.mxu0 %v10887_v43  ;;  %v2473_v43 = vld [vmem:[%s12001_s17 + $0x1ad0] sm:$0xff] }
 0x4f4   : > { %9038 = vmatpush1.bf16.msra.mxu1 %v10889_v34  ;;  %8711 = vmatprep.subr.bf16.mxu0 %v10896_v16  ;;  %v10944_v34 = vcombine.high %v2465_v59, %v2469_v9  ;;  %v2477_v16 = vld [vmem:[%s12001_s17 + $0x1af0] sm:$0xff] }
 0x4f5   : > { %9039 = vmatprep.subr.bf16.mxu1 %v10898_v20  ;;  %v2474_v20 = vld [vmem:[%s12001_s17 + $0x1ad8] sm:$0xff]  ;;  %v10951_v24 = vcombine.low %v2473_v43, %v2477_v16  ;;  %v2517_v59 = vld [vmem:[%s12001_s17 + $0x1c30] sm:$0xff] }
 0x4f6   : > { %v10954_v28 = vcombine.high %v2474_v20, %v2478_v52  ;;  %v10953_v31 = vcombine.low %v2474_v20, %v2478_v52  ;;  %v2522_v20 = vld [vmem:[%s12001_s17 + $0x1c58] sm:$0xff] }
 0x4f7   : > { %8712 = vmatpush1.bf16.msra.mxu0 %v10895_v26  ;;  %v2481_v26 = vld [vmem:[%s12001_s17 + $0x1b10] sm:$0xff]  ;;  %v2526_v52 = vld [vmem:[%s12001_s17 + $0x1c78] sm:$0xff] }
 0x4f8   : > { %9040 = vmatpush1.bf16.msra.mxu1 %v10897_v22  ;;  %8713 = vmatprep.subr.bf16.mxu0 %v10904_v53  ;;  %v10952_v22 = vcombine.high %v2473_v43, %v2477_v16  ;;  %v2485_v53 = vld [vmem:[%s12001_s17 + $0x1b30] sm:$0xff] }
 0x4f9   : > { %9041 = vmatprep.subr.bf16.mxu1 %v10906_v27  ;;  %v2482_v27 = vld [vmem:[%s12001_s17 + $0x1b18] sm:$0xff]  ;;  %v10959_v49 = vcombine.low %v2481_v26, %v2485_v53 }
 0x4fa   : > { %v10962_v33 = vcombine.high %v2482_v27, %v2486_v30  ;;  %v10961_v46 = vcombine.low %v2482_v27, %v2486_v30  ;;  %v2534_v27 = vld [vmem:[%s12001_s17 + $0x1cb8] sm:$0xff] }
 0x4fb   : > { %8714 = vmatpush1.bf16.msra.mxu0 %v10903_v32  ;;  %v2489_v32 = vld [vmem:[%s12001_s17 + $0x1b50] sm:$0xff] }
 0x4fc   : > { %9042 = vmatpush1.bf16.msra.mxu1 %v10905_v63  ;;  %8715 = vmatprep.subr.bf16.mxu0 %v10912_v2  ;;  %v10960_v63 = vcombine.high %v2481_v26, %v2485_v53  ;;  %v2493_v2 = vld [vmem:[%s12001_s17 + $0x1b70] sm:$0xff]  ;;  %v11002_v53 = vcombine.high %v2522_v20, %v2526_v52 }
 0x4fd   : > { %9043 = vmatprep.subr.bf16.mxu1 %v10914_v35  ;;  %v2490_v35 = vld [vmem:[%s12001_s17 + $0x1b58] sm:$0xff]  ;;  %v10967_v42 = vcombine.low %v2489_v32, %v2493_v2 }
 0x4fe   : > { %v10970_v0 = vcombine.high %v2490_v35, %v2494_v36  ;;  %v10969_v47 = vcombine.low %v2490_v35, %v2494_v36 }
 0x4ff   : > { %8716 = vmatpush1.bf16.msra.mxu0 %v10911_v44  ;;  %v2497_v44 = vld [vmem:[%s12001_s17 + $0x1b90] sm:$0xff] }
 0x500   : > { %9044 = vmatpush1.bf16.msra.mxu1 %v10913_v38  ;;  %8717 = vmatprep.subr.bf16.mxu0 %v10920_v58  ;;  %v10968_v38 = vcombine.high %v2489_v32, %v2493_v2  ;;  %v2501_v58 = vld [vmem:[%s12001_s17 + $0x1bb0] sm:$0xff] }
 0x501   : > { %9045 = vmatprep.subr.bf16.mxu1 %v10922_v18  ;;  %v2498_v18 = vld [vmem:[%s12001_s17 + $0x1b98] sm:$0xff]  ;;  %v10975_v57 = vcombine.low %v2497_v44, %v2501_v58  ;;  %v2541_v2 = vld [vmem:[%s12001_s17 + $0x1cf0] sm:$0xff] }
 0x502   : > { %v10978_v54 = vcombine.high %v2498_v18, %v2502_v3  ;;  %v10977_v9 = vcombine.low %v2498_v18, %v2502_v3 }
 0x503   : > { %8718 = vmatpush1.bf16.msra.mxu0 %v10919_v12  ;;  %v2505_v12 = vld [vmem:[%s12001_s17 + $0x1bd0] sm:$0xff] }
 0x504   : > { %9046 = vmatpush1.bf16.msra.mxu1 %v10921_v50  ;;  %8719 = vmatprep.subr.bf16.mxu0 %v10928_v51  ;;  %v10976_v50 = vcombine.high %v2497_v44, %v2501_v58  ;;  %v2509_v51 = vld [vmem:[%s12001_s17 + $0x1bf0] sm:$0xff]  ;;  %v2550_v58 = vld [vmem:[%s12001_s17 + $0x1d38] sm:$0xff] }
 0x505   : > { %9047 = vmatprep.subr.bf16.mxu1 %v10930_v55  ;;  %v2506_v55 = vld [vmem:[%s12001_s17 + $0x1bd8] sm:$0xff]  ;;  %v10983_v48 = vcombine.low %v2505_v12, %v2509_v51  ;;  %v2545_v44 = vld [vmem:[%s12001_s17 + $0x1d10] sm:$0xff] }
 0x506   : > { %v10986_v1 = vcombine.high %v2506_v55, %v2510_v56 }
 0x507   : > { %8720 = vmatpush1.bf16.msra.mxu0 %v10927_v37  ;;  %v2513_v37 = vld [vmem:[%s12001_s17 + $0x1c10] sm:$0xff] }
 0x508   : > { %9048 = vmatpush1.bf16.msra.mxu1 %v10929_v61  ;;  %8721 = vmatprep.subr.bf16.mxu0 %v10936_v41  ;;  %v10984_v61 = vcombine.high %v2505_v12, %v2509_v51  ;;  %v2514_v41 = vld [vmem:[%s12001_s17 + $0x1c18] sm:$0xff]  ;;  %v10992_v43 = vcombine.high %v2513_v37, %v2517_v59  ;;  %v2553_v12 = vld [vmem:[%s12001_s17 + $0x1d50] sm:$0xff] }
 0x509   : > { %9049 = vmatprep.subr.bf16.mxu1 %v10938_v6  ;;  %v2518_v6 = vld [vmem:[%s12001_s17 + $0x1c38] sm:$0xff] }
 0x50a   : > { %v10994_v16 = vcombine.high %v2514_v41, %v2518_v6  ;;  %v2558_v51 = vld [vmem:[%s12001_s17 + $0x1d78] sm:$0xff] }
 0x50b   : > { %8722 = vmatpush1.bf16.msra.mxu0 %v10935_v5  ;;  %v10985_v5 = vcombine.low %v2506_v55, %v2510_v56 }
 0x50c   : > { %9050 = vmatpush1.bf16.msra.mxu1 %v10937_v15  ;;  %8723 = vmatprep.subr.bf16.mxu0 %v10944_v34  ;;  %v2521_v15 = vld [vmem:[%s12001_s17 + $0x1c50] sm:$0xff] }
 0x50d   : > { %9051 = vmatprep.subr.bf16.mxu1 %v10946_v17  ;;  %v2525_v34 = vld [vmem:[%s12001_s17 + $0x1c70] sm:$0xff]  ;;  %v10991_v17 = vcombine.low %v2513_v37, %v2517_v59 }
 0x50e   : > { %v11000_v26 = vcombine.high %v2521_v15, %v2525_v34  ;;  %v10999_v30 = vcombine.low %v2521_v15, %v2525_v34  ;;  %v2561_v37 = vld [vmem:[%s12001_s17 + $0x1d90] sm:$0xff]  ;;  %v2570_v15 = vld [vmem:[%s12001_s17 + $0x1dd8] sm:$0xff] }
 0x50f   : > { %8724 = vmatpush1.bf16.msra.mxu0 %v10943_v21  ;;  %v10993_v21 = vcombine.low %v2514_v41, %v2518_v6  ;;  %v2565_v59 = vld [vmem:[%s12001_s17 + $0x1db0] sm:$0xff]  ;;  %v2574_v34 = vld [vmem:[%s12001_s17 + $0x1df8] sm:$0xff] }
 0x510   : > { %9052 = vmatpush1.bf16.msra.mxu1 %v10945_v19  ;;  %8725 = vmatprep.subr.bf16.mxu0 %v10952_v22  ;;  %v2529_v19 = vld [vmem:[%s12001_s17 + $0x1c90] sm:$0xff]  ;;  %v11040_v6 = vcombine.high %v2561_v37, %v2565_v59 }
 0x511   : > { %9053 = vmatprep.subr.bf16.mxu1 %v10954_v28  ;;  %v2533_v22 = vld [vmem:[%s12001_s17 + $0x1cb0] sm:$0xff]  ;;  %v2530_v28 = vld [vmem:[%s12001_s17 + $0x1c98] sm:$0xff] }
 0x512   : > { %v11008_v32 = vcombine.high %v2529_v19, %v2533_v22  ;;  %v11007_v35 = vcombine.low %v2529_v19, %v2533_v22  ;;  %v11009_v36 = vcombine.low %v2530_v28, %v2534_v27  ;;  %v2578_v19 = vld [vmem:[%s12001_s17 + $0x1e18] sm:$0xff] }
 0x513   : > { %8726 = vmatpush1.bf16.msra.mxu0 %v10951_v24  ;;  %v11001_v24 = vcombine.low %v2522_v20, %v2526_v52  ;;  %v11050_v52 = vcombine.high %v2570_v15, %v2574_v34  ;;  %v2582_v22 = vld [vmem:[%s12001_s17 + $0x1e38] sm:$0xff] }
 0x514   : > { %9054 = vmatpush1.bf16.msra.mxu1 %v10953_v31  ;;  %8727 = vmatprep.subr.bf16.mxu0 %v10960_v63  ;;  %v11010_v31 = vcombine.high %v2530_v28, %v2534_v27  ;;  %v2537_v63 = vld [vmem:[%s12001_s17 + $0x1cd0] sm:$0xff]  ;;  %v11049_v28 = vcombine.low %v2570_v15, %v2574_v34  ;;  %v13273_v15 = vld [vmem:[%s316_s11] sm:$0xff] }
 0x515   : > { %9055 = vmatprep.subr.bf16.mxu1 %v10962_v33  ;;  %v2538_v33 = vld [vmem:[%s12001_s17 + $0x1cd8] sm:$0xff] }
 0x517   : > { %8728 = vmatpush1.bf16.msra.mxu0 %v10959_v49  ;;  %v11016_v49 = vcombine.high %v2537_v63, %v2541_v2 }
 0x518   : > { %9056 = vmatpush1.bf16.msra.mxu1 %v10961_v46  ;;  %8729 = vmatprep.subr.bf16.mxu0 %v10968_v38  ;;  %v2549_v46 = vld [vmem:[%s12001_s17 + $0x1d30] sm:$0xff]  ;;  %v2546_v38 = vld [vmem:[%s12001_s17 + $0x1d18] sm:$0xff] }
 0x519   : > { %9057 = vmatprep.subr.bf16.mxu1 %v10970_v0  ;;  %v11015_v0 = vcombine.low %v2537_v63, %v2541_v2  ;;  %v11024_v3 = vcombine.high %v2545_v44, %v2549_v46  ;;  %v11025_v55 = vcombine.low %v2546_v38, %v2550_v58  ;;  %v2590_v63 = vld [vmem:[%s12001_s17 + $0x1e78] sm:$0xff] }
 0x51b   : > { %8730 = vmatpush1.bf16.msra.mxu0 %v10967_v42  ;;  %v11026_v42 = vcombine.high %v2546_v38, %v2550_v58 }
 0x51c   : > { %9058 = vmatpush1.bf16.msra.mxu1 %v10969_v47  ;;  %8731 = vmatprep.subr.bf16.mxu0 %v10976_v50  ;;  %v2557_v47 = vld [vmem:[%s12001_s17 + $0x1d70] sm:$0xff]  ;;  %v2554_v50 = vld [vmem:[%s12001_s17 + $0x1d58] sm:$0xff] }
 0x51d   : > { %9059 = vmatprep.subr.bf16.mxu1 %v10978_v54  ;;  %v11023_v54 = vcombine.low %v2545_v44, %v2549_v46  ;;  %v11032_v56 = vcombine.high %v2553_v12, %v2557_v47  ;;  %v11031_v41 = vcombine.low %v2553_v12, %v2557_v47  ;;  %v2598_v44 = vld [vmem:[%s12001_s17 + $0x1eb8] sm:$0xff] }
 0x51e   : > { %v2606_v12 = vld [vmem:[%s12001_s17 + $0x1ef8] sm:$0xff] }
 0x51f   : > { %8732 = vmatpush1.bf16.msra.mxu0 %v10975_v57  ;;  %v11034_v57 = vcombine.high %v2554_v50, %v2558_v51 }
 0x520   : > { %9060 = vmatpush1.bf16.msra.mxu1 %v10977_v9  ;;  %8733 = vmatprep.subr.bf16.mxu0 %v10984_v61  ;;  %v2562_v9 = vld [vmem:[%s12001_s17 + $0x1d98] sm:$0xff] }
 0x521   : > { %9061 = vmatprep.subr.bf16.mxu1 %v10986_v1  ;;  %v2566_v61 = vld [vmem:[%s12001_s17 + $0x1db8] sm:$0xff]  ;;  %v11033_v1 = vcombine.low %v2554_v50, %v2558_v51 }
 0x523   : > { %8734 = vmatpush1.bf16.msra.mxu0 %v10983_v48  ;;  %v11042_v48 = vcombine.high %v2562_v9, %v2566_v61 }
 0x524   : > { %9062 = vmatpush1.bf16.msra.mxu1 %v10985_v5  ;;  %8744 = vmatprep.subr.bf16.mxu0 %v10992_v43  ;;  %v2569_v5 = vld [vmem:[%s12001_s17 + $0x1dd0] sm:$0xff] }
 0x525   : > { %9072 = vmatprep.subr.bf16.mxu1 %v10994_v16  ;;  %v2573_v43 = vld [vmem:[%s12001_s17 + $0x1df0] sm:$0xff]  ;;  %v11039_v16 = vcombine.low %v2561_v37, %v2565_v59  ;;  %v2614_v37 = vld [vmem:[%s12001_s17 + $0x1f38] sm:$0xff] }
 0x526   : > { %8736 = vmatmul.mubr.bf16.vlgmr.msra.gmra.mrb[20].mxu0 %v12656_v14  ;;  %v11048_v20 = vcombine.high %v2569_v5, %v2573_v43 }
 0x527   : > { %9064 = vmatmul.mubr.bf16.vlgmr.msra.gmra.mrb[20].mxu1 %v12656_v14  ;;  %8745 = vmatpush1.bf16.msra.mxu0 %v10991_v17  ;;  %v2542_v14 = vld [vmem:[%s12001_s17 + $0x1cf8] sm:$0xff]  ;;  %v11041_v17 = vcombine.low %v2562_v9, %v2566_v61 }
 0x528   : > { %8776 = vmatprep.mubr.bf16.mxu0 %v12660_v62  ;;  %9073 = vmatpush1.bf16.msra.mxu1 %v10993_v21  ;;  %v11017_v18 = vcombine.low %v2538_v33, %v2542_v14  ;;  %v2577_v21 = vld [vmem:[%s12001_s17 + $0x1e10] sm:$0xff] }
 0x529   : > { %9104 = vmatprep.mubr.bf16.mxu1 %v12660_v62  ;;  %8746 = vmatprep.subr.bf16.mxu0 %v11000_v26  ;;  %v11018_v62 = vcombine.high %v2538_v33, %v2542_v14  ;;  %v2581_v26 = vld [vmem:[%s12001_s17 + $0x1e30] sm:$0xff]  ;;  %v11057_v33 = vcombine.low %v2578_v19, %v2582_v22 }
 0x52a   : > { %9074 = vmatprep.subr.bf16.mxu1 %v11002_v53  ;;  %v11047_v53 = vcombine.low %v2569_v5, %v2573_v43  ;;  %v11056_v27 = vcombine.high %v2577_v21, %v2581_v26  ;;  %v11055_v2 = vcombine.low %v2577_v21, %v2581_v26  ;;  %v2622_v5 = vld [vmem:[%s12001_s17 + $0x1f78] sm:$0xff] }
 0x52b   : > { %8747 = vmatpush1.bf16.msra.mxu0 %v10999_v30  ;;  %v11058_v30 = vcombine.high %v2578_v19, %v2582_v22  ;;  %v2626_v21 = vld [vmem:[%s12001_s17 + $0x1f98] sm:$0xff]  ;;  %v2648_v19 = vrot.slane %v13273_v15, %v12112_v25 }
 0x52c   : > { %9075 = vmatpush1.bf16.msra.mxu1 %v11001_v24  ;;  %8748 = vmatprep.subr.bf16.mxu0 %v11008_v32  ;;  %v2585_v24 = vld [vmem:[%s12001_s17 + $0x1e50] sm:$0xff]  ;;  %v2630_v26 = vld [vmem:[%s12001_s17 + $0x1fb8] sm:$0xff] }
 0x52d   : > { %9076 = vmatprep.subr.bf16.mxu1 %v11010_v31  ;;  %v2589_v32 = vld [vmem:[%s12001_s17 + $0x1e70] sm:$0xff]  ;;  %v2586_v31 = vld [vmem:[%s12001_s17 + $0x1e58] sm:$0xff] }
 0x52e   : > { %v11064_v14 = vcombine.high %v2585_v24, %v2589_v32  ;;  %v11063_v46 = vcombine.low %v2585_v24, %v2589_v32  ;;  %v11065_v38 = vcombine.low %v2586_v31, %v2590_v63  ;;  %v2633_v24 = vld [vmem:[%s12001_s17 + $0x1fd0] sm:$0xff] }
 0x52f   : > { %8749 = vmatpush1.bf16.msra.mxu0 %v11007_v35  ;;  %v11066_v35 = vcombine.high %v2586_v31, %v2590_v63  ;;  %v2637_v32 = vld [vmem:[%s12001_s17 + $0x1ff0] sm:$0xff]  ;;  %v2634_v31 = vld [vmem:[%s12001_s17 + $0x1fd8] sm:$0xff] }
 0x530   : > { %9077 = vmatpush1.bf16.msra.mxu1 %v11009_v36  ;;  %8750 = vmatprep.subr.bf16.mxu0 %v11016_v49  ;;  %v2593_v36 = vld [vmem:[%s12001_s17 + $0x1e90] sm:$0xff]  ;;  %v2638_v63 = vld [vmem:[%s12001_s17 + $0x1ff8] sm:$0xff] }
 0x531   : > { %9078 = vmatprep.subr.bf16.mxu1 %v11018_v62  ;;  %v2597_v49 = vld [vmem:[%s12001_s17 + $0x1eb0] sm:$0xff]  ;;  %v2594_v62 = vld [vmem:[%s12001_s17 + $0x1e98] sm:$0xff] }
 0x532   : > { %v11072_v58 = vcombine.high %v2593_v36, %v2597_v49  ;;  %v11071_v47 = vcombine.low %v2593_v36, %v2597_v49  ;;  %v11073_v50 = vcombine.low %v2594_v62, %v2598_v44  ;;  %v11111_v49 = vcombine.low %v2633_v24, %v2637_v32 }
 0x533   : > { %8751 = vmatpush1.bf16.msra.mxu0 %v11015_v0  ;;  %v11074_v0 = vcombine.high %v2594_v62, %v2598_v44  ;;  %v11469_v44 = vld [vmem:[%s13155_s20 + $0xc0] sm:$0xff]  }
 0x534   : > { %9079 = vmatpush1.bf16.msra.mxu1 %v11017_v18  ;;  %8752 = vmatprep.subr.bf16.mxu0 %v11024_v3  ;;  %v2601_v18 = vld [vmem:[%s12001_s17 + $0x1ed0] sm:$0xff] }
 0x535   : > { %9080 = vmatprep.subr.bf16.mxu1 %v11026_v42  ;;  %v2605_v3 = vld [vmem:[%s12001_s17 + $0x1ef0] sm:$0xff]  ;;  %v2602_v42 = vld [vmem:[%s12001_s17 + $0x1ed8] sm:$0xff] }
 0x536   : > { %v11080_v51 = vcombine.high %v2601_v18, %v2605_v3  ;;  %v11079_v59 = vcombine.low %v2601_v18, %v2605_v3  ;;  %v11081_v9 = vcombine.low %v2602_v42, %v2606_v12  ;;  %v11472_v18 = vld [vmem:[%s13155_s20 + $0x48] sm:$0xff]  }
 0x537   : > { %8753 = vmatpush1.bf16.msra.mxu0 %v11023_v54  ;;  %v11082_v54 = vcombine.high %v2602_v42, %v2606_v12  ;;  %v11473_v42 = vld [vmem:[%s13155_s20 + $0xc8] sm:$0xff]  }
 0x538   : > { %9081 = vmatpush1.bf16.msra.mxu1 %v11025_v55  ;;  %8754 = vmatprep.subr.bf16.mxu0 %v11032_v56  ;;  %v2609_v55 = vld [vmem:[%s12001_s17 + $0x1f10] sm:$0xff] }
 0x539   : > { %9082 = vmatprep.subr.bf16.mxu1 %v11034_v57  ;;  %v2613_v56 = vld [vmem:[%s12001_s17 + $0x1f30] sm:$0xff]  ;;  %v2610_v57 = vld [vmem:[%s12001_s17 + $0x1f18] sm:$0xff] }
 0x53a   : > { %v11088_v61 = vcombine.high %v2609_v55, %v2613_v56  ;;  %v11087_v43 = vcombine.low %v2609_v55, %v2613_v56  ;;  %v11089_v34 = vcombine.low %v2610_v57, %v2614_v37  ;;  %v11479_v55 = vld [vmem:[%s13155_s20 + $0x90] sm:$0xff]   ;;  %v11480_v56 = vld [vmem:[%s13155_s20 + $0x58] sm:$0xff]  }
 0x53b   : > { %8755 = vmatpush1.bf16.msra.mxu0 %v11031_v41  ;;  %v11090_v41 = vcombine.high %v2610_v57, %v2614_v37  ;;  %v11481_v57 = vld [vmem:[%s13155_s20 + $0xd8] sm:$0xff]  }
 0x53c   : > { %9083 = vmatpush1.bf16.msra.mxu1 %v11033_v1  ;;  %8756 = vmatprep.subr.bf16.mxu0 %v11040_v6  ;;  %v2617_v1 = vld [vmem:[%s12001_s17 + $0x1f50] sm:$0xff]  ;;  %v11482_v37 = vld [vmem:[%s13155_s20 + $0x18] sm:$0xff]  }
 0x53d   : > { %9084 = vmatprep.subr.bf16.mxu1 %v11042_v48  ;;  %v2621_v6 = vld [vmem:[%s12001_s17 + $0x1f70] sm:$0xff]  ;;  %v2618_v48 = vld [vmem:[%s12001_s17 + $0x1f58] sm:$0xff] }
 0x53e   : > { %v11095_v22 = vcombine.low %v2617_v1, %v2621_v6 }
 0x53f   : > { %8757 = vmatpush1.bf16.msra.mxu0 %v11039_v16  ;;  %v11096_v16 = vcombine.high %v2617_v1, %v2621_v6  ;;  %v11487_v1 = vld [vmem:[%s13155_s20 + $0xa0] sm:$0xff]   ;;  %v11488_v6 = vld [vmem:[%s13155_s20 + $0x68] sm:$0xff]  }
 0x540   : > { %9085 = vmatpush1.bf16.msra.mxu1 %v11041_v17  ;;  %8758 = vmatprep.subr.bf16.mxu0 %v11048_v20  ;;  %v11098_v17 = vcombine.high %v2618_v48, %v2622_v5  ;;  %v2625_v20 = vld [vmem:[%s12001_s17 + $0x1f90] sm:$0xff] }
 0x541   : > { %9086 = vmatprep.subr.bf16.mxu1 %v11050_v52  ;;  %v2629_v52 = vld [vmem:[%s12001_s17 + $0x1fb0] sm:$0xff] }
 0x543   : > { %8759 = vmatpush1.bf16.msra.mxu0 %v11047_v53  ;;  %v2656_v53 = vrot.slane %v13273_v15, %v12119_v29  ;;  %v11105_v29 = vcombine.low %v2626_v21, %v2630_v26 }
 0x544   : > { %9087 = vmatpush1.bf16.msra.mxu1 %v11049_v28  ;;  %8760 = vmatprep.subr.bf16.mxu0 %v11056_v27  ;;  %v11097_v28 = vcombine.low %v2618_v48, %v2622_v5  ;;  %v11104_v27 = vcombine.high %v2625_v20, %v2629_v52  ;;  %v2644_v48 = vrot.slane %v13273_v15, %v12107_v23  ;;  %v11489_v5 = vld [vmem:[%s13155_s20 + $0xe8] sm:$0xff]  }
 0x545   : > { %9088 = vmatprep.subr.bf16.mxu1 %v11058_v30  ;;  %v11106_v30 = vcombine.high %v2626_v21, %v2630_v26  ;;  %v11275_v25 = vadd.f32 %v12971_v7, %v2656_v53  ;;  %v11468_v7 = vld [vmem:[%s13155_s20 + $0x40] sm:$0xff]   ;;  %v11494_v21 = vld [vmem:[%s13155_s20 + $0x30] sm:$0xff]   ;;  %v11496_v26 = vld [vmem:[%s13155_s20 + $0x78] sm:$0xff]  }
 0x546   : > { %v11499_v53 = vld [vmem:[%s13155_s20 + $0xb8] sm:$0xff]  }
 0x547   : > { %8761 = vmatpush1.bf16.msra.mxu0 %v11055_v2  ;;  %v11273_v2 = vadd.f32 %v12967_v4, %v2648_v19  ;;  %v9124_v62 = vmul.f32 0.2, %v11275_v25  ;;  %v11113_v4 = vcombine.low %v2634_v31, %v2638_v63  ;;  %vm9116_vm1 = vcmp.gt.f32.partialorder %v11275_v25, 0.0 }
 0x548   : > { %9089 = vmatpush1.bf16.msra.mxu1 %v11057_v33  ;;  %8762 = vmatprep.subr.bf16.mxu0 %v11064_v14  ;;  %v11103_v33 = vcombine.low %v2625_v20, %v2629_v52  ;;  %v11112_v14 = vcombine.high %v2633_v24, %v2637_v32  ;;  %v11272_v20 = vadd.f32 %v12961_v60, %v2644_v48  ;;  %v11493_v52 = vld [vmem:[%s13155_s20 + $0xf0] sm:$0xff]   ;;  %v11502_v32 = vld [vmem:[%s13155_s20 + $0x100] sm:$0xff]  }
 0x549   : > { %9090 = vmatprep.subr.bf16.mxu1 %v11066_v35  ;;  %v11114_v35 = vcombine.high %v2634_v31, %v2638_v63  ;;  %v9122_v36 = vmul.f32 0.2, %v11273_v2  ;;  %vm9114_vm0 = vcmp.gt.f32.partialorder %v11273_v2, 0.0  ;;  %v11503_v63 = vld [vmem:[%s13155_s20 + $0x180] sm:$0xff]  }
 0x54a   : > { %v9121_v19 = vmul.f32 0.2, %v11272_v20  ;;  %vm9113_vm2 = vcmp.gt.f32.partialorder %v11272_v20, 0.0 }
 0x54b   : > { %8763 = vmatpush1.bf16.msra.mxu0 %v11063_v46  ;;  %v11470_v46 = vld [vmem:[%s13155_s20] sm:$0xff]  }
 0x54c   : > { %9091 = vmatpush1.bf16.msra.mxu1 %v11065_v38  ;;  %8764 = vmatprep.subr.bf16.mxu0 %v11072_v58  ;;  %v9130_v38 = vsel %vm9114_vm0, %v11273_v2, %v9122_v36  ;;  %v11471_v58 = vld [vmem:[%s13155_s20 + $0x80] sm:$0xff]   ;;  %v11504_v2 = vld [vmem:[%s13155_s20 + $0x148] sm:$0xff]   ;;  %v11509_v36 = vld [vmem:[%s13155_s20 + $0x1d0] sm:$0xff]  }
 0x54d   : > { %9092 = vmatprep.subr.bf16.mxu1 %v11074_v0  ;;  %v9132_v0 = vsel %vm9116_vm1, %v11275_v25, %v9124_v62  ;;  %v9138_v3 = vpack.c.bf16 %v9130_v38, %v9130_v38  ;;  %v11505_v25 = vld [vmem:[%s13155_s20 + $0x1c8] sm:$0xff]   ;;  %v11511_v62 = vld [vmem:[%s13155_s20 + $0x190] sm:$0xff]   ;;  %v11516_v38 = vld [vmem:[%s13155_s20 + $0x160] sm:$0xff]  }
 0x54e   : > { %v9140_v12 = vpack.c.bf16 %v9132_v0, %v9132_v0  ;;  %v11518_v0 = vld [vmem:[%s13155_s20 + $0x120] sm:$0xff]  }
 0x54f   : > { %8765 = vmatpush1.bf16.msra.mxu0 %v11071_v47  ;;  %v11474_v47 = vld [vmem:[%s13155_s20 + $0x8] sm:$0xff]  }
 0x550   : > { %9093 = vmatpush1.bf16.msra.mxu1 %v11073_v50  ;;  %8766 = vmatprep.subr.bf16.mxu0 %v11080_v51  ;;  %v11475_v50 = vld [vmem:[%s13155_s20 + $0x88] sm:$0xff]   ;;  %v11476_v51 = vld [vmem:[%s13155_s20 + $0x50] sm:$0xff]  }
 0x551   : > { %9094 = vmatprep.subr.bf16.mxu1 %v11082_v54  ;;  %v11477_v54 = vld [vmem:[%s13155_s20 + $0xd0] sm:$0xff]  }
 0x553   : > { %8767 = vmatpush1.bf16.msra.mxu0 %v11079_v59  ;;  %v11483_v59 = vld [vmem:[%s13155_s20 + $0x98] sm:$0xff]  }
 0x554   : > { %9095 = vmatpush1.bf16.msra.mxu1 %v11081_v9  ;;  %8768 = vmatprep.subr.bf16.mxu0 %v11088_v61  ;;  %v11484_v9 = vld [vmem:[%s13155_s20 + $0x60] sm:$0xff]  }
 0x555   : > { %9096 = vmatprep.subr.bf16.mxu1 %v11090_v41  ;;  %v11485_v61 = vld [vmem:[%s13155_s20 + $0xe0] sm:$0xff]  }
 0x556   : > { %v11486_v41 = vld [vmem:[%s13155_s20 + $0x20] sm:$0xff]  }
 0x557   : > { %8769 = vmatpush1.bf16.msra.mxu0 %v11087_v43  ;;  %v2652_v43 = vrot.slane %v13273_v15, %v12198_v40  ;;  %v11495_v40 = vld [vmem:[%s13155_s20 + $0xb0] sm:$0xff]  }
 0x558   : > { %9097 = vmatpush1.bf16.msra.mxu1 %v11089_v34  ;;  %8770 = vmatprep.subr.bf16.mxu0 %v11096_v16  ;;  %v11490_v34 = vld [vmem:[%s13155_s20 + $0x28] sm:$0xff]  }
 0x559   : > { %9098 = vmatprep.subr.bf16.mxu1 %v11098_v17  ;;  %v11491_v16 = vld [vmem:[%s13155_s20 + $0xa8] sm:$0xff]   ;;  %v11492_v17 = vld [vmem:[%s13155_s20 + $0x70] sm:$0xff]   ;;  %v11274_v23 = vadd.f32 %v12965_v13, %v2652_v43  ;;  %v11498_v13 = vld [vmem:[%s13155_s20 + $0x38] sm:$0xff]  }
 0x55b   : > { %8771 = vmatpush1.bf16.msra.mxu0 %v11095_v22  ;;  %v11497_v22 = vld [vmem:[%s13155_s20 + $0xf8] sm:$0xff]   ;;  %v9123_v60 = vmul.f32 0.2, %v11274_v23  ;;  %vm9115_vm3 = vcmp.gt.f32.partialorder %v11274_v23, 0.0 }
 0x55c   : > { %9099 = vmatpush1.bf16.msra.mxu1 %v11097_v28  ;;  %8772 = vmatprep.subr.bf16.mxu0 %v11104_v27  ;;  %v11500_v28 = vld [vmem:[%s13155_s20 + $0x140] sm:$0xff]   ;;  %v9129_v27 = vsel %vm9113_vm2, %v11272_v20, %v9121_v19 }
 0x55d   : > { %9100 = vmatprep.subr.bf16.mxu1 %v11106_v30  ;;  %v11501_v30 = vld [vmem:[%s13155_s20 + $0x1c0] sm:$0xff]   ;;  %v9131_v24 = vsel %vm9115_vm3, %v11274_v23, %v9123_v60  ;;  %v9137_v31 = vpack.c.bf16 %v9129_v27, %v9129_v27 }
 0x55f   : > { %8773 = vmatpush1.bf16.msra.mxu0 %v11103_v33  ;;  %v9139_v33 = vpack.c.bf16 %v9131_v24, %v9131_v24 }
 0x560   : > { %9101 = vmatpush1.bf16.msra.mxu1 %v11105_v29  ;;  %8774 = vmatprep.subr.bf16.mxu0 %v11112_v14  ;;  %v11506_v29 = vld [vmem:[%s13155_s20 + $0x108] sm:$0xff]  }
 0x561   : > { %9102 = vmatprep.subr.bf16.mxu1 %v11114_v35  ;;  %v11507_v14 = vld [vmem:[%s13155_s20 + $0x188] sm:$0xff]   ;;  %v11508_v35 = vld [vmem:[%s13155_s20 + $0x150] sm:$0xff]  }
 0x563   : > { %8775 = vmatpush1.bf16.msra.mxu0 %v11111_v49  ;;  %v11510_v49 = vld [vmem:[%s13155_s20 + $0x110] sm:$0xff]  }
 0x564   : > { %9103 = vmatpush1.bf16.msra.mxu1 %v11113_v4  ;;  %11184 = vmatprep.subr.bf16.mxu0 %v11468_v7  ;;  %v11512_v4 = vld [vmem:[%s13155_s20 + $0x158] sm:$0xff]  }
 0x565   : > { %11206 = vmatprep.subr.bf16.mxu1 %v11469_v44  ;;  %v11513_v7 = vld [vmem:[%s13155_s20 + $0x1d8] sm:$0xff]  }
 0x566   : > { %8777 = vmatmul.mubr.bf16.vlgmr.msra.gmra.mrb[20].mxu0 %v12731_v10  ;;  %v11514_v44 = vld [vmem:[%s13155_s20 + $0x118] sm:$0xff]  }
 0x567   : > { %9105 = vmatmul.mubr.bf16.vlgmr.msra.gmra.mrb[20].mxu1 %v12731_v10  ;;  %11185 = vmatpush3.bf16.msra.mxu0 %v11470_v46  ;;  %v11478_v10 = vld [vmem:[%s13155_s20 + $0x10] sm:$0xff]   ;;  %v11515_v46 = vld [vmem:[%s13155_s20 + $0x198] sm:$0xff]  }
 0x568   : > { %9689 = vmatprep.mubr.bf16.mxu0 %v9138_v3  ;;  %11207 = vmatpush3.bf16.msra.mxu1 %v11471_v58  ;;  %v11517_v58 = vld [vmem:[%s13155_s20 + $0x1e0] sm:$0xff]   ;;  %v11520_v3 = vld [vmem:[%s13155_s20 + $0x168] sm:$0xff]  }
 0x569   : > { %9729 = vmatprep.mubr.bf16.mxu1 %v9140_v12  ;;  %11186 = vmatprep.subr.bf16.mxu0 %v11472_v18  ;;  %v11519_v18 = vld [vmem:[%s13155_s20 + $0x1a0] sm:$0xff]   ;;  %v11522_v12 = vld [vmem:[%s13155_s20 + $0x128] sm:$0xff]  }
 0x56a   : > { %11208 = vmatprep.subr.bf16.mxu1 %v11473_v42  ;;  %v11521_v42 = vld [vmem:[%s13155_s20 + $0x1e8] sm:$0xff]  }
 0x56b   : > { %11187 = vmatpush3.bf16.msra.mxu0 %v11474_v47  ;;  %v11523_v47 = vld [vmem:[%s13155_s20 + $0x1a8] sm:$0xff]  }
 0x56c   : > { %11209 = vmatpush3.bf16.msra.mxu1 %v11475_v50  ;;  %11188 = vmatprep.subr.bf16.mxu0 %v11476_v51  ;;  %v11524_v50 = vld [vmem:[%s13155_s20 + $0x170] sm:$0xff]  }
 0x56d   : > { %11210 = vmatprep.subr.bf16.mxu1 %v11477_v54  ;;  %v11525_v51 = vld [vmem:[%s13155_s20 + $0x1f0] sm:$0xff]  }
 0x56e   : > { %v11526_v54 = vld [vmem:[%s13155_s20 + $0x130] sm:$0xff]  }
 0x56f   : > { %11189 = vmatpush3.bf16.msra.mxu0 %v11478_v10  ;;  %v11527_v10 = vld [vmem:[%s13155_s20 + $0x1b0] sm:$0xff]  }
 0x570   : > { %11211 = vmatpush3.bf16.msra.mxu1 %v11479_v55  ;;  %11190 = vmatprep.subr.bf16.mxu0 %v11480_v56  ;;  %v11528_v55 = vld [vmem:[%s13155_s20 + $0x178] sm:$0xff]  }
 0x571   : > { %11212 = vmatprep.subr.bf16.mxu1 %v11481_v57  ;;  %v11529_v56 = vld [vmem:[%s13155_s20 + $0x1f8] sm:$0xff]  }
 0x572   : > { %v11530_v57 = vld [vmem:[%s13155_s20 + $0x138] sm:$0xff]  }
 0x573   : > { %11191 = vmatpush3.bf16.msra.mxu0 %v11482_v37  ;;  %v11531_v37 = vld [vmem:[%s13155_s20 + $0x1b8] sm:$0xff]  }
 0x574   : > { %11213 = vmatpush3.bf16.msra.mxu1 %v11483_v59  ;;  %11192 = vmatprep.subr.bf16.mxu0 %v11484_v9  ;;  %v2660_v59 = vrot.slane %v13273_v15, %v12272_v39  ;;  %v2668_v9 = vrot.slane %v13273_v15, %v12284_v8 }
 0x575   : > { %11214 = vmatprep.subr.bf16.mxu1 %v11485_v61  ;;  %v2664_v61 = vrot.slane %v13273_v15, %v12204_v45 }
 0x577   : > { %11193 = vmatpush3.bf16.msra.mxu0 %v11486_v41  ;;  %v2672_v41 = vrot.slane %v13273_v15, %v12292_v11 }
 0x578   : > { %11215 = vmatpush3.bf16.msra.mxu1 %v11487_v1  ;;  %11194 = vmatprep.subr.bf16.mxu0 %v11488_v6 }
 0x579   : > { %11216 = vmatprep.subr.bf16.mxu1 %v11489_v5 }
 0x57b   : > { %11195 = vmatpush3.bf16.msra.mxu0 %v11490_v34 }
 0x57c   : > { %11217 = vmatpush3.bf16.msra.mxu1 %v11491_v16  ;;  %11196 = vmatprep.subr.bf16.mxu0 %v11492_v17 }
 0x57d   : > { %11218 = vmatprep.subr.bf16.mxu1 %v11493_v52 }
 0x57f   : > { %11197 = vmatpush3.bf16.msra.mxu0 %v11494_v21 }
 0x580   : > { %11219 = vmatpush3.bf16.msra.mxu1 %v11495_v40  ;;  %11198 = vmatprep.subr.bf16.mxu0 %v11496_v26 }
 0x581   : > { %11220 = vmatprep.subr.bf16.mxu1 %v11497_v22 }
 0x583   : > { %11199 = vmatpush3.bf16.msra.mxu0 %v11498_v13 }
 0x584   : > { %11221 = vmatpush3.bf16.msra.mxu1 %v11499_v53  ;;  %11228 = vmatprep.subr.bf16.mxu0 %v11500_v28 }
 0x585   : > { %11250 = vmatprep.subr.bf16.mxu1 %v11501_v30 }
 0x586   : > { %9690 = vmatmul.mubr.bf16.vlgmr.msra.gmra.mrb[24].mxu0 %v9137_v31 }
 0x587   : > { %9730 = vmatmul.mubr.bf16.vlgmr.msra.gmra.mrb[24].mxu1 %v9139_v33  ;;  %11229 = vmatpush3.bf16.msra.mxu0 %v11502_v32 }
 0x588   : > { %11251 = vmatpush3.bf16.msra.mxu1 %v11503_v63  ;;  %11230 = vmatprep.subr.bf16.mxu0 %v11504_v2 }
 0x589   : > { %11252 = vmatprep.subr.bf16.mxu1 %v11505_v25 }
 0x58b   : > { %11231 = vmatpush3.bf16.msra.mxu0 %v11506_v29 }
 0x58c   : > { %11253 = vmatpush3.bf16.msra.mxu1 %v11507_v14  ;;  %11232 = vmatprep.subr.bf16.mxu0 %v11508_v35 }
 0x58d   : > { %11254 = vmatprep.subr.bf16.mxu1 %v11509_v36 }
 0x58f   : > { %11233 = vmatpush3.bf16.msra.mxu0 %v11510_v49 }
 0x590   : > { %11255 = vmatpush3.bf16.msra.mxu1 %v11511_v62  ;;  %11234 = vmatprep.subr.bf16.mxu0 %v11512_v4 }
 0x591   : > { %11256 = vmatprep.subr.bf16.mxu1 %v11513_v7 }
 0x593   : > { %11235 = vmatpush3.bf16.msra.mxu0 %v11514_v44 }
 0x594   : > { %11257 = vmatpush3.bf16.msra.mxu1 %v11515_v46  ;;  %11236 = vmatprep.subr.bf16.mxu0 %v11516_v38 }
 0x595   : > { %11258 = vmatprep.subr.bf16.mxu1 %v11517_v58 }
 0x597   : > { %11237 = vmatpush3.bf16.msra.mxu0 %v11518_v0 }
 0x598   : > { %11259 = vmatpush3.bf16.msra.mxu1 %v11519_v18  ;;  %11238 = vmatprep.subr.bf16.mxu0 %v11520_v3 }
 0x599   : > { %11260 = vmatprep.subr.bf16.mxu1 %v11521_v42 }
 0x59b   : > { %11239 = vmatpush3.bf16.msra.mxu0 %v11522_v12 }
 0x59c   : > { %11261 = vmatpush3.bf16.msra.mxu1 %v11523_v47  ;;  %11240 = vmatprep.subr.bf16.mxu0 %v11524_v50 }
 0x59d   : > { %11262 = vmatprep.subr.bf16.mxu1 %v11525_v51 }
 0x59f   : > { %11241 = vmatpush3.bf16.msra.mxu0 %v11526_v54 }
 0x5a0   : > { %11263 = vmatpush3.bf16.msra.mxu1 %v11527_v10  ;;  %11242 = vmatprep.subr.bf16.mxu0 %v11528_v55 }
 0x5a1   : > { %11264 = vmatprep.subr.bf16.mxu1 %v11529_v56 }
 0x5a3   : > { %11243 = vmatpush3.bf16.msra.mxu0 %v11530_v57 }
 0x5a4   : > { %11265 = vmatpush3.bf16.msra.mxu1 %v11531_v37 }
 0x639   : > { %v8778_v1 = vpop.f32.mrb[20].mxu0 }
 0x63a   : > { %v11276_v6 = vadd.f32 %v8778_v1, %v2660_v59  ;;  %v9106_v48 = vpop.f32.mrb[20].mxu1  ;;  %v8780_v5 = vpop.f32.mrb[21].mxu0 }
 0x63b   : > { %v11278_v43 = vadd.f32 %v9106_v48, %v2668_v9  ;;  %v11277_v34 = vadd.f32 %v8780_v5, %v2664_v61  ;;  %v9108_v16 = vpop.f32.mrb[21].mxu1  ;;  %v8782_v17 = vpop.f32.mrb[22].mxu0 }
 0x63c   : > { %vm9117_vm4 = vcmp.gt.f32.partialorder %v11276_v6, 0.0  ;;  %v9125_v20 = vmul.f32 0.2, %v11276_v6  ;;  %v11279_v39 = vadd.f32 %v9108_v16, %v2672_v41  ;;  %v9110_v52 = vpop.f32.mrb[22].mxu1  ;;  %v8783_v23 = vpop.f32.mrb[23].mxu0 }
 0x63d   : > { %vm9119_vm5 = vcmp.gt.f32.partialorder %v11278_v43, 0.0  ;;  %v9127_v8 = vmul.f32 0.2, %v11278_v43  ;;  %vm9118_vm6 = vcmp.gt.f32.partialorder %v11277_v34, 0.0  ;;  %v9126_v45 = vmul.f32 0.2, %v11277_v34 }
 0x63e   : > { %v9133_v21 = vsel %vm9117_vm4, %v11276_v6, %v9125_v20  ;;  %vm9120_vm7 = vcmp.gt.f32.partialorder %v11279_v39, 0.0  ;;  %v9128_v11 = vmul.f32 0.2, %v11279_v39  ;;  %v9111_v15 = vpop.f32.mrb[23].mxu1 }
 0x63f   : > { %v9135_v40 = vsel %vm9119_vm5, %v11278_v43, %v9127_v8  ;;  %v9134_v26 = vsel %vm9118_vm6, %v11277_v34, %v9126_v45  ;;  %v9141_v60 = vpack.c.bf16 %v9133_v21, %v9133_v21 }
 0x640   : > { %v9142_v19 = vpack.c.bf16 %v9134_v26, %v9134_v26  ;;  %v9136_v22 = vsel %vm9120_vm7, %v11279_v39, %v9128_v11  ;;  %v9143_v53 = vpack.c.bf16 %v9135_v40, %v9135_v40 }
 0x641   : > { %v9144_v13 = vpack.c.bf16 %v9136_v22, %v9136_v22 }
 0x642   : > { %9769 = vmatprep.mubr.bf16.mxu0 %v9142_v19 }
 0x643   : > { %9809 = vmatprep.mubr.bf16.mxu1 %v9144_v13  ;;  %9770 = vmatmul.mubr.bf16.vlgmr.msra.gmra.mrb[28].mxu0 %v9141_v60 }
 0x644   : > { %9810 = vmatmul.mubr.bf16.vlgmr.msra.gmra.mrb[28].mxu1 %v9143_v53 }
 0x659   : > { %v11200_v28 = vpop.f32.mrb[24].mxu0 }
 0x65a   : > { %v11222_v27 = vpop.f32.mrb[24].mxu1  ;;  %v11201_v30 = vpop.f32.mrb[25].mxu0 }
 0x65b   : > { %v11202_v24 = vadd.f32 %v11201_v30, %v11200_v28  ;;  %v11223_v32 = vpop.f32.mrb[25].mxu1  ;;  %v11203_v31 = vpop.f32.mrb[26].mxu0 }
 0x65c   : > { %v11224_v63 = vadd.f32 %v11223_v32, %v11222_v27  ;;  %v11225_v2 = vpop.f32.mrb[26].mxu1  ;;  %v11204_v33 = vpop.f32.mrb[27].mxu0 }
 0x65d   : > { %v11226_v25 = vpop.f32.mrb[27].mxu1 }
 0x65e   : > { %v9732_v29 = vadd.f32 %v11224_v63, %v11202_v24 }
 0x716   : > { %v11244_v14 = vpop.f32.mrb[28].mxu0 }
 0x717   : > { %v11266_v35 = vpop.f32.mrb[28].mxu1  ;;  %v11245_v36 = vpop.f32.mrb[29].mxu0 }
 0x718   : > { %v11246_v49 = vadd.f32 %v11245_v36, %v11244_v14  ;;  %v11267_v62 = vpop.f32.mrb[29].mxu1  ;;  %v11247_v4 = vpop.f32.mrb[30].mxu0 }
 0x719   : > { %v11268_v7 = vadd.f32 %v11267_v62, %v11266_v35  ;;  %v11269_v44 = vpop.f32.mrb[30].mxu1  ;;  %v11248_v46 = vpop.f32.mrb[31].mxu0 }
 0x71a   : > { %v9772_v38 = vadd.f32 %v11246_v49, %v9732_v29  ;;  %v11270_v58 = vpop.f32.mrb[31].mxu1 }
 0x71c   : > { %v9812_v0 = vadd.f32 %v11268_v7, %v9772_v38 }
 0x71e   : > { %9817 = vst [vmem:[%s368_s28] sm:$0xff] %v9812_v0 }
 0x71f PF: > { %s13429_s15 = sld [smem:[#allocation12_spill]]  ;;  %s13430_s23 = sld [smem:[#allocation13_spill]] }
 0x720   : > { %p15_p4 = scmp.ge.s32.totalorder %s11792_s26, 4   ;;  %s13431_s21 = smov %s11714_s22 }
 0x721   : > { %s13433_s24 = smov %s11792_s26 }
 0x722   :  { %17 = sbr.rel (!%p15_p4) target bundleno = 5 (0x5), region = 113 }
 0x725   : > { %s13432_s22 = smov %s13429_s15 }
 0x729   :  { %9837 = vsyncpa [#allocation3], 1 }
 0x72a   :  { %9839 = vsyncpa [#allocation3 + $0x1], 1 }
 0x72b   :  { %9840 = vsyncpa [#allocation5], 1 }

</bundles_post_ra>
